<compile_context>
chip_gen: v7x
topology: tpu7x:2x2x1
jax: 0.10.0
libtpu: 0.0.40
codegen_flags: <defaults>
</compile_context>

<pallas_src>
import jax
import jax.numpy as jnp
from jax.experimental import pallas as pl
from jax.experimental.pallas import tpu as pltpu


def _round_up(v, m):
    return -(-v // m) * m


def _pick_steps(n):
    # >=2 grid steps keep both v7x TensorCores busy ("parallel" axis); cap the
    # per-step batch block so VMEM stays tiny on every generation.
    lo = 2 if n >= 2 else 1
    for s in range(lo, n + 1):
        if n % s == 0 and n // s <= 16:
            return s
    return n


def encoder_decoder_forward(x_nchw, p):
    """x_nchw: (N, Cin, H, W) f32.  p: dict of HWIO weights (see __main__)."""
    x = jnp.transpose(x_nchw, (0, 2, 3, 1)).astype(jnp.float32)   # NCHW -> NHWC
    N, H, W, Cin = x.shape
    C1 = p["w1"].shape[-1]            # 128
    C2 = p["w2"].shape[-1]            # 64
    Cout = p["tw2"].shape[-1]         # n_out_chs
    assert H % 4 == 0 and W % 4 == 0, "spatial dims must be divisible by 4"
    H1, W1 = H // 2, W // 2           # after pool1
    H2, W2 = H // 4, W // 4           # after pool2
    M2 = H2 * W2                      # rows per tconv1 tap
    CP = _round_up(Cout, 32)          # pad final channels so 4*CP % 128 == 0
    C2P = _round_up(C2, 128)          # lane-dense conv2 output / tconv1 K
    K1 = 9 * Cin
    K1P = _round_up(K1, 128)          # lane-dense conv1 im2col K
    bf = jnp.bfloat16

    num_steps = _pick_steps(N)
    Bb = N // num_steps               # batch elements folded into each step
    Hh = H1 + 2                       # per-batch rows in conv2 halo scratch

    # ---- wrapper-side conv1 im2col (tiny, replaces in-kernel halo) ---------
    xpad = jnp.pad(x, ((0, 0), (1, 1), (1, 1), (0, 0)))
    patches1 = jnp.concatenate(
        [xpad[:, kh:kh + H, kw:kw + W, :] for kh in range(3) for kw in range(3)],
        axis=-1).reshape(N, H * W, K1)
    patches1 = jnp.pad(patches1, ((0, 0), (0, 0), (0, K1P - K1))).astype(bf)

    # ---- wrapper-side weight prep (tiny, one XLA pass over <1 MB) ----------
    w1 = jnp.pad(p["w1"].reshape(K1, C1), ((0, K1P - K1), (0, 0))).astype(bf)
    b1 = p["b1"].reshape(1, C1).astype(jnp.float32)
    w2 = jnp.pad(p["w2"].reshape(9 * C1, C2), ((0, 0), (0, C2P - C2))).astype(bf)
    b2 = jnp.pad(p["b2"], (0, C2P - C2)).reshape(1, C2P).astype(jnp.float32)
    # tconv1: pack the 4 (kh,kw) taps along lanes, input channels padded to C2P.
    tw1p = jnp.pad(p["tw1"], ((0, 0), (0, 0), (0, C2P - C2), (0, 0)))
    tw1c = jnp.transpose(tw1p, (2, 0, 1, 3)).reshape(C2P, 4 * C1).astype(bf)
    tb1c = jnp.tile(p["tb1"], 4).reshape(1, 4 * C1).astype(jnp.float32)
    # tconv2: pack the 4 (a,b) taps along lanes, channels padded to CP.
    tw2p = jnp.pad(p["tw2"], ((0, 0), (0, 0), (0, 0), (0, CP - Cout)))
    tw2c = jnp.transpose(tw2p, (2, 0, 1, 3)).reshape(C1, 4 * CP).astype(bf)
    tb2c = jnp.tile(jnp.pad(p["tb2"], (0, CP - Cout)), 4).reshape(1, 4 * CP)
    tb2c = tb2c.astype(jnp.float32)

    def kernel(p1_ref, w1_ref, b1_ref, w2_ref, b2_ref, tw1_ref, tb1_ref,
               tw2_ref, tb2_ref, o_ref, xp2, p2sc, usc):
        # ---------- conv1: single im2col matmul + ReLU + 2x2 maxpool ---------
        acc = jnp.dot(p1_ref[...].reshape(Bb * H * W, K1P), w1_ref[...],
                      preferred_element_type=jnp.float32)       # (Bb*H*W, C1)
        acc = jnp.maximum(acc + b1_ref[...], 0.0)
        y = jnp.max(acc.reshape(Bb * H, W1, 2, C1), axis=2)
        y = jnp.max(y.reshape(Bb * H1, 2, W1, C1), axis=1)      # (Bb*H1, W1, C1)

        # ---------- conv2: halo + direct im2col slabs + matmul + pool --------
        # Border-only halo zeroing (per step: safe under megacore splitting).
        xp2[:, 0:1, :] = jnp.zeros((Bb * Hh, 1, C1), bf)
        xp2[:, W1 + 1:W1 + 2, :] = jnp.zeros((Bb * Hh, 1, C1), bf)
        for b in range(Bb):
            r0 = b * Hh
            xp2[r0:r0 + 1, :, :] = jnp.zeros((1, W1 + 2, C1), bf)
            xp2[r0 + H1 + 1:r0 + H1 + 2, :, :] = jnp.zeros((1, W1 + 2, C1), bf)
            xp2[r0 + 1:r0 + 1 + H1, 1:W1 + 1, :] = (
                y[b * H1:(b + 1) * H1].astype(bf))
        for b in range(Bb):
            r0 = b * Hh
            for kh in range(3):
                for kw in range(3):
                    k = kh * 3 + kw
                    p2sc[b * H1 * W1:(b + 1) * H1 * W1,
                         k * C1:(k + 1) * C1] = (
                        xp2[r0 + kh:r0 + kh + H1, kw:kw + W1, :]
                        .reshape(H1 * W1, C1))
        acc2 = jnp.dot(p2sc[...], w2_ref[...],
                       preferred_element_type=jnp.float32)      # (Bb*H1*W1, C2P)
        acc2 = jnp.maximum(acc2 + b2_ref[...], 0.0)
        y2 = jnp.max(acc2.reshape(Bb * H1, W2, 2, C2P), axis=2)
        y2 = jnp.max(y2.reshape(Bb * H2, 2, W2, C2P), axis=1)   # (Bb*H2, W2, C2P)

        # ---------- t_conv1: one merged matmul, taps packed along lanes ------
        hf = y2.reshape(Bb * M2, C2P).astype(bf)
        t = jnp.dot(hf, tw1_ref[...], preferred_element_type=jnp.float32)
        t = jnp.maximum(t + tb1_ref[...], 0.0)                  # (Bb*M2, 4*C1)
        for tap in range(4):                                    # row-slab layout
            usc[tap * Bb * M2:(tap + 1) * Bb * M2, :] = (
                t[:, tap * C1:(tap + 1) * C1].astype(bf))

        # ---------- t_conv2 (taps packed along lanes) + stable sigmoid -------
        z = jnp.dot(usc[...], tw2_ref[...],
                    preferred_element_type=jnp.float32) + tb2_ref[...]
        e = jnp.exp(-jnp.abs(z))                                # EUP
        r = pl.reciprocal(1.0 + e, approx=True)                 # EUP
        o_ref[0] = jnp.where(z >= 0.0, r, e * r).astype(o_ref.dtype)

    out_k = pl.pallas_call(
        kernel,
        out_shape=jax.ShapeDtypeStruct((num_steps, 4 * Bb * M2, 4 * CP), bf),
        grid=(num_steps,),
        in_specs=[
            pl.BlockSpec((Bb, H * W, K1P), lambda s: (s, 0, 0)),
            pl.BlockSpec((K1P, C1), lambda s: (0, 0)),
            pl.BlockSpec((1, C1), lambda s: (0, 0)),
            pl.BlockSpec((9 * C1, C2P), lambda s: (0, 0)),
            pl.BlockSpec((1, C2P), lambda s: (0, 0)),
            pl.BlockSpec((C2P, 4 * C1), lambda s: (0, 0)),
            pl.BlockSpec((1, 4 * C1), lambda s: (0, 0)),
            pl.BlockSpec((C1, 4 * CP), lambda s: (0, 0)),
            pl.BlockSpec((1, 4 * CP), lambda s: (0, 0)),
        ],
        out_specs=pl.BlockSpec((1, 4 * Bb * M2, 4 * CP), lambda s: (s, 0, 0)),
        scratch_shapes=[
            pltpu.VMEM((Bb * Hh, W1 + 2, C1), bf),      # conv2 halo (bf16)
            pltpu.VMEM((Bb * H1 * W1, 9 * C1), bf),     # conv2 im2col patches
            pltpu.VMEM((4 * Bb * M2, C1), bf),          # tconv1 row-slab taps
        ],
        compiler_params=pltpu.CompilerParams(dimension_semantics=("parallel",)),
    )(patches1, w1, b1, w2, b2, tw1c, tb1c, tw2c, tb2c)

    # Un-block rows=(kh,kw,b,pp,qq), lanes=(a,b2,c) -> NCHW, drop channel pad.
    # out[s*Bb+b, c, 4*pp+2*kh+a, 4*qq+2*kw+b2] = out_k[s, (kh,kw,b,pp,qq), (a,b2,c)]
    o9 = out_k.reshape(num_steps, 2, 2, Bb, H2, W2, 2, 2, CP)
    out = jnp.transpose(o9, (0, 3, 8, 4, 1, 6, 5, 2, 7)).reshape(N, CP, H, W)
    return out[:, :Cout].astype(jnp.float32)


# ---------------------------------------------------------------------------
# Pure-JAX f32 reference (correctness check only).
# ---------------------------------------------------------------------------
def reference_forward(x_nchw, p):
    x = jnp.transpose(x_nchw, (0, 2, 3, 1)).astype(jnp.float32)

    def conv(x, w, b):
        y = jax.lax.conv_general_dilated(
            x, w, window_strides=(1, 1), padding="SAME",
            dimension_numbers=("NHWC", "HWIO", "NHWC"))
        return y + b

    def pool(x):
        return jax.lax.reduce_window(
            x, -jnp.inf, jax.lax.max, (1, 2, 2, 1), (1, 2, 2, 1), "VALID")

    def tconv(x, w, b):
        y = jnp.einsum("nijc,hwco->nijhwo", x, w)      # (N,H,W,2,2,Cout)
        N, H, W, _, _, Co = y.shape
        y = jnp.transpose(y, (0, 1, 3, 2, 4, 5)).reshape(N, 2 * H, 2 * W, Co)
        return y + b

    h = pool(jax.nn.relu(conv(x, p["w1"], p["b1"])))
    h = pool(jax.nn.relu(conv(h, p["w2"], p["b2"])))
    h = jax.nn.relu(tconv(h, p["tw1"], p["tb1"]))
    h = jax.nn.sigmoid(tconv(h, p["tw2"], p["tb2"]))
    return jnp.transpose(h, (0, 3, 1, 2))


if __name__ == "__main__":
    # Small shapes: batch=4 (2 grid steps x 2 batch per step), n_in_chs=4,
    # n_out_chs=3, spatial 16x16.
    N, C_IN, H, W = 4, 4, 16, 16
    C_OUT = 3

    key = jax.random.PRNGKey(0)
    ks = jax.random.split(key, 9)
    x = jax.random.normal(ks[0], (N, C_IN, H, W), jnp.float32)      # NCHW input

    # Conv weights stored as HWIO (kh, kw, Cin, Cout); transposed-conv weights
    # as (kh, kw, Cin, Cout) (PyTorch stores (Cin, Cout, kh, kw) — same math).
    params = {
        "w1":  jax.random.normal(ks[1], (3, 3, C_IN, 128), jnp.float32) * 0.10,
        "b1":  jax.random.normal(ks[2], (128,), jnp.float32) * 0.10,
        "w2":  jax.random.normal(ks[3], (3, 3, 128, 64), jnp.float32) * 0.05,
        "b2":  jax.random.normal(ks[4], (64,), jnp.float32) * 0.05,
        "tw1": jax.random.normal(ks[5], (2, 2, 64, 128), jnp.float32) * 0.05,
        "tb1": jax.random.normal(ks[6], (128,), jnp.float32) * 0.05,
        "tw2": jax.random.normal(ks[7], (2, 2, 128, C_OUT), jnp.float32) * 0.05,
        "tb2": jax.random.normal(ks[8], (C_OUT,), jnp.float32) * 0.05,
    }

    out = jax.jit(encoder_decoder_forward)(x, params)
    jax.block_until_ready(out)

    assert out.shape == (N, C_OUT, H, W), out.shape

    ref = reference_forward(x, params)
    max_diff = float(jnp.max(jnp.abs(out - ref)))
    assert max_diff < 2e-2, f"mismatch vs reference, max |diff| = {max_diff}"

    print("KERNEL_OK")
</pallas_src>

<mosaic_0001>
module attributes {stable_mosaic.version = 11 : i64} {
  func.func @kernel(%arg0: i32, %arg1: memref<2x256x128xbf16, #tpu.memory_space<vmem>>, %arg2: memref<128x128xbf16, #tpu.memory_space<vmem>>, %arg3: memref<1x128xf32, #tpu.memory_space<vmem>>, %arg4: memref<1152x128xbf16, #tpu.memory_space<vmem>>, %arg5: memref<1x128xf32, #tpu.memory_space<vmem>>, %arg6: memref<128x512xbf16, #tpu.memory_space<vmem>>, %arg7: memref<1x512xf32, #tpu.memory_space<vmem>>, %arg8: memref<128x128xbf16, #tpu.memory_space<vmem>>, %arg9: memref<1x128xf32, #tpu.memory_space<vmem>>, %arg10: memref<1x128x128xbf16, #tpu.memory_space<vmem>>, %arg11: memref<20x10x128xbf16, #tpu.memory_space<vmem>>, %arg12: memref<128x1152xbf16, #tpu.memory_space<vmem>>, %arg13: memref<128x128xbf16, #tpu.memory_space<vmem>>) attributes {dimension_semantics = [#tpu.dimension_semantics<parallel>], iteration_bounds = array<i64: 2>, scalar_prefetch = 0 : i64, scratch_operands = 3 : i64, tpu.core_type = #tpu.core_type<tc>, window_params = [{transform_indices = @transform_0, window_bounds = array<i64: 2, 256, 128>}, {pipeline_mode = #tpu.pipeline_mode<synchronous>, transform_indices = @transform_1, window_bounds = array<i64: 128, 128>}, {pipeline_mode = #tpu.pipeline_mode<synchronous>, transform_indices = @transform_2, window_bounds = array<i64: 1, 128>}, {pipeline_mode = #tpu.pipeline_mode<synchronous>, transform_indices = @transform_3, window_bounds = array<i64: 1152, 128>}, {pipeline_mode = #tpu.pipeline_mode<synchronous>, transform_indices = @transform_4, window_bounds = array<i64: 1, 128>}, {pipeline_mode = #tpu.pipeline_mode<synchronous>, transform_indices = @transform_5, window_bounds = array<i64: 128, 512>}, {pipeline_mode = #tpu.pipeline_mode<synchronous>, transform_indices = @transform_6, window_bounds = array<i64: 1, 512>}, {pipeline_mode = #tpu.pipeline_mode<synchronous>, transform_indices = @transform_7, window_bounds = array<i64: 128, 128>}, {pipeline_mode = #tpu.pipeline_mode<synchronous>, transform_indices = @transform_8, window_bounds = array<i64: 1, 128>}, {transform_indices = @transform_9, window_bounds = array<i64: 1, 128, 128>}]} {
    %c0 = arith.constant 0 : index
    %c0_0 = arith.constant 0 : index
    %c0_1 = arith.constant 0 : index
    %0 = vector.load %arg1[%c0, %c0_0, %c0_1] : memref<2x256x128xbf16, #tpu.memory_space<vmem>>, vector<2x256x128xbf16>
    %1 = vector.shape_cast %0 : vector<2x256x128xbf16> to vector<512x128xbf16>
    %c0_2 = arith.constant 0 : index
    %c0_3 = arith.constant 0 : index
    %2 = vector.load %arg2[%c0_2, %c0_3] : memref<128x128xbf16, #tpu.memory_space<vmem>>, vector<128x128xbf16>
    %cst = arith.constant dense<0.000000e+00> : vector<512x128xf32>
    %3 = tpu.matmul %1, %2, %cst {dimension_numbers = #tpu.dot_dimension_numbers<[1], [0], [0], [1], [0, 0, 1, 1], [], []>} : vector<512x128xbf16>, vector<128x128xbf16>, vector<512x128xf32> -> vector<512x128xf32>
    %c0_4 = arith.constant 0 : index
    %c0_5 = arith.constant 0 : index
    %4 = vector.load %arg3[%c0_4, %c0_5] : memref<1x128xf32, #tpu.memory_space<vmem>>, vector<1x128xf32>
    %5 = vector.broadcast %4 : vector<1x128xf32> to vector<512x128xf32>
    %6 = arith.addf %3, %5 : vector<512x128xf32>
    %cst_6 = arith.constant 0.000000e+00 : f32
    %7 = vector.broadcast %cst_6 : f32 to vector<512x128xf32>
    %8 = arith.maximumf %6, %7 : vector<512x128xf32>
    %9 = vector.shape_cast %8 : vector<512x128xf32> to vector<32x8x2x128xf32>
    %cst_7 = arith.constant dense<0xFF800000> : vector<32x8x128xf32>
    %10 = vector.multi_reduction <maximumf>, %9, %cst_7 [2] : vector<32x8x2x128xf32> to vector<32x8x128xf32>
    %11 = vector.shape_cast %10 : vector<32x8x128xf32> to vector<16x2x8x128xf32>
    %cst_8 = arith.constant dense<0xFF800000> : vector<16x8x128xf32>
    %12 = vector.multi_reduction <maximumf>, %11, %cst_8 [1] : vector<16x2x8x128xf32> to vector<16x8x128xf32>
    %cst_9 = arith.constant 0.000000e+00 : bf16
    %13 = vector.broadcast %cst_9 : bf16 to vector<20x1x128xbf16>
    %c0_10 = arith.constant 0 : index
    %c0_11 = arith.constant 0 : index
    %c0_12 = arith.constant 0 : index
    %14 = vector.load %arg11[%c0_10, %c0_11, %c0_12] : memref<20x10x128xbf16, #tpu.memory_space<vmem>>, vector<20x1x128xbf16>
    tpu.vector_store %arg11[%c0_10, %c0_11, %c0_12], %13 {strides = array<i32>} : memref<20x10x128xbf16, #tpu.memory_space<vmem>>, vector<20x1x128xbf16>,
    %cst_13 = arith.constant 0.000000e+00 : bf16
    %15 = vector.broadcast %cst_13 : bf16 to vector<20x1x128xbf16>
    %c0_14 = arith.constant 0 : index
    %c9 = arith.constant 9 : index
    %c0_15 = arith.constant 0 : index
    %16 = vector.load %arg11[%c0_14, %c9, %c0_15] : memref<20x10x128xbf16, #tpu.memory_space<vmem>>, vector<20x1x128xbf16>
    tpu.vector_store %arg11[%c0_14, %c9, %c0_15], %15 {strides = array<i32>} : memref<20x10x128xbf16, #tpu.memory_space<vmem>>, vector<20x1x128xbf16>,
    %cst_16 = arith.constant 0.000000e+00 : bf16
    %17 = vector.broadcast %cst_16 : bf16 to vector<1x10x128xbf16>
    %c0_17 = arith.constant 0 : index
    %c0_18 = arith.constant 0 : index
    %c0_19 = arith.constant 0 : index
    %18 = vector.load %arg11[%c0_17, %c0_18, %c0_19] : memref<20x10x128xbf16, #tpu.memory_space<vmem>>, vector<1x10x128xbf16>
    tpu.vector_store %arg11[%c0_17, %c0_18, %c0_19], %17 {strides = array<i32>} : memref<20x10x128xbf16, #tpu.memory_space<vmem>>, vector<1x10x128xbf16>,
    %cst_20 = arith.constant 0.000000e+00 : bf16
    %19 = vector.broadcast %cst_20 : bf16 to vector<1x10x128xbf16>
    %c9_21 = arith.constant 9 : index
    %c0_22 = arith.constant 0 : index
    %c0_23 = arith.constant 0 : index
    %20 = vector.load %arg11[%c9_21, %c0_22, %c0_23] : memref<20x10x128xbf16, #tpu.memory_space<vmem>>, vector<1x10x128xbf16>
    tpu.vector_store %arg11[%c9_21, %c0_22, %c0_23], %19 {strides = array<i32>} : memref<20x10x128xbf16, #tpu.memory_space<vmem>>, vector<1x10x128xbf16>,
    %21 = vector.extract_strided_slice %12 {offsets = [0, 0, 0], sizes = [8, 8, 128], strides = [1, 1, 1]} : vector<16x8x128xf32> to vector<8x8x128xf32>
    %22 = arith.truncf %21 : vector<8x8x128xf32> to vector<8x8x128xbf16>
    %c1 = arith.constant 1 : index
    %c1_24 = arith.constant 1 : index
    %c0_25 = arith.constant 0 : index
    %23 = vector.load %arg11[%c1, %c1_24, %c0_25] : memref<20x10x128xbf16, #tpu.memory_space<vmem>>, vector<8x8x128xbf16>
    tpu.vector_store %arg11[%c1, %c1_24, %c0_25], %22 {strides = array<i32>} : memref<20x10x128xbf16, #tpu.memory_space<vmem>>, vector<8x8x128xbf16>,
    %cst_26 = arith.constant 0.000000e+00 : bf16
    %24 = vector.broadcast %cst_26 : bf16 to vector<1x10x128xbf16>
    %c10 = arith.constant 10 : index
    %c0_27 = arith.constant 0 : index
    %c0_28 = arith.constant 0 : index
    %25 = vector.load %arg11[%c10, %c0_27, %c0_28] : memref<20x10x128xbf16, #tpu.memory_space<vmem>>, vector<1x10x128xbf16>
    tpu.vector_store %arg11[%c10, %c0_27, %c0_28], %24 {strides = array<i32>} : memref<20x10x128xbf16, #tpu.memory_space<vmem>>, vector<1x10x128xbf16>,
    %cst_29 = arith.constant 0.000000e+00 : bf16
    %26 = vector.broadcast %cst_29 : bf16 to vector<1x10x128xbf16>
    %c19 = arith.constant 19 : index
    %c0_30 = arith.constant 0 : index
    %c0_31 = arith.constant 0 : index
    %27 = vector.load %arg11[%c19, %c0_30, %c0_31] : memref<20x10x128xbf16, #tpu.memory_space<vmem>>, vector<1x10x128xbf16>
    tpu.vector_store %arg11[%c19, %c0_30, %c0_31], %26 {strides = array<i32>} : memref<20x10x128xbf16, #tpu.memory_space<vmem>>, vector<1x10x128xbf16>,
    %28 = vector.extract_strided_slice %12 {offsets = [8, 0, 0], sizes = [8, 8, 128], strides = [1, 1, 1]} : vector<16x8x128xf32> to vector<8x8x128xf32>
    %29 = arith.truncf %28 : vector<8x8x128xf32> to vector<8x8x128xbf16>
    %c11 = arith.constant 11 : index
    %c1_32 = arith.constant 1 : index
    %c0_33 = arith.constant 0 : index
    %30 = vector.load %arg11[%c11, %c1_32, %c0_33] : memref<20x10x128xbf16, #tpu.memory_space<vmem>>, vector<8x8x128xbf16>
    tpu.vector_store %arg11[%c11, %c1_32, %c0_33], %29 {strides = array<i32>} : memref<20x10x128xbf16, #tpu.memory_space<vmem>>, vector<8x8x128xbf16>,
    %c0_34 = arith.constant 0 : index
    %c0_35 = arith.constant 0 : index
    %c0_36 = arith.constant 0 : index
    %31 = vector.load %arg11[%c0_34, %c0_35, %c0_36] : memref<20x10x128xbf16, #tpu.memory_space<vmem>>, vector<8x8x128xbf16>
    %32 = vector.shape_cast %31 : vector<8x8x128xbf16> to vector<64x128xbf16>
    %c0_37 = arith.constant 0 : index
    %c0_38 = arith.constant 0 : index
    %33 = vector.load %arg12[%c0_37, %c0_38] : memref<128x1152xbf16, #tpu.memory_space<vmem>>, vector<64x128xbf16>
    tpu.vector_store %arg12[%c0_37, %c0_38], %32 {strides = array<i32>} : memref<128x1152xbf16, #tpu.memory_space<vmem>>, vector<64x128xbf16>,
    %c0_39 = arith.constant 0 : index
    %c1_40 = arith.constant 1 : index
    %c0_41 = arith.constant 0 : index
    %34 = vector.load %arg11[%c0_39, %c1_40, %c0_41] : memref<20x10x128xbf16, #tpu.memory_space<vmem>>, vector<8x8x128xbf16>
    %35 = vector.shape_cast %34 : vector<8x8x128xbf16> to vector<64x128xbf16>
    %c0_42 = arith.constant 0 : index
    %c128 = arith.constant 128 : index
    %36 = vector.load %arg12[%c0_42, %c128] : memref<128x1152xbf16, #tpu.memory_space<vmem>>, vector<64x128xbf16>
    tpu.vector_store %arg12[%c0_42, %c128], %35 {strides = array<i32>} : memref<128x1152xbf16, #tpu.memory_space<vmem>>, vector<64x128xbf16>,
    %c0_43 = arith.constant 0 : index
    %c2 = arith.constant 2 : index
    %c0_44 = arith.constant 0 : index
    %37 = vector.load %arg11[%c0_43, %c2, %c0_44] : memref<20x10x128xbf16, #tpu.memory_space<vmem>>, vector<8x8x128xbf16>
    %38 = vector.shape_cast %37 : vector<8x8x128xbf16> to vector<64x128xbf16>
    %c0_45 = arith.constant 0 : index
    %c256 = arith.constant 256 : index
    %39 = vector.load %arg12[%c0_45, %c256] : memref<128x1152xbf16, #tpu.memory_space<vmem>>, vector<64x128xbf16>
    tpu.vector_store %arg12[%c0_45, %c256], %38 {strides = array<i32>} : memref<128x1152xbf16, #tpu.memory_space<vmem>>, vector<64x128xbf16>,
    %c1_46 = arith.constant 1 : index
    %c0_47 = arith.constant 0 : index
    %c0_48 = arith.constant 0 : index
    %40 = vector.load %arg11[%c1_46, %c0_47, %c0_48] : memref<20x10x128xbf16, #tpu.memory_space<vmem>>, vector<8x8x128xbf16>
    %41 = vector.shape_cast %40 : vector<8x8x128xbf16> to vector<64x128xbf16>
    %c0_49 = arith.constant 0 : index
    %c384 = arith.constant 384 : index
    %42 = vector.load %arg12[%c0_49, %c384] : memref<128x1152xbf16, #tpu.memory_space<vmem>>, vector<64x128xbf16>
    tpu.vector_store %arg12[%c0_49, %c384], %41 {strides = array<i32>} : memref<128x1152xbf16, #tpu.memory_space<vmem>>, vector<64x128xbf16>,
    %c1_50 = arith.constant 1 : index
    %c1_51 = arith.constant 1 : index
    %c0_52 = arith.constant 0 : index
    %43 = vector.load %arg11[%c1_50, %c1_51, %c0_52] : memref<20x10x128xbf16, #tpu.memory_space<vmem>>, vector<8x8x128xbf16>
    %44 = vector.shape_cast %43 : vector<8x8x128xbf16> to vector<64x128xbf16>
    %c0_53 = arith.constant 0 : index
    %c512 = arith.constant 512 : index
    %45 = vector.load %arg12[%c0_53, %c512] : memref<128x1152xbf16, #tpu.memory_space<vmem>>, vector<64x128xbf16>
    tpu.vector_store %arg12[%c0_53, %c512], %44 {strides = array<i32>} : memref<128x1152xbf16, #tpu.memory_space<vmem>>, vector<64x128xbf16>,
    %c1_54 = arith.constant 1 : index
    %c2_55 = arith.constant 2 : index
    %c0_56 = arith.constant 0 : index
    %46 = vector.load %arg11[%c1_54, %c2_55, %c0_56] : memref<20x10x128xbf16, #tpu.memory_space<vmem>>, vector<8x8x128xbf16>
    %47 = vector.shape_cast %46 : vector<8x8x128xbf16> to vector<64x128xbf16>
    %c0_57 = arith.constant 0 : index
    %c640 = arith.constant 640 : index
    %48 = vector.load %arg12[%c0_57, %c640] : memref<128x1152xbf16, #tpu.memory_space<vmem>>, vector<64x128xbf16>
    tpu.vector_store %arg12[%c0_57, %c640], %47 {strides = array<i32>} : memref<128x1152xbf16, #tpu.memory_space<vmem>>, vector<64x128xbf16>,
    %c2_58 = arith.constant 2 : index
    %c0_59 = arith.constant 0 : index
    %c0_60 = arith.constant 0 : index
    %49 = vector.load %arg11[%c2_58, %c0_59, %c0_60] : memref<20x10x128xbf16, #tpu.memory_space<vmem>>, vector<8x8x128xbf16>
    %50 = vector.shape_cast %49 : vector<8x8x128xbf16> to vector<64x128xbf16>
    %c0_61 = arith.constant 0 : index
    %c768 = arith.constant 768 : index
    %51 = vector.load %arg12[%c0_61, %c768] : memref<128x1152xbf16, #tpu.memory_space<vmem>>, vector<64x128xbf16>
    tpu.vector_store %arg12[%c0_61, %c768], %50 {strides = array<i32>} : memref<128x1152xbf16, #tpu.memory_space<vmem>>, vector<64x128xbf16>,
    %c2_62 = arith.constant 2 : index
    %c1_63 = arith.constant 1 : index
    %c0_64 = arith.constant 0 : index
    %52 = vector.load %arg11[%c2_62, %c1_63, %c0_64] : memref<20x10x128xbf16, #tpu.memory_space<vmem>>, vector<8x8x128xbf16>
    %53 = vector.shape_cast %52 : vector<8x8x128xbf16> to vector<64x128xbf16>
    %c0_65 = arith.constant 0 : index
    %c896 = arith.constant 896 : index
    %54 = vector.load %arg12[%c0_65, %c896] : memref<128x1152xbf16, #tpu.memory_space<vmem>>, vector<64x128xbf16>
    tpu.vector_store %arg12[%c0_65, %c896], %53 {strides = array<i32>} : memref<128x1152xbf16, #tpu.memory_space<vmem>>, vector<64x128xbf16>,
    %c2_66 = arith.constant 2 : index
    %c2_67 = arith.constant 2 : index
    %c0_68 = arith.constant 0 : index
    %55 = vector.load %arg11[%c2_66, %c2_67, %c0_68] : memref<20x10x128xbf16, #tpu.memory_space<vmem>>, vector<8x8x128xbf16>
    %56 = vector.shape_cast %55 : vector<8x8x128xbf16> to vector<64x128xbf16>
    %c0_69 = arith.constant 0 : index
    %c1024 = arith.constant 1024 : index
    %57 = vector.load %arg12[%c0_69, %c1024] : memref<128x1152xbf16, #tpu.memory_space<vmem>>, vector<64x128xbf16>
    tpu.vector_store %arg12[%c0_69, %c1024], %56 {strides = array<i32>} : memref<128x1152xbf16, #tpu.memory_space<vmem>>, vector<64x128xbf16>,
    %c10_70 = arith.constant 10 : index
    %c0_71 = arith.constant 0 : index
    %c0_72 = arith.constant 0 : index
    %58 = vector.load %arg11[%c10_70, %c0_71, %c0_72] : memref<20x10x128xbf16, #tpu.memory_space<vmem>>, vector<8x8x128xbf16>
    %59 = vector.shape_cast %58 : vector<8x8x128xbf16> to vector<64x128xbf16>
    %c64 = arith.constant 64 : index
    %c0_73 = arith.constant 0 : index
    %60 = vector.load %arg12[%c64, %c0_73] : memref<128x1152xbf16, #tpu.memory_space<vmem>>, vector<64x128xbf16>
    tpu.vector_store %arg12[%c64, %c0_73], %59 {strides = array<i32>} : memref<128x1152xbf16, #tpu.memory_space<vmem>>, vector<64x128xbf16>,
    %c10_74 = arith.constant 10 : index
    %c1_75 = arith.constant 1 : index
    %c0_76 = arith.constant 0 : index
    %61 = vector.load %arg11[%c10_74, %c1_75, %c0_76] : memref<20x10x128xbf16, #tpu.memory_space<vmem>>, vector<8x8x128xbf16>
    %62 = vector.shape_cast %61 : vector<8x8x128xbf16> to vector<64x128xbf16>
    %c64_77 = arith.constant 64 : index
    %c128_78 = arith.constant 128 : index
    %63 = vector.load %arg12[%c64_77, %c128_78] : memref<128x1152xbf16, #tpu.memory_space<vmem>>, vector<64x128xbf16>
    tpu.vector_store %arg12[%c64_77, %c128_78], %62 {strides = array<i32>} : memref<128x1152xbf16, #tpu.memory_space<vmem>>, vector<64x128xbf16>,
    %c10_79 = arith.constant 10 : index
    %c2_80 = arith.constant 2 : index
    %c0_81 = arith.constant 0 : index
    %64 = vector.load %arg11[%c10_79, %c2_80, %c0_81] : memref<20x10x128xbf16, #tpu.memory_space<vmem>>, vector<8x8x128xbf16>
    %65 = vector.shape_cast %64 : vector<8x8x128xbf16> to vector<64x128xbf16>
    %c64_82 = arith.constant 64 : index
    %c256_83 = arith.constant 256 : index
    %66 = vector.load %arg12[%c64_82, %c256_83] : memref<128x1152xbf16, #tpu.memory_space<vmem>>, vector<64x128xbf16>
    tpu.vector_store %arg12[%c64_82, %c256_83], %65 {strides = array<i32>} : memref<128x1152xbf16, #tpu.memory_space<vmem>>, vector<64x128xbf16>,
    %c11_84 = arith.constant 11 : index
    %c0_85 = arith.constant 0 : index
    %c0_86 = arith.constant 0 : index
    %67 = vector.load %arg11[%c11_84, %c0_85, %c0_86] : memref<20x10x128xbf16, #tpu.memory_space<vmem>>, vector<8x8x128xbf16>
    %68 = vector.shape_cast %67 : vector<8x8x128xbf16> to vector<64x128xbf16>
    %c64_87 = arith.constant 64 : index
    %c384_88 = arith.constant 384 : index
    %69 = vector.load %arg12[%c64_87, %c384_88] : memref<128x1152xbf16, #tpu.memory_space<vmem>>, vector<64x128xbf16>
    tpu.vector_store %arg12[%c64_87, %c384_88], %68 {strides = array<i32>} : memref<128x1152xbf16, #tpu.memory_space<vmem>>, vector<64x128xbf16>,
    %c11_89 = arith.constant 11 : index
    %c1_90 = arith.constant 1 : index
    %c0_91 = arith.constant 0 : index
    %70 = vector.load %arg11[%c11_89, %c1_90, %c0_91] : memref<20x10x128xbf16, #tpu.memory_space<vmem>>, vector<8x8x128xbf16>
    %71 = vector.shape_cast %70 : vector<8x8x128xbf16> to vector<64x128xbf16>
    %c64_92 = arith.constant 64 : index
    %c512_93 = arith.constant 512 : index
    %72 = vector.load %arg12[%c64_92, %c512_93] : memref<128x1152xbf16, #tpu.memory_space<vmem>>, vector<64x128xbf16>
    tpu.vector_store %arg12[%c64_92, %c512_93], %71 {strides = array<i32>} : memref<128x1152xbf16, #tpu.memory_space<vmem>>, vector<64x128xbf16>,
    %c11_94 = arith.constant 11 : index
    %c2_95 = arith.constant 2 : index
    %c0_96 = arith.constant 0 : index
    %73 = vector.load %arg11[%c11_94, %c2_95, %c0_96] : memref<20x10x128xbf16, #tpu.memory_space<vmem>>, vector<8x8x128xbf16>
    %74 = vector.shape_cast %73 : vector<8x8x128xbf16> to vector<64x128xbf16>
    %c64_97 = arith.constant 64 : index
    %c640_98 = arith.constant 640 : index
    %75 = vector.load %arg12[%c64_97, %c640_98] : memref<128x1152xbf16, #tpu.memory_space<vmem>>, vector<64x128xbf16>
    tpu.vector_store %arg12[%c64_97, %c640_98], %74 {strides = array<i32>} : memref<128x1152xbf16, #tpu.memory_space<vmem>>, vector<64x128xbf16>,
    %c12 = arith.constant 12 : index
    %c0_99 = arith.constant 0 : index
    %c0_100 = arith.constant 0 : index
    %76 = vector.load %arg11[%c12, %c0_99, %c0_100] : memref<20x10x128xbf16, #tpu.memory_space<vmem>>, vector<8x8x128xbf16>
    %77 = vector.shape_cast %76 : vector<8x8x128xbf16> to vector<64x128xbf16>
    %c64_101 = arith.constant 64 : index
    %c768_102 = arith.constant 768 : index
    %78 = vector.load %arg12[%c64_101, %c768_102] : memref<128x1152xbf16, #tpu.memory_space<vmem>>, vector<64x128xbf16>
    tpu.vector_store %arg12[%c64_101, %c768_102], %77 {strides = array<i32>} : memref<128x1152xbf16, #tpu.memory_space<vmem>>, vector<64x128xbf16>,
    %c12_103 = arith.constant 12 : index
    %c1_104 = arith.constant 1 : index
    %c0_105 = arith.constant 0 : index
    %79 = vector.load %arg11[%c12_103, %c1_104, %c0_105] : memref<20x10x128xbf16, #tpu.memory_space<vmem>>, vector<8x8x128xbf16>
    %80 = vector.shape_cast %79 : vector<8x8x128xbf16> to vector<64x128xbf16>
    %c64_106 = arith.constant 64 : index
    %c896_107 = arith.constant 896 : index
    %81 = vector.load %arg12[%c64_106, %c896_107] : memref<128x1152xbf16, #tpu.memory_space<vmem>>, vector<64x128xbf16>
    tpu.vector_store %arg12[%c64_106, %c896_107], %80 {strides = array<i32>} : memref<128x1152xbf16, #tpu.memory_space<vmem>>, vector<64x128xbf16>,
    %c12_108 = arith.constant 12 : index
    %c2_109 = arith.constant 2 : index
    %c0_110 = arith.constant 0 : index
    %82 = vector.load %arg11[%c12_108, %c2_109, %c0_110] : memref<20x10x128xbf16, #tpu.memory_space<vmem>>, vector<8x8x128xbf16>
    %83 = vector.shape_cast %82 : vector<8x8x128xbf16> to vector<64x128xbf16>
    %c64_111 = arith.constant 64 : index
    %c1024_112 = arith.constant 1024 : index
    %84 = vector.load %arg12[%c64_111, %c1024_112] : memref<128x1152xbf16, #tpu.memory_space<vmem>>, vector<64x128xbf16>
    tpu.vector_store %arg12[%c64_111, %c1024_112], %83 {strides = array<i32>} : memref<128x1152xbf16, #tpu.memory_space<vmem>>, vector<64x128xbf16>,
    %c0_113 = arith.constant 0 : index
    %c0_114 = arith.constant 0 : index
    %85 = vector.load %arg12[%c0_113, %c0_114] : memref<128x1152xbf16, #tpu.memory_space<vmem>>, vector<128x1152xbf16>
    %c0_115 = arith.constant 0 : index
    %c0_116 = arith.constant 0 : index
    %86 = vector.load %arg4[%c0_115, %c0_116] : memref<1152x128xbf16, #tpu.memory_space<vmem>>, vector<1152x128xbf16>
    %cst_117 = arith.constant dense<0.000000e+00> : vector<128x128xf32>
    %87 = tpu.matmul %85, %86, %cst_117 {dimension_numbers = #tpu.dot_dimension_numbers<[1], [0], [0], [1], [0, 0, 1, 1], [], []>} : vector<128x1152xbf16>, vector<1152x128xbf16>, vector<128x128xf32> -> vector<128x128xf32>
    %c0_118 = arith.constant 0 : index
    %c0_119 = arith.constant 0 : index
    %88 = vector.load %arg5[%c0_118, %c0_119] : memref<1x128xf32, #tpu.memory_space<vmem>>, vector<1x128xf32>
    %89 = vector.broadcast %88 : vector<1x128xf32> to vector<128x128xf32>
    %90 = arith.addf %87, %89 : vector<128x128xf32>
    %cst_120 = arith.constant 0.000000e+00 : f32
    %91 = vector.broadcast %cst_120 : f32 to vector<128x128xf32>
    %92 = arith.maximumf %90, %91 : vector<128x128xf32>
    %93 = vector.shape_cast %92 : vector<128x128xf32> to vector<16x4x2x128xf32>
    %cst_121 = arith.constant dense<0xFF800000> : vector<16x4x128xf32>
    %94 = vector.multi_reduction <maximumf>, %93, %cst_121 [2] : vector<16x4x2x128xf32> to vector<16x4x128xf32>
    %95 = vector.shape_cast %94 : vector<16x4x128xf32> to vector<8x2x4x128xf32>
    %cst_122 = arith.constant dense<0xFF800000> : vector<8x4x128xf32>
    %96 = vector.multi_reduction <maximumf>, %95, %cst_122 [1] : vector<8x2x4x128xf32> to vector<8x4x128xf32>
    %97 = vector.shape_cast %96 : vector<8x4x128xf32> to vector<32x128xf32>
    %98 = arith.truncf %97 : vector<32x128xf32> to vector<32x128xbf16>
    %c0_123 = arith.constant 0 : index
    %c0_124 = arith.constant 0 : index
    %99 = vector.load %arg6[%c0_123, %c0_124] : memref<128x512xbf16, #tpu.memory_space<vmem>>, vector<128x512xbf16>
    %cst_125 = arith.constant dense<0.000000e+00> : vector<32x512xf32>
    %100 = tpu.matmul %98, %99, %cst_125 {dimension_numbers = #tpu.dot_dimension_numbers<[1], [0], [0], [1], [0, 0, 1, 1], [], []>} : vector<32x128xbf16>, vector<128x512xbf16>, vector<32x512xf32> -> vector<32x512xf32>
    %c0_126 = arith.constant 0 : index
    %c0_127 = arith.constant 0 : index
    %101 = vector.load %arg7[%c0_126, %c0_127] : memref<1x512xf32, #tpu.memory_space<vmem>>, vector<1x512xf32>
    %102 = vector.broadcast %101 : vector<1x512xf32> to vector<32x512xf32>
    %103 = arith.addf %100, %102 : vector<32x512xf32>
    %cst_128 = arith.constant 0.000000e+00 : f32
    %104 = vector.broadcast %cst_128 : f32 to vector<32x512xf32>
    %105 = arith.maximumf %103, %104 : vector<32x512xf32>
    %106 = vector.extract_strided_slice %105 {offsets = [0, 0], sizes = [32, 128], strides = [1, 1]} : vector<32x512xf32> to vector<32x128xf32>
    %107 = arith.truncf %106 : vector<32x128xf32> to vector<32x128xbf16>
    %c0_129 = arith.constant 0 : index
    %c0_130 = arith.constant 0 : index
    %108 = vector.load %arg13[%c0_129, %c0_130] : memref<128x128xbf16, #tpu.memory_space<vmem>>, vector<32x128xbf16>
    tpu.vector_store %arg13[%c0_129, %c0_130], %107 {strides = array<i32>} : memref<128x128xbf16, #tpu.memory_space<vmem>>, vector<32x128xbf16>,
    %109 = vector.extract_strided_slice %105 {offsets = [0, 128], sizes = [32, 128], strides = [1, 1]} : vector<32x512xf32> to vector<32x128xf32>
    %110 = arith.truncf %109 : vector<32x128xf32> to vector<32x128xbf16>
    %c32 = arith.constant 32 : index
    %c0_131 = arith.constant 0 : index
    %111 = vector.load %arg13[%c32, %c0_131] : memref<128x128xbf16, #tpu.memory_space<vmem>>, vector<32x128xbf16>
    tpu.vector_store %arg13[%c32, %c0_131], %110 {strides = array<i32>} : memref<128x128xbf16, #tpu.memory_space<vmem>>, vector<32x128xbf16>,
    %112 = vector.extract_strided_slice %105 {offsets = [0, 256], sizes = [32, 128], strides = [1, 1]} : vector<32x512xf32> to vector<32x128xf32>
    %113 = arith.truncf %112 : vector<32x128xf32> to vector<32x128xbf16>
    %c64_132 = arith.constant 64 : index
    %c0_133 = arith.constant 0 : index
    %114 = vector.load %arg13[%c64_132, %c0_133] : memref<128x128xbf16, #tpu.memory_space<vmem>>, vector<32x128xbf16>
    tpu.vector_store %arg13[%c64_132, %c0_133], %113 {strides = array<i32>} : memref<128x128xbf16, #tpu.memory_space<vmem>>, vector<32x128xbf16>,
    %115 = vector.extract_strided_slice %105 {offsets = [0, 384], sizes = [32, 128], strides = [1, 1]} : vector<32x512xf32> to vector<32x128xf32>
    %116 = arith.truncf %115 : vector<32x128xf32> to vector<32x128xbf16>
    %c96 = arith.constant 96 : index
    %c0_134 = arith.constant 0 : index
    %117 = vector.load %arg13[%c96, %c0_134] : memref<128x128xbf16, #tpu.memory_space<vmem>>, vector<32x128xbf16>
    tpu.vector_store %arg13[%c96, %c0_134], %116 {strides = array<i32>} : memref<128x128xbf16, #tpu.memory_space<vmem>>, vector<32x128xbf16>,
    %c0_135 = arith.constant 0 : index
    %c0_136 = arith.constant 0 : index
    %118 = vector.load %arg13[%c0_135, %c0_136] : memref<128x128xbf16, #tpu.memory_space<vmem>>, vector<128x128xbf16>
    %c0_137 = arith.constant 0 : index
    %c0_138 = arith.constant 0 : index
    %119 = vector.load %arg8[%c0_137, %c0_138] : memref<128x128xbf16, #tpu.memory_space<vmem>>, vector<128x128xbf16>
    %cst_139 = arith.constant dense<0.000000e+00> : vector<128x128xf32>
    %120 = tpu.matmul %118, %119, %cst_139 {dimension_numbers = #tpu.dot_dimension_numbers<[1], [0], [0], [1], [0, 0, 1, 1], [], []>} : vector<128x128xbf16>, vector<128x128xbf16>, vector<128x128xf32> -> vector<128x128xf32>
    %c0_140 = arith.constant 0 : index
    %c0_141 = arith.constant 0 : index
    %121 = vector.load %arg9[%c0_140, %c0_141] : memref<1x128xf32, #tpu.memory_space<vmem>>, vector<1x128xf32>
    %122 = vector.broadcast %121 : vector<1x128xf32> to vector<128x128xf32>
    %123 = arith.addf %120, %122 : vector<128x128xf32>
    %124 = math.absf %123 : vector<128x128xf32>
    %cst_142 = arith.constant 0.000000e+00 : f32
    %125 = vector.broadcast %cst_142 : f32 to vector<128x128xf32>
    %126 = arith.subf %125, %124 : vector<128x128xf32>
    %127 = math.exp %126 : vector<128x128xf32>
    %cst_143 = arith.constant 1.000000e+00 : f32
    %128 = vector.broadcast %cst_143 : f32 to vector<128x128xf32>
    %129 = arith.addf %128, %127 : vector<128x128xf32>
    %130 = tpu.reciprocal %129 {approx = true} : vector<128x128xf32> -> vector<128x128xf32>
    %cst_144 = arith.constant 0.000000e+00 : f32
    %131 = vector.broadcast %cst_144 : f32 to vector<128x128xf32>
    %132 = arith.cmpf oge, %123, %131 : vector<128x128xf32>
    %133 = arith.mulf %127, %130 : vector<128x128xf32>
    %134 = arith.select %132, %130, %133 : vector<128x128xi1>, vector<128x128xf32>
    %135 = arith.truncf %134 : vector<128x128xf32> to vector<128x128xbf16>
    %c0_145 = arith.constant 0 : index
    %c0_146 = arith.constant 0 : index
    %c0_147 = arith.constant 0 : index
    %136 = vector.load %arg10[%c0_145, %c0_146, %c0_147] : memref<1x128x128xbf16, #tpu.memory_space<vmem>>, vector<1x128x128xbf16>
    %137 = vector.shape_cast %136 : vector<1x128x128xbf16> to vector<128x128xbf16>
    %138 = vector.shape_cast %135 : vector<128x128xbf16> to vector<1x128x128xbf16>
    tpu.vector_store %arg10[%c0_145, %c0_146, %c0_147], %138 {strides = array<i32>} : memref<1x128x128xbf16, #tpu.memory_space<vmem>>, vector<1x128x128xbf16>,
    return
  }
  func.func @transform_0(%arg0: i32) -> (i32, i32, i32) {
    %c0_i32 = arith.constant 0 : i32
    %c0_i32_0 = arith.constant 0 : i32
    %c0_i32_1 = arith.constant 0 : i32
    return %arg0, %c0_i32, %c0_i32_0 : i32, i32, i32
  }
  func.func @transform_1(%arg0: i32) -> (i32, i32) {
    %c0_i32 = arith.constant 0 : i32
    %c0_i32_0 = arith.constant 0 : i32
    %c0_i32_1 = arith.constant 0 : i32
    return %c0_i32, %c0_i32_0 : i32, i32
  }
  func.func @transform_2(%arg0: i32) -> (i32, i32) {
    %c0_i32 = arith.constant 0 : i32
    %c0_i32_0 = arith.constant 0 : i32
    %c0_i32_1 = arith.constant 0 : i32
    return %c0_i32, %c0_i32_0 : i32, i32
  }
  func.func @transform_3(%arg0: i32) -> (i32, i32) {
    %c0_i32 = arith.constant 0 : i32
    %c0_i32_0 = arith.constant 0 : i32
    %c0_i32_1 = arith.constant 0 : i32
    return %c0_i32, %c0_i32_0 : i32, i32
  }
  func.func @transform_4(%arg0: i32) -> (i32, i32) {
    %c0_i32 = arith.constant 0 : i32
    %c0_i32_0 = arith.constant 0 : i32
    %c0_i32_1 = arith.constant 0 : i32
    return %c0_i32, %c0_i32_0 : i32, i32
  }
  func.func @transform_5(%arg0: i32) -> (i32, i32) {
    %c0_i32 = arith.constant 0 : i32
    %c0_i32_0 = arith.constant 0 : i32
    %c0_i32_1 = arith.constant 0 : i32
    return %c0_i32, %c0_i32_0 : i32, i32
  }
  func.func @transform_6(%arg0: i32) -> (i32, i32) {
    %c0_i32 = arith.constant 0 : i32
    %c0_i32_0 = arith.constant 0 : i32
    %c0_i32_1 = arith.constant 0 : i32
    return %c0_i32, %c0_i32_0 : i32, i32
  }
  func.func @transform_7(%arg0: i32) -> (i32, i32) {
    %c0_i32 = arith.constant 0 : i32
    %c0_i32_0 = arith.constant 0 : i32
    %c0_i32_1 = arith.constant 0 : i32
    return %c0_i32, %c0_i32_0 : i32, i32
  }
  func.func @transform_8(%arg0: i32) -> (i32, i32) {
    %c0_i32 = arith.constant 0 : i32
    %c0_i32_0 = arith.constant 0 : i32
    %c0_i32_1 = arith.constant 0 : i32
    return %c0_i32, %c0_i32_0 : i32, i32
  }
  func.func @transform_9(%arg0: i32) -> (i32, i32, i32) {
    %c0_i32 = arith.constant 0 : i32
    %c0_i32_0 = arith.constant 0 : i32
    %c0_i32_1 = arith.constant 0 : i32
    return %arg0, %c0_i32, %c0_i32_0 : i32, i32, i32
  }
}

</mosaic_0001>

<bundles_post_ra>
// kernel: tile.18
= control target key start
LH: loop header
LB: loop body
LE: loop exit
PB: predicated region body
PF: predicated region fallthrough
CT: control target
= control target key end

     0   :  { %s22_s0 = inlined_call_operand.vmem [shape: f32[32], index: 0, kind: input, shape index: {}]   ;;  %s23_s1 = inlined_call_operand.vmem [shape: f32[4,32], index: 1, kind: output, shape index: {}]  }
   0x1   :  { %v4_v0 = vld [vmem:[%s22_s0] ss:$0 sm:$0xff] }
   0x2   :  { %5 = vst [vmem:[%s23_s1] sm:$0xf] %v4_v0 }

// kernel: tile.19
= control target key start
LH: loop header
LB: loop body
LE: loop exit
PB: predicated region body
PF: predicated region fallthrough
CT: control target
= control target key end

     0   :  { %vm7_vm0 = vcmask 261120   ;;  %s37_s8 = smov 32   ;;  %s38_s9 = smov 64   ;;  %vm13_vm1 = vcmask 1048320   ;;  %vm19_vm2 = vcmask 785920   ;;  %vm25_vm3 = vcmask 523520   ;;  %s55_s0 = inlined_call_operand.vmem [shape: f32[4,32], index: 0, kind: input, shape index: {}]   ;;  %s56_s1 = inlined_call_operand.vmem [shape: f32[1,128], index: 1, kind: output, shape index: {}]  }
   0x1   :  { %v4_v0 = vld [vmem:[%s55_s0] sm:$0xf]  ;;  %s36_s0 = smov 96  }
   0x2   :  { %5 = vst [vmem:[#allocation1] sm:$0xf] %v4_v0 }
   0x9   :  { %v10_v1 = vld [vmem:[#allocation1 + $0x3] sm:$0x1]   ;;  %v22_v2 = vld [vmem:[#allocation1 + $0x1] sm:$0x1]   ;;  %v6_v3 = vld [vmem:[#allocation1] sm:$0x1]  }
   0xa   :  { %11 = vrot.lane.b32.xlu0 %v10_v1, %s36_s0  ;;  %23 = vrot.lane.b32.xlu1 %v22_v2, %s37_s8  ;;  %v16_v4 = vld [vmem:[#allocation1 + $0x2] sm:$0x1]   ;;  %8 = vst.msk [vmem:[#allocation0] sm:$0x1] %vm7_vm0, %v6_v3  }
   0xe   :  { %17 = vrot.lane.b32.xlu0 %v16_v4, %s38_s9 }
  0x7c   :  { %v12_v5 = vpop.permute.xlu0 %11   ;;  %v24_v6 = vpop.permute.xlu1 %23  }
  0x7d   :  { %14 = vst.msk [vmem:[#allocation0] sm:$0x1] %vm13_vm1, %v12_v5  }
  0x80   :  { %v18_v7 = vpop.permute.xlu0 %17  }
  0x81   :  { %20 = vst.msk [vmem:[#allocation0] sm:$0x1] %vm19_vm2, %v18_v7  }
  0x82   :  { %26 = vst.msk [vmem:[#allocation0] sm:$0x1] %vm25_vm3, %v24_v6  }
  0x89   :  { %v30_v8 = vld [vmem:[#allocation0] sm:$0x1] }
  0x8a   :  { %32 = vst [vmem:[%s56_s1] sm:$0x1] %v30_v8 }

// kernel: tile.13
= control target key start
LH: loop header
LB: loop body
LE: loop exit
PB: predicated region body
PF: predicated region fallthrough
CT: control target
= control target key end

     0   :  { %s22_s0 = inlined_call_operand.vmem [shape: f32[128], index: 0, kind: input, shape index: {}]   ;;  %s23_s1 = inlined_call_operand.vmem [shape: f32[4,128], index: 1, kind: output, shape index: {}]  }
   0x1   :  { %v4_v0 = vld [vmem:[%s22_s0] ss:$0 sm:$0xff] }
   0x2   :  { %5 = vst [vmem:[%s23_s1] sm:$0xf] %v4_v0 }

// kernel: encoder_decoder_forward.1
= control target key start
LH: loop header
LB: loop body
LE: loop exit
PB: predicated region body
PF: predicated region fallthrough
CT: control target
= control target key end

     0   :  { %s11390_s30 = smov 0   ;;  %s14083_s0 = inlined_call_operand.vmem [shape: bf16[4,256,128], index: 0, kind: input, shape index: {}]   ;;  %s14084_s1 = inlined_call_operand.vmem [shape: bf16[128,128], index: 1, kind: input, shape index: {}]   ;;  %s14085_s2 = inlined_call_operand.vmem [shape: f32[1,128], index: 2, kind: input, shape index: {}]   ;;  %s14086_s3 = inlined_call_operand.vmem [shape: bf16[1152,128], index: 3, kind: input, shape index: {}]   ;;  %s14087_s4 = inlined_call_operand.vmem [shape: f32[1,128], index: 4, kind: input, shape index: {}]   ;;  %s14088_s5 = inlined_call_operand.vmem [shape: bf16[128,512], index: 5, kind: input, shape index: {}]   ;;  %s14089_s6 = inlined_call_operand.vmem [shape: f32[1,512], index: 6, kind: input, shape index: {}]   ;;  %s14090_s7 = inlined_call_operand.vmem [shape: bf16[128,128], index: 7, kind: input, shape index: {}]   ;;  %s14091_s8 = inlined_call_operand.vmem [shape: f32[1,128], index: 8, kind: input, shape index: {}]   ;;  %s14092_s9 = inlined_call_operand.vmem [shape: bf16[2,128,128], index: 9, kind: output, shape index: {}]  }
   0x1 LB: > { %s11396_s10 = sadd.s32 4294967295, %s11336_s30   ;;  %p9934_p0 = scmp.ge.s32.totalorder %s11336_s30, 1  ;;  %s11336_s30 = sphi %s11390_s30, %s19_s30  }
   0x2   : > { %p289_p1 = scmp.lt.s32.totalorder %s11336_s30, 3 }
   0x4   : > { %p290_p2 = pnand %p9934_p0, %p289_p1 }
   0x6   : > { %293 = sbr.rel (%p290_p2) target bundleno = 2029 (0x7ed), region = 56 }
   0xd   : > { %v11068_v0 = vld [vmem:[%s14084_s1] sm:$0xff]   ;;  %s9935_s13 = sshll.u32 %s11396_s10, 1  ;;  %v11069_v1 = vld [vmem:[%s14084_s1 + $0x8] sm:$0xff]   ;;  %v11070_v2 = vld [vmem:[%s14084_s1 + $0x10] sm:$0xff]   ;;  %vm4348_vm0 = vcmask 1040384   ;;  %v1087_v52 = vlaneseq  ;;  %vm2427_vm5 = vcmask 1041408  }
   0xe   : > { %p327_p3 = scmp.lt.s32.totalorder %s9935_s13, 3  ;;  %10914 = vmatprep.subr.bf16.mxu0 %v11068_v0  ;;  %v11071_v3 = vld [vmem:[%s14084_s1 + $0x18] sm:$0xff]   ;;  %v11072_v5 = vld [vmem:[%s14084_s1 + $0x20] sm:$0xff]   ;;  %v11073_v6 = vld [vmem:[%s14084_s1 + $0x28] sm:$0xff]   ;;  %vm4411_vm1 = vsmask.f32 7938 }
   0xf   : > { %10915 = vmatpush3.bf16.msra.mxu0 %v11068_v0  ;;  %v11074_v7 = vld [vmem:[%s14084_s1 + $0x30] sm:$0xff]   ;;  %v11075_v8 = vld [vmem:[%s14084_s1 + $0x38] sm:$0xff]   ;;  %vm11463_vm2 = vmand %vm4348_vm0, %vm4411_vm1  ;;  %vm4349_vm3 = vsmask.f32 256  ;;  %v11338_v50 = vmov 1983009808  }
  0x10   : > { %s14147_s13 = smov (!%p327_p3, %s9935_s13), 3  ;;  %10916 = vmatprep.subr.bf16.mxu0 %v11069_v1  ;;  %v4416_v41 = vld [vmem:[#allocation2 + $0xc] sm:$0x1]  ;;  %v4354_v43 = vld [vmem:[#allocation2 + $0x8] sm:$0x1]  ;;  %vm11469_vm4 = vmand %vm4348_vm0, %vm4349_vm3  ;;  %v1085_v51 = vunpack.c.l.s4 %v11338_v50  ;;  %v11479_v54 = vshrl.u32 %v1087_v52, 7 }
  0x11   : > { %s10377_s18 = sshll.u32 %s14147_s13, 7  ;;  %v4417_v42 = vsel %vm11463_vm2, 0, %v4416_v41  ;;  %v4355_v45 = vsel %vm11469_vm4, 0, %v4354_v43  ;;  %v4419_v46 = vld [vmem:[#allocation2 + $0x14] sm:$0x1]  ;;  %vm4798_vm6 = vcmask 1042434  }
  0x12   : > { %s11413_s21 = scalar_lea.vmem %s14083_s0, %s10377_s18  ;;  %4418 = vst [vmem:[#allocation2 + $0xc] sm:$0x1] %v4417_v42  ;;  %4356 = vst [vmem:[#allocation2 + $0x8] sm:$0x1] %v4355_v45  ;;  %v4420_v47 = vsel %vm11463_vm2, 0, %v4419_v46  ;;  %v1086_v53 = vunpack.c.0.s8 %v1085_v51  ;;  %vm4800_vm7 = vcmask 1043459  }
  0x13   : > { %10917 = vmatpush3.bf16.msra.mxu0 %v11069_v1  ;;  %v11076_v4 = vld [vmem:[%s11413_s21] sm:$0xff]   ;;  %v11077_v9 = vld [vmem:[%s11413_s21 + $0x8] sm:$0xff]   ;;  %v11078_v10 = vld [vmem:[%s11413_s21 + $0x10] sm:$0xff]   ;;  %4421 = vst [vmem:[#allocation2 + $0x14] sm:$0x1] %v4420_v47  ;;  %vm4802_vm8 = vcmask 1044484  }
  0x14   : > { %10918 = vmatprep.subr.bf16.mxu0 %v11070_v2  ;;  %10930 = vmatprep.mubr.bf16.mxu0 %v11076_v4  ;;  %v11079_v11 = vld [vmem:[%s11413_s21 + $0x18] sm:$0xff]   ;;  %v11080_v12 = vld [vmem:[%s11413_s21 + $0x20] sm:$0xff]   ;;  %v11081_v13 = vld [vmem:[%s11413_s21 + $0x28] sm:$0xff]   ;;  %14101 = vst [vmem:[#allocation5_spill] sm:$0xff] %v11479_v54  ;;  %v11488_v58 = vsub.s32 %v1086_v53, %v11479_v54  ;;  %vm4804_vm9 = vcmask 1045509   ;;  %vm4806_vm10 = vcmask 1046534  }
  0x15   : > { %v11082_v14 = vld [vmem:[%s11413_s21 + $0x30] sm:$0xff]   ;;  %v11083_v15 = vld [vmem:[%s11413_s21 + $0x38] sm:$0xff]   ;;  %v11084_v16 = vld [vmem:[%s11413_s21 + $0x40] sm:$0xff]   ;;  %vm4808_vm11 = vcmask 1047559   ;;  %vm4885_vm12 = vcmask 1043456   ;;  %vm5610_vm3 = vcmask 1046532  }
  0x16   : > { %v11085_v17 = vld [vmem:[%s11413_s21 + $0x48] sm:$0xff]   ;;  %v11086_v18 = vld [vmem:[%s11413_s21 + $0x50] sm:$0xff]   ;;  %v11087_v19 = vld [vmem:[%s11413_s21 + $0x58] sm:$0xff]   ;;  %vm5442_vm14 = vsmask.f32 3328  ;;  %p333_p4 = scmp.lt.s32.totalorder %s11396_s10, 1 }
  0x17   : > { %10919 = vmatpush3.bf16.msra.mxu0 %v11070_v2  ;;  %v11088_v20 = vld [vmem:[%s11413_s21 + $0x60] sm:$0xff]   ;;  %v11089_v21 = vld [vmem:[%s11413_s21 + $0x68] sm:$0xff]   ;;  %v11090_v22 = vld [vmem:[%s11413_s21 + $0x70] sm:$0xff]   ;;  %vm5443_vm15 = vsmask.f32 7440 }
  0x18   : > { %10920 = vmatprep.subr.bf16.mxu0 %v11071_v3  ;;  %v11091_v23 = vld [vmem:[%s11413_s21 + $0x78] sm:$0xff]   ;;  %v11092_v24 = vld [vmem:[%s11413_s21 + $0x80] sm:$0xff]   ;;  %v11093_v25 = vld [vmem:[%s11413_s21 + $0x88] sm:$0xff]   ;;  %s14149_s10 = smov (!%p333_p4, %s11396_s10), 1 }
  0x19   : > { %v11094_v26 = vld [vmem:[%s11413_s21 + $0x90] sm:$0xff]   ;;  %v11095_v27 = vld [vmem:[%s11413_s21 + $0x98] sm:$0xff]   ;;  %v11096_v28 = vld [vmem:[%s11413_s21 + $0xa0] sm:$0xff]   ;;  %s10378_s29 = sshll.u32 %s14149_s10, 6 }
  0x1a   : > { %v11097_v29 = vld [vmem:[%s11413_s21 + $0xa8] sm:$0xff]   ;;  %v11098_v30 = vld [vmem:[%s11413_s21 + $0xb0] sm:$0xff]   ;;  %v11099_v31 = vld [vmem:[%s11413_s21 + $0xb8] sm:$0xff]   ;;  %s14050_s12 = scalar_lea.vmem %s14092_s9, %s10378_s29 }
  0x1b   : > { %10921 = vmatpush3.bf16.msra.mxu0 %v11071_v3  ;;  %v11100_v32 = vld [vmem:[%s11413_s21 + $0xc0] sm:$0xff]   ;;  %v11101_v33 = vld [vmem:[%s11413_s21 + $0xc8] sm:$0xff]   ;;  %v11102_v34 = vld [vmem:[%s11413_s21 + $0xd0] sm:$0xff]  }
  0x1c   : > { %10922 = vmatprep.subr.bf16.mxu0 %v11072_v5  ;;  %v11103_v35 = vld [vmem:[%s11413_s21 + $0xd8] sm:$0xff]   ;;  %v11104_v36 = vld [vmem:[%s11413_s21 + $0xe0] sm:$0xff]   ;;  %v11105_v37 = vld [vmem:[%s11413_s21 + $0xe8] sm:$0xff]  }
  0x1d   : > { %v11106_v38 = vld [vmem:[%s11413_s21 + $0xf0] sm:$0xff]   ;;  %v11107_v39 = vld [vmem:[%s11413_s21 + $0xf8] sm:$0xff]   ;;  %v11484_v55 = vld [vmem:[%s14085_s2] ss:$0 sm:$0xff] }
  0x1e   : > { %v4357_v48 = vld [vmem:[#allocation2 + $0x10] sm:$0x1]  ;;  %v4422_v3 = vld [vmem:[#allocation2 + $0x1c] sm:$0x1]  ;;  %vm11616_vm13 = vmand %vm4885_vm12, %vm4411_vm1  ;;  %vm5609_vm1 = vcmask 1042432  }
  0x1f   : > { %10923 = vmatpush3.bf16.msra.mxu0 %v11072_v5  ;;  %v4358_v49 = vsel %vm11469_vm4, 0, %v4357_v48  ;;  %vm12228_vm0 = vmor %vm5442_vm14, %vm5443_vm15  ;;  %v11189_v40 = vld [vmem:[%s14086_s3 + $0x1a8] sm:$0xff]  }
  0x20   : > { %10924 = vmatprep.subr.bf16.mxu0 %v11073_v6  ;;  %4359 = vst [vmem:[#allocation2 + $0x10] sm:$0x1] %v4358_v49  ;;  %v11108_v49 = vld [vmem:[%s14086_s3 + $0x40] sm:$0xff]   ;;  %vm12263_vm12 = vmor %vm5609_vm1, %vm5610_vm3 }
  0x21   : > { %10626 = vmatprep.subr.bf16.mxu1 %v11108_v49 }
  0x23   : > { %10925 = vmatpush3.bf16.msra.mxu0 %v11073_v6 }
  0x24   : > { %10926 = vmatprep.subr.bf16.mxu0 %v11074_v7 }
  0x27   : > { %10927 = vmatpush3.bf16.msra.mxu0 %v11074_v7  ;;  %v4423_v7 = vsel %vm11463_vm2, 0, %v4422_v3 }
  0x28   : > { %10928 = vmatprep.subr.bf16.mxu0 %v11075_v8  ;;  %4424 = vst [vmem:[#allocation2 + $0x1c] sm:$0x1] %v4423_v7 }
  0x2b   : > { %10929 = vmatpush3.bf16.msra.mxu0 %v11075_v8 }
  0x2e   : > { %10931 = vmatmul.mubr.bf16.vlgmr.msra.gmra.mrb[0].mxu0 %v11077_v9 }
  0x2f   : > { %10934 = vmatprep.mubr.bf16.mxu0 %v11078_v10 }
  0x36   : > { %10935 = vmatmul.mubr.bf16.gmra.mrb[4].mxu0 %v11079_v11 }
  0x37   : > { %10938 = vmatprep.mubr.bf16.mxu0 %v11080_v12 }
  0x3e   : > { %10939 = vmatmul.mubr.bf16.gmra.mrb[8].mxu0 %v11081_v13 }
  0x3f   : > { %10942 = vmatprep.mubr.bf16.mxu0 %v11082_v14 }
  0x46   : > { %10943 = vmatmul.mubr.bf16.gmra.mrb[12].mxu0 %v11083_v15 }
  0x47   : > { %10946 = vmatprep.mubr.bf16.mxu0 %v11084_v16 }
  0x4e   : > { %10947 = vmatmul.mubr.bf16.gmra.mrb[16].mxu0 %v11085_v17 }
  0x4f   : > { %10950 = vmatprep.mubr.bf16.mxu0 %v11086_v18 }
  0x56   : > { %10951 = vmatmul.mubr.bf16.gmra.mrb[20].mxu0 %v11087_v19 }
  0x57   : > { %10954 = vmatprep.mubr.bf16.mxu0 %v11088_v20 }
  0x5e   : > { %10955 = vmatmul.mubr.bf16.gmra.mrb[24].mxu0 %v11089_v21 }
  0x5f   : > { %10958 = vmatprep.mubr.bf16.mxu0 %v11090_v22 }
  0x66   : > { %10959 = vmatmul.mubr.bf16.gmra.mrb[28].mxu0 %v11091_v23 }
  0x67   : > { %10962 = vmatprep.mubr.bf16.mxu0 %v11092_v24 }
  0x6e   : > { %10963 = vmatmul.mubr.bf16.gmra.mrb[32].mxu0 %v11093_v25 }
  0x6f   : > { %10966 = vmatprep.mubr.bf16.mxu0 %v11094_v26 }
  0x76   : > { %10967 = vmatmul.mubr.bf16.gmra.mrb[36].mxu0 %v11095_v27 }
  0x77   : > { %10970 = vmatprep.mubr.bf16.mxu0 %v11096_v28 }
  0x7e   : > { %10971 = vmatmul.mubr.bf16.gmra.mrb[40].mxu0 %v11097_v29 }
  0x7f   : > { %10974 = vmatprep.mubr.bf16.mxu0 %v11098_v30 }
  0x86   : > { %10975 = vmatmul.mubr.bf16.gmra.mrb[44].mxu0 %v11099_v31 }
  0x87   : > { %10978 = vmatprep.mubr.bf16.mxu0 %v11100_v32 }
  0x8e   : > { %10979 = vmatmul.mubr.bf16.gmra.mrb[48].mxu0 %v11101_v33 }
  0x8f   : > { %10982 = vmatprep.mubr.bf16.mxu0 %v11102_v34 }
  0x96   : > { %10983 = vmatmul.mubr.bf16.gmra.mrb[52].mxu0 %v11103_v35 }
  0x97   : > { %10986 = vmatprep.mubr.bf16.mxu0 %v11104_v36 }
  0x9e   : > { %10987 = vmatmul.mubr.bf16.gmra.mrb[56].mxu0 %v11105_v37 }
  0x9f   : > { %10990 = vmatprep.mubr.bf16.mxu0 %v11106_v38 }
  0xa6   : > { %10991 = vmatmul.mubr.bf16.gmra.mrb[60].mxu0 %v11107_v39 }
 0x101   : > { %v10932_v56 = vpop.f32.mrb[0].mxu0 }
 0x102   : > { %v709_v57 = vadd.f32 %v10932_v56, %v11484_v55  ;;  %v700_v59 = vpop.f32.mrb[1].mxu0 }
 0x103   : > { %v701_v60 = vadd.f32 %v11484_v55, %v700_v59  ;;  %v10933_v61 = vpop.f32.mrb[2].mxu0 }
 0x104   : > { %v957_v62 = vmax.f32 %v709_v57, 0.0  ;;  %v712_v63 = vadd.f32 %v10933_v61, %v11484_v55  ;;  %v703_v0 = vpop.f32.mrb[3].mxu0 }
 0x105   : > { %v955_v1 = vmax.f32 %v701_v60, 0.0  ;;  %v704_v2 = vadd.f32 %v11484_v55, %v703_v0 }
 0x106   : > { %v1117_v4 = vcombine.high %v957_v62, %v957_v62  ;;  %v1124_v5 = vrot.slane %v957_v62, %v11488_v58  ;;  %v11494_v6 = vmax.f32 %v712_v63, 0.0 }
 0x107   : > { %v1083_v8 = vcombine.high %v955_v1, %v955_v1  ;;  %v1090_v9 = vrot.slane %v955_v1, %v11488_v58  ;;  %v11499_v10 = vmax.f32 %v704_v2, 0.0 }
 0x108   : > { %v1131_v11 = vrot.slane %v1117_v4, %v11488_v58  ;;  %v1132_v12 = vcombine.high %v1124_v5, %v1124_v5  ;;  %v2484_v13 = vsel %vm2427_vm5, %v1124_v5, -inf  ;;  %v1134_v14 = vcombine.high %v11494_v6, %v11494_v6 }
 0x109   : > { %v2485_v15 = vrot.slane %v2484_v13, 4  ;;  %v1097_v16 = vrot.slane %v1083_v8, %v11488_v58  ;;  %v1098_v17 = vcombine.high %v1090_v9, %v1090_v9  ;;  %v2428_v18 = vsel %vm2427_vm5, %v1090_v9, -inf  ;;  %v11507_v19 = vpop.f32.mrb[4].mxu0 }
 0x10a   : > { %v1133_v20 = vcombine.high %v1131_v11, %v1131_v11  ;;  %v2491_v21 = vsel %vm2427_vm5, %v1132_v12, -inf  ;;  %v2498_v22 = vsel %vm2427_vm5, %v1131_v11, -inf  ;;  %v2429_v23 = vrot.slane %v2428_v18, 4  ;;  %v11511_v24 = vpop.f32.mrb[5].mxu0 }
 0x10b   : > { %v2486_v25 = vmax.f32 %v2484_v13, %v2485_v15  ;;  %v2492_v26 = vrot.slane %v2491_v21, 4  ;;  %v2499_v27 = vrot.slane %v2498_v22, 4  ;;  %v1099_v28 = vcombine.high %v1097_v16, %v1097_v16  ;;  %v11513_v29 = vpop.f32.mrb[6].mxu0 }
 0x10c   : > { %v2505_v30 = vsel %vm2427_vm5, %v1133_v20, -inf  ;;  %v2430_v31 = vmax.f32 %v2428_v18, %v2429_v23  ;;  %v2435_v32 = vsel %vm2427_vm5, %v1098_v17, -inf  ;;  %v2442_v33 = vsel %vm2427_vm5, %v1097_v16, -inf  ;;  %v11518_v34 = vpop.f32.mrb[7].mxu0 }
 0x10d   : > { %v2487_v35 = vrot.slane %v2486_v25, 2  ;;  %v2493_v36 = vmax.f32 %v2491_v21, %v2492_v26  ;;  %v2500_v37 = vmax.f32 %v2498_v22, %v2499_v27  ;;  %v2506_v38 = vrot.slane %v2505_v30, 4 }
 0x10e   : > { %v2431_v39 = vrot.slane %v2430_v31, 2  ;;  %v2436_v41 = vrot.slane %v2435_v32, 4  ;;  %v2443_v42 = vrot.slane %v2442_v33, 4  ;;  %v2449_v43 = vsel %vm2427_vm5, %v1099_v28, -inf }
 0x10f   : > { %v2488_v45 = vmax.f32 %v2486_v25, %v2487_v35  ;;  %v2494_v46 = vrot.slane %v2493_v36, 2  ;;  %v2501_v47 = vrot.slane %v2500_v37, 2  ;;  %v2507_v48 = vmax.f32 %v2505_v30, %v2506_v38 }
 0x110   : > { %v2432_v50 = vmax.f32 %v2430_v31, %v2431_v39  ;;  %v2437_v51 = vmax.f32 %v2435_v32, %v2436_v41  ;;  %v2444_v52 = vmax.f32 %v2442_v33, %v2443_v42  ;;  %v2450_v53 = vrot.slane %v2449_v43, 4 }
 0x111   : > { %v2489_v56 = vrot.slane %v2488_v45, 1  ;;  %v2495_v57 = vmax.f32 %v2493_v36, %v2494_v46  ;;  %v2502_v59 = vmax.f32 %v2500_v37, %v2501_v47  ;;  %v2508_v60 = vrot.slane %v2507_v48, 2  ;;  %v11524_v61 = vpop.f32.mrb[8].mxu0 }
 0x112   : > { %v2433_v62 = vrot.slane %v2432_v50, 1  ;;  %v2438_v63 = vrot.slane %v2437_v51, 2  ;;  %v2445_v0 = vrot.slane %v2444_v52, 2  ;;  %v2451_v1 = vmax.f32 %v2449_v43, %v2450_v53  ;;  %v11526_v2 = vpop.f32.mrb[9].mxu0 }
 0x113   : > { %v2490_v3 = vmax.f32 %v2488_v45, %v2489_v56  ;;  %v2496_v4 = vrot.slane %v2495_v57, 1  ;;  %v2503_v5 = vrot.slane %v2502_v59, 1  ;;  %v2509_v7 = vmax.f32 %v2507_v48, %v2508_v60  ;;  %v11528_v8 = vpop.f32.mrb[10].mxu0 }
 0x114   : > { %v2434_v9 = vmax.f32 %v2432_v50, %v2433_v62  ;;  %v2439_v11 = vmax.f32 %v2437_v51, %v2438_v63  ;;  %v2446_v12 = vmax.f32 %v2444_v52, %v2445_v0  ;;  %v2452_v13 = vrot.slane %v2451_v1, 2  ;;  %v11530_v15 = vpop.f32.mrb[11].mxu0 }
 0x115   : > { %v2497_v16 = vmax.f32 %v2495_v57, %v2496_v4  ;;  %v2504_v17 = vmax.f32 %v2502_v59, %v2503_v5  ;;  %v2510_v18 = vrot.slane %v2509_v7, 1  ;;  %v1141_v20 = vrot.slane %v11494_v6, %v11488_v58  ;;  %v11109_v59 = vld [vmem:[%s14086_s3] sm:$0xff]  }
 0x116   : > { %v2440_v21 = vrot.slane %v2439_v11, 1  ;;  %v2447_v22 = vrot.slane %v2446_v12, 1  ;;  %v2453_v23 = vmax.f32 %v2451_v1, %v2452_v13  ;;  %v4220_v25 = vmax.f32 %v2434_v9, %v2490_v3  ;;  %10627 = vmatpush3.bf16.msra.mxu1 %v11109_v59  ;;  %v11110_v13 = vld [vmem:[%s14086_s3 + $0x48] sm:$0xff]  }
 0x117   : > { %v2511_v26 = vmax.f32 %v2509_v7, %v2510_v18  ;;  %v1148_v27 = vrot.slane %v1134_v14, %v11488_v58  ;;  %v1149_v28 = vcombine.high %v1141_v20, %v1141_v20  ;;  %v2512_v30 = vsel %vm2427_vm5, %v1141_v20, -inf  ;;  %10628 = vmatprep.subr.bf16.mxu1 %v11110_v13 }
 0x118   : > { %v2441_v31 = vmax.f32 %v2439_v11, %v2440_v21  ;;  %v2448_v32 = vmax.f32 %v2446_v12, %v2447_v22  ;;  %v2454_v33 = vrot.slane %v2453_v23, 1  ;;  %v10379_v35 = vpack.c.bf16 %v4220_v25, %v4220_v25  ;;  %v11111_v21 = vld [vmem:[%s14086_s3 + $0x8] sm:$0xff]  }
 0x119   : > { %v1150_v36 = vcombine.high %v1148_v27, %v1148_v27  ;;  %v2513_v37 = vrot.slane %v2512_v30, 4  ;;  %v2519_v38 = vsel %vm2427_vm5, %v1149_v28, -inf  ;;  %v2526_v39 = vsel %vm2427_vm5, %v1148_v27, -inf  ;;  %v11541_v41 = vpop.f32.mrb[12].mxu0 }
 0x11a   : > { %v2455_v42 = vmax.f32 %v2453_v23, %v2454_v33  ;;  %v4221_v43 = vmax.f32 %v2441_v31, %v2497_v16  ;;  %v4222_v45 = vmax.f32 %v2448_v32, %v2504_v17  ;;  %v4734_v6 = vunpack.c.l.b16 %v10379_v35  ;;  %v11543_v14 = vpop.f32.mrb[13].mxu0  ;;  %10629 = vmatpush3.bf16.msra.mxu1 %v11111_v21 }
 0x11b   : > { %v2514_v46 = vmax.f32 %v2512_v30, %v2513_v37  ;;  %v2520_v47 = vrot.slane %v2519_v38, 4  ;;  %v2527_v48 = vrot.slane %v2526_v39, 4  ;;  %v2533_v49 = vsel %vm2427_vm5, %v1150_v36, -inf  ;;  %v11546_v50 = vpop.f32.mrb[14].mxu0 }
 0x11c   : > { %v4223_v51 = vmax.f32 %v2455_v42, %v2511_v26  ;;  %v10380_v52 = vpack.c.bf16 %v4221_v43, %v4221_v43  ;;  %v10381_v53 = vpack.c.bf16 %v4222_v45, %v4222_v45  ;;  %v2534_v56 = vrot.slane %v2533_v49, 4  ;;  %v11548_v57 = vpop.f32.mrb[15].mxu0 }
 0x11d   : > { %v2515_v60 = vrot.slane %v2514_v46, 2  ;;  %v2521_v62 = vmax.f32 %v2519_v38, %v2520_v47  ;;  %v2528_v63 = vmax.f32 %v2526_v39, %v2527_v48  ;;  %v1100_v0 = vcombine.high %v11499_v10, %v11499_v10 }
 0x11e   : > { %v10382_v1 = vpack.c.bf16 %v4223_v51, %v4223_v51  ;;  %v4735_v3 = vunpack.c.l.b16 %v10380_v52  ;;  %v4736_v4 = vunpack.c.l.b16 %v10381_v53  ;;  %v2535_v5 = vmax.f32 %v2533_v49, %v2534_v56 }
 0x11f   : > { %v2516_v7 = vmax.f32 %v2514_v46, %v2515_v60  ;;  %v2522_v9 = vrot.slane %v2521_v62, 2  ;;  %v2529_v11 = vrot.slane %v2528_v63, 2  ;;  %v1107_v12 = vrot.slane %v11499_v10, %v11488_v58 }
 0x120   : > { %v4737_v16 = vunpack.c.l.b16 %v10382_v1  ;;  %v4799_v17 = vsel %vm4798_vm6, %v4735_v3, %v4734_v6  ;;  %v2536_v18 = vrot.slane %v2535_v5, 2  ;;  %v1114_v20 = vrot.slane %v1100_v0, %v11488_v58 }
 0x121   : > { %v4801_v22 = vsel %vm4800_vm7, %v4736_v4, %v4799_v17  ;;  %v2517_v23 = vrot.slane %v2516_v7, 1  ;;  %v2523_v25 = vmax.f32 %v2521_v62, %v2522_v9  ;;  %v2530_v26 = vmax.f32 %v2528_v63, %v2529_v11  ;;  %v11567_v36 = vpop.f32.mrb[16].mxu0 }
 0x122   : > { %v2537_v10 = vmax.f32 %v2535_v5, %v2536_v18  ;;  %v1115_v27 = vcombine.high %v1107_v12, %v1107_v12  ;;  %v1116_v28 = vcombine.high %v1114_v20, %v1114_v20  ;;  %v2456_v30 = vsel %vm2427_vm5, %v1107_v12, -inf  ;;  %v11583_v1 = vpop.f32.mrb[17].mxu0 }
 0x123   : > { %v2518_v31 = vmax.f32 %v2516_v7, %v2517_v23  ;;  %v2524_v32 = vrot.slane %v2523_v25, 1  ;;  %v2531_v33 = vrot.slane %v2530_v26, 1  ;;  %v2457_v35 = vrot.slane %v2456_v30, 4 }
 0x124   : > { %v2538_v37 = vrot.slane %v2537_v10, 1  ;;  %v2463_v38 = vsel %vm2427_vm5, %v1115_v27, -inf  ;;  %v2470_v39 = vsel %vm2427_vm5, %v1114_v20, -inf  ;;  %v2477_v42 = vsel %vm2427_vm5, %v1116_v28, -inf }
 0x125   : > { %v2525_v43 = vmax.f32 %v2523_v25, %v2524_v32  ;;  %v2532_v45 = vmax.f32 %v2530_v26, %v2531_v33  ;;  %v2458_v6 = vmax.f32 %v2456_v30, %v2457_v35  ;;  %v2464_v46 = vrot.slane %v2463_v38, 4 }
 0x126   : > { %v2539_v47 = vmax.f32 %v2537_v10, %v2538_v37  ;;  %v2471_v48 = vrot.slane %v2470_v39, 4  ;;  %v2478_v49 = vrot.slane %v2477_v42, 4  ;;  %v11573_v51 = vsel %vm4802_vm8, %v4737_v16, %v4801_v22 }
 0x127   : > { %v2459_v52 = vrot.slane %v2458_v6, 2  ;;  %v2465_v53 = vmax.f32 %v2463_v38, %v2464_v46  ;;  %v725_v56 = vadd.f32 %v11507_v19, %v11484_v55  ;;  %v717_v59 = vadd.f32 %v11484_v55, %v11511_v24 }
 0x128   : > { %v2472_v60 = vmax.f32 %v2470_v39, %v2471_v48  ;;  %v2479_v62 = vmax.f32 %v2477_v42, %v2478_v49  ;;  %v728_v63 = vadd.f32 %v11513_v29, %v11484_v55  ;;  %v720_v0 = vadd.f32 %v11484_v55, %v11518_v34 }
 0x129   : > { %v2460_v3 = vmax.f32 %v2458_v6, %v2459_v52  ;;  %v2466_v4 = vrot.slane %v2465_v53, 2  ;;  %v961_v5 = vmax.f32 %v725_v56, 0.0  ;;  %v959_v7 = vmax.f32 %v717_v59, 0.0 }
 0x12a   : > { %v2473_v9 = vrot.slane %v2472_v60, 2  ;;  %v2480_v11 = vrot.slane %v2479_v62, 2  ;;  %v11585_v19 = vmax.f32 %v728_v63, 0.0  ;;  %v11587_v24 = vmax.f32 %v720_v0, 0.0 }
 0x12b   : > { %v2461_v12 = vrot.slane %v2460_v3, 1  ;;  %v2467_v13 = vmax.f32 %v2465_v53, %v2466_v4  ;;  %v1185_v16 = vcombine.high %v961_v5, %v961_v5  ;;  %v1192_v29 = vrot.slane %v961_v5, %v11488_v58 }
 0x12c   : > { %v2474_v17 = vmax.f32 %v2472_v60, %v2473_v9  ;;  %v2481_v34 = vmax.f32 %v2479_v62, %v2480_v11  ;;  %v1151_v18 = vcombine.high %v959_v7, %v959_v7  ;;  %v11591_v20 = vrot.slane %v959_v7, %v11488_v58 }
 0x12d   : > { %v2462_v21 = vmax.f32 %v2460_v3, %v2461_v12  ;;  %v2468_v22 = vrot.slane %v2467_v13, 1  ;;  %v1199_v23 = vrot.slane %v1185_v16, %v11488_v58  ;;  %v1200_v25 = vcombine.high %v1192_v29, %v1192_v29  ;;  %v11112_v3 = vld [vmem:[%s14086_s3 + $0x140] sm:$0xff]  }
 0x12e   : > { %v2475_v26 = vrot.slane %v2474_v17, 1  ;;  %v2482_v10 = vrot.slane %v2481_v34, 1  ;;  %v2596_v27 = vsel %vm2427_vm5, %v1192_v29, -inf  ;;  %v11596_v28 = vrot.slane %v1151_v18, %v11488_v58  ;;  %10754 = vmatprep.subr.bf16.mxu0 %v11112_v3 }
 0x12f   : > { %v2469_v30 = vmax.f32 %v2467_v13, %v2468_v22  ;;  %v4224_v32 = vmax.f32 %v2462_v21, %v2518_v31  ;;  %v1201_v33 = vcombine.high %v1199_v23, %v1199_v23  ;;  %v2597_v35 = vrot.slane %v2596_v27, 4  ;;  %v4890_v31 = vld [vmem:[#allocation2 + $0xc] sm:$0x1] }
 0x130   : > { %v2476_v37 = vmax.f32 %v2474_v17, %v2475_v26  ;;  %v2483_v38 = vmax.f32 %v2481_v34, %v2482_v10  ;;  %v2603_v39 = vsel %vm2427_vm5, %v1200_v25, -inf  ;;  %v2610_v42 = vsel %vm2427_vm5, %v1199_v23, -inf  ;;  %v11608_v17 = vpop.f32.mrb[18].mxu0  ;;  %v4887_v25 = vld [vmem:[#allocation2 + $0x8] sm:$0xf] }
 0x131   : > { %v4225_v6 = vmax.f32 %v2469_v30, %v2525_v43  ;;  %v10383_v46 = vpack.c.bf16 %v4224_v32, %v4224_v32  ;;  %v2598_v48 = vmax.f32 %v2596_v27, %v2597_v35  ;;  %v2604_v49 = vrot.slane %v2603_v39, 4  ;;  %v11640_v3 = vpop.f32.mrb[19].mxu0 }
 0x132   : > { %v4226_v52 = vmax.f32 %v2476_v37, %v2532_v45  ;;  %v4227_v53 = vmax.f32 %v2483_v38, %v2539_v47  ;;  %v2611_v56 = vrot.slane %v2610_v42, 4  ;;  %v2617_v59 = vsel %vm2427_vm5, %v1201_v33, -inf }
 0x133   : > { %v10384_v60 = vpack.c.bf16 %v4225_v6, %v4225_v6  ;;  %v4738_v62 = vunpack.c.l.b16 %v10383_v46  ;;  %v2599_v63 = vrot.slane %v2598_v48, 2  ;;  %v2605_v0 = vmax.f32 %v2603_v39, %v2604_v49  ;;  %v11113_v6 = vld [vmem:[%s14086_s3 + $0x50] sm:$0xff]   ;;  %v11114_v46 = vld [vmem:[%s14086_s3 + $0x100] sm:$0xff]  }
 0x134   : > { %v10385_v4 = vpack.c.bf16 %v4226_v52, %v4226_v52  ;;  %v10443_v5 = vpack.c.bf16 %v4227_v53, %v4227_v53  ;;  %v2612_v43 = vmax.f32 %v2610_v42, %v2611_v56  ;;  %v2618_v7 = vrot.slane %v2617_v59, 4  ;;  %10630 = vmatprep.subr.bf16.mxu1 %v11113_v6  ;;  %10755 = vmatpush3.bf16.msra.mxu0 %v11114_v46 }
 0x135   : > { %v4739_v9 = vunpack.c.l.b16 %v10384_v60  ;;  %v4805_v45 = vsel %vm4804_vm9, %v4738_v62, %v11573_v51  ;;  %v2600_v47 = vmax.f32 %v2598_v48, %v2599_v63  ;;  %v2606_v11 = vrot.slane %v2605_v0, 2 }
 0x136   : > { %v4740_v12 = vunpack.c.l.b16 %v10385_v4  ;;  %v4891_v13 = vsel %vm11469_vm4, %v10443_v5, %v4890_v31  ;;  %v2613_v16 = vrot.slane %v2612_v43, 2  ;;  %v2619_v29 = vmax.f32 %v2617_v59, %v2618_v7 }
 0x137   : > { %v4807_v34 = vsel %vm4806_vm10, %v4739_v9, %v4805_v45  ;;  %4892 = vst [vmem:[#allocation2 + $0xc] sm:$0x1] %v4891_v13  ;;  %v2601_v18 = vrot.slane %v2600_v47, 1  ;;  %v2607_v21 = vmax.f32 %v2605_v0, %v2606_v11  ;;  %v1166_v22 = vcombine.high %v11591_v20, %v11591_v20 }
 0x138   : > { %v4809_v51 = vsel %vm4808_vm11, %v4740_v12, %v4807_v34  ;;  %v2614_v26 = vmax.f32 %v2612_v43, %v2613_v16  ;;  %v2620_v10 = vrot.slane %v2619_v29, 2  ;;  %v1167_v27 = vcombine.high %v11596_v28, %v11596_v28 }
 0x139   : > { %v4852_v30 = vpack.c.b16 %v4809_v51, %v4809_v51  ;;  %v2602_v32 = vmax.f32 %v2600_v47, %v2601_v18  ;;  %v2608_v33 = vrot.slane %v2607_v21, 1  ;;  %v2540_v35 = vsel %vm2427_vm5, %v11591_v20, -inf }
 0x13a   : > { %v2615_v37 = vrot.slane %v2614_v26, 1  ;;  %v2621_v38 = vmax.f32 %v2619_v29, %v2620_v10  ;;  %v2541_v39 = vrot.slane %v2540_v35, 4  ;;  %v2547_v42 = vsel %vm2427_vm5, %v1166_v22, -inf }
 0x13b   : > { %v4888_v48 = vsel %vm11616_vm13, %v4852_v30, %v4887_v25  ;;  %v2609_v49 = vmax.f32 %v2607_v21, %v2608_v33  ;;  %v2548_v52 = vrot.slane %v2547_v42, 4  ;;  %v2554_v20 = vsel %vm2427_vm5, %v11596_v28, -inf }
 0x13c   : > { %4889 = vst [vmem:[#allocation2 + $0x8] sm:$0xf] %v4888_v48  ;;  %v2616_v53 = vmax.f32 %v2614_v26, %v2615_v37  ;;  %v2622_v56 = vrot.slane %v2621_v38, 1  ;;  %v2542_v59 = vmax.f32 %v2540_v35, %v2541_v39  ;;  %v2555_v60 = vrot.slane %v2554_v20, 4 }
 0x13d   : > { %v2549_v62 = vmax.f32 %v2547_v42, %v2548_v52  ;;  %v2561_v31 = vsel %vm2427_vm5, %v1167_v27, -inf  ;;  %v1202_v63 = vcombine.high %v11585_v19, %v11585_v19  ;;  %v1209_v0 = vrot.slane %v11585_v19, %v11488_v58 }
 0x13e   : > { %v2623_v4 = vmax.f32 %v2621_v38, %v2622_v56  ;;  %v2543_v28 = vrot.slane %v2542_v59, 2  ;;  %v2556_v5 = vmax.f32 %v2554_v20, %v2555_v60  ;;  %v2562_v43 = vrot.slane %v2561_v31, 4 }
 0x13f   : > { %v2550_v7 = vrot.slane %v2549_v62, 2  ;;  %v1216_v9 = vrot.slane %v1202_v63, %v11488_v58  ;;  %v1217_v45 = vcombine.high %v1209_v0, %v1209_v0  ;;  %v2624_v47 = vsel %vm2427_vm5, %v1209_v0, -inf }
 0x140   : > { %v2544_v11 = vmax.f32 %v2542_v59, %v2543_v28  ;;  %v2557_v12 = vrot.slane %v2556_v5, 2  ;;  %v2563_v13 = vmax.f32 %v2561_v31, %v2562_v43  ;;  %v2625_v16 = vrot.slane %v2624_v47, 4  ;;  %v11115_v43 = vld [vmem:[%s14086_s3 + $0x10] sm:$0xff]  }
 0x141   : > { %v2551_v29 = vmax.f32 %v2549_v62, %v2550_v7  ;;  %v1218_v34 = vcombine.high %v1216_v9, %v1216_v9  ;;  %v2631_v19 = vsel %vm2427_vm5, %v1217_v45, -inf  ;;  %v2638_v18 = vsel %vm2427_vm5, %v1216_v9, -inf  ;;  %10631 = vmatpush3.bf16.msra.mxu1 %v11115_v43 }
 0x142   : > { %v2545_v21 = vrot.slane %v2544_v11, 1  ;;  %v2558_v22 = vmax.f32 %v2556_v5, %v2557_v12  ;;  %v2564_v51 = vrot.slane %v2563_v13, 2  ;;  %v2626_v25 = vmax.f32 %v2624_v47, %v2625_v16 }
 0x143   : > { %v2552_v26 = vrot.slane %v2551_v29, 1  ;;  %v2632_v10 = vrot.slane %v2631_v19, 4  ;;  %v2639_v27 = vrot.slane %v2638_v18, 4  ;;  %v2645_v30 = vsel %vm2427_vm5, %v1218_v34, -inf }
 0x144   : > { %v2546_v33 = vmax.f32 %v2544_v11, %v2545_v21  ;;  %v2559_v35 = vrot.slane %v2558_v22, 1  ;;  %v2565_v37 = vmax.f32 %v2563_v13, %v2564_v51  ;;  %v2627_v38 = vrot.slane %v2626_v25, 2 }
 0x145   : > { %v2553_v39 = vmax.f32 %v2551_v29, %v2552_v26  ;;  %v2633_v42 = vmax.f32 %v2631_v19, %v2632_v10  ;;  %v2640_v6 = vmax.f32 %v2638_v18, %v2639_v27  ;;  %v2646_v46 = vrot.slane %v2645_v30, 4  ;;  %v11117_v19 = vld [vmem:[%s14086_s3 + $0x58] sm:$0xff]  }
 0x146   : > { %v2560_v48 = vmax.f32 %v2558_v22, %v2559_v35  ;;  %v2566_v52 = vrot.slane %v2565_v37, 1  ;;  %v4228_v20 = vmax.f32 %v2546_v33, %v2602_v32  ;;  %v2628_v56 = vmax.f32 %v2626_v25, %v2627_v38  ;;  %v11119_v25 = vld [vmem:[%s14086_s3 + $0x18] sm:$0xff]   ;;  %10632 = vmatprep.subr.bf16.mxu1 %v11117_v19 }
 0x147   : > { %v4229_v59 = vmax.f32 %v2553_v39, %v2609_v49  ;;  %v2634_v60 = vrot.slane %v2633_v42, 2  ;;  %v2641_v62 = vrot.slane %v2640_v6, 2  ;;  %v2647_v31 = vmax.f32 %v2645_v30, %v2646_v46  ;;  %v11116_v49 = vld [vmem:[%s14086_s3 + $0x148] sm:$0xff]   ;;  %10633 = vmatpush3.bf16.msra.mxu1 %v11119_v25  ;;  %v11682_v46 = vpop.f32.mrb[20].mxu0 }
 0x148   : > { %v2567_v63 = vmax.f32 %v2565_v37, %v2566_v52  ;;  %v4230_v0 = vmax.f32 %v2560_v48, %v2616_v53  ;;  %v10387_v28 = vpack.c.bf16 %v4228_v20, %v4228_v20  ;;  %v2629_v5 = vrot.slane %v2628_v56, 1  ;;  %10756 = vmatprep.subr.bf16.mxu0 %v11116_v49  ;;  %v11703_v19 = vpop.f32.mrb[21].mxu0 }
 0x149   : > { %v10388_v7 = vpack.c.bf16 %v4229_v59, %v4229_v59  ;;  %v2635_v9 = vmax.f32 %v2633_v42, %v2634_v60  ;;  %v2642_v45 = vmax.f32 %v2640_v6, %v2641_v62  ;;  %v2648_v47 = vrot.slane %v2647_v31, 2 }
 0x14a   : > { %v4231_v11 = vmax.f32 %v2567_v63, %v2623_v4  ;;  %v10389_v12 = vpack.c.bf16 %v4230_v0, %v4230_v0  ;;  %v4742_v32 = vunpack.c.l.b16 %v10387_v28  ;;  %v11650_v13 = vmax.f32 %v2628_v56, %v2629_v5  ;;  %v11118_v4 = vld [vmem:[%s14086_s3 + $0x108] sm:$0xff]  }
 0x14b   : > { %v4743_v53 = vunpack.c.l.b16 %v10388_v7  ;;  %v2636_v16 = vrot.slane %v2635_v9, 1  ;;  %v2643_v29 = vrot.slane %v2642_v45, 1  ;;  %v2649_v34 = vmax.f32 %v2647_v31, %v2648_v47  ;;  %10757 = vmatpush3.bf16.msra.mxu0 %v11118_v4 }
 0x14c   : > { %v10390_v18 = vpack.c.bf16 %v4231_v11, %v4231_v11  ;;  %v4744_v21 = vunpack.c.l.b16 %v10389_v12  ;;  %v1168_v22 = vcombine.high %v11587_v24, %v11587_v24  ;;  %v1175_v51 = vrot.slane %v11587_v24, %v11488_v58 }
 0x14d   : > { %v4810_v26 = vsel %vm4798_vm6, %v4743_v53, %v4742_v32  ;;  %v11669_v10 = vmax.f32 %v2635_v9, %v2636_v16  ;;  %v11671_v27 = vmax.f32 %v2642_v45, %v2643_v29  ;;  %v2650_v30 = vrot.slane %v2649_v34, 1 }
 0x14e   : > { %v4745_v33 = vunpack.c.l.b16 %v10390_v18  ;;  %v4811_v35 = vsel %vm4800_vm7, %v4744_v21, %v4810_v26  ;;  %v1182_v37 = vrot.slane %v1168_v22, %v11488_v58  ;;  %v1183_v24 = vcombine.high %v1175_v51, %v1175_v51 }
 0x14f   : > { %v11675_v38 = vmax.f32 %v2649_v34, %v2650_v30  ;;  %v2568_v39 = vsel %vm2427_vm5, %v1175_v51, -inf  ;;  %v741_v42 = vadd.f32 %v11524_v61, %v11484_v55  ;;  %v733_v6 = vadd.f32 %v11484_v55, %v11526_v2 }
 0x150   : > { %v1184_v48 = vcombine.high %v1182_v37, %v1182_v37  ;;  %v2569_v52 = vrot.slane %v2568_v39, 4  ;;  %v2575_v20 = vsel %vm2427_vm5, %v1183_v24, -inf  ;;  %v2582_v56 = vsel %vm2427_vm5, %v1182_v37, -inf }
 0x151   : > { %v2576_v59 = vrot.slane %v2575_v20, 4  ;;  %v2583_v60 = vrot.slane %v2582_v56, 4  ;;  %v11687_v62 = vsel %vm4802_vm8, %v4745_v33, %v4811_v35  ;;  %v965_v31 = vmax.f32 %v741_v42, 0.0 }
 0x152   : > { %v2570_v63 = vmax.f32 %v2568_v39, %v2569_v52  ;;  %v2589_v61 = vsel %vm2427_vm5, %v1184_v48, -inf  ;;  %v963_v0 = vmax.f32 %v733_v6, 0.0  ;;  %v11692_v2 = vadd.f32 %v11528_v8, %v11484_v55 }
 0x153   : > { %v2577_v28 = vmax.f32 %v2575_v20, %v2576_v59  ;;  %v2584_v5 = vmax.f32 %v2582_v56, %v2583_v60  ;;  %v2590_v43 = vrot.slane %v2589_v61, 4  ;;  %v1253_v7 = vcombine.high %v965_v31, %v965_v31 }
 0x154   : > { %v2571_v9 = vrot.slane %v2570_v63, 2  ;;  %v1260_v45 = vrot.slane %v965_v31, %v11488_v58  ;;  %v1219_v47 = vcombine.high %v963_v0, %v963_v0  ;;  %v11696_v11 = vrot.slane %v963_v0, %v11488_v58 }
 0x155   : > { %v2578_v12 = vrot.slane %v2577_v28, 2  ;;  %v2585_v32 = vrot.slane %v2584_v5, 2  ;;  %v2591_v49 = vmax.f32 %v2589_v61, %v2590_v43  ;;  %v1267_v53 = vrot.slane %v1253_v7, %v11488_v58 }
 0x156   : > { %v2572_v16 = vmax.f32 %v2570_v63, %v2571_v9  ;;  %v1268_v29 = vcombine.high %v1260_v45, %v1260_v45  ;;  %v2708_v8 = vsel %vm2427_vm5, %v1260_v45, -inf  ;;  %v11701_v34 = vrot.slane %v1219_v47, %v11488_v58 }
 0x157   : > { %v2579_v4 = vmax.f32 %v2577_v28, %v2578_v12  ;;  %v2586_v18 = vmax.f32 %v2584_v5, %v2585_v32  ;;  %v2592_v21 = vrot.slane %v2591_v49, 2  ;;  %v1269_v22 = vcombine.high %v1267_v53, %v1267_v53  ;;  %v11120_v12 = vld [vmem:[%s14086_s3 + $0x150] sm:$0xff]  }
 0x158   : > { %v2573_v51 = vrot.slane %v2572_v16, 1  ;;  %v2709_v25 = vrot.slane %v2708_v8, 4  ;;  %v2715_v26 = vsel %vm2427_vm5, %v1268_v29, -inf  ;;  %v2722_v30 = vsel %vm2427_vm5, %v1267_v53, -inf  ;;  %v4896_v29 = vld [vmem:[#allocation2 + $0x14] sm:$0x1]  ;;  %10758 = vmatprep.subr.bf16.mxu0 %v11120_v12 }
 0x159   : > { %v2580_v33 = vrot.slane %v2579_v4, 1  ;;  %v2587_v35 = vrot.slane %v2586_v18, 1  ;;  %v2593_v37 = vmax.f32 %v2591_v49, %v2592_v21  ;;  %v2716_v24 = vrot.slane %v2715_v26, 4 }
 0x15a   : > { %v2574_v39 = vmax.f32 %v2572_v16, %v2573_v51  ;;  %v2710_v42 = vmax.f32 %v2708_v8, %v2709_v25  ;;  %v2723_v6 = vrot.slane %v2722_v30, 4  ;;  %v2729_v48 = vsel %vm2427_vm5, %v1269_v22, -inf  ;;  %v11715_v51 = vpop.f32.mrb[22].mxu0 }
 0x15b   : > { %v2581_v52 = vmax.f32 %v2579_v4, %v2580_v33  ;;  %v2588_v20 = vmax.f32 %v2586_v18, %v2587_v35  ;;  %v2594_v56 = vrot.slane %v2593_v37, 1  ;;  %v2717_v59 = vmax.f32 %v2715_v26, %v2716_v24 }
 0x15c   : > { %v4232_v60 = vmax.f32 %v2574_v39, %v11650_v13  ;;  %v2711_v31 = vrot.slane %v2710_v42, 2  ;;  %v2724_v63 = vmax.f32 %v2722_v30, %v2723_v6  ;;  %v2730_v61 = vrot.slane %v2729_v48, 4 }
 0x15d   : > { %v2595_v0 = vmax.f32 %v2593_v37, %v2594_v56  ;;  %v4233_v28 = vmax.f32 %v2581_v52, %v11669_v10  ;;  %v4234_v5 = vmax.f32 %v2588_v20, %v11671_v27  ;;  %v2718_v43 = vrot.slane %v2717_v59, 2 }
 0x15e   : > { %v10391_v7 = vpack.c.bf16 %v4232_v60, %v4232_v60  ;;  %v2712_v9 = vmax.f32 %v2710_v42, %v2711_v31  ;;  %v2725_v45 = vrot.slane %v2724_v63, 2  ;;  %v2731_v47 = vmax.f32 %v2729_v48, %v2730_v61  ;;  %v4893_v42 = vld [vmem:[#allocation2 + $0x10] sm:$0xf]  ;;  %v11121_v60 = vld [vmem:[%s14086_s3 + $0x60] sm:$0xff]  }
 0x15f   : > { %v4235_v32 = vmax.f32 %v2595_v0, %v11675_v38  ;;  %v10392_v13 = vpack.c.bf16 %v4233_v28, %v4233_v28  ;;  %v10393_v49 = vpack.c.bf16 %v4234_v5, %v4234_v5  ;;  %v2719_v53 = vmax.f32 %v2717_v59, %v2718_v43  ;;  %v11122_v31 = vld [vmem:[%s14086_s3 + $0x110] sm:$0xff]   ;;  %v4360_v5 = vld [vmem:[#allocation2 + $0x18] sm:$0x1]  ;;  %10634 = vmatprep.subr.bf16.mxu1 %v11121_v60 }
 0x160   : > { %v4746_v16 = vunpack.c.l.b16 %v10391_v7  ;;  %v2713_v8 = vrot.slane %v2712_v9, 1  ;;  %v2726_v10 = vmax.f32 %v2724_v63, %v2725_v45  ;;  %v2732_v4 = vrot.slane %v2731_v47, 2  ;;  %10759 = vmatpush3.bf16.msra.mxu0 %v11122_v31 }
 0x161   : > { %v4747_v27 = vunpack.c.l.b16 %v10392_v13  ;;  %v4748_v18 = vunpack.c.l.b16 %v10393_v49  ;;  %v10444_v21 = vpack.c.bf16 %v4235_v32, %v4235_v32  ;;  %v2720_v22 = vrot.slane %v2719_v53, 1  ;;  %v11752_v32 = vpop.f32.mrb[23].mxu0 }
 0x162   : > { %v4813_v25 = vsel %vm4804_vm9, %v4746_v16, %v11687_v62  ;;  %v11719_v26 = vmax.f32 %v2712_v9, %v2713_v8  ;;  %v2727_v38 = vrot.slane %v2726_v10, 1  ;;  %v2733_v30 = vmax.f32 %v2731_v47, %v2732_v4 }
 0x163   : > { %v4814_v33 = vsel %vm4806_vm10, %v4747_v27, %v4813_v25  ;;  %v4897_v35 = vsel %vm11469_vm4, %v10444_v21, %v4896_v29  ;;  %v11724_v37 = vmax.f32 %v2719_v53, %v2720_v22  ;;  %v1234_v24 = vcombine.high %v11696_v11, %v11696_v11 }
 0x164   : > { %v4815_v39 = vsel %vm4808_vm11, %v4748_v18, %v4814_v33  ;;  %4898 = vst [vmem:[#allocation2 + $0x14] sm:$0x1] %v4897_v35  ;;  %v11729_v6 = vmax.f32 %v2726_v10, %v2727_v38  ;;  %v2734_v62 = vrot.slane %v2733_v30, 1  ;;  %v1235_v48 = vcombine.high %v11701_v34, %v11701_v34 }
 0x165   : > { %v4854_v52 = vpack.c.b16 %v4815_v39, %v4815_v39  ;;  %v2652_v20 = vsel %vm2427_vm5, %v11696_v11, -inf  ;;  %v2659_v56 = vsel %vm2427_vm5, %v1234_v24, -inf  ;;  %v2666_v59 = vsel %vm2427_vm5, %v11701_v34, -inf }
 0x166   : > { %v11744_v63 = vmax.f32 %v2733_v30, %v2734_v62  ;;  %v2653_v61 = vrot.slane %v2652_v20, 4  ;;  %v2660_v0 = vrot.slane %v2659_v56, 4  ;;  %v2667_v28 = vrot.slane %v2666_v59, 4 }
 0x167   : > { %v4894_v11 = vsel %vm11616_vm13, %v4854_v52, %v4893_v42  ;;  %v2673_v43 = vsel %vm2427_vm5, %v1235_v48, -inf  ;;  %v966_v34 = vmax.f32 %v11692_v2, 0.0  ;;  %v736_v7 = vadd.f32 %v11484_v55, %v11530_v15 }
 0x168   : > { %4895 = vst [vmem:[#allocation2 + $0x10] sm:$0xf] %v4894_v11  ;;  %v2654_v9 = vmax.f32 %v2652_v20, %v2653_v61  ;;  %v2661_v45 = vmax.f32 %v2659_v56, %v2660_v0  ;;  %v2668_v47 = vmax.f32 %v2666_v59, %v2667_v28  ;;  %v2674_v12 = vrot.slane %v2673_v43, 4 }
 0x169   : > { %v1270_v13 = vcombine.high %v966_v34, %v966_v34  ;;  %v1277_v49 = vrot.slane %v966_v34, %v11488_v58  ;;  %v11755_v53 = vmax.f32 %v736_v7, 0.0  ;;  %v4361_v2 = vsel %vm11469_vm4, 0, %v4360_v5 }
 0x16a   : > { %v2655_v16 = vrot.slane %v2654_v9, 2  ;;  %v2662_v29 = vrot.slane %v2661_v45, 2  ;;  %v2669_v55 = vrot.slane %v2668_v47, 2  ;;  %v2675_v15 = vmax.f32 %v2673_v43, %v2674_v12  ;;  %4362 = vst [vmem:[#allocation2 + $0x18] sm:$0x1] %v4361_v2 }
 0x16b   : > { %v1284_v8 = vrot.slane %v1270_v13, %v11488_v58  ;;  %v1285_v10 = vcombine.high %v1277_v49, %v1277_v49  ;;  %v2736_v4 = vsel %vm2427_vm5, %v1277_v49, -inf  ;;  %v1236_v27 = vcombine.high %v11755_v53, %v11755_v53  ;;  %v11123_v49 = vld [vmem:[%s14086_s3 + $0x20] sm:$0xff]  }
 0x16c   : > { %v2656_v18 = vmax.f32 %v2654_v9, %v2655_v16  ;;  %v2663_v21 = vmax.f32 %v2661_v45, %v2662_v29  ;;  %v2670_v22 = vmax.f32 %v2668_v47, %v2669_v55  ;;  %v2676_v25 = vrot.slane %v2675_v15, 2  ;;  %10635 = vmatpush3.bf16.msra.mxu1 %v11123_v49 }
 0x16d   : > { %v1286_v38 = vcombine.high %v1284_v8, %v1284_v8  ;;  %v2737_v30 = vrot.slane %v2736_v4, 4  ;;  %v2743_v33 = vsel %vm2427_vm5, %v1285_v10, -inf  ;;  %v2750_v35 = vsel %vm2427_vm5, %v1284_v8, -inf }
 0x16e   : > { %v2657_v24 = vrot.slane %v2656_v18, 1  ;;  %v2664_v39 = vrot.slane %v2663_v21, 1  ;;  %v2671_v42 = vrot.slane %v2670_v22, 1  ;;  %v2677_v62 = vmax.f32 %v2675_v15, %v2676_v25 }
 0x16f   : > { %v2738_v48 = vmax.f32 %v2736_v4, %v2737_v30  ;;  %v2744_v52 = vrot.slane %v2743_v33, 4  ;;  %v2751_v20 = vrot.slane %v2750_v35, 4  ;;  %v2757_v56 = vsel %vm2427_vm5, %v1286_v38, -inf }
 0x170   : > { %v2658_v59 = vmax.f32 %v2656_v18, %v2657_v24  ;;  %v2665_v60 = vmax.f32 %v2663_v21, %v2664_v39  ;;  %v2672_v31 = vmax.f32 %v2670_v22, %v2671_v42  ;;  %v2678_v61 = vrot.slane %v2677_v62, 1  ;;  %v11126_v22 = vld [vmem:[%s14086_s3 + $0x118] sm:$0xff]  }
 0x171   : > { %v2739_v0 = vrot.slane %v2738_v48, 2  ;;  %v2745_v28 = vmax.f32 %v2743_v33, %v2744_v52  ;;  %v2752_v5 = vmax.f32 %v2750_v35, %v2751_v20  ;;  %v2758_v11 = vrot.slane %v2757_v56, 4  ;;  %v11127_v35 = vld [vmem:[%s14086_s3 + $0x28] sm:$0xff]  }
 0x172   : > { %v2679_v43 = vmax.f32 %v2677_v62, %v2678_v61  ;;  %v4236_v34 = vmax.f32 %v2658_v59, %v11719_v26  ;;  %v4237_v7 = vmax.f32 %v2665_v60, %v11724_v37  ;;  %v4238_v9 = vmax.f32 %v2672_v31, %v11729_v6  ;;  %v11124_v37 = vld [vmem:[%s14086_s3 + $0x158] sm:$0xff]  }
 0x173   : > { %v2740_v45 = vmax.f32 %v2738_v48, %v2739_v0  ;;  %v2746_v47 = vrot.slane %v2745_v28, 2  ;;  %v2753_v12 = vrot.slane %v2752_v5, 2  ;;  %v2759_v13 = vmax.f32 %v2757_v56, %v2758_v11  ;;  %10760 = vmatprep.subr.bf16.mxu0 %v11124_v37  ;;  %v11796_v0 = vpop.f32.mrb[24].mxu0 }
 0x174   : > { %v4239_v2 = vmax.f32 %v2679_v43, %v11744_v63  ;;  %v10395_v16 = vpack.c.bf16 %v4236_v34, %v4236_v34  ;;  %v10396_v29 = vpack.c.bf16 %v4237_v7, %v4237_v7  ;;  %v10397_v55 = vpack.c.bf16 %v4238_v9, %v4238_v9  ;;  %v11125_v63 = vld [vmem:[%s14086_s3 + $0x68] sm:$0xff]   ;;  %10761 = vmatpush3.bf16.msra.mxu0 %v11126_v22  ;;  %v11806_v34 = vld [vmem:[%s14085_s2] ss:$0 sm:$0xff] }
 0x175   : > { %v2741_v15 = vrot.slane %v2740_v45, 1  ;;  %v2747_v8 = vmax.f32 %v2745_v28, %v2746_v47  ;;  %v2754_v26 = vmax.f32 %v2752_v5, %v2753_v12  ;;  %v2760_v10 = vrot.slane %v2759_v13, 2  ;;  %10636 = vmatprep.subr.bf16.mxu1 %v11125_v63 }
 0x176   : > { %v10398_v6 = vpack.c.bf16 %v4239_v2, %v4239_v2  ;;  %v4750_v4 = vunpack.c.l.b16 %v10395_v16  ;;  %v4751_v18 = vunpack.c.l.b16 %v10396_v29  ;;  %v4752_v21 = vunpack.c.l.b16 %v10397_v55  ;;  %10637 = vmatpush3.bf16.msra.mxu1 %v11127_v35 }
 0x177   : > { %v11782_v25 = vmax.f32 %v2740_v45, %v2741_v15  ;;  %v2748_v38 = vrot.slane %v2747_v8, 1  ;;  %v2755_v30 = vrot.slane %v2754_v26, 1  ;;  %v2761_v33 = vmax.f32 %v2759_v13, %v2760_v10 }
 0x178   : > { %v4753_v24 = vunpack.c.l.b16 %v10398_v6  ;;  %v4816_v39 = vsel %vm4798_vm6, %v4751_v18, %v4750_v4  ;;  %v1243_v42 = vrot.slane %v11755_v53, %v11488_v58  ;;  %v1250_v62 = vrot.slane %v1236_v27, %v11488_v58 }
 0x179   : > { %v4817_v48 = vsel %vm4800_vm7, %v4752_v21, %v4816_v39  ;;  %v11792_v52 = vmax.f32 %v2747_v8, %v2748_v38  ;;  %v2756_v20 = vmax.f32 %v2754_v26, %v2755_v30  ;;  %v2762_v56 = vrot.slane %v2761_v33, 1  ;;  %v11829_v38 = vpop.f32.mrb[25].mxu0 }
 0x17a   : > { %v1251_v59 = vcombine.high %v1243_v42, %v1243_v42  ;;  %v1252_v60 = vcombine.high %v1250_v62, %v1250_v62  ;;  %v2680_v31 = vsel %vm2427_vm5, %v1243_v42, -inf  ;;  %v2694_v61 = vsel %vm2427_vm5, %v1250_v62, -inf }
 0x17b   : > { %v2763_v53 = vmax.f32 %v2761_v33, %v2762_v56  ;;  %v2681_v28 = vrot.slane %v2680_v31, 4  ;;  %v2695_v27 = vrot.slane %v2694_v61, 4  ;;  %v11799_v5 = vsel %vm4802_vm8, %v4753_v24, %v4817_v48 }
 0x17c   : > { %v2687_v11 = vsel %vm2427_vm5, %v1251_v59, -inf  ;;  %v2701_v43 = vsel %vm2427_vm5, %v1252_v60, -inf  ;;  %v757_v7 = vadd.f32 %v11806_v34, %v11541_v41  ;;  %v749_v9 = vadd.f32 %v11806_v34, %v11543_v14 }
 0x17d   : > { %v2682_v45 = vmax.f32 %v2680_v31, %v2681_v28  ;;  %v2688_v47 = vrot.slane %v2687_v11, 4  ;;  %v2696_v12 = vmax.f32 %v2694_v61, %v2695_v27  ;;  %v2702_v13 = vrot.slane %v2701_v43, 4 }
 0x17e   : > { %v969_v49 = vmax.f32 %v757_v7, 0.0  ;;  %v967_v2 = vmax.f32 %v749_v9, 0.0  ;;  %v11814_v16 = vadd.f32 %v11806_v34, %v11546_v50  ;;  %v11818_v29 = vadd.f32 %v11806_v34, %v11548_v57 }
 0x17f   : > { %v2683_v55 = vrot.slane %v2682_v45, 2  ;;  %v2689_v15 = vmax.f32 %v2687_v11, %v2688_v47  ;;  %v2697_v41 = vrot.slane %v2696_v12, 2  ;;  %v2703_v8 = vmax.f32 %v2701_v43, %v2702_v13 }
 0x180   : > { %v1321_v26 = vcombine.high %v969_v49, %v969_v49  ;;  %v1328_v14 = vrot.slane %v969_v49, %v11488_v58  ;;  %v1287_v10 = vcombine.high %v967_v2, %v967_v2  ;;  %v11822_v37 = vrot.slane %v967_v2, %v11488_v58 }
 0x181   : > { %v2684_v6 = vmax.f32 %v2682_v45, %v2683_v55  ;;  %v2690_v4 = vrot.slane %v2689_v15, 2  ;;  %v2698_v18 = vmax.f32 %v2696_v12, %v2697_v41  ;;  %v2704_v50 = vrot.slane %v2703_v8, 2 }
 0x182   : > { %v1335_v21 = vrot.slane %v1321_v26, %v11488_v58  ;;  %v1336_v63 = vcombine.high %v1328_v14, %v1328_v14  ;;  %v2820_v57 = vsel %vm2427_vm5, %v1328_v14, -inf  ;;  %v11827_v22 = vrot.slane %v1287_v10, %v11488_v58 }
 0x183   : > { %v2685_v30 = vrot.slane %v2684_v6, 1  ;;  %v2691_v33 = vmax.f32 %v2689_v15, %v2690_v4  ;;  %v2699_v35 = vrot.slane %v2698_v18, 1  ;;  %v2705_v24 = vmax.f32 %v2703_v8, %v2704_v50  ;;  %v4902_v8 = vld [vmem:[#allocation2 + $0x1c] sm:$0x1]  ;;  %v11128_v4 = vld [vmem:[%s14086_s3 + $0x160] sm:$0xff]  }
 0x184   : > { %v1337_v39 = vcombine.high %v1335_v21, %v1335_v21  ;;  %v2821_v42 = vrot.slane %v2820_v57, 4  ;;  %v2827_v62 = vsel %vm2427_vm5, %v1336_v63, -inf  ;;  %v2834_v48 = vsel %vm2427_vm5, %v1335_v21, -inf  ;;  %10762 = vmatprep.subr.bf16.mxu0 %v11128_v4 }
 0x185   : > { %v2686_v56 = vmax.f32 %v2684_v6, %v2685_v30  ;;  %v2692_v59 = vrot.slane %v2691_v33, 1  ;;  %v2700_v60 = vmax.f32 %v2698_v18, %v2699_v35  ;;  %v2706_v31 = vrot.slane %v2705_v24, 1 }
 0x186   : > { %v2822_v61 = vmax.f32 %v2820_v57, %v2821_v42  ;;  %v2828_v28 = vrot.slane %v2827_v62, 4  ;;  %v2835_v27 = vrot.slane %v2834_v48, 4  ;;  %v2841_v11 = vsel %vm2427_vm5, %v1337_v39, -inf }
 0x187   : > { %v2693_v43 = vmax.f32 %v2691_v33, %v2692_v59  ;;  %v2707_v7 = vmax.f32 %v2705_v24, %v2706_v31  ;;  %v4240_v9 = vmax.f32 %v2686_v56, %v11782_v25  ;;  %v4242_v45 = vmax.f32 %v2700_v60, %v2756_v20  ;;  %v11845_v24 = vpop.f32.mrb[26].mxu0 }
 0x188   : > { %v2823_v47 = vrot.slane %v2822_v61, 2  ;;  %v2829_v12 = vmax.f32 %v2827_v62, %v2828_v28  ;;  %v2836_v13 = vmax.f32 %v2834_v48, %v2835_v27  ;;  %v2842_v49 = vrot.slane %v2841_v11, 4  ;;  %v11872_v4 = vpop.f32.mrb[27].mxu0 }
 0x189   : > { %v4241_v2 = vmax.f32 %v2693_v43, %v11792_v52  ;;  %v4243_v55 = vmax.f32 %v2707_v7, %v2763_v53  ;;  %v10399_v15 = vpack.c.bf16 %v4240_v9, %v4240_v9  ;;  %v10401_v41 = vpack.c.bf16 %v4242_v45, %v4242_v45 }
 0x18a   : > { %v2824_v26 = vmax.f32 %v2822_v61, %v2823_v47  ;;  %v2830_v14 = vrot.slane %v2829_v12, 2  ;;  %v2837_v10 = vrot.slane %v2836_v13, 2  ;;  %v2843_v6 = vmax.f32 %v2841_v11, %v2842_v49  ;;  %v4899_v61 = vld [vmem:[#allocation2 + $0x18] sm:$0xf]  ;;  %v11129_v47 = vld [vmem:[%s14086_s3 + $0x70] sm:$0xff]  }
 0x18b   : > { %v10400_v25 = vpack.c.bf16 %v4241_v2, %v4241_v2  ;;  %v4754_v20 = vunpack.c.l.b16 %v10399_v15  ;;  %v4756_v18 = vunpack.c.l.b16 %v10401_v41  ;;  %v10445_v50 = vpack.c.bf16 %v4243_v55, %v4243_v55  ;;  %v4363_v55 = vld [vmem:[#allocation2 + $0x20] sm:$0x1]  ;;  %10638 = vmatprep.subr.bf16.mxu1 %v11129_v47 }
 0x18c   : > { %v2825_v21 = vrot.slane %v2824_v26, 1  ;;  %v2831_v63 = vmax.f32 %v2829_v12, %v2830_v14  ;;  %v2838_v57 = vmax.f32 %v2836_v13, %v2837_v10  ;;  %v2844_v52 = vrot.slane %v2843_v6, 2 }
 0x18d   : > { %v4755_v53 = vunpack.c.l.b16 %v10400_v25  ;;  %v4819_v30 = vsel %vm4804_vm9, %v4754_v20, %v11799_v5  ;;  %v4903_v33 = vsel %vm11469_vm4, %v10445_v50, %v4902_v8  ;;  %v1302_v35 = vcombine.high %v11822_v37, %v11822_v37 }
 0x18e   : > { %4904 = vst [vmem:[#allocation2 + $0x1c] sm:$0x1] %v4903_v33  ;;  %v11847_v39 = vmax.f32 %v2824_v26, %v2825_v21  ;;  %v2832_v42 = vrot.slane %v2831_v63, 1  ;;  %v2839_v62 = vrot.slane %v2838_v57, 1  ;;  %v2845_v48 = vmax.f32 %v2843_v6, %v2844_v52 }
 0x18f   : > { %v4820_v56 = vsel %vm4806_vm10, %v4755_v53, %v4819_v30  ;;  %v1303_v59 = vcombine.high %v11827_v22, %v11827_v22  ;;  %v2764_v5 = vsel %vm2427_vm5, %v11822_v37, -inf  ;;  %v2771_v60 = vsel %vm2427_vm5, %v1302_v35, -inf  ;;  %v11130_v37 = vld [vmem:[%s14086_s3 + $0x120] sm:$0xff]  }
 0x190   : > { %v4821_v31 = vsel %vm4808_vm11, %v4756_v18, %v4820_v56  ;;  %v2833_v28 = vmax.f32 %v2831_v63, %v2832_v42  ;;  %v2840_v27 = vmax.f32 %v2838_v57, %v2839_v62  ;;  %v2846_v11 = vrot.slane %v2845_v48, 1  ;;  %10763 = vmatpush3.bf16.msra.mxu0 %v11130_v37 }
 0x191   : > { %v4856_v43 = vpack.c.b16 %v4821_v31, %v4821_v31  ;;  %v2765_v7 = vrot.slane %v2764_v5, 4  ;;  %v2772_v9 = vrot.slane %v2771_v60, 4  ;;  %v2778_v45 = vsel %vm2427_vm5, %v11827_v22, -inf }
 0x192   : > { %v2847_v12 = vmax.f32 %v2845_v48, %v2846_v11  ;;  %v2779_v13 = vrot.slane %v2778_v45, 4  ;;  %v2785_v49 = vsel %vm2427_vm5, %v1303_v59, -inf  ;;  %v970_v2 = vmax.f32 %v11814_v16, 0.0 }
 0x193   : > { %v4900_v15 = vsel %vm11616_vm13, %v4856_v43, %v4899_v61  ;;  %v2766_v41 = vmax.f32 %v2764_v5, %v2765_v7  ;;  %v2773_v22 = vmax.f32 %v2771_v60, %v2772_v9  ;;  %v2786_v8 = vrot.slane %v2785_v49, 4 }
 0x194   : > { %4901 = vst [vmem:[#allocation2 + $0x18] sm:$0xf] %v4900_v15  ;;  %v2780_v26 = vmax.f32 %v2778_v45, %v2779_v13  ;;  %v1338_v14 = vcombine.high %v970_v2, %v970_v2  ;;  %v1345_v10 = vrot.slane %v970_v2, %v11488_v58  ;;  %v11870_v6 = vmax.f32 %v11818_v29, 0.0 }
 0x195   : > { %v2767_v16 = vrot.slane %v2766_v41, 2  ;;  %v2774_v25 = vrot.slane %v2773_v22, 2  ;;  %v2787_v20 = vmax.f32 %v2785_v49, %v2786_v8  ;;  %v4364_v18 = vsel %vm11469_vm4, 0, %v4363_v55 }
 0x196   : > { %v2781_v50 = vrot.slane %v2780_v26, 2  ;;  %v1352_v21 = vrot.slane %v1338_v14, %v11488_v58  ;;  %v1353_v63 = vcombine.high %v1345_v10, %v1345_v10  ;;  %v2848_v57 = vsel %vm2427_vm5, %v1345_v10, -inf  ;;  %4365 = vst [vmem:[#allocation2 + $0x20] sm:$0x1] %v4364_v18  ;;  %v11131_v10 = vld [vmem:[%s14086_s3 + $0x30] sm:$0xff]  }
 0x197   : > { %v2768_v52 = vmax.f32 %v2766_v41, %v2767_v16  ;;  %v2775_v53 = vmax.f32 %v2773_v22, %v2774_v25  ;;  %v2788_v30 = vrot.slane %v2787_v20, 2  ;;  %v2849_v29 = vrot.slane %v2848_v57, 4  ;;  %10639 = vmatpush3.bf16.msra.mxu1 %v11131_v10 }
 0x198   : > { %v2782_v33 = vmax.f32 %v2780_v26, %v2781_v50  ;;  %v1354_v35 = vcombine.high %v1352_v21, %v1352_v21  ;;  %v2855_v42 = vsel %vm2427_vm5, %v1353_v63, -inf  ;;  %v2862_v62 = vsel %vm2427_vm5, %v1352_v21, -inf }
 0x199   : > { %v2769_v48 = vrot.slane %v2768_v52, 1  ;;  %v2776_v56 = vrot.slane %v2775_v53, 1  ;;  %v2789_v59 = vmax.f32 %v2787_v20, %v2788_v30  ;;  %v2850_v5 = vmax.f32 %v2848_v57, %v2849_v29  ;;  %v11134_v30 = vld [vmem:[%s14086_s3 + $0x128] sm:$0xff]  }
 0x19a   : > { %v2783_v60 = vrot.slane %v2782_v33, 1  ;;  %v2856_v31 = vrot.slane %v2855_v42, 4  ;;  %v2863_v61 = vrot.slane %v2862_v62, 4  ;;  %v2869_v11 = vsel %vm2427_vm5, %v1354_v35, -inf }
 0x19b   : > { %v2770_v43 = vmax.f32 %v2768_v52, %v2769_v48  ;;  %v2777_v7 = vmax.f32 %v2775_v53, %v2776_v56  ;;  %v2790_v9 = vrot.slane %v2789_v59, 1  ;;  %v2851_v45 = vrot.slane %v2850_v5, 2  ;;  %v11135_v48 = vld [vmem:[%s14086_s3 + $0x38] sm:$0xff]  }
 0x19c   : > { %v2784_v47 = vmax.f32 %v2782_v33, %v2783_v60  ;;  %v2857_v37 = vmax.f32 %v2855_v42, %v2856_v31  ;;  %v2864_v13 = vmax.f32 %v2862_v62, %v2863_v61  ;;  %v2870_v49 = vrot.slane %v2869_v11, 4  ;;  %v4425_v62 = vld [vmem:[#allocation2 + $0x24] sm:$0x1] }
 0x19d   : > { %v2791_v2 = vmax.f32 %v2789_v59, %v2790_v9  ;;  %v4244_v55 = vmax.f32 %v2770_v43, %v11847_v39  ;;  %v4245_v15 = vmax.f32 %v2777_v7, %v2833_v28  ;;  %v2852_v41 = vmax.f32 %v2850_v5, %v2851_v45  ;;  %v11132_v39 = vld [vmem:[%s14086_s3 + $0x168] sm:$0xff]  }
 0x19e   : > { %v4246_v22 = vmax.f32 %v2784_v47, %v2840_v27  ;;  %v2858_v8 = vrot.slane %v2857_v37, 2  ;;  %v2865_v26 = vrot.slane %v2864_v13, 2  ;;  %v2871_v14 = vmax.f32 %v2869_v11, %v2870_v49  ;;  %10764 = vmatprep.subr.bf16.mxu0 %v11132_v39 }
 0x19f   : > { %v4247_v16 = vmax.f32 %v2791_v2, %v2847_v12  ;;  %v10403_v25 = vpack.c.bf16 %v4244_v55, %v4244_v55  ;;  %v10404_v20 = vpack.c.bf16 %v4245_v15, %v4245_v15  ;;  %v2853_v18 = vrot.slane %v2852_v41, 1  ;;  %v11133_v12 = vld [vmem:[%s14086_s3 + $0x78] sm:$0xff]   ;;  %10765 = vmatpush3.bf16.msra.mxu0 %v11134_v30 }
 0x1a0   : > { %v10405_v50 = vpack.c.bf16 %v4246_v22, %v4246_v22  ;;  %v2859_v21 = vmax.f32 %v2857_v37, %v2858_v8  ;;  %v2866_v63 = vmax.f32 %v2864_v13, %v2865_v26  ;;  %v2872_v57 = vrot.slane %v2871_v14, 2  ;;  %10640 = vmatprep.subr.bf16.mxu1 %v11133_v12  ;;  %v11913_v37 = vpop.f32.mrb[28].mxu0 }
 0x1a1   : > { %v10406_v28 = vpack.c.bf16 %v4247_v16, %v4247_v16  ;;  %v4758_v27 = vunpack.c.l.b16 %v10403_v25  ;;  %v4759_v52 = vunpack.c.l.b16 %v10404_v20  ;;  %v11888_v53 = vmax.f32 %v2852_v41, %v2853_v18  ;;  %10641 = vmatpush3.bf16.msra.mxu1 %v11135_v48 }
 0x1a2   : > { %v4760_v29 = vunpack.c.l.b16 %v10405_v50  ;;  %v2860_v33 = vrot.slane %v2859_v21, 1  ;;  %v2867_v35 = vrot.slane %v2866_v63, 1  ;;  %v2873_v42 = vmax.f32 %v2871_v14, %v2872_v57 }
 0x1a3   : > { %v4761_v56 = vunpack.c.l.b16 %v10406_v28  ;;  %v4822_v59 = vsel %vm4798_vm6, %v4759_v52, %v4758_v27  ;;  %v1304_v5 = vcombine.high %v11870_v6, %v11870_v6  ;;  %v1311_v60 = vrot.slane %v11870_v6, %v11488_v58 }
 0x1a4   : > { %v4823_v31 = vsel %vm4800_vm7, %v4760_v29, %v4822_v59  ;;  %v11905_v61 = vmax.f32 %v2859_v21, %v2860_v33  ;;  %v11907_v11 = vmax.f32 %v2866_v63, %v2867_v35  ;;  %v2874_v43 = vrot.slane %v2873_v42, 1  ;;  %v11944_v35 = vpop.f32.mrb[29].mxu0 }
 0x1a5   : > { %v1318_v7 = vrot.slane %v1304_v5, %v11488_v58  ;;  %v1319_v9 = vcombine.high %v1311_v60, %v1311_v60  ;;  %v2792_v45 = vsel %vm2427_vm5, %v1311_v60, -inf  ;;  %v4426_v47 = vsel %vm11463_vm2, 0, %v4425_v62 }
 0x1a6   : > { %v11915_v6 = vmax.f32 %v2873_v42, %v2874_v43  ;;  %v2793_v13 = vrot.slane %v2792_v45, 4  ;;  %4427 = vst [vmem:[#allocation2 + $0x24] sm:$0x1] %v4426_v47  ;;  %v11918_v49 = vsel %vm4802_vm8, %v4761_v56, %v4823_v31  ;;  %v773_v2 = vadd.f32 %v11806_v34, %v11567_v36 }
 0x1a7   : > { %v1320_v55 = vcombine.high %v1318_v7, %v1318_v7  ;;  %v2799_v15 = vsel %vm2427_vm5, %v1319_v9, -inf  ;;  %v2806_v41 = vsel %vm2427_vm5, %v1318_v7, -inf  ;;  %v765_v22 = vadd.f32 %v11806_v34, %v11583_v1 }
 0x1a8   : > { %v2794_v8 = vmax.f32 %v2792_v45, %v2793_v13  ;;  %v2800_v26 = vrot.slane %v2799_v15, 4  ;;  %v2807_v14 = vrot.slane %v2806_v41, 4  ;;  %v973_v10 = vmax.f32 %v773_v2, 0.0 }
 0x1a9   : > { %v2813_v16 = vsel %vm2427_vm5, %v1320_v55, -inf  ;;  %v971_v25 = vmax.f32 %v765_v22, 0.0  ;;  %v11929_v20 = vadd.f32 %v11806_v34, %v11608_v17  ;;  %v11933_v36 = vadd.f32 %v11806_v34, %v11640_v3 }
 0x1aa   : > { %v2795_v18 = vrot.slane %v2794_v8, 2  ;;  %v2801_v50 = vmax.f32 %v2799_v15, %v2800_v26  ;;  %v2808_v21 = vmax.f32 %v2806_v41, %v2807_v14  ;;  %v2814_v63 = vrot.slane %v2813_v16, 4 }
 0x1ab   : > { %v1389_v1 = vcombine.high %v973_v10, %v973_v10  ;;  %v1396_v57 = vrot.slane %v973_v10, %v11488_v58  ;;  %v1355_v39 = vcombine.high %v971_v25, %v971_v25  ;;  %v11937_v28 = vrot.slane %v971_v25, %v11488_v58 }
 0x1ac   : > { %v2796_v27 = vmax.f32 %v2794_v8, %v2795_v18  ;;  %v2802_v52 = vrot.slane %v2801_v50, 2  ;;  %v2809_v12 = vrot.slane %v2808_v21, 2  ;;  %v2815_v17 = vmax.f32 %v2813_v16, %v2814_v63 }
 0x1ad   : > { %v1403_v30 = vrot.slane %v1389_v1, %v11488_v58  ;;  %v1404_v29 = vcombine.high %v1396_v57, %v1396_v57  ;;  %v2932_v3 = vsel %vm2427_vm5, %v1396_v57, -inf  ;;  %v11942_v33 = vrot.slane %v1355_v39, %v11488_v58 }
 0x1ae   : > { %v2797_v42 = vrot.slane %v2796_v27, 1  ;;  %v2803_v62 = vmax.f32 %v2801_v50, %v2802_v52  ;;  %v2810_v48 = vmax.f32 %v2808_v21, %v2809_v12  ;;  %v2816_v56 = vrot.slane %v2815_v17, 2 }
 0x1af   : > { %v1405_v59 = vcombine.high %v1403_v30, %v1403_v30  ;;  %v2933_v5 = vrot.slane %v2932_v3, 4  ;;  %v2939_v60 = vsel %vm2427_vm5, %v1404_v29, -inf  ;;  %v2946_v31 = vsel %vm2427_vm5, %v1403_v30, -inf }
 0x1b0   : > { %v2798_v43 = vmax.f32 %v2796_v27, %v2797_v42  ;;  %v2804_v7 = vrot.slane %v2803_v62, 1  ;;  %v2811_v9 = vrot.slane %v2810_v48, 1  ;;  %v2817_v45 = vmax.f32 %v2815_v17, %v2816_v56 }
 0x1b1   : > { %v2934_v47 = vmax.f32 %v2932_v3, %v2933_v5  ;;  %v2940_v13 = vrot.slane %v2939_v60, 4  ;;  %v2947_v2 = vrot.slane %v2946_v31, 4  ;;  %v2953_v55 = vsel %vm2427_vm5, %v1405_v59, -inf }
 0x1b2   : > { %v2805_v15 = vmax.f32 %v2803_v62, %v2804_v7  ;;  %v2812_v41 = vmax.f32 %v2810_v48, %v2811_v9  ;;  %v2818_v22 = vrot.slane %v2817_v45, 1  ;;  %v4248_v8 = vmax.f32 %v2798_v43, %v11888_v53  ;;  %v4908_v53 = vld [vmem:[#allocation2 + $0x24] sm:$0x1] }
 0x1b3   : > { %v2935_v26 = vrot.slane %v2934_v47, 2  ;;  %v2941_v14 = vmax.f32 %v2939_v60, %v2940_v13  ;;  %v2948_v10 = vmax.f32 %v2946_v31, %v2947_v2  ;;  %v2954_v16 = vrot.slane %v2953_v55, 4 }
 0x1b4   : > { %v2819_v25 = vmax.f32 %v2817_v45, %v2818_v22  ;;  %v4249_v18 = vmax.f32 %v2805_v15, %v11905_v61  ;;  %v4250_v50 = vmax.f32 %v2812_v41, %v11907_v11  ;;  %v10407_v21 = vpack.c.bf16 %v4248_v8, %v4248_v8 }
 0x1b5   : > { %v2936_v63 = vmax.f32 %v2934_v47, %v2935_v26  ;;  %v2942_v1 = vrot.slane %v2941_v14, 2  ;;  %v2949_v57 = vrot.slane %v2948_v10, 2  ;;  %v2955_v39 = vmax.f32 %v2953_v55, %v2954_v16 }
 0x1b6   : > { %v4251_v27 = vmax.f32 %v2819_v25, %v11915_v6  ;;  %v10408_v52 = vpack.c.bf16 %v4249_v18, %v4249_v18  ;;  %v10409_v12 = vpack.c.bf16 %v4250_v50, %v4250_v50  ;;  %v4762_v17 = vunpack.c.l.b16 %v10407_v21 }
 0x1b7   : > { %v2937_v30 = vrot.slane %v2936_v63, 1  ;;  %v2943_v29 = vmax.f32 %v2941_v14, %v2942_v1  ;;  %v2950_v3 = vmax.f32 %v2948_v10, %v2949_v57  ;;  %v2956_v42 = vrot.slane %v2955_v39, 2 }
 0x1b8   : > { %v4763_v62 = vunpack.c.l.b16 %v10408_v52  ;;  %v4764_v48 = vunpack.c.l.b16 %v10409_v12  ;;  %v4825_v61 = vsel %vm4804_vm9, %v4762_v17, %v11918_v49  ;;  %v10446_v11 = vpack.c.bf16 %v4251_v27, %v4251_v27  ;;  %v4905_v49 = vld [vmem:[#allocation2 + $0x20] sm:$0xf] }
 0x1b9   : > { %v11955_v56 = vmax.f32 %v2936_v63, %v2937_v30  ;;  %v2944_v59 = vrot.slane %v2943_v29, 1  ;;  %v2951_v5 = vrot.slane %v2950_v3, 1  ;;  %v2957_v60 = vmax.f32 %v2955_v39, %v2956_v42 }
 0x1ba   : > { %v4826_v6 = vsel %vm4806_vm10, %v4763_v62, %v4825_v61  ;;  %v4909_v31 = vsel %vm11469_vm4, %v10446_v11, %v4908_v53  ;;  %v1370_v43 = vcombine.high %v11937_v28, %v11937_v28  ;;  %v1371_v7 = vcombine.high %v11942_v33, %v11942_v33 }
 0x1bb   : > { %v4827_v9 = vsel %vm4808_vm11, %v4764_v48, %v4826_v6  ;;  %4910 = vst [vmem:[#allocation2 + $0x24] sm:$0x1] %v4909_v31  ;;  %v2945_v45 = vmax.f32 %v2943_v29, %v2944_v59  ;;  %v2952_v47 = vmax.f32 %v2950_v3, %v2951_v5  ;;  %v2958_v13 = vrot.slane %v2957_v60, 1 }
 0x1bc   : > { %v4858_v2 = vpack.c.b16 %v4827_v9, %v4827_v9  ;;  %v2876_v55 = vsel %vm2427_vm5, %v11937_v28, -inf  ;;  %v2883_v15 = vsel %vm2427_vm5, %v1370_v43, -inf  ;;  %v2890_v41 = vsel %vm2427_vm5, %v11942_v33, -inf }
 0x1bd   : > { %v2959_v22 = vmax.f32 %v2957_v60, %v2958_v13  ;;  %v2877_v8 = vrot.slane %v2876_v55, 4  ;;  %v2884_v26 = vrot.slane %v2883_v15, 4  ;;  %v2891_v14 = vrot.slane %v2890_v41, 4 }
 0x1be   : > { %v4906_v10 = vsel %vm11616_vm13, %v4858_v2, %v4905_v49  ;;  %v2897_v16 = vsel %vm2427_vm5, %v1371_v7, -inf  ;;  %v974_v25 = vmax.f32 %v11929_v20, 0.0  ;;  %v972_v18 = vmax.f32 %v11933_v36, 0.0 }
 0x1bf   : > { %4907 = vst [vmem:[#allocation2 + $0x20] sm:$0xf] %v4906_v10  ;;  %v2878_v28 = vmax.f32 %v2876_v55, %v2877_v8  ;;  %v2885_v50 = vmax.f32 %v2883_v15, %v2884_v26  ;;  %v2892_v21 = vmax.f32 %v2890_v41, %v2891_v14  ;;  %v2898_v63 = vrot.slane %v2897_v16, 4 }
 0x1c0   : > { %v1406_v1 = vcombine.high %v974_v25, %v974_v25  ;;  %v1413_v33 = vrot.slane %v974_v25, %v11488_v58  ;;  %v1372_v57 = vcombine.high %v972_v18, %v972_v18  ;;  %v11977_v39 = vrot.slane %v972_v18, %v11488_v58 }
 0x1c1   : > { %v2879_v27 = vrot.slane %v2878_v28, 2  ;;  %v2886_v52 = vrot.slane %v2885_v50, 2  ;;  %v2893_v12 = vrot.slane %v2892_v21, 2  ;;  %v2899_v17 = vmax.f32 %v2897_v16, %v2898_v63 }
 0x1c2   : > { %v1420_v20 = vrot.slane %v1406_v1, %v11488_v58  ;;  %v1421_v53 = vcombine.high %v1413_v33, %v1413_v33  ;;  %v2960_v36 = vsel %vm2427_vm5, %v1413_v33, -inf  ;;  %v11982_v30 = vrot.slane %v1372_v57, %v11488_v58 }
 0x1c3   : > { %v2880_v29 = vmax.f32 %v2878_v28, %v2879_v27  ;;  %v2887_v3 = vmax.f32 %v2885_v50, %v2886_v52  ;;  %v2894_v42 = vmax.f32 %v2892_v21, %v2893_v12  ;;  %v2900_v62 = vrot.slane %v2899_v17, 2 }
 0x1c4   : > { %v1422_v48 = vcombine.high %v1420_v20, %v1420_v20  ;;  %v2961_v61 = vrot.slane %v2960_v36, 4  ;;  %v2967_v11 = vsel %vm2427_vm5, %v1421_v53, -inf  ;;  %v2974_v59 = vsel %vm2427_vm5, %v1420_v20, -inf }
 0x1c5   : > { %v2881_v5 = vrot.slane %v2880_v29, 1  ;;  %v2888_v60 = vrot.slane %v2887_v3, 1  ;;  %v2895_v6 = vrot.slane %v2894_v42, 1  ;;  %v2901_v31 = vmax.f32 %v2899_v17, %v2900_v62 }
 0x1c6   : > { %v2962_v43 = vmax.f32 %v2960_v36, %v2961_v61  ;;  %v2968_v7 = vrot.slane %v2967_v11, 4  ;;  %v2975_v9 = vrot.slane %v2974_v59, 4  ;;  %v2981_v49 = vsel %vm2427_vm5, %v1422_v48, -inf }
 0x1c7   : > { %v2882_v13 = vmax.f32 %v2880_v29, %v2881_v5  ;;  %v2889_v2 = vmax.f32 %v2887_v3, %v2888_v60  ;;  %v2896_v55 = vmax.f32 %v2894_v42, %v2895_v6  ;;  %v2902_v15 = vrot.slane %v2901_v31, 1  ;;  %v4366_v6 = vld [vmem:[#allocation2 + $0x28] sm:$0x1] }
 0x1c8   : > { %v2963_v41 = vrot.slane %v2962_v43, 2  ;;  %v2969_v8 = vmax.f32 %v2967_v11, %v2968_v7  ;;  %v2976_v26 = vmax.f32 %v2974_v59, %v2975_v9  ;;  %v2982_v14 = vrot.slane %v2981_v49, 4 }
 0x1c9   : > { %v2903_v10 = vmax.f32 %v2901_v31, %v2902_v15  ;;  %v4252_v16 = vmax.f32 %v2882_v13, %v11955_v56  ;;  %v4253_v25 = vmax.f32 %v2889_v2, %v2945_v45  ;;  %v4254_v18 = vmax.f32 %v2896_v55, %v2952_v47  ;;  %v4428_v31 = vld [vmem:[#allocation2 + $0x2c] sm:$0x1] }
 0x1ca   : > { %v2964_v28 = vmax.f32 %v2962_v43, %v2963_v41  ;;  %v2970_v50 = vrot.slane %v2969_v8, 2  ;;  %v2977_v21 = vrot.slane %v2976_v26, 2  ;;  %v2983_v63 = vmax.f32 %v2981_v49, %v2982_v14  ;;  %v11136_v41 = vld [vmem:[%s14086_s3 + $0x170] sm:$0xff]  }
 0x1cb   : > { %v4255_v1 = vmax.f32 %v2903_v10, %v2959_v22  ;;  %v10411_v33 = vpack.c.bf16 %v4252_v16, %v4252_v16  ;;  %v10412_v57 = vpack.c.bf16 %v4253_v25, %v4253_v25  ;;  %v10413_v27 = vpack.c.bf16 %v4254_v18, %v4254_v18  ;;  %10766 = vmatprep.subr.bf16.mxu0 %v11136_v41 }
 0x1cc   : > { %v2965_v52 = vrot.slane %v2964_v28, 1  ;;  %v2971_v12 = vmax.f32 %v2969_v8, %v2970_v50  ;;  %v2978_v17 = vmax.f32 %v2976_v26, %v2977_v21  ;;  %v2984_v20 = vrot.slane %v2983_v63, 2  ;;  %v12009_v8 = vpop.f32.mrb[30].mxu0 }
 0x1cd   : > { %v10414_v53 = vpack.c.bf16 %v4255_v1, %v4255_v1  ;;  %v4766_v36 = vunpack.c.l.b16 %v10411_v33  ;;  %v4767_v29 = vunpack.c.l.b16 %v10412_v57  ;;  %v4768_v3 = vunpack.c.l.b16 %v10413_v27 }
 0x1ce   : > { %v11988_v42 = vmax.f32 %v2964_v28, %v2965_v52  ;;  %v2972_v56 = vrot.slane %v2971_v12, 1  ;;  %v2979_v45 = vrot.slane %v2978_v17, 1  ;;  %v2985_v47 = vmax.f32 %v2983_v63, %v2984_v20 }
 0x1cf   : > { %v4769_v62 = vunpack.c.l.b16 %v10414_v53  ;;  %v4828_v48 = vsel %vm4798_vm6, %v4767_v29, %v4766_v36  ;;  %v1387_v22 = vcombine.high %v11977_v39, %v11977_v39  ;;  %v1388_v61 = vcombine.high %v11982_v30, %v11982_v30 }
 0x1d0   : > { %v4829_v11 = vsel %vm4800_vm7, %v4768_v3, %v4828_v48  ;;  %v11996_v59 = vmax.f32 %v2971_v12, %v2972_v56  ;;  %v11998_v5 = vmax.f32 %v2978_v17, %v2979_v45  ;;  %v2986_v60 = vrot.slane %v2985_v47, 1  ;;  %v12036_v48 = vpop.f32.mrb[31].mxu0 }
 0x1d1   : > { %v2904_v43 = vsel %vm2427_vm5, %v11977_v39, -inf  ;;  %v2911_v7 = vsel %vm2427_vm5, %v1387_v22, -inf  ;;  %v2918_v9 = vsel %vm2427_vm5, %v11982_v30, -inf  ;;  %v2925_v49 = vsel %vm2427_vm5, %v1388_v61, -inf }
 0x1d2   : > { %v2987_v13 = vmax.f32 %v2985_v47, %v2986_v60  ;;  %v2905_v2 = vrot.slane %v2904_v43, 4  ;;  %v2912_v55 = vrot.slane %v2911_v7, 4  ;;  %v2919_v15 = vrot.slane %v2918_v9, 4 }
 0x1d3   : > { %v2926_v26 = vrot.slane %v2925_v49, 4  ;;  %v4367_v39 = vsel %vm11469_vm4, 0, %v4366_v6  ;;  %v4429_v14 = vsel %vm11463_vm2, 0, %v4428_v31  ;;  %v12016_v30 = vsel %vm4802_vm8, %v4769_v62, %v4829_v11 }
 0x1d4   : > { %v2906_v10 = vmax.f32 %v2904_v43, %v2905_v2  ;;  %v2913_v16 = vmax.f32 %v2911_v7, %v2912_v55  ;;  %v2920_v25 = vmax.f32 %v2918_v9, %v2919_v15  ;;  %4368 = vst [vmem:[#allocation2 + $0x28] sm:$0x1] %v4367_v39  ;;  %4430 = vst [vmem:[#allocation2 + $0x2c] sm:$0x1] %v4429_v14 }
 0x1d5   : > { %v789_v18 = vadd.f32 %v11806_v34, %v11682_v46  ;;  %v2927_v28 = vmax.f32 %v2925_v49, %v2926_v26  ;;  %v781_v50 = vadd.f32 %v11806_v34, %v11703_v19  ;;  %v792_v21 = vadd.f32 %v11806_v34, %v11715_v51  ;;  %v11138_v19 = vld [vmem:[%s14086_s3 + $0x130] sm:$0xff]  }
 0x1d6   : > { %v784_v63 = vadd.f32 %v11806_v34, %v11752_v32  ;;  %v2907_v1 = vrot.slane %v2906_v10, 2  ;;  %v2914_v33 = vrot.slane %v2913_v16, 2  ;;  %v2921_v57 = vrot.slane %v2920_v25, 2  ;;  %10767 = vmatpush3.bf16.msra.mxu0 %v11138_v19 }
 0x1d7   : > { %v977_v27 = vmax.f32 %v789_v18, 0.0  ;;  %v2928_v52 = vrot.slane %v2927_v28, 2  ;;  %v975_v12 = vmax.f32 %v781_v50, 0.0  ;;  %v12026_v17 = vmax.f32 %v792_v21, 0.0 }
 0x1d8   : > { %v12028_v46 = vmax.f32 %v784_v63, 0.0  ;;  %v2908_v20 = vmax.f32 %v2906_v10, %v2907_v1  ;;  %v2915_v53 = vmax.f32 %v2913_v16, %v2914_v33  ;;  %v2922_v51 = vmax.f32 %v2920_v25, %v2921_v57 }
 0x1d9   : > { %v1457_v36 = vcombine.high %v977_v27, %v977_v27  ;;  %v2929_v29 = vmax.f32 %v2927_v28, %v2928_v52  ;;  %v1464_v32 = vrot.slane %v977_v27, %v11488_v58  ;;  %v1423_v34 = vcombine.high %v975_v12, %v975_v12 }
 0x1da   : > { %v1430_v3 = vrot.slane %v975_v12, %v11488_v58  ;;  %v2909_v56 = vrot.slane %v2908_v20, 1  ;;  %v2916_v45 = vrot.slane %v2915_v53, 1  ;;  %v2923_v47 = vrot.slane %v2922_v51, 1 }
 0x1db   : > { %v1471_v62 = vrot.slane %v1457_v36, %v11488_v58  ;;  %v2930_v22 = vrot.slane %v2929_v29, 1  ;;  %v1472_v61 = vcombine.high %v1464_v32, %v1464_v32  ;;  %v3044_v11 = vsel %vm2427_vm5, %v1464_v32, -inf  ;;  %v4914_v21 = vld [vmem:[#allocation2 + $0x2c] sm:$0x1] }
 0x1dc   : > { %v12040_v60 = vrot.slane %v1423_v34, %v11488_v58  ;;  %v2910_v6 = vmax.f32 %v2908_v20, %v2909_v56  ;;  %v2917_v31 = vmax.f32 %v2915_v53, %v2916_v45  ;;  %v2924_v43 = vmax.f32 %v2922_v51, %v2923_v47 }
 0x1dd   : > { %v1473_v7 = vcombine.high %v1471_v62, %v1471_v62  ;;  %v2931_v9 = vmax.f32 %v2929_v29, %v2930_v22  ;;  %v3045_v49 = vrot.slane %v3044_v11, 4  ;;  %v3051_v2 = vsel %vm2427_vm5, %v1472_v61, -inf }
 0x1de   : > { %v3058_v55 = vsel %vm2427_vm5, %v1471_v62, -inf  ;;  %v4256_v15 = vmax.f32 %v2910_v6, %v11988_v42  ;;  %v4257_v41 = vmax.f32 %v2917_v31, %v11996_v59  ;;  %v4258_v26 = vmax.f32 %v2924_v43, %v11998_v5  ;;  %v4911_v62 = vld [vmem:[#allocation2 + $0x28] sm:$0xf] }
 0x1df   : > { %v3052_v39 = vrot.slane %v3051_v2, 4  ;;  %v4259_v14 = vmax.f32 %v2931_v9, %v2987_v13  ;;  %v3046_v10 = vmax.f32 %v3044_v11, %v3045_v49  ;;  %v3059_v16 = vrot.slane %v3058_v55, 4 }
 0x1e0   : > { %v3065_v25 = vsel %vm2427_vm5, %v1473_v7, -inf  ;;  %v10415_v18 = vpack.c.bf16 %v4256_v15, %v4256_v15  ;;  %v10416_v28 = vpack.c.bf16 %v4257_v41, %v4257_v41  ;;  %v10417_v50 = vpack.c.bf16 %v4258_v26, %v4258_v26 }
 0x1e1   : > { %v3053_v63 = vmax.f32 %v3051_v2, %v3052_v39  ;;  %v10447_v1 = vpack.c.bf16 %v4259_v14, %v4259_v14  ;;  %v3047_v33 = vrot.slane %v3046_v10, 2  ;;  %v3060_v57 = vmax.f32 %v3058_v55, %v3059_v16 }
 0x1e2   : > { %v3066_v27 = vrot.slane %v3065_v25, 4  ;;  %v4770_v42 = vunpack.c.l.b16 %v10415_v18  ;;  %v4771_v52 = vunpack.c.l.b16 %v10416_v28  ;;  %v4772_v59 = vunpack.c.l.b16 %v10417_v50 }
 0x1e3   : > { %v3054_v12 = vrot.slane %v3053_v63, 2  ;;  %v4915_v5 = vsel %vm11469_vm4, %v10447_v1, %v4914_v21  ;;  %v3048_v13 = vmax.f32 %v3046_v10, %v3047_v33  ;;  %v3061_v19 = vrot.slane %v3060_v57, 2 }
 0x1e4   : > { %v3067_v20 = vmax.f32 %v3065_v25, %v3066_v27  ;;  %v4831_v53 = vsel %vm4804_vm9, %v4770_v42, %v12016_v30  ;;  %4916 = vst [vmem:[#allocation2 + $0x2c] sm:$0x1] %v4915_v5  ;;  %v1438_v36 = vcombine.high %v1430_v3, %v1430_v3  ;;  %v1439_v29 = vcombine.high %v12040_v60, %v12040_v60 }
 0x1e5   : > { %v3055_v51 = vmax.f32 %v3053_v63, %v3054_v12  ;;  %v4832_v32 = vsel %vm4806_vm10, %v4771_v52, %v4831_v53  ;;  %v3049_v34 = vrot.slane %v3048_v13, 1  ;;  %v3062_v56 = vmax.f32 %v3060_v57, %v3061_v19 }
 0x1e6   : > { %v3068_v45 = vrot.slane %v3067_v20, 2  ;;  %v4833_v47 = vsel %vm4808_vm11, %v4772_v59, %v4832_v32  ;;  %v2988_v61 = vsel %vm2427_vm5, %v1430_v3, -inf  ;;  %v2995_v11 = vsel %vm2427_vm5, %v1438_v36, -inf  ;;  %v11140_v32 = vld [vmem:[%s14086_s3 + $0x138] sm:$0xff]  }
 0x1e7   : > { %v3056_v22 = vrot.slane %v3055_v51, 1  ;;  %v4860_v30 = vpack.c.b16 %v4833_v47, %v4833_v47  ;;  %v3050_v6 = vmax.f32 %v3048_v13, %v3049_v34  ;;  %v3063_v31 = vrot.slane %v3062_v56, 1  ;;  %v12079_v34 = vpop.f32.mrb[32].mxu0 }
 0x1e8   : > { %v3069_v43 = vmax.f32 %v3067_v20, %v3068_v45  ;;  %v2989_v9 = vrot.slane %v2988_v61, 4  ;;  %v2996_v49 = vrot.slane %v2995_v11, 4  ;;  %v3002_v2 = vsel %vm2427_vm5, %v12040_v60, -inf }
 0x1e9   : > { %v3057_v7 = vmax.f32 %v3055_v51, %v3056_v22  ;;  %v4912_v55 = vsel %vm11616_vm13, %v4860_v30, %v4911_v62  ;;  %v3064_v15 = vmax.f32 %v3062_v56, %v3063_v31  ;;  %v3003_v26 = vrot.slane %v3002_v2, 4 }
 0x1ea   : > { %v3070_v41 = vrot.slane %v3069_v43, 1  ;;  %4913 = vst [vmem:[#allocation2 + $0x28] sm:$0xf] %v4912_v55  ;;  %v2990_v3 = vmax.f32 %v2988_v61, %v2989_v9  ;;  %v2997_v39 = vmax.f32 %v2995_v11, %v2996_v49  ;;  %v3009_v14 = vsel %vm2427_vm5, %v1439_v29, -inf  ;;  %v11139_v29 = vld [vmem:[%s14086_s3 + $0x178] sm:$0xff]  }
 0x1eb   : > { %v1474_v10 = vcombine.high %v12026_v17, %v12026_v17  ;;  %v3004_v25 = vmax.f32 %v3002_v2, %v3003_v26  ;;  %v3010_v18 = vrot.slane %v3009_v14, 4  ;;  %v1481_v60 = vrot.slane %v12026_v17, %v11488_v58  ;;  %10768 = vmatprep.subr.bf16.mxu0 %v11139_v29  ;;  %v4431_v29 = vld [vmem:[#allocation2 + $0x34] sm:$0x1] }
 0x1ec   : > { %v3071_v16 = vmax.f32 %v3069_v43, %v3070_v41  ;;  %v2991_v28 = vrot.slane %v2990_v3, 2  ;;  %v2998_v50 = vrot.slane %v2997_v39, 2  ;;  %v1440_v63 = vcombine.high %v12028_v46, %v12028_v46  ;;  %10769 = vmatpush3.bf16.msra.mxu0 %v11140_v32 }
 0x1ed   : > { %v1488_v21 = vrot.slane %v1474_v10, %v11488_v58  ;;  %v3005_v1 = vrot.slane %v3004_v25, 2  ;;  %v3011_v33 = vmax.f32 %v3009_v14, %v3010_v18  ;;  %v1489_v57 = vcombine.high %v1481_v60, %v1481_v60 }
 0x1ee   : > { %v3072_v27 = vsel %vm2427_vm5, %v1481_v60, -inf  ;;  %v2992_v42 = vmax.f32 %v2990_v3, %v2991_v28  ;;  %v2999_v52 = vmax.f32 %v2997_v39, %v2998_v50 }
 0x1ef   : > { %v1490_v59 = vcombine.high %v1488_v21, %v1488_v21  ;;  %v3073_v12 = vrot.slane %v3072_v27, 4  ;;  %v3006_v5 = vmax.f32 %v3004_v25, %v3005_v1  ;;  %v3012_v13 = vrot.slane %v3011_v33, 2 }
 0x1f0   : > { %v3079_v17 = vsel %vm2427_vm5, %v1489_v57, -inf  ;;  %v3086_v19 = vsel %vm2427_vm5, %v1488_v21, -inf  ;;  %v2993_v20 = vrot.slane %v2992_v42, 1  ;;  %v3000_v53 = vrot.slane %v2999_v52, 1  ;;  %v12082_v57 = vpop.f32.mrb[33].mxu0 }
 0x1f1   : > { %v3074_v51 = vmax.f32 %v3072_v27, %v3073_v12  ;;  %v3080_v36 = vrot.slane %v3079_v17, 4  ;;  %v3007_v56 = vrot.slane %v3006_v5, 1  ;;  %v3013_v45 = vmax.f32 %v3011_v33, %v3012_v13 }
 0x1f2   : > { %v3087_v47 = vrot.slane %v3086_v19, 4  ;;  %v3093_v62 = vsel %vm2427_vm5, %v1490_v59, -inf  ;;  %v2994_v22 = vmax.f32 %v2992_v42, %v2993_v20  ;;  %v3001_v61 = vmax.f32 %v2999_v52, %v3000_v53 }
 0x1f3   : > { %v3075_v11 = vrot.slane %v3074_v51, 2  ;;  %v3081_v30 = vmax.f32 %v3079_v17, %v3080_v36  ;;  %v3008_v31 = vmax.f32 %v3006_v5, %v3007_v56  ;;  %v3014_v43 = vrot.slane %v3013_v45, 1 }
 0x1f4   : > { %v3088_v9 = vmax.f32 %v3086_v19, %v3087_v47  ;;  %v3094_v49 = vrot.slane %v3093_v62, 4  ;;  %v4260_v2 = vmax.f32 %v2994_v22, %v3050_v6  ;;  %v4261_v55 = vmax.f32 %v3001_v61, %v3057_v7  ;;  %v4369_v19 = vld [vmem:[#allocation2 + $0x30] sm:$0x1] }
 0x1f5   : > { %v3076_v41 = vmax.f32 %v3074_v51, %v3075_v11  ;;  %v3082_v26 = vrot.slane %v3081_v30, 2  ;;  %v3015_v3 = vmax.f32 %v3013_v45, %v3014_v43  ;;  %v4262_v39 = vmax.f32 %v3008_v31, %v3064_v15 }
 0x1f6   : > { %v3089_v14 = vrot.slane %v3088_v9, 2  ;;  %v3095_v10 = vmax.f32 %v3093_v62, %v3094_v49  ;;  %v10419_v25 = vpack.c.bf16 %v4260_v2, %v4260_v2  ;;  %v10420_v18 = vpack.c.bf16 %v4261_v55, %v4261_v55  ;;  %v12107_v55 = vld [vmem:[%s14085_s2] ss:$0 sm:$0xff] }
 0x1f7   : > { %v3077_v60 = vrot.slane %v3076_v41, 1  ;;  %v3083_v28 = vmax.f32 %v3081_v30, %v3082_v26  ;;  %v4263_v50 = vmax.f32 %v3015_v3, %v3071_v16  ;;  %v10421_v21 = vpack.c.bf16 %v4262_v39, %v4262_v39 }
 0x1f8   : > { %v3090_v1 = vmax.f32 %v3088_v9, %v3089_v14  ;;  %v3096_v33 = vrot.slane %v3095_v10, 2  ;;  %v4774_v27 = vunpack.c.l.b16 %v10419_v25  ;;  %v4775_v42 = vunpack.c.l.b16 %v10420_v18 }
 0x1f9   : > { %v12084_v6 = vmax.f32 %v3076_v41, %v3077_v60  ;;  %v3084_v7 = vrot.slane %v3083_v28, 1  ;;  %v10422_v52 = vpack.c.bf16 %v4263_v50, %v4263_v50  ;;  %v4776_v59 = vunpack.c.l.b16 %v10421_v21 }
 0x1fa   : > { %v3091_v15 = vrot.slane %v3090_v1, 1  ;;  %v3097_v12 = vmax.f32 %v3095_v10, %v3096_v33  ;;  %v4834_v5 = vsel %vm4798_vm6, %v4775_v42, %v4774_v27  ;;  %v1447_v16 = vrot.slane %v12028_v46, %v11488_v58 }
 0x1fb   : > { %v12087_v13 = vmax.f32 %v3083_v28, %v3084_v7  ;;  %v1454_v17 = vrot.slane %v1440_v63, %v11488_v58  ;;  %v4777_v20 = vunpack.c.l.b16 %v10422_v52  ;;  %v4835_v53 = vsel %vm4800_vm7, %v4776_v59, %v4834_v5  ;;  %v12123_v7 = vpop.f32.mrb[34].mxu0 }
 0x1fc   : > { %v3092_v51 = vmax.f32 %v3090_v1, %v3091_v15  ;;  %v3098_v36 = vrot.slane %v3097_v12, 1  ;;  %v1455_v32 = vcombine.high %v1447_v16, %v1447_v16  ;;  %v3016_v45 = vsel %vm2427_vm5, %v1447_v16, -inf }
 0x1fd   : > { %v1456_v56 = vcombine.high %v1454_v17, %v1454_v17  ;;  %v3030_v47 = vsel %vm2427_vm5, %v1454_v17, -inf  ;;  %v3017_v22 = vrot.slane %v3016_v45, 4  ;;  %v4370_v46 = vsel %vm11469_vm4, 0, %v4369_v19 }
 0x1fe   : > { %v3099_v62 = vmax.f32 %v3097_v12, %v3098_v36  ;;  %v3031_v61 = vrot.slane %v3030_v47, 4  ;;  %v3023_v63 = vsel %vm2427_vm5, %v1455_v32, -inf  ;;  %4371 = vst [vmem:[#allocation2 + $0x30] sm:$0x1] %v4370_v46  ;;  %v4432_v30 = vsel %vm11463_vm2, 0, %v4431_v29 }
 0x1ff   : > { %v3037_v11 = vsel %vm2427_vm5, %v1456_v56, -inf  ;;  %v12102_v31 = vsel %vm4802_vm8, %v4777_v20, %v4835_v53  ;;  %v3018_v43 = vmax.f32 %v3016_v45, %v3017_v22  ;;  %v3024_v9 = vrot.slane %v3023_v63, 4  ;;  %4433 = vst [vmem:[#allocation2 + $0x34] sm:$0x1] %v4432_v30 }
 0x200   : > { %v3032_v49 = vmax.f32 %v3030_v47, %v3031_v61  ;;  %v3038_v2 = vrot.slane %v3037_v11, 4  ;;  %v805_v41 = vadd.f32 %v12107_v55, %v11796_v0  ;;  %v797_v26 = vadd.f32 %v12107_v55, %v11829_v38 }
 0x201   : > { %v808_v3 = vadd.f32 %v12107_v55, %v11845_v24  ;;  %v800_v39 = vadd.f32 %v12107_v55, %v11872_v4  ;;  %v3019_v14 = vrot.slane %v3018_v43, 2  ;;  %v3025_v10 = vmax.f32 %v3023_v63, %v3024_v9 }
 0x202   : > { %v3033_v25 = vrot.slane %v3032_v49, 2  ;;  %v3039_v18 = vmax.f32 %v3037_v11, %v3038_v2  ;;  %v981_v60 = vmax.f32 %v805_v41, 0.0  ;;  %v979_v28 = vmax.f32 %v797_v26, 0.0 }
 0x203   : > { %v12117_v50 = vmax.f32 %v808_v3, 0.0  ;;  %v12119_v21 = vmax.f32 %v800_v39, 0.0  ;;  %v3020_v0 = vmax.f32 %v3018_v43, %v3019_v14  ;;  %v3026_v1 = vrot.slane %v3025_v10, 2 }
 0x204   : > { %v3034_v33 = vmax.f32 %v3032_v49, %v3033_v25  ;;  %v3040_v38 = vrot.slane %v3039_v18, 2  ;;  %v1525_v27 = vcombine.high %v981_v60, %v981_v60  ;;  %v1532_v24 = vrot.slane %v981_v60, %v11488_v58 }
 0x205   : > { %v1491_v42 = vcombine.high %v979_v28, %v979_v28  ;;  %v1498_v4 = vrot.slane %v979_v28, %v11488_v58  ;;  %v3021_v52 = vrot.slane %v3020_v0, 1  ;;  %v3027_v59 = vmax.f32 %v3025_v10, %v3026_v1 }
 0x206   : > { %v3035_v15 = vrot.slane %v3034_v33, 1  ;;  %v3041_v12 = vmax.f32 %v3039_v18, %v3040_v38  ;;  %v1539_v5 = vrot.slane %v1525_v27, %v11488_v58  ;;  %v1540_v16 = vcombine.high %v1532_v24, %v1532_v24  ;;  %v4920_v3 = vld [vmem:[#allocation2 + $0x34] sm:$0x1] }
 0x207   : > { %v3156_v17 = vsel %vm2427_vm5, %v1532_v24, -inf  ;;  %v1505_v19 = vrot.slane %v1491_v42, %v11488_v58  ;;  %v3022_v20 = vmax.f32 %v3020_v0, %v3021_v52  ;;  %v3028_v53 = vrot.slane %v3027_v59, 1 }
 0x208   : > { %v3036_v36 = vmax.f32 %v3034_v33, %v3035_v15  ;;  %v3042_v29 = vrot.slane %v3041_v12, 1  ;;  %v1541_v32 = vcombine.high %v1539_v5, %v1539_v5  ;;  %v3157_v56 = vrot.slane %v3156_v17, 4 }
 0x209   : > { %v3163_v45 = vsel %vm2427_vm5, %v1540_v16, -inf  ;;  %v3170_v47 = vsel %vm2427_vm5, %v1539_v5, -inf  ;;  %v3029_v22 = vmax.f32 %v3027_v59, %v3028_v53  ;;  %v4264_v46 = vmax.f32 %v3022_v20, %v12084_v6  ;;  %v4917_v20 = vld [vmem:[#allocation2 + $0x30] sm:$0xf] }
 0x20a   : > { %v3043_v61 = vmax.f32 %v3041_v12, %v3042_v29  ;;  %v4266_v63 = vmax.f32 %v3036_v36, %v3092_v51  ;;  %v3158_v11 = vmax.f32 %v3156_v17, %v3157_v56  ;;  %v3164_v30 = vrot.slane %v3163_v45, 4  ;;  %v12140_v17 = vpop.f32.mrb[35].mxu0 }
 0x20b   : > { %v3171_v43 = vrot.slane %v3170_v47, 4  ;;  %v3177_v9 = vsel %vm2427_vm5, %v1541_v32, -inf  ;;  %v4265_v49 = vmax.f32 %v3029_v22, %v12087_v13  ;;  %v10423_v41 = vpack.c.bf16 %v4264_v46, %v4264_v46 }
 0x20c   : > { %v4267_v2 = vmax.f32 %v3043_v61, %v3099_v62  ;;  %v10425_v26 = vpack.c.bf16 %v4266_v63, %v4266_v63  ;;  %v3159_v39 = vrot.slane %v3158_v11, 2  ;;  %v3165_v14 = vmax.f32 %v3163_v45, %v3164_v30 }
 0x20d   : > { %v3172_v10 = vmax.f32 %v3170_v47, %v3171_v43  ;;  %v3178_v25 = vrot.slane %v3177_v9, 4  ;;  %v10424_v18 = vpack.c.bf16 %v4265_v49, %v4265_v49  ;;  %v4778_v60 = vunpack.c.l.b16 %v10423_v41 }
 0x20e   : > { %v4780_v28 = vunpack.c.l.b16 %v10425_v26  ;;  %v10448_v6 = vpack.c.bf16 %v4267_v2, %v4267_v2  ;;  %v3160_v51 = vmax.f32 %v3158_v11, %v3159_v39  ;;  %v3166_v0 = vrot.slane %v3165_v14, 2 }
 0x20f   : > { %v3173_v1 = vrot.slane %v3172_v10, 2  ;;  %v3179_v33 = vmax.f32 %v3177_v9, %v3178_v25  ;;  %v4779_v38 = vunpack.c.l.b16 %v10424_v18  ;;  %v4837_v13 = vsel %vm4804_vm9, %v4778_v60, %v12102_v31 }
 0x210   : > { %v4921_v62 = vsel %vm11469_vm4, %v10448_v6, %v4920_v3  ;;  %v1506_v27 = vcombine.high %v1498_v4, %v1498_v4  ;;  %v3161_v24 = vrot.slane %v3160_v51, 1  ;;  %v3167_v42 = vmax.f32 %v3165_v14, %v3166_v0  ;;  %v12153_v14 = vpop.f32.mrb[36].mxu0 }
 0x211   : > { %4922 = vst [vmem:[#allocation2 + $0x34] sm:$0x1] %v4921_v62  ;;  %v3174_v52 = vmax.f32 %v3172_v10, %v3173_v1  ;;  %v3180_v59 = vrot.slane %v3179_v33, 2  ;;  %v4838_v15 = vsel %vm4806_vm10, %v4779_v38, %v4837_v13  ;;  %v1507_v12 = vcombine.high %v1505_v19, %v1505_v19 }
 0x212   : > { %v3100_v5 = vsel %vm2427_vm5, %v1498_v4, -inf  ;;  %v3107_v16 = vsel %vm2427_vm5, %v1506_v27, -inf  ;;  %v4839_v31 = vsel %vm4808_vm11, %v4780_v28, %v4838_v15  ;;  %v3162_v53 = vmax.f32 %v3160_v51, %v3161_v24  ;;  %v12156_v28 = vpop.f32.mrb[37].mxu0 }
 0x213   : > { %v3168_v36 = vrot.slane %v3167_v42, 1  ;;  %v3175_v29 = vrot.slane %v3174_v52, 1  ;;  %v4862_v32 = vpack.c.b16 %v4839_v31, %v4839_v31  ;;  %v3181_v56 = vmax.f32 %v3179_v33, %v3180_v59 }
 0x214   : > { %v3101_v45 = vrot.slane %v3100_v5, 4  ;;  %v3108_v47 = vrot.slane %v3107_v16, 4  ;;  %v3114_v46 = vsel %vm2427_vm5, %v1505_v19, -inf  ;;  %v3121_v4 = vsel %vm2427_vm5, %v1507_v12, -inf }
 0x215   : > { %v3169_v22 = vmax.f32 %v3167_v42, %v3168_v36  ;;  %v3176_v61 = vmax.f32 %v3174_v52, %v3175_v29  ;;  %v4918_v63 = vsel %vm11616_vm13, %v4862_v32, %v4917_v20  ;;  %v3182_v11 = vrot.slane %v3181_v56, 1 }
 0x216   : > { %v3102_v30 = vmax.f32 %v3100_v5, %v3101_v45  ;;  %v3109_v43 = vmax.f32 %v3107_v16, %v3108_v47  ;;  %4919 = vst [vmem:[#allocation2 + $0x30] sm:$0xf] %v4918_v63  ;;  %v3115_v9 = vrot.slane %v3114_v46, 4  ;;  %v3122_v49 = vrot.slane %v3121_v4, 4 }
 0x217   : > { %v1542_v2 = vcombine.high %v12117_v50, %v12117_v50  ;;  %v1549_v41 = vrot.slane %v12117_v50, %v11488_v58  ;;  %v3183_v26 = vmax.f32 %v3181_v56, %v3182_v11  ;;  %v1508_v39 = vcombine.high %v12119_v21, %v12119_v21 }
 0x218   : > { %v3103_v3 = vrot.slane %v3102_v30, 2  ;;  %v3110_v19 = vrot.slane %v3109_v43, 2  ;;  %v3116_v10 = vmax.f32 %v3114_v46, %v3115_v9  ;;  %v3123_v25 = vmax.f32 %v3121_v4, %v3122_v49 }
 0x219   : > { %v1556_v18 = vrot.slane %v1542_v2, %v11488_v58  ;;  %v1557_v60 = vcombine.high %v1549_v41, %v1549_v41  ;;  %v3184_v0 = vsel %vm2427_vm5, %v1549_v41, -inf  ;;  %v1515_v50 = vrot.slane %v12119_v21, %v11488_v58 }
 0x21a   : > { %v3104_v6 = vmax.f32 %v3102_v30, %v3103_v3  ;;  %v3111_v51 = vmax.f32 %v3109_v43, %v3110_v19  ;;  %v3117_v1 = vrot.slane %v3116_v10, 2  ;;  %v3124_v33 = vrot.slane %v3123_v25, 2 }
 0x21b   : > { %v1558_v38 = vcombine.high %v1556_v18, %v1556_v18  ;;  %v3185_v13 = vrot.slane %v3184_v0, 4  ;;  %v3191_v24 = vsel %vm2427_vm5, %v1557_v60, -inf  ;;  %v3198_v42 = vsel %vm2427_vm5, %v1556_v18, -inf }
 0x21c   : > { %v3105_v62 = vrot.slane %v3104_v6, 1  ;;  %v3112_v27 = vrot.slane %v3111_v51, 1  ;;  %v3118_v52 = vmax.f32 %v3116_v10, %v3117_v1  ;;  %v3125_v59 = vmax.f32 %v3123_v25, %v3124_v33 }
 0x21d   : > { %v3186_v15 = vmax.f32 %v3184_v0, %v3185_v13  ;;  %v3192_v12 = vrot.slane %v3191_v24, 4  ;;  %v3199_v31 = vrot.slane %v3198_v42, 4  ;;  %v3205_v20 = vsel %vm2427_vm5, %v1558_v38, -inf }
 0x21e   : > { %v3106_v5 = vmax.f32 %v3104_v6, %v3105_v62  ;;  %v3113_v16 = vmax.f32 %v3111_v51, %v3112_v27  ;;  %v3119_v21 = vrot.slane %v3118_v52, 1  ;;  %v3126_v36 = vrot.slane %v3125_v59, 1 }
 0x21f   : > { %v3187_v29 = vrot.slane %v3186_v15, 2  ;;  %v3193_v32 = vmax.f32 %v3191_v24, %v3192_v12  ;;  %v3200_v47 = vmax.f32 %v3198_v42, %v3199_v31  ;;  %v3206_v46 = vrot.slane %v3205_v20, 4  ;;  %v4434_v12 = vld [vmem:[#allocation2 + $0x3c] sm:$0x1] }
 0x220   : > { %v4268_v56 = vmax.f32 %v3106_v5, %v3162_v53  ;;  %v4269_v45 = vmax.f32 %v3113_v16, %v3169_v22  ;;  %v3120_v4 = vmax.f32 %v3118_v52, %v3119_v21  ;;  %v3127_v63 = vmax.f32 %v3125_v59, %v3126_v36 }
 0x221   : > { %v3188_v11 = vmax.f32 %v3186_v15, %v3187_v29  ;;  %v3194_v30 = vrot.slane %v3193_v32, 2  ;;  %v3201_v49 = vrot.slane %v3200_v47, 2  ;;  %v3207_v2 = vmax.f32 %v3205_v20, %v3206_v46  ;;  %v4372_v15 = vld [vmem:[#allocation2 + $0x38] sm:$0x1]  ;;  %v4413_v46 = vld [vmem:[#allocation2 + $0x4] sm:$0x1] }
 0x222   : > { %v10427_v43 = vpack.c.bf16 %v4268_v56, %v4268_v56  ;;  %v10428_v9 = vpack.c.bf16 %v4269_v45, %v4269_v45  ;;  %v4270_v41 = vmax.f32 %v3120_v4, %v3176_v61  ;;  %v4271_v3 = vmax.f32 %v3127_v63, %v3183_v26 }
 0x223   : > { %v3189_v19 = vrot.slane %v3188_v11, 1  ;;  %v3195_v10 = vmax.f32 %v3193_v32, %v3194_v30  ;;  %v3202_v60 = vmax.f32 %v3200_v47, %v3201_v49  ;;  %v3208_v6 = vrot.slane %v3207_v2, 2  ;;  %v4351_v32 = vld [vmem:[#allocation2] sm:$0x1] }
 0x224   : > { %v4782_v25 = vunpack.c.l.b16 %v10427_v43  ;;  %v4783_v18 = vunpack.c.l.b16 %v10428_v9  ;;  %v10429_v53 = vpack.c.bf16 %v4270_v41, %v4270_v41  ;;  %v10430_v22 = vpack.c.bf16 %v4271_v3, %v4271_v3 }
 0x225   : > { %v12164_v51 = vmax.f32 %v3188_v11, %v3189_v19  ;;  %v3196_v0 = vrot.slane %v3195_v10, 1  ;;  %v3203_v33 = vrot.slane %v3202_v60, 1  ;;  %v3209_v38 = vmax.f32 %v3207_v2, %v3208_v6 }
 0x226   : > { %v4840_v1 = vsel %vm4798_vm6, %v4783_v18, %v4782_v25  ;;  %v1522_v13 = vrot.slane %v1508_v39, %v11488_v58  ;;  %v4784_v62 = vunpack.c.l.b16 %v10429_v53  ;;  %v4785_v61 = vunpack.c.l.b16 %v10430_v22 }
 0x227   : > { %v12168_v26 = vmax.f32 %v3195_v10, %v3196_v0  ;;  %v1523_v27 = vcombine.high %v1515_v50, %v1515_v50  ;;  %v12170_v24 = vmax.f32 %v3202_v60, %v3203_v33  ;;  %v3210_v42 = vrot.slane %v3209_v38, 1 }
 0x228   : > { %v1524_v52 = vcombine.high %v1522_v13, %v1522_v13  ;;  %v3128_v59 = vsel %vm2427_vm5, %v1515_v50, -inf  ;;  %v4841_v5 = vsel %vm4800_vm7, %v4784_v62, %v4840_v1  ;;  %v3142_v39 = vsel %vm2427_vm5, %v1522_v13, -inf }
 0x229   : > { %v3129_v16 = vrot.slane %v3128_v59, 4  ;;  %v3135_v31 = vsel %vm2427_vm5, %v1523_v27, -inf  ;;  %v3211_v20 = vmax.f32 %v3209_v38, %v3210_v42  ;;  %v3143_v36 = vrot.slane %v3142_v39, 4 }
 0x22a   : > { %v3136_v21 = vrot.slane %v3135_v31, 4  ;;  %v3149_v29 = vsel %vm2427_vm5, %v1524_v52, -inf  ;;  %v4373_v50 = vsel %vm11469_vm4, 0, %v4372_v15  ;;  %v4435_v47 = vsel %vm11463_vm2, 0, %v4434_v12 }
 0x22b   : > { %v3130_v56 = vmax.f32 %v3128_v59, %v3129_v16  ;;  %v3150_v45 = vrot.slane %v3149_v29, 4  ;;  %v3144_v63 = vmax.f32 %v3142_v39, %v3143_v36  ;;  %4374 = vst [vmem:[#allocation2 + $0x38] sm:$0x1] %v4373_v50  ;;  %4436 = vst [vmem:[#allocation2 + $0x3c] sm:$0x1] %v4435_v47  ;;  %v12182_v11 = vsel %vm4802_vm8, %v4785_v61, %v4841_v5  ;;  %v12206_v47 = vpop.f32.mrb[38].mxu0 }
 0x22c   : > { %v3137_v4 = vmax.f32 %v3135_v31, %v3136_v21  ;;  %v821_v30 = vadd.f32 %v12107_v55, %v11913_v37  ;;  %v813_v49 = vadd.f32 %v12107_v55, %v11944_v35  ;;  %v4352_v2 = vsel %vm11469_vm4, 0, %v4351_v32 }
 0x22d   : > { %v3131_v43 = vrot.slane %v3130_v56, 2  ;;  %v3151_v9 = vmax.f32 %v3149_v29, %v3150_v45  ;;  %v3145_v3 = vrot.slane %v3144_v63, 2  ;;  %4353 = vst [vmem:[#allocation2] sm:$0x1] %v4352_v2  ;;  %v4414_v10 = vsel %vm11463_vm2, 0, %v4413_v46 }
 0x22e   : > { %v3138_v41 = vrot.slane %v3137_v4, 2  ;;  %v985_v19 = vmax.f32 %v821_v30, 0.0  ;;  %v983_v60 = vmax.f32 %v813_v49, 0.0  ;;  %4415 = vst [vmem:[#allocation2 + $0x4] sm:$0x1] %v4414_v10  ;;  %v14093_v35 = vmov 0  }
 0x22f   : > { %v3132_v25 = vmax.f32 %v3130_v56, %v3131_v43  ;;  %v3152_v18 = vrot.slane %v3151_v9, 2  ;;  %v3146_v6 = vmax.f32 %v3144_v63, %v3145_v3  ;;  %4473 = vst [vmem:[#allocation2] sm:$0xf] %v14093_v35  ;;  %4474 = vst [vmem:[#allocation2 + $0x4] sm:$0x1] %v14093_v35 }
 0x230   : > { %v3139_v37 = vmax.f32 %v3137_v4, %v3138_v41  ;;  %v1593_v53 = vcombine.high %v985_v19, %v985_v19  ;;  %v1600_v22 = vrot.slane %v985_v19, %v11488_v58  ;;  %v1559_v33 = vcombine.high %v983_v60, %v983_v60 }
 0x231   : > { %v3133_v0 = vrot.slane %v3132_v25, 1  ;;  %v3153_v1 = vmax.f32 %v3151_v9, %v3152_v18  ;;  %v1566_v38 = vrot.slane %v983_v60, %v11488_v58  ;;  %v3147_v62 = vrot.slane %v3146_v6, 1 }
 0x232   : > { %v3140_v13 = vrot.slane %v3139_v37, 1  ;;  %v1607_v61 = vrot.slane %v1593_v53, %v11488_v58  ;;  %v1608_v27 = vcombine.high %v1600_v22, %v1600_v22  ;;  %v3268_v59 = vsel %vm2427_vm5, %v1600_v22, -inf }
 0x233   : > { %v3134_v42 = vmax.f32 %v3132_v25, %v3133_v0  ;;  %v3154_v52 = vrot.slane %v3153_v1, 1  ;;  %v12199_v15 = vrot.slane %v1559_v33, %v11488_v58  ;;  %v3148_v5 = vmax.f32 %v3146_v6, %v3147_v62 }
 0x234   : > { %v3141_v12 = vmax.f32 %v3139_v37, %v3140_v13  ;;  %v1609_v16 = vcombine.high %v1607_v61, %v1607_v61  ;;  %v3269_v31 = vrot.slane %v3268_v59, 4  ;;  %v3275_v36 = vsel %vm2427_vm5, %v1608_v27, -inf  ;;  %v4923_v13 = vld [vmem:[#allocation2 + $0x38] sm:$0xf] }
 0x235   : > { %v3155_v39 = vmax.f32 %v3153_v1, %v3154_v52  ;;  %v4272_v21 = vmax.f32 %v3134_v42, %v12164_v51  ;;  %v3282_v29 = vsel %vm2427_vm5, %v1607_v61, -inf  ;;  %v4274_v56 = vmax.f32 %v3148_v5, %v12170_v24  ;;  %v4926_v51 = vld [vmem:[#allocation2 + $0x3c] sm:$0x1] }
 0x236   : > { %v4273_v32 = vmax.f32 %v3141_v12, %v12168_v26  ;;  %v3270_v45 = vmax.f32 %v3268_v59, %v3269_v31  ;;  %v3276_v50 = vrot.slane %v3275_v36, 4  ;;  %v3283_v63 = vrot.slane %v3282_v29, 4 }
 0x237   : > { %v4275_v46 = vmax.f32 %v3155_v39, %v3211_v20  ;;  %v10431_v4 = vpack.c.bf16 %v4272_v21, %v4272_v21  ;;  %v3289_v30 = vsel %vm2427_vm5, %v1609_v16, -inf  ;;  %v10433_v9 = vpack.c.bf16 %v4274_v56, %v4274_v56 }
 0x238   : > { %v10432_v43 = vpack.c.bf16 %v4273_v32, %v4273_v32  ;;  %v3271_v49 = vrot.slane %v3270_v45, 2  ;;  %v3277_v2 = vmax.f32 %v3275_v36, %v3276_v50  ;;  %v3284_v19 = vmax.f32 %v3282_v29, %v3283_v63  ;;  %v5428_v32 = vld [vmem:[#allocation2 + $0x8] sm:$0xf] }
 0x239   : > { %v4786_v41 = vunpack.c.l.b16 %v10431_v4  ;;  %v10449_v3 = vpack.c.bf16 %v4275_v46, %v4275_v46  ;;  %v3290_v26 = vrot.slane %v3289_v30, 4  ;;  %v4788_v24 = vunpack.c.l.b16 %v10433_v9  ;;  %v5427_v4 = vld [vmem:[#allocation2 + $0x4] sm:$0x1] }
 0x23a   : > { %v4787_v10 = vunpack.c.l.b16 %v10432_v43  ;;  %v3272_v25 = vmax.f32 %v3270_v45, %v3271_v49  ;;  %v3278_v18 = vrot.slane %v3277_v2, 2  ;;  %v3285_v37 = vrot.slane %v3284_v19, 2  ;;  %v12224_v43 = vpop.f32.mrb[39].mxu0 }
 0x23b   : > { %v4843_v20 = vsel %vm4804_vm9, %v4786_v41, %v12182_v11  ;;  %v4927_v60 = vsel %vm11469_vm4, %v10449_v3, %v4926_v51  ;;  %v3291_v6 = vmax.f32 %v3289_v30, %v3290_v26  ;;  %v1574_v1 = vcombine.high %v1566_v38, %v1566_v38 }
 0x23c   : > { %v4844_v53 = vsel %vm4806_vm10, %v4787_v10, %v4843_v20  ;;  %4928 = vst [vmem:[#allocation2 + $0x3c] sm:$0x1] %v4927_v60  ;;  %v3273_v22 = vrot.slane %v3272_v25, 1  ;;  %v3279_v0 = vmax.f32 %v3277_v2, %v3278_v18  ;;  %v3286_v62 = vmax.f32 %v3284_v19, %v3285_v37 }
 0x23d   : > { %v4845_v33 = vsel %vm4808_vm11, %v4788_v24, %v4844_v53  ;;  %v3292_v61 = vrot.slane %v3291_v6, 2  ;;  %v1575_v27 = vcombine.high %v12199_v15, %v12199_v15  ;;  %v3212_v59 = vsel %vm2427_vm5, %v1566_v38, -inf  ;;  %v5426_v38 = vld [vmem:[#allocation2] sm:$0xf] }
 0x23e   : > { %v4864_v11 = vpack.c.b16 %v4845_v33, %v4845_v33  ;;  %v3274_v42 = vmax.f32 %v3272_v25, %v3273_v22  ;;  %v3280_v52 = vrot.slane %v3279_v0, 1  ;;  %v3287_v12 = vrot.slane %v3286_v62, 1  ;;  %v5429_v25 = vld [vmem:[#allocation2 + $0xc] sm:$0x1] }
 0x23f   : > { %v3293_v5 = vmax.f32 %v3291_v6, %v3292_v61  ;;  %v3213_v16 = vrot.slane %v3212_v59, 4  ;;  %v3219_v31 = vsel %vm2427_vm5, %v1574_v1, -inf  ;;  %v3226_v29 = vsel %vm2427_vm5, %v12199_v15, -inf }
 0x240   : > { %v4924_v39 = vsel %vm11616_vm13, %v4864_v11, %v4923_v13  ;;  %v3281_v21 = vmax.f32 %v3279_v0, %v3280_v52  ;;  %v3220_v36 = vrot.slane %v3219_v31, 4  ;;  %v3288_v56 = vmax.f32 %v3286_v62, %v3287_v12 }
 0x241   : > { %4925 = vst [vmem:[#allocation2 + $0x38] sm:$0xf] %v4924_v39  ;;  %v3294_v45 = vrot.slane %v3293_v5, 1  ;;  %v3214_v50 = vmax.f32 %v3212_v59, %v3213_v16  ;;  %v3227_v46 = vrot.slane %v3226_v29, 4  ;;  %v3233_v30 = vsel %vm2427_vm5, %v1575_v27, -inf }
 0x242   : > { %v3221_v63 = vmax.f32 %v3219_v31, %v3220_v36  ;;  %v3234_v2 = vrot.slane %v3233_v30, 4  ;;  %v5446_v41 = vshrl.u32 %v5426_v38, 16  ;;  %v5449_v3 = vshll.u32 %v5426_v38, 16 }
 0x243   : > { %v3295_v9 = vmax.f32 %v3293_v5, %v3294_v45  ;;  %v3215_v51 = vrot.slane %v3214_v50, 2  ;;  %v3228_v49 = vmax.f32 %v3226_v29, %v3227_v46  ;;  %v5455_v19 = vshll.u32 %v5427_v4, 16 }
 0x244   : > { %v3222_v15 = vrot.slane %v3221_v63, 2  ;;  %v3235_v24 = vmax.f32 %v3233_v30, %v3234_v2  ;;  %v5460_v18 = vshrl.u32 %v5428_v32, 16  ;;  %v5448_v60 = vrot.slane %v5446_v41, 4 }
 0x245   : > { %v3216_v26 = vmax.f32 %v3214_v50, %v3215_v51  ;;  %v3229_v10 = vrot.slane %v3228_v49, 2  ;;  %v5451_v37 = vrot.slane %v5449_v3, 5  ;;  %v5457_v6 = vrot.slane %v5455_v19, 5 }
 0x246   : > { %v3223_v20 = vmax.f32 %v3221_v63, %v3222_v15  ;;  %v3236_v0 = vrot.slane %v3235_v24, 2  ;;  %v5462_v1 = vrot.slane %v5460_v18, 4  ;;  %v5463_v62 = vshll.u32 %v5428_v32, 16 }
 0x247   : > { %v3217_v53 = vrot.slane %v3216_v26, 1  ;;  %v3230_v22 = vmax.f32 %v3228_v49, %v3229_v10  ;;  %v5452_v13 = vor.u32 %v5451_v37, %v5448_v60  ;;  %v5469_v61 = vshll.u32 %v5429_v25, 16  ;;  %v4375_v60 = vld [vmem:[#allocation2 + $0x40] sm:$0x1] }
 0x248   : > { %v3224_v33 = vrot.slane %v3223_v20, 1  ;;  %v3237_v52 = vmax.f32 %v3235_v24, %v3236_v0  ;;  %v824_v12 = vadd.f32 %v12107_v55, %v12009_v8  ;;  %v5465_v31 = vrot.slane %v5463_v62, 5  ;;  %v12247_v62 = vpop.f32.mrb[40].mxu0 }
 0x249   : > { %v3218_v27 = vmax.f32 %v3216_v26, %v3217_v53  ;;  %v3231_v11 = vrot.slane %v3230_v22, 1  ;;  %v5453_v16 = vrot.slane %v5452_v13, 4  ;;  %v5471_v39 = vrot.slane %v5469_v61, 5 }
 0x24a   : > { %v3225_v5 = vmax.f32 %v3223_v20, %v3224_v33  ;;  %v3238_v29 = vrot.slane %v3237_v52, 1  ;;  %v986_v45 = vmax.f32 %v824_v12, 0.0  ;;  %v5466_v38 = vor.u32 %v5465_v31, %v5462_v1 }
 0x24b   : > { %v3232_v36 = vmax.f32 %v3230_v22, %v3231_v11  ;;  %v4276_v32 = vmax.f32 %v3218_v27, %v3274_v42  ;;  %v5458_v46 = vsel %vm12228_vm0, %v5453_v16, %v5457_v6  ;;  %v816_v4 = vadd.f32 %v12107_v55, %v12036_v48  ;;  %v11137_v22 = vld [vmem:[#allocation2] ss:$8 sps:$4 sm:$0xff]  }
 0x24c   : > { %v4277_v50 = vmax.f32 %v3225_v5, %v3281_v21  ;;  %v3239_v63 = vmax.f32 %v3237_v52, %v3238_v29  ;;  %v1610_v8 = vcombine.high %v986_v45, %v986_v45  ;;  %v5467_v2 = vrot.slane %v5466_v38, 4 }
 0x24d   : > { %v4278_v30 = vmax.f32 %v3232_v36, %v3288_v56  ;;  %v10435_v51 = vpack.c.bf16 %v4276_v32, %v4276_v32  ;;  %v1617_v15 = vrot.slane %v986_v45, %v11488_v58  ;;  %v984_v41 = vmax.f32 %v816_v4, 0.0 }
 0x24e   : > { %v10436_v49 = vpack.c.bf16 %v4277_v50, %v4277_v50  ;;  %v4279_v3 = vmax.f32 %v3239_v63, %v3295_v9  ;;  %v1624_v21 = vrot.slane %v1610_v8, %v11488_v58  ;;  %v5472_v10 = vsel %vm12228_vm0, %v5467_v2, %v5471_v39 }
 0x24f   : > { %v10437_v42 = vpack.c.bf16 %v4278_v30, %v4278_v30  ;;  %v4790_v19 = vunpack.c.l.b16 %v10435_v51  ;;  %v1625_v24 = vcombine.high %v1617_v15, %v1617_v15  ;;  %v3296_v48 = vsel %vm2427_vm5, %v1617_v15, -inf }
 0x250   : > { %v4791_v26 = vunpack.c.l.b16 %v10436_v49  ;;  %v10438_v56 = vpack.c.bf16 %v4279_v3, %v4279_v3  ;;  %v10129_v18 = vcombine.low %v5458_v46, %v5472_v10  ;;  %v1626_v20 = vcombine.high %v1624_v21, %v1624_v21 }
 0x251   : > { %v4792_v25 = vunpack.c.l.b16 %v10437_v42  ;;  %v3297_v6 = vrot.slane %v3296_v48, 4  ;;  %v3303_v9 = vsel %vm2427_vm5, %v1625_v24, -inf  ;;  %v3310_v53 = vsel %vm2427_vm5, %v1624_v21, -inf }
 0x252   : > { %v4846_v37 = vsel %vm4798_vm6, %v4791_v26, %v4790_v19  ;;  %v4793_v0 = vunpack.c.l.b16 %v10438_v56  ;;  %7693 = vmatprep.mubr.bf16.mxu1 %v10129_v18  ;;  %v3304_v33 = vrot.slane %v3303_v9, 4  ;;  %v3311_v13 = vrot.slane %v3310_v53, 4  ;;  %v12258_v56 = vpop.f32.mrb[41].mxu0 }
 0x253   : > { %v4847_v1 = vsel %vm4800_vm7, %v4792_v25, %v4846_v37  ;;  %v3298_v61 = vmax.f32 %v3296_v48, %v3297_v6  ;;  %v3317_v27 = vsel %vm2427_vm5, %v1626_v20, -inf  ;;  %7694 = vmatmul.mubr.bf16.vlgmr.msra.gmra.mrb[0].mxu1 %v11137_v22  ;;  %v1576_v11 = vcombine.high %v984_v41, %v984_v41  ;;  %v4437_v48 = vld [vmem:[#allocation2 + $0x44] sm:$0x1]  ;;  %v5848_v22 = vld [vmem:[#allocation2 + $0x8] sm:$0xe] }
 0x254   : > { %v1583_v52 = vrot.slane %v984_v41, %v11488_v58  ;;  %v3305_v12 = vmax.f32 %v3303_v9, %v3304_v33  ;;  %v3312_v5 = vmax.f32 %v3310_v53, %v3311_v13  ;;  %v3318_v16 = vrot.slane %v3317_v27, 4  ;;  %v5849_v33 = vld [vmem:[#allocation2 + $0xc] sm:$0x1] }
 0x255   : > { %v4376_v31 = vsel %vm11469_vm4, 0, %v4375_v60  ;;  %v3299_v39 = vrot.slane %v3298_v61, 2  ;;  %v1590_v36 = vrot.slane %v1576_v11, %v11488_v58  ;;  %v4438_v11 = vsel %vm11463_vm2, 0, %v4437_v48 }
 0x256   : > { %v1591_v29 = vcombine.high %v1583_v52, %v1583_v52  ;;  %v3240_v32 = vsel %vm2427_vm5, %v1583_v52, -inf  ;;  %4377 = vst [vmem:[#allocation2 + $0x40] sm:$0x1] %v4376_v31  ;;  %v3306_v45 = vrot.slane %v3305_v12, 2  ;;  %v3313_v50 = vrot.slane %v3312_v5, 2 }
 0x257   : > { %v3319_v46 = vmax.f32 %v3317_v27, %v3318_v16  ;;  %v3241_v38 = vrot.slane %v3240_v32, 4  ;;  %v3300_v4 = vmax.f32 %v3298_v61, %v3299_v39  ;;  %v1592_v63 = vcombine.high %v1590_v36, %v1590_v36  ;;  %v5850_v52 = vld [vmem:[#allocation2 + $0x10] sm:$0xe]  ;;  %4439 = vst [vmem:[#allocation2 + $0x44] sm:$0x1] %v4438_v11 }
 0x258   : > { %v3247_v30 = vsel %vm2427_vm5, %v1591_v29, -inf  ;;  %v3254_v51 = vsel %vm2427_vm5, %v1590_v36, -inf  ;;  %v3307_v8 = vmax.f32 %v3305_v12, %v3306_v45  ;;  %v3314_v49 = vmax.f32 %v3312_v5, %v3313_v50  ;;  %v5851_v31 = vld [vmem:[#allocation2 + $0x14] sm:$0x1] }
 0x259   : > { %v3320_v2 = vrot.slane %v3319_v46, 2  ;;  %v3242_v15 = vmax.f32 %v3240_v32, %v3241_v38  ;;  %v3301_v41 = vrot.slane %v3300_v4, 1  ;;  %v3248_v3 = vrot.slane %v3247_v30, 4 }
 0x25a   : > { %v3255_v42 = vrot.slane %v3254_v51, 4  ;;  %v3261_v19 = vsel %vm2427_vm5, %v1592_v63, -inf  ;;  %v3308_v21 = vrot.slane %v3307_v8, 1  ;;  %v3315_v26 = vrot.slane %v3314_v49, 1 }
 0x25b   : > { %v3321_v10 = vmax.f32 %v3319_v46, %v3320_v2  ;;  %v3243_v24 = vrot.slane %v3242_v15, 2  ;;  %v3302_v25 = vmax.f32 %v3300_v4, %v3301_v41  ;;  %v3249_v18 = vmax.f32 %v3247_v30, %v3248_v3  ;;  %v12273_v2 = vld [vmem:[#allocation2 + $0x8] sm:$0xf] }
 0x25c   : > { %v3256_v20 = vmax.f32 %v3254_v51, %v3255_v42  ;;  %v3262_v60 = vrot.slane %v3261_v19, 4  ;;  %v3309_v37 = vmax.f32 %v3307_v8, %v3308_v21  ;;  %v3316_v6 = vmax.f32 %v3314_v49, %v3315_v26 }
 0x25d   : > { %v3322_v9 = vrot.slane %v3321_v10, 1  ;;  %v3244_v53 = vmax.f32 %v3242_v15, %v3243_v24  ;;  %v3250_v13 = vrot.slane %v3249_v18, 2  ;;  %v4848_v16 = vsel %vm4802_vm8, %v4793_v0, %v4847_v1 }
 0x25e   : > { %v3257_v61 = vrot.slane %v3256_v20, 2  ;;  %v3263_v27 = vmax.f32 %v3261_v19, %v3262_v60  ;;  %v10153_v50 = vrot.slane %v5848_v22, 9  ;;  %v5882_v46 = vrot.slane %v5849_v33, 5  ;;  %v12280_v33 = vpop.f32.mrb[42].mxu0 }
 0x25f   : > { %v3323_v12 = vmax.f32 %v3321_v10, %v3322_v9  ;;  %v3245_v5 = vrot.slane %v3244_v53, 1  ;;  %v3251_v39 = vmax.f32 %v3249_v18, %v3250_v13  ;;  %v10154_v38 = vrot.slane %v5850_v52, 9 }
 0x260   : > { %v3258_v36 = vmax.f32 %v3256_v20, %v3257_v61  ;;  %v3264_v29 = vrot.slane %v3263_v27, 2  ;;  %v5886_v51 = vrot.slane %v5851_v31, 5  ;;  %v5883_v0 = vsel %vm12263_vm12, %v10153_v50, %v5882_v46  ;;  %v4932_v61 = vld [vmem:[#allocation2 + $0x44] sm:$0x1] }
 0x261   : > { %v3246_v32 = vmax.f32 %v3244_v53, %v3245_v5  ;;  %v3252_v4 = vrot.slane %v3251_v39, 1  ;;  %v837_v1 = vadd.f32 %v12107_v55, %v12079_v34  ;;  %v829_v49 = vadd.f32 %v12107_v55, %v12082_v57 }
 0x262   : > { %v3259_v63 = vrot.slane %v3258_v36, 1  ;;  %v3265_v30 = vmax.f32 %v3263_v27, %v3264_v29  ;;  %v5887_v42 = vsel %vm12263_vm12, %v10154_v38, %v5886_v51  ;;  %v5717_v34 = vshrl.u32 %v12273_v2, 16 }
 0x263   : > { %v4280_v8 = vmax.f32 %v3246_v32, %v3302_v25  ;;  %v3253_v15 = vmax.f32 %v3251_v39, %v3252_v4  ;;  %v10161_v21 = vcombine.low %v5883_v0, %v5887_v42  ;;  %v989_v26 = vmax.f32 %v837_v1, 0.0  ;;  %v4929_v4 = vld [vmem:[#allocation2 + $0x40] sm:$0xf] }
 0x264   : > { %v3260_v41 = vmax.f32 %v3258_v36, %v3259_v63  ;;  %v3266_v3 = vrot.slane %v3265_v30, 1  ;;  %v987_v10 = vmax.f32 %v829_v49, 0.0 }
 0x265   : > { %v10439_v19 = vpack.c.bf16 %v4280_v8, %v4280_v8  ;;  %v4281_v48 = vmax.f32 %v3253_v15, %v3309_v37  ;;  %7887 = vmatprep.mubr.bf16.mxu0 %v10161_v21  ;;  %v1661_v57 = vcombine.high %v989_v26, %v989_v26  ;;  %v1668_v55 = vrot.slane %v989_v26, %v11488_v58 }
 0x266   : > { %v3267_v24 = vmax.f32 %v3265_v30, %v3266_v3  ;;  %v4282_v25 = vmax.f32 %v3260_v41, %v3316_v6  ;;  %v1627_v20 = vcombine.high %v987_v10, %v987_v10  ;;  %v1634_v22 = vrot.slane %v987_v10, %v11488_v58 }
 0x267   : > { %v4794_v18 = vunpack.c.l.b16 %v10439_v19  ;;  %v10440_v9 = vpack.c.bf16 %v4281_v48, %v4281_v48  ;;  %v1675_v37 = vrot.slane %v1661_v57, %v11488_v58  ;;  %v1676_v6 = vcombine.high %v1668_v55, %v1668_v55 }
 0x268   : > { %v4283_v60 = vmax.f32 %v3267_v24, %v3323_v12  ;;  %v10441_v53 = vpack.c.bf16 %v4282_v25, %v4282_v25  ;;  %v3380_v27 = vsel %vm2427_vm5, %v1668_v55, -inf  ;;  %v1641_v29 = vrot.slane %v1627_v20, %v11488_v58 }
 0x269   : > { %v4849_v13 = vsel %vm4804_vm9, %v4794_v18, %v4848_v16  ;;  %v4795_v11 = vunpack.c.l.b16 %v10440_v9  ;;  %v3381_v31 = vrot.slane %v3380_v27, 4  ;;  %v1677_v39 = vcombine.high %v1675_v37, %v1675_v37 }
 0x26a   : > { %v4796_v52 = vunpack.c.l.b16 %v10441_v53  ;;  %v10450_v5 = vpack.c.bf16 %v4283_v60, %v4283_v60  ;;  %v3387_v12 = vsel %vm2427_vm5, %v1676_v6, -inf  ;;  %v3394_v36 = vsel %vm2427_vm5, %v1675_v37, -inf }
 0x26b   : > { %v4850_v32 = vsel %vm4806_vm10, %v4795_v11, %v4849_v13  ;;  %v3382_v50 = vmax.f32 %v3380_v27, %v3381_v31  ;;  %v3388_v46 = vrot.slane %v3387_v12, 4  ;;  %v3395_v63 = vrot.slane %v3394_v36, 4  ;;  %v5701_v11 = vld [vmem:[#allocation2 + $0xc] sm:$0x1] }
 0x26c   : > { %v4933_v16 = vsel %vm11469_vm4, %v10450_v5, %v4932_v61  ;;  %v4851_v38 = vsel %vm4808_vm11, %v4796_v52, %v4850_v32  ;;  %v3401_v30 = vsel %vm2427_vm5, %v1677_v39, -inf  ;;  %v1642_v51 = vcombine.high %v1634_v22, %v1634_v22 }
 0x26d   : > { %4934 = vst [vmem:[#allocation2 + $0x44] sm:$0x1] %v4933_v16  ;;  %v4866_v8 = vpack.c.b16 %v4851_v38, %v4851_v38  ;;  %v3383_v0 = vrot.slane %v3382_v50, 2  ;;  %v3389_v1 = vmax.f32 %v3387_v12, %v3388_v46  ;;  %v3402_v49 = vrot.slane %v3401_v30, 4  ;;  %v12299_v12 = vpop.f32.mrb[43].mxu0 }
 0x26e   : > { %v3396_v15 = vmax.f32 %v3394_v36, %v3395_v63  ;;  %v1643_v41 = vcombine.high %v1641_v29, %v1641_v29  ;;  %v3324_v3 = vsel %vm2427_vm5, %v1634_v22, -inf  ;;  %v3331_v42 = vsel %vm2427_vm5, %v1642_v51, -inf  ;;  %v5702_v16 = vld [vmem:[#allocation2 + $0x10] sm:$0xf] }
 0x26f   : > { %v4930_v19 = vsel %vm11616_vm13, %v4866_v8, %v4929_v4  ;;  %v3384_v21 = vmax.f32 %v3382_v50, %v3383_v0  ;;  %v3390_v26 = vrot.slane %v3389_v1, 2  ;;  %v3403_v10 = vmax.f32 %v3401_v30, %v3402_v49 }
 0x270   : > { %4931 = vst [vmem:[#allocation2 + $0x40] sm:$0xf] %v4930_v19  ;;  %v3397_v24 = vrot.slane %v3396_v15, 2  ;;  %v3325_v48 = vrot.slane %v3324_v3, 4  ;;  %v3332_v25 = vrot.slane %v3331_v42, 4  ;;  %v3338_v18 = vsel %vm2427_vm5, %v1641_v29, -inf }
 0x271   : > { %v3385_v57 = vrot.slane %v3384_v21, 1  ;;  %v3391_v55 = vmax.f32 %v3389_v1, %v3390_v26  ;;  %v3404_v20 = vrot.slane %v3403_v10, 2  ;;  %v3339_v60 = vrot.slane %v3338_v18, 4 }
 0x272   : > { %v3398_v9 = vmax.f32 %v3396_v15, %v3397_v24  ;;  %v3326_v53 = vmax.f32 %v3324_v3, %v3325_v48  ;;  %v3333_v22 = vmax.f32 %v3331_v42, %v3332_v25  ;;  %v3345_v13 = vsel %vm2427_vm5, %v1643_v41, -inf  ;;  %v5703_v41 = vld [vmem:[#allocation2 + $0x14] sm:$0x1] }
 0x273   : > { %v3386_v61 = vmax.f32 %v3384_v21, %v3385_v57  ;;  %v3392_v37 = vrot.slane %v3391_v55, 1  ;;  %v3405_v6 = vmax.f32 %v3403_v10, %v3404_v20  ;;  %v3340_v27 = vmax.f32 %v3338_v18, %v3339_v60  ;;  %v12304_v10 = vpop.f32.mrb[44].mxu0 }
 0x274   : > { %v3399_v52 = vrot.slane %v3398_v9, 1  ;;  %v3327_v5 = vrot.slane %v3326_v53, 2  ;;  %v3334_v31 = vrot.slane %v3333_v22, 2  ;;  %v3346_v39 = vrot.slane %v3345_v13, 4  ;;  %v12306_v18 = vpop.f32.mrb[45].mxu0 }
 0x275   : > { %v3393_v36 = vmax.f32 %v3391_v55, %v3392_v37  ;;  %v3406_v29 = vrot.slane %v3405_v6, 1  ;;  %v3341_v32 = vrot.slane %v3340_v27, 2  ;;  %v5719_v50 = vrot.slane %v5717_v34, 4 }
 0x276   : > { %v3400_v46 = vmax.f32 %v3398_v9, %v3399_v52  ;;  %v3328_v38 = vmax.f32 %v3326_v53, %v3327_v5  ;;  %v3335_v4 = vmax.f32 %v3333_v22, %v3334_v31  ;;  %v3347_v63 = vmax.f32 %v3345_v13, %v3346_v39  ;;  %v12311_v22 = vld [vmem:[%s14085_s2] ss:$0 sm:$0xff] }
 0x277   : > { %v3407_v30 = vmax.f32 %v3405_v6, %v3406_v29  ;;  %v3342_v51 = vmax.f32 %v3340_v27, %v3341_v32  ;;  %v5720_v8 = vshll.u32 %v12273_v2, 16  ;;  %v5726_v0 = vshll.u32 %v5701_v11, 16 }
 0x278   : > { %v3329_v1 = vrot.slane %v3328_v38, 1  ;;  %v3336_v49 = vrot.slane %v3335_v4, 1  ;;  %v3348_v15 = vrot.slane %v3347_v63, 2  ;;  %v5731_v3 = vshrl.u32 %v5702_v16, 16 }
 0x279   : > { %v3343_v42 = vrot.slane %v3342_v51, 1  ;;  %v5722_v19 = vrot.slane %v5720_v8, 5  ;;  %v5728_v21 = vrot.slane %v5726_v0, 5  ;;  %v5734_v26 = vshll.u32 %v5702_v16, 16 }
 0x27a   : > { %v3330_v34 = vmax.f32 %v3328_v38, %v3329_v1  ;;  %v3337_v24 = vmax.f32 %v3335_v4, %v3336_v49  ;;  %v3349_v48 = vmax.f32 %v3347_v63, %v3348_v15  ;;  %v5733_v25 = vrot.slane %v5731_v3, 4  ;;  %v4384_v3 = vld [vmem:[#allocation2 + $0x58] sm:$0x1] }
 0x27b   : > { %v3344_v57 = vmax.f32 %v3342_v51, %v3343_v42  ;;  %v5723_v2 = vor.u32 %v5722_v19, %v5719_v50  ;;  %v5736_v55 = vrot.slane %v5734_v26, 5  ;;  %v5740_v20 = vshll.u32 %v5703_v41, 16 }
 0x27c   : > { %v3350_v60 = vrot.slane %v3349_v48, 1  ;;  %v4284_v9 = vmax.f32 %v3330_v34, %v3386_v61  ;;  %v4285_v53 = vmax.f32 %v3337_v24, %v3393_v36  ;;  %v840_v13 = vadd.f32 %v12311_v22, %v12123_v7 }
 0x27d   : > { %v4286_v37 = vmax.f32 %v3344_v57, %v3400_v46  ;;  %v5724_v6 = vrot.slane %v5723_v2, 4  ;;  %v5737_v27 = vor.u32 %v5736_v55, %v5733_v25  ;;  %v5742_v11 = vrot.slane %v5740_v20, 5 }
 0x27e   : > { %v3351_v52 = vmax.f32 %v3349_v48, %v3350_v60  ;;  %v10451_v5 = vpack.c.bf16 %v4284_v9, %v4284_v9  ;;  %v10452_v31 = vpack.c.bf16 %v4285_v53, %v4285_v53  ;;  %v990_v39 = vmax.f32 %v840_v13, 0.0 }
 0x27f   : > { %v10453_v29 = vpack.c.bf16 %v4286_v37, %v4286_v37  ;;  %v5729_v61 = vsel %vm12228_vm0, %v5724_v6, %v5728_v21  ;;  %v5738_v36 = vrot.slane %v5737_v27, 4  ;;  %v832_v32 = vadd.f32 %v12311_v22, %v12140_v17 }
 0x280   : > { %v4287_v16 = vmax.f32 %v3351_v52, %v3407_v30  ;;  %v5197_v50 = vunpack.c.l.b16 %v10451_v5  ;;  %v5198_v38 = vunpack.c.l.b16 %v10452_v31  ;;  %v1678_v7 = vcombine.high %v990_v39, %v990_v39 }
 0x281   : > { %v5199_v46 = vunpack.c.l.b16 %v10453_v29  ;;  %v5743_v4 = vsel %vm12228_vm0, %v5738_v36, %v5742_v11  ;;  %v1685_v63 = vrot.slane %v990_v39, %v11488_v58  ;;  %v988_v51 = vmax.f32 %v832_v32, 0.0 }
 0x282   : > { %v10454_v8 = vpack.c.bf16 %v4287_v16, %v4287_v16  ;;  %v5261_v0 = vsel %vm4798_vm6, %v5198_v38, %v5197_v50  ;;  %v10149_v1 = vcombine.low %v5729_v61, %v5743_v4  ;;  %v1692_v49 = vrot.slane %v1678_v7, %v11488_v58 }
 0x283   : > { %v12325_v15 = vsel %vm4800_vm7, %v5199_v46, %v5261_v0  ;;  %v1693_v17 = vcombine.high %v1685_v63, %v1685_v63  ;;  %v3408_v30 = vsel %vm2427_vm5, %v1685_v63, -inf  ;;  %v1644_v41 = vcombine.high %v988_v51, %v988_v51 }
 0x284   : > { %v5200_v42 = vunpack.c.l.b16 %v10454_v8  ;;  %7888 = vmatmul.mubr.bf16.vlgmr.msra.gmra.mrb[64].mxu0 %v10149_v1  ;;  %v1694_v19 = vcombine.high %v1692_v49, %v1692_v49  ;;  %v3409_v21 = vrot.slane %v3408_v30, 4  ;;  %v3422_v26 = vsel %vm2427_vm5, %v1692_v49, -inf }
 0x285   : > { %v3415_v34 = vsel %vm2427_vm5, %v1693_v17, -inf  ;;  %v3423_v24 = vrot.slane %v3422_v26, 4  ;;  %v1651_v48 = vrot.slane %v988_v51, %v11488_v58  ;;  %v1658_v25 = vrot.slane %v1644_v41, %v11488_v58  ;;  %v4446_v17 = vld [vmem:[#allocation2 + $0x5c] sm:$0x1] }
 0x286   : > { %v3410_v57 = vmax.f32 %v3408_v30, %v3409_v21  ;;  %v3416_v2 = vrot.slane %v3415_v34, 4  ;;  %v3429_v55 = vsel %vm2427_vm5, %v1694_v19, -inf  ;;  %v4385_v20 = vsel %vm11469_vm4, 0, %v4384_v3 }
 0x287   : > { %v3424_v60 = vmax.f32 %v3422_v26, %v3423_v24  ;;  %v3430_v9 = vrot.slane %v3429_v55, 4  ;;  %v1659_v53 = vcombine.high %v1651_v48, %v1651_v48  ;;  %v1660_v13 = vcombine.high %v1658_v25, %v1658_v25  ;;  %4386 = vst [vmem:[#allocation2 + $0x58] sm:$0x1] %v4385_v20 }
 0x288   : > { %v3411_v37 = vrot.slane %v3410_v57, 2  ;;  %v3417_v6 = vmax.f32 %v3415_v34, %v3416_v2  ;;  %v3352_v27 = vsel %vm2427_vm5, %v1651_v48, -inf  ;;  %v3366_v11 = vsel %vm2427_vm5, %v1658_v25, -inf }
 0x289   : > { %v3425_v52 = vrot.slane %v3424_v60, 2  ;;  %v3431_v5 = vmax.f32 %v3429_v55, %v3430_v9  ;;  %v3353_v31 = vrot.slane %v3352_v27, 4  ;;  %v3359_v39 = vsel %vm2427_vm5, %v1659_v53, -inf  ;;  %v5430_v55 = vld [vmem:[#allocation2 + $0x10] sm:$0xf] }
 0x28a   : > { %v3412_v29 = vmax.f32 %v3410_v57, %v3411_v37  ;;  %v3418_v61 = vrot.slane %v3417_v6, 2  ;;  %v3360_v36 = vrot.slane %v3359_v39, 4  ;;  %v3367_v32 = vrot.slane %v3366_v11, 4 }
 0x28b   : > { %v3426_v16 = vmax.f32 %v3424_v60, %v3425_v52  ;;  %v3432_v50 = vrot.slane %v3431_v5, 2  ;;  %v3354_v38 = vmax.f32 %v3352_v27, %v3353_v31  ;;  %v3373_v7 = vsel %vm2427_vm5, %v1660_v13, -inf }
 0x28c   : > { %v3413_v46 = vrot.slane %v3412_v29, 1  ;;  %v3419_v4 = vmax.f32 %v3417_v6, %v3418_v61  ;;  %v3361_v63 = vmax.f32 %v3359_v39, %v3360_v36  ;;  %v3368_v51 = vmax.f32 %v3366_v11, %v3367_v32 }
 0x28d   : > { %v3427_v8 = vrot.slane %v3426_v16, 1  ;;  %v3433_v0 = vmax.f32 %v3431_v5, %v3432_v50  ;;  %v3355_v1 = vrot.slane %v3354_v38, 2  ;;  %v3374_v49 = vrot.slane %v3373_v7, 4 }
 0x28e   : > { %v3414_v30 = vmax.f32 %v3412_v29, %v3413_v46  ;;  %v3420_v41 = vrot.slane %v3419_v4, 1  ;;  %v3362_v3 = vrot.slane %v3361_v63, 2  ;;  %v3369_v19 = vrot.slane %v3368_v51, 2 }
 0x28f   : > { %v3428_v21 = vmax.f32 %v3426_v16, %v3427_v8  ;;  %v3434_v26 = vrot.slane %v3433_v0, 1  ;;  %v3356_v34 = vmax.f32 %v3354_v38, %v3355_v1  ;;  %v3375_v24 = vmax.f32 %v3373_v7, %v3374_v49 }
 0x290   : > { %v3421_v48 = vmax.f32 %v3419_v4, %v3420_v41  ;;  %v3363_v25 = vmax.f32 %v3361_v63, %v3362_v3  ;;  %v3370_v57 = vmax.f32 %v3368_v51, %v3369_v19  ;;  %v4447_v2 = vsel %vm11463_vm2, 0, %v4446_v17  ;;  %v12353_v51 = vpop.f32.mrb[46].mxu0 }
 0x291   : > { %v3435_v20 = vmax.f32 %v3433_v0, %v3434_v26  ;;  %v3357_v60 = vrot.slane %v3356_v34, 1  ;;  %v3376_v9 = vrot.slane %v3375_v24, 2  ;;  %4448 = vst [vmem:[#allocation2 + $0x5c] sm:$0x1] %v4447_v2  ;;  %v5263_v53 = vsel %vm4802_vm8, %v5200_v42, %v12325_v15 }
 0x292   : > { %v3364_v13 = vrot.slane %v3363_v25, 1  ;;  %v3371_v37 = vrot.slane %v3370_v57, 1  ;;  %v853_v6 = vadd.f32 %v12311_v22, %v12153_v14  ;;  %v845_v27 = vadd.f32 %v12311_v22, %v12156_v28 }
 0x293   : > { %v3358_v11 = vmax.f32 %v3356_v34, %v3357_v60  ;;  %v3377_v52 = vmax.f32 %v3375_v24, %v3376_v9  ;;  %v5474_v5 = vshrl.u32 %v5430_v55, 16  ;;  %v5477_v31 = vshll.u32 %v5430_v55, 16 }
 0x294   : > { %v3365_v39 = vmax.f32 %v3363_v25, %v3364_v13  ;;  %v3372_v29 = vmax.f32 %v3370_v57, %v3371_v37  ;;  %v993_v61 = vmax.f32 %v853_v6, 0.0  ;;  %v991_v36 = vmax.f32 %v845_v27, 0.0  ;;  %v5342_v37 = vld [vmem:[#allocation2 + $0x58] sm:$0xf] }
 0x295   : > { %v3378_v32 = vrot.slane %v3377_v52, 1  ;;  %v4288_v16 = vmax.f32 %v3358_v11, %v3414_v30  ;;  %v12347_v50 = vrot.slane %v5474_v5, 4  ;;  %v12349_v15 = vrot.slane %v5477_v31, 5 }
 0x296   : > { %v4289_v42 = vmax.f32 %v3365_v39, %v3421_v48  ;;  %v4290_v38 = vmax.f32 %v3372_v29, %v3428_v21  ;;  %v1729_v14 = vcombine.high %v993_v61, %v993_v61  ;;  %v1736_v7 = vrot.slane %v993_v61, %v11488_v58 }
 0x297   : > { %v3379_v28 = vmax.f32 %v3377_v52, %v3378_v32  ;;  %v10455_v46 = vpack.c.bf16 %v4288_v16, %v4288_v16  ;;  %v1695_v4 = vcombine.high %v991_v36, %v991_v36  ;;  %v1702_v63 = vrot.slane %v991_v36, %v11488_v58 }
 0x298   : > { %v10456_v8 = vpack.c.bf16 %v4289_v42, %v4289_v42  ;;  %v10457_v0 = vpack.c.bf16 %v4290_v38, %v4290_v38  ;;  %v1743_v1 = vrot.slane %v1729_v14, %v11488_v58  ;;  %v1744_v49 = vcombine.high %v1736_v7, %v1736_v7  ;;  %v5345_v26 = vld [vmem:[#allocation2 + $0x5c] sm:$0x1] }
 0x299   : > { %v4291_v17 = vmax.f32 %v3379_v28, %v3435_v20  ;;  %v5201_v30 = vunpack.c.l.b16 %v10455_v46  ;;  %v3492_v41 = vsel %vm2427_vm5, %v1736_v7, -inf  ;;  %v1709_v3 = vrot.slane %v1695_v4, %v11488_v58 }
 0x29a   : > { %v5202_v19 = vunpack.c.l.b16 %v10456_v8  ;;  %v5203_v21 = vunpack.c.l.b16 %v10457_v0  ;;  %v1745_v34 = vcombine.high %v1743_v1, %v1743_v1  ;;  %v3493_v24 = vrot.slane %v3492_v41, 4 }
 0x29b   : > { %v5264_v48 = vsel %vm4804_vm9, %v5201_v30, %v5263_v53  ;;  %v10515_v25 = vpack.c.bf16 %v4291_v17, %v4291_v17  ;;  %v3499_v57 = vsel %vm2427_vm5, %v1744_v49, -inf  ;;  %v3506_v2 = vsel %vm2427_vm5, %v1743_v1, -inf }
 0x29c   : > { %v5265_v55 = vsel %vm4806_vm10, %v5202_v19, %v5264_v48  ;;  %v3494_v20 = vmax.f32 %v3492_v41, %v3493_v24  ;;  %v3500_v60 = vrot.slane %v3499_v57, 4  ;;  %v3507_v9 = vrot.slane %v3506_v2, 4  ;;  %v12372_v41 = vpop.f32.mrb[47].mxu0  ;;  %v5431_v24 = vld [vmem:[#allocation2 + $0x14] sm:$0x1] }
 0x29d   : > { %v5266_v13 = vsel %vm4808_vm11, %v5203_v21, %v5265_v55  ;;  %v5346_v6 = vsel %vm11469_vm4, %v10515_v25, %v5345_v26  ;;  %v3513_v27 = vsel %vm2427_vm5, %v1745_v34, -inf  ;;  %v1710_v11 = vcombine.high %v1702_v63, %v1702_v63 }
 0x29e   : > { %v5309_v53 = vpack.c.b16 %v5266_v13, %v5266_v13  ;;  %5347 = vst [vmem:[#allocation2 + $0x5c] sm:$0x1] %v5346_v6  ;;  %v3495_v52 = vrot.slane %v3494_v20, 2  ;;  %v3501_v5 = vmax.f32 %v3499_v57, %v3500_v60  ;;  %v3508_v31 = vmax.f32 %v3506_v2, %v3507_v9  ;;  %v5432_v2 = vld [vmem:[#allocation2 + $0x18] sm:$0xf] }
 0x29f   : > { %v3514_v39 = vrot.slane %v3513_v27, 4  ;;  %v1711_v29 = vcombine.high %v1709_v3, %v1709_v3  ;;  %v3436_v61 = vsel %vm2427_vm5, %v1702_v63, -inf  ;;  %v3443_v36 = vsel %vm2427_vm5, %v1710_v11, -inf  ;;  %v5433_v11 = vld [vmem:[#allocation2 + $0x1c] sm:$0x1] }
 0x2a0   : > { %v5343_v32 = vsel %vm11616_vm13, %v5309_v53, %v5342_v37  ;;  %v3496_v16 = vmax.f32 %v3494_v20, %v3495_v52  ;;  %v3502_v42 = vrot.slane %v3501_v5, 2  ;;  %v3509_v38 = vrot.slane %v3508_v31, 2 }
 0x2a1   : > { %5344 = vst [vmem:[#allocation2 + $0x58] sm:$0xf] %v5343_v32  ;;  %v3515_v14 = vmax.f32 %v3513_v27, %v3514_v39  ;;  %v3437_v7 = vrot.slane %v3436_v61, 4  ;;  %v3444_v28 = vrot.slane %v3443_v36, 4  ;;  %v3450_v46 = vsel %vm2427_vm5, %v1709_v3, -inf }
 0x2a2   : > { %v3497_v4 = vrot.slane %v3496_v16, 1  ;;  %v3503_v8 = vmax.f32 %v3501_v5, %v3502_v42  ;;  %v3510_v0 = vmax.f32 %v3508_v31, %v3509_v38  ;;  %v3451_v1 = vrot.slane %v3450_v46, 4 }
 0x2a3   : > { %v3516_v49 = vrot.slane %v3515_v14, 2  ;;  %v3438_v63 = vmax.f32 %v3436_v61, %v3437_v7  ;;  %v3445_v17 = vmax.f32 %v3443_v36, %v3444_v28  ;;  %v3457_v30 = vsel %vm2427_vm5, %v1711_v29, -inf }
 0x2a4   : > { %v3498_v19 = vmax.f32 %v3496_v16, %v3497_v4  ;;  %v3504_v21 = vrot.slane %v3503_v8, 1  ;;  %v3511_v26 = vrot.slane %v3510_v0, 1  ;;  %v3452_v34 = vmax.f32 %v3450_v46, %v3451_v1 }
 0x2a5   : > { %v3517_v48 = vmax.f32 %v3515_v14, %v3516_v49  ;;  %v3439_v25 = vrot.slane %v3438_v63, 2  ;;  %v3446_v57 = vrot.slane %v3445_v17, 2  ;;  %v3458_v3 = vrot.slane %v3457_v30, 4 }
 0x2a6   : > { %v3505_v55 = vmax.f32 %v3503_v8, %v3504_v21  ;;  %v3512_v20 = vmax.f32 %v3510_v0, %v3511_v26  ;;  %v3453_v60 = vrot.slane %v3452_v34, 2  ;;  %v5480_v9 = vor.u32 %v12349_v15, %v12347_v50  ;;  %v4387_v0 = vld [vmem:[#allocation2 + $0x60] sm:$0x1] }
 0x2a7   : > { %v3518_v13 = vrot.slane %v3517_v48, 1  ;;  %v3440_v37 = vmax.f32 %v3438_v63, %v3439_v25  ;;  %v3447_v6 = vmax.f32 %v3445_v17, %v3446_v57  ;;  %v3459_v27 = vmax.f32 %v3457_v30, %v3458_v3 }
 0x2a8   : > { %v3454_v53 = vmax.f32 %v3452_v34, %v3453_v60  ;;  %v5481_v52 = vrot.slane %v5480_v9, 4  ;;  %v5483_v5 = vshll.u32 %v5431_v24, 16  ;;  %v5488_v31 = vshrl.u32 %v5432_v2, 16 }
 0x2a9   : > { %v3519_v39 = vmax.f32 %v3517_v48, %v3518_v13  ;;  %v3441_v29 = vrot.slane %v3440_v37, 1  ;;  %v3448_v61 = vrot.slane %v3447_v6, 1  ;;  %v3460_v36 = vrot.slane %v3459_v27, 2 }
 0x2aa   : > { %v3455_v32 = vrot.slane %v3454_v53, 1  ;;  %v5485_v16 = vrot.slane %v5483_v5, 5  ;;  %v5490_v42 = vrot.slane %v5488_v31, 4  ;;  %v5491_v38 = vshll.u32 %v5432_v2, 16  ;;  %v11141_v5 = vld [vmem:[#allocation2 + $0x10] ss:$8 sps:$4 sm:$0xff]  }
 0x2ab   : > { %v3442_v14 = vmax.f32 %v3440_v37, %v3441_v29  ;;  %v3449_v7 = vmax.f32 %v3447_v6, %v3448_v61  ;;  %v3461_v50 = vmax.f32 %v3459_v27, %v3460_v36  ;;  %v5497_v15 = vshll.u32 %v5433_v11, 16  ;;  %v4449_v36 = vld [vmem:[#allocation2 + $0x64] sm:$0x1] }
 0x2ac   : > { %v3456_v28 = vmax.f32 %v3454_v53, %v3455_v32  ;;  %v5486_v46 = vsel %vm12228_vm0, %v5481_v52, %v5485_v16  ;;  %v5493_v4 = vrot.slane %v5491_v38, 5  ;;  %v856_v8 = vadd.f32 %v12311_v22, %v12206_v47  ;;  %v12392_v32 = vpop.f32.mrb[48].mxu0 }
 0x2ad   : > { %v3462_v1 = vrot.slane %v3461_v50, 1  ;;  %v4292_v49 = vmax.f32 %v3442_v14, %v3498_v19  ;;  %v4293_v63 = vmax.f32 %v3449_v7, %v3505_v55  ;;  %v5499_v17 = vrot.slane %v5497_v15, 5 }
 0x2ae   : > { %v4294_v30 = vmax.f32 %v3456_v28, %v3512_v20  ;;  %v5494_v21 = vor.u32 %v5493_v4, %v5490_v42  ;;  %v994_v26 = vmax.f32 %v856_v8, 0.0  ;;  %v848_v34 = vadd.f32 %v12311_v22, %v12224_v43 }
 0x2af   : > { %v3463_v24 = vmax.f32 %v3461_v50, %v3462_v1  ;;  %v10459_v48 = vpack.c.bf16 %v4292_v49, %v4292_v49  ;;  %v10460_v25 = vpack.c.bf16 %v4293_v63, %v4293_v63  ;;  %v4388_v57 = vsel %vm11469_vm4, 0, %v4387_v0 }
 0x2b0   : > { %v10461_v3 = vpack.c.bf16 %v4294_v30, %v4294_v30  ;;  %v5495_v2 = vrot.slane %v5494_v21, 4  ;;  %v1746_v47 = vcombine.high %v994_v26, %v994_v26  ;;  %v1753_v60 = vrot.slane %v994_v26, %v11488_v58  ;;  %4389 = vst [vmem:[#allocation2 + $0x60] sm:$0x1] %v4388_v57 }
 0x2b1   : > { %v4295_v19 = vmax.f32 %v3463_v24, %v3519_v39  ;;  %v5205_v55 = vunpack.c.l.b16 %v10459_v48  ;;  %v5206_v20 = vunpack.c.l.b16 %v10460_v25  ;;  %v992_v9 = vmax.f32 %v848_v34, 0.0 }
 0x2b2   : > { %v5207_v13 = vunpack.c.l.b16 %v10461_v3  ;;  %v5500_v43 = vsel %vm12228_vm0, %v5495_v2, %v5499_v17  ;;  %v1760_v37 = vrot.slane %v1746_v47, %v11488_v58  ;;  %v1761_v6 = vcombine.high %v1753_v60, %v1753_v60 }
 0x2b3   : > { %v10462_v27 = vpack.c.bf16 %v4295_v19, %v4295_v19  ;;  %v5267_v11 = vsel %vm4798_vm6, %v5206_v20, %v5205_v55  ;;  %v10130_v53 = vcombine.low %v5486_v46, %v5500_v43  ;;  %v3520_v52 = vsel %vm2427_vm5, %v1753_v60, -inf }
 0x2b4   : > { %v5268_v31 = vsel %vm4800_vm7, %v5207_v13, %v5267_v11  ;;  %v1762_v39 = vcombine.high %v1760_v37, %v1760_v37  ;;  %v3521_v29 = vrot.slane %v3520_v52, 4  ;;  %v3527_v61 = vsel %vm2427_vm5, %v1761_v6, -inf  ;;  %v12404_v13 = vpop.f32.mrb[49].mxu0 }
 0x2b5   : > { %v5208_v16 = vunpack.c.l.b16 %v10462_v27  ;;  %7701 = vmatprep.mubr.bf16.mxu1 %v10130_v53  ;;  %v3528_v42 = vrot.slane %v3527_v61, 4  ;;  %v3534_v38 = vsel %vm2427_vm5, %v1760_v37, -inf  ;;  %v1712_v14 = vcombine.high %v992_v9, %v992_v9 }
 0x2b6   : > { %v3522_v7 = vmax.f32 %v3520_v52, %v3521_v29  ;;  %v3535_v50 = vrot.slane %v3534_v38, 4  ;;  %v3541_v15 = vsel %vm2427_vm5, %v1762_v39, -inf  ;;  %7702 = vmatmul.mubr.bf16.gmra.mrb[4].mxu1 %v11141_v5  ;;  %v1719_v28 = vrot.slane %v992_v9, %v11488_v58  ;;  %v5852_v39 = vld [vmem:[#allocation2 + $0x18] sm:$0xe] }
 0x2b7   : > { %v3529_v46 = vmax.f32 %v3527_v61, %v3528_v42  ;;  %v3542_v4 = vrot.slane %v3541_v15, 4  ;;  %v1726_v8 = vrot.slane %v1712_v14, %v11488_v58  ;;  %v4450_v0 = vsel %vm11463_vm2, 0, %v4449_v36  ;;  %v5854_v14 = vld [vmem:[#allocation2 + $0x20] sm:$0xe] }
 0x2b8   : > { %v3523_v1 = vrot.slane %v3522_v7, 2  ;;  %v3536_v49 = vmax.f32 %v3534_v38, %v3535_v50  ;;  %v1727_v63 = vcombine.high %v1719_v28, %v1719_v28  ;;  %v3464_v17 = vsel %vm2427_vm5, %v1719_v28, -inf  ;;  %4451 = vst [vmem:[#allocation2 + $0x64] sm:$0x1] %v4450_v0  ;;  %v5853_v38 = vld [vmem:[#allocation2 + $0x1c] sm:$0x1] }
 0x2b9   : > { %v3530_v30 = vrot.slane %v3529_v46, 2  ;;  %v3543_v21 = vmax.f32 %v3541_v15, %v3542_v4  ;;  %v1728_v26 = vcombine.high %v1726_v8, %v1726_v8  ;;  %v3465_v34 = vrot.slane %v3464_v17, 4 }
 0x2ba   : > { %v3524_v24 = vmax.f32 %v3522_v7, %v3523_v1  ;;  %v3537_v48 = vrot.slane %v3536_v49, 2  ;;  %v3471_v25 = vsel %vm2427_vm5, %v1727_v63, -inf  ;;  %v3478_v57 = vsel %vm2427_vm5, %v1726_v8, -inf }
 0x2bb   : > { %v3531_v3 = vmax.f32 %v3529_v46, %v3530_v30  ;;  %v3544_v2 = vrot.slane %v3543_v21, 2  ;;  %v3466_v47 = vmax.f32 %v3464_v17, %v3465_v34  ;;  %v3472_v60 = vrot.slane %v3471_v25, 4  ;;  %v5855_v46 = vld [vmem:[#allocation2 + $0x24] sm:$0x1] }
 0x2bc   : > { %v3525_v19 = vrot.slane %v3524_v24, 1  ;;  %v3538_v55 = vmax.f32 %v3536_v49, %v3537_v48  ;;  %v3479_v20 = vrot.slane %v3478_v57, 4  ;;  %v3485_v9 = vsel %vm2427_vm5, %v1728_v26, -inf }
 0x2bd   : > { %v3532_v43 = vrot.slane %v3531_v3, 1  ;;  %v3545_v37 = vmax.f32 %v3543_v21, %v3544_v2  ;;  %v3467_v6 = vrot.slane %v3466_v47, 2  ;;  %v3473_v27 = vmax.f32 %v3471_v25, %v3472_v60 }
 0x2be   : > { %v3526_v11 = vmax.f32 %v3524_v24, %v3525_v19  ;;  %v3539_v53 = vrot.slane %v3538_v55, 1  ;;  %v3480_v52 = vmax.f32 %v3478_v57, %v3479_v20  ;;  %v3486_v5 = vrot.slane %v3485_v9, 4 }
 0x2bf   : > { %v3533_v29 = vmax.f32 %v3531_v3, %v3532_v43  ;;  %v3546_v61 = vrot.slane %v3545_v37, 1  ;;  %v3468_v36 = vmax.f32 %v3466_v47, %v3467_v6  ;;  %v3474_v42 = vrot.slane %v3473_v27, 2 }
 0x2c0   : > { %v3540_v7 = vmax.f32 %v3538_v55, %v3539_v53  ;;  %v3481_v50 = vrot.slane %v3480_v52, 2  ;;  %v3487_v15 = vmax.f32 %v3485_v9, %v3486_v5  ;;  %v5269_v28 = vsel %vm4802_vm8, %v5208_v16, %v5268_v31 }
 0x2c1   : > { %v3547_v4 = vmax.f32 %v3545_v37, %v3546_v61  ;;  %v3469_v8 = vrot.slane %v3468_v36, 1  ;;  %v3475_v0 = vmax.f32 %v3473_v27, %v3474_v42  ;;  %v10155_v1 = vrot.slane %v5852_v39, 9  ;;  %v12418_v61 = vpop.f32.mrb[50].mxu0 }
 0x2c2   : > { %v3482_v49 = vmax.f32 %v3480_v52, %v3481_v50  ;;  %v3488_v63 = vrot.slane %v3487_v15, 2  ;;  %v5890_v17 = vrot.slane %v5853_v38, 5  ;;  %v10156_v30 = vrot.slane %v5854_v14, 9  ;;  %v5351_v50 = vld [vmem:[#allocation2 + $0x64] sm:$0x1] }
 0x2c3   : > { %v3470_v21 = vmax.f32 %v3468_v36, %v3469_v8  ;;  %v3476_v26 = vrot.slane %v3475_v0, 1  ;;  %v5894_v34 = vrot.slane %v5855_v46, 5  ;;  %v869_v24 = vadd.f32 %v12311_v22, %v12247_v62 }
 0x2c4   : > { %v3483_v48 = vrot.slane %v3482_v49, 1  ;;  %v3489_v25 = vmax.f32 %v3487_v15, %v3488_v63  ;;  %v5891_v31 = vsel %vm12263_vm12, %v10155_v1, %v5890_v17  ;;  %v861_v16 = vadd.f32 %v12311_v22, %v12258_v56 }
 0x2c5   : > { %v3477_v57 = vmax.f32 %v3475_v0, %v3476_v26  ;;  %v4296_v3 = vmax.f32 %v3470_v21, %v3526_v11  ;;  %v5895_v2 = vsel %vm12263_vm12, %v10156_v30, %v5894_v34  ;;  %v997_v47 = vmax.f32 %v869_v24, 0.0  ;;  %v5348_v26 = vld [vmem:[#allocation2 + $0x60] sm:$0xf] }
 0x2c6   : > { %v3484_v60 = vmax.f32 %v3482_v49, %v3483_v48  ;;  %v3490_v19 = vrot.slane %v3489_v25, 1  ;;  %v10162_v55 = vcombine.low %v5891_v31, %v5895_v2  ;;  %v995_v20 = vmax.f32 %v861_v16, 0.0 }
 0x2c7   : > { %v4297_v9 = vmax.f32 %v3477_v57, %v3533_v29  ;;  %v10463_v62 = vpack.c.bf16 %v4296_v3, %v4296_v3  ;;  %v1797_v43 = vcombine.high %v997_v47, %v997_v47  ;;  %v1804_v37 = vrot.slane %v997_v47, %v11488_v58 }
 0x2c8   : > { %v3491_v6 = vmax.f32 %v3489_v25, %v3490_v19  ;;  %v4298_v27 = vmax.f32 %v3484_v60, %v3540_v7  ;;  %7895 = vmatprep.mubr.bf16.mxu0 %v10162_v55  ;;  %v1763_v53 = vcombine.high %v995_v20, %v995_v20  ;;  %v1770_v56 = vrot.slane %v995_v20, %v11488_v58 }
 0x2c9   : > { %v10464_v11 = vpack.c.bf16 %v4297_v9, %v4297_v9  ;;  %v5209_v52 = vunpack.c.l.b16 %v10463_v62  ;;  %v1811_v5 = vrot.slane %v1797_v43, %v11488_v58  ;;  %v1812_v39 = vcombine.high %v1804_v37, %v1804_v37 }
 0x2ca   : > { %v4299_v36 = vmax.f32 %v3491_v6, %v3547_v4  ;;  %v10465_v42 = vpack.c.bf16 %v4298_v27, %v4298_v27  ;;  %v3604_v29 = vsel %vm2427_vm5, %v1804_v37, -inf  ;;  %v1777_v38 = vrot.slane %v1763_v53, %v11488_v58 }
 0x2cb   : > { %v5210_v14 = vunpack.c.l.b16 %v10464_v11  ;;  %v5270_v7 = vsel %vm4804_vm9, %v5209_v52, %v5269_v28  ;;  %v1813_v15 = vcombine.high %v1811_v5, %v1811_v5  ;;  %v3605_v46 = vrot.slane %v3604_v29, 4 }
 0x2cc   : > { %v5211_v8 = vunpack.c.l.b16 %v10465_v42  ;;  %v10516_v0 = vpack.c.bf16 %v4299_v36, %v4299_v36  ;;  %v3611_v1 = vsel %vm2427_vm5, %v1812_v39, -inf  ;;  %v3618_v49 = vsel %vm2427_vm5, %v1811_v5, -inf  ;;  %v5704_v36 = vld [vmem:[#allocation2 + $0x18] sm:$0xf] }
 0x2cd   : > { %v5271_v63 = vsel %vm4806_vm10, %v5210_v14, %v5270_v7  ;;  %v3606_v4 = vmax.f32 %v3604_v29, %v3605_v46  ;;  %v3612_v17 = vrot.slane %v3611_v1, 4  ;;  %v3619_v30 = vrot.slane %v3618_v49, 4 }
 0x2ce   : > { %v5272_v21 = vsel %vm4808_vm11, %v5211_v8, %v5271_v63  ;;  %v5352_v28 = vsel %vm11469_vm4, %v10516_v0, %v5351_v50  ;;  %v3625_v34 = vsel %vm2427_vm5, %v1813_v15, -inf  ;;  %v1778_v24 = vcombine.high %v1770_v56, %v1770_v56  ;;  %v5705_v0 = vld [vmem:[#allocation2 + $0x1c] sm:$0x1] }
 0x2cf   : > { %v5311_v48 = vpack.c.b16 %v5272_v21, %v5272_v21  ;;  %5353 = vst [vmem:[#allocation2 + $0x64] sm:$0x1] %v5352_v28  ;;  %v3607_v25 = vrot.slane %v3606_v4, 2  ;;  %v3613_v31 = vmax.f32 %v3611_v1, %v3612_v17  ;;  %v3620_v16 = vmax.f32 %v3618_v49, %v3619_v30  ;;  %v5706_v28 = vld [vmem:[#allocation2 + $0x20] sm:$0xf] }
 0x2d0   : > { %v3626_v57 = vrot.slane %v3625_v34, 4  ;;  %v1779_v3 = vcombine.high %v1777_v38, %v1777_v38  ;;  %v3548_v2 = vsel %vm2427_vm5, %v1770_v56, -inf  ;;  %v3555_v47 = vsel %vm2427_vm5, %v1778_v24, -inf }
 0x2d1   : > { %v5349_v60 = vsel %vm11616_vm13, %v5311_v48, %v5348_v26  ;;  %v3608_v19 = vmax.f32 %v3606_v4, %v3607_v25  ;;  %v3614_v55 = vrot.slane %v3613_v31, 2  ;;  %v3621_v20 = vrot.slane %v3620_v16, 2 }
 0x2d2   : > { %5350 = vst [vmem:[#allocation2 + $0x60] sm:$0xf] %v5349_v60  ;;  %v3627_v9 = vmax.f32 %v3625_v34, %v3626_v57  ;;  %v3549_v62 = vrot.slane %v3548_v2, 4  ;;  %v3556_v43 = vrot.slane %v3555_v47, 4  ;;  %v3562_v37 = vsel %vm2427_vm5, %v1777_v38, -inf  ;;  %v12436_v38 = vpop.f32.mrb[51].mxu0 }
 0x2d3   : > { %v3609_v6 = vrot.slane %v3608_v19, 1  ;;  %v3615_v27 = vmax.f32 %v3613_v31, %v3614_v55  ;;  %v3622_v53 = vmax.f32 %v3620_v16, %v3621_v20  ;;  %v3563_v11 = vrot.slane %v3562_v37, 4  ;;  %v5707_v34 = vld [vmem:[#allocation2 + $0x24] sm:$0x1] }
 0x2d4   : > { %v3628_v52 = vrot.slane %v3627_v9, 2  ;;  %v3550_v56 = vmax.f32 %v3548_v2, %v3549_v62  ;;  %v3557_v5 = vmax.f32 %v3555_v47, %v3556_v43  ;;  %v3569_v39 = vsel %vm2427_vm5, %v1779_v3, -inf }
 0x2d5   : > { %v3610_v42 = vmax.f32 %v3608_v19, %v3609_v6  ;;  %v3616_v29 = vrot.slane %v3615_v27, 1  ;;  %v3623_v14 = vrot.slane %v3622_v53, 1  ;;  %v3564_v7 = vmax.f32 %v3562_v37, %v3563_v11  ;;  %v12438_v37 = vpop.f32.mrb[52].mxu0 }
 0x2d6   : > { %v3629_v50 = vmax.f32 %v3627_v9, %v3628_v52  ;;  %v3551_v15 = vrot.slane %v3550_v56, 2  ;;  %v3558_v46 = vrot.slane %v3557_v5, 2  ;;  %v3570_v8 = vrot.slane %v3569_v39, 4 }
 0x2d7   : > { %v3617_v1 = vmax.f32 %v3615_v27, %v3616_v29  ;;  %v3624_v49 = vmax.f32 %v3622_v53, %v3623_v14  ;;  %v3565_v63 = vrot.slane %v3564_v7, 2  ;;  %v5745_v4 = vshrl.u32 %v5704_v36, 16 }
 0x2d8   : > { %v3630_v17 = vrot.slane %v3629_v50, 1  ;;  %v3552_v30 = vmax.f32 %v3550_v56, %v3551_v15  ;;  %v3559_v21 = vmax.f32 %v3557_v5, %v3558_v46  ;;  %v3571_v26 = vmax.f32 %v3569_v39, %v3570_v8 }
 0x2d9   : > { %v3566_v24 = vmax.f32 %v3564_v7, %v3565_v63  ;;  %v5747_v48 = vrot.slane %v5745_v4, 4  ;;  %v5748_v25 = vshll.u32 %v5704_v36, 16  ;;  %v5754_v31 = vshll.u32 %v5705_v0, 16  ;;  %v12440_v36 = vpop.f32.mrb[53].mxu0 }
 0x2da   : > { %v3631_v16 = vmax.f32 %v3629_v50, %v3630_v17  ;;  %v3553_v57 = vrot.slane %v3552_v30, 1  ;;  %v3560_v3 = vrot.slane %v3559_v21, 1  ;;  %v3572_v2 = vrot.slane %v3571_v26, 2 }
 0x2db   : > { %v3567_v47 = vrot.slane %v3566_v24, 1  ;;  %v5750_v60 = vrot.slane %v5748_v25, 5  ;;  %v5756_v19 = vrot.slane %v5754_v31, 5  ;;  %v5759_v55 = vshrl.u32 %v5706_v28, 16 }
 0x2dc   : > { %v3554_v20 = vmax.f32 %v3552_v30, %v3553_v57  ;;  %v3561_v9 = vmax.f32 %v3559_v21, %v3560_v3  ;;  %v3573_v62 = vmax.f32 %v3571_v26, %v3572_v2  ;;  %v5762_v43 = vshll.u32 %v5706_v28, 16 }
 0x2dd   : > { %v3568_v6 = vmax.f32 %v3566_v24, %v3567_v47  ;;  %v5751_v27 = vor.u32 %v5750_v60, %v5747_v48  ;;  %v5761_v53 = vrot.slane %v5759_v55, 4  ;;  %v5768_v11 = vshll.u32 %v5707_v34, 16  ;;  %v4452_v55 = vld [vmem:[#allocation2 + $0x6c] sm:$0x1] }
 0x2de   : > { %v3574_v52 = vrot.slane %v3573_v62, 1  ;;  %v4300_v56 = vmax.f32 %v3554_v20, %v3610_v42  ;;  %v4301_v5 = vmax.f32 %v3561_v9, %v3617_v1  ;;  %v5764_v39 = vrot.slane %v5762_v43, 5  ;;  %v4390_v1 = vld [vmem:[#allocation2 + $0x68] sm:$0x1] }
 0x2df   : > { %v4302_v29 = vmax.f32 %v3568_v6, %v3624_v49  ;;  %v5752_v14 = vrot.slane %v5751_v27, 4  ;;  %v5770_v7 = vrot.slane %v5768_v11, 5  ;;  %v872_v50 = vadd.f32 %v12311_v22, %v12280_v33 }
 0x2e0   : > { %v3575_v15 = vmax.f32 %v3573_v62, %v3574_v52  ;;  %v10467_v46 = vpack.c.bf16 %v4300_v56, %v4300_v56  ;;  %v10468_v8 = vpack.c.bf16 %v4301_v5, %v4301_v5  ;;  %v5765_v0 = vor.u32 %v5764_v39, %v5761_v53 }
 0x2e1   : > { %v10469_v63 = vpack.c.bf16 %v4302_v29, %v4302_v29  ;;  %v5757_v4 = vsel %vm12228_vm0, %v5752_v14, %v5756_v19  ;;  %v998_v17 = vmax.f32 %v872_v50, 0.0  ;;  %v864_v42 = vadd.f32 %v12311_v22, %v12299_v12 }
 0x2e2   : > { %v4303_v30 = vmax.f32 %v3575_v15, %v3631_v16  ;;  %v5213_v49 = vunpack.c.l.b16 %v10467_v46  ;;  %v5214_v21 = vunpack.c.l.b16 %v10468_v8  ;;  %v5766_v26 = vrot.slane %v5765_v0, 4 }
 0x2e3   : > { %v5215_v28 = vunpack.c.l.b16 %v10469_v63  ;;  %v1814_v34 = vcombine.high %v998_v17, %v998_v17  ;;  %v1821_v33 = vrot.slane %v998_v17, %v11488_v58  ;;  %v996_v24 = vmax.f32 %v864_v42, 0.0 }
 0x2e4   : > { %v10470_v48 = vpack.c.bf16 %v4303_v30, %v4303_v30  ;;  %v5273_v25 = vsel %vm4798_vm6, %v5214_v21, %v5213_v49  ;;  %v5771_v31 = vsel %vm12228_vm0, %v5766_v26, %v5770_v7  ;;  %v4391_v57 = vsel %vm11469_vm4, 0, %v4390_v1 }
 0x2e5   : > { %v12455_v12 = vsel %vm4800_vm7, %v5215_v28, %v5273_v25  ;;  %v10150_v22 = vcombine.low %v5757_v4, %v5771_v31  ;;  %v1828_v16 = vrot.slane %v1814_v34, %v11488_v58  ;;  %v1829_v3 = vcombine.high %v1821_v33, %v1821_v33  ;;  %4392 = vst [vmem:[#allocation2 + $0x68] sm:$0x1] %v4391_v57 }
 0x2e6   : > { %v5216_v2 = vunpack.c.l.b16 %v10470_v48  ;;  %v3632_v47 = vsel %vm2427_vm5, %v1821_v33, -inf  ;;  %v1780_v60 = vcombine.high %v996_v24, %v996_v24  ;;  %v1787_v19 = vrot.slane %v996_v24, %v11488_v58 }
 0x2e7   : > { %7896 = vmatmul.mubr.bf16.gmra.mrb[68].mxu0 %v10150_v22  ;;  %v1830_v20 = vcombine.high %v1828_v16, %v1828_v16  ;;  %v3633_v9 = vrot.slane %v3632_v47, 4  ;;  %v3639_v62 = vsel %vm2427_vm5, %v1829_v3, -inf  ;;  %v3646_v43 = vsel %vm2427_vm5, %v1828_v16, -inf }
 0x2e8   : > { %v3640_v6 = vrot.slane %v3639_v62, 4  ;;  %v3647_v27 = vrot.slane %v3646_v43, 4  ;;  %v1794_v53 = vrot.slane %v1780_v60, %v11488_v58  ;;  %v1795_v11 = vcombine.high %v1787_v19, %v1787_v19 }
 0x2e9   : > { %v3634_v52 = vmax.f32 %v3632_v47, %v3633_v9  ;;  %v3653_v56 = vsel %vm2427_vm5, %v1830_v20, -inf  ;;  %v3576_v5 = vsel %vm2427_vm5, %v1787_v19, -inf  ;;  %v4453_v39 = vsel %vm11463_vm2, 0, %v4452_v55 }
 0x2ea   : > { %v3641_v29 = vmax.f32 %v3639_v62, %v3640_v6  ;;  %v3648_v14 = vmax.f32 %v3646_v43, %v3647_v27  ;;  %v3654_v7 = vrot.slane %v3653_v56, 4  ;;  %v1796_v50 = vcombine.high %v1794_v53, %v1794_v53  ;;  %4454 = vst [vmem:[#allocation2 + $0x6c] sm:$0x1] %v4453_v39  ;;  %v12470_v6 = vld [vmem:[#allocation2 + $0x20] sm:$0xf] }
 0x2eb   : > { %v3635_v15 = vrot.slane %v3634_v52, 2  ;;  %v3577_v46 = vrot.slane %v3576_v5, 4  ;;  %v3583_v8 = vsel %vm2427_vm5, %v1795_v11, -inf  ;;  %v3590_v0 = vsel %vm2427_vm5, %v1794_v53, -inf  ;;  %v12477_v39 = vld [vmem:[%s14085_s2] ss:$0 sm:$0xff] }
 0x2ec   : > { %v3642_v63 = vrot.slane %v3641_v29, 2  ;;  %v3649_v4 = vrot.slane %v3648_v14, 2  ;;  %v3655_v17 = vmax.f32 %v3653_v56, %v3654_v7  ;;  %v3584_v42 = vrot.slane %v3583_v8, 4 }
 0x2ed   : > { %v3636_v1 = vmax.f32 %v3634_v52, %v3635_v15  ;;  %v3578_v30 = vmax.f32 %v3576_v5, %v3577_v46  ;;  %v3591_v49 = vrot.slane %v3590_v0, 4  ;;  %v3597_v21 = vsel %vm2427_vm5, %v1796_v50, -inf }
 0x2ee   : > { %v3643_v26 = vmax.f32 %v3641_v29, %v3642_v63  ;;  %v3650_v28 = vmax.f32 %v3648_v14, %v3649_v4  ;;  %v3656_v34 = vrot.slane %v3655_v17, 2  ;;  %v3585_v33 = vmax.f32 %v3583_v8, %v3584_v42 }
 0x2ef   : > { %v3637_v24 = vrot.slane %v3636_v1, 1  ;;  %v3579_v48 = vrot.slane %v3578_v30, 2  ;;  %v3592_v25 = vmax.f32 %v3590_v0, %v3591_v49  ;;  %v3598_v31 = vrot.slane %v3597_v21, 4 }
 0x2f0   : > { %v3644_v57 = vrot.slane %v3643_v26, 1  ;;  %v3651_v22 = vrot.slane %v3650_v28, 1  ;;  %v3657_v16 = vmax.f32 %v3655_v17, %v3656_v34  ;;  %v3586_v3 = vrot.slane %v3585_v33, 2 }
 0x2f1   : > { %v3638_v47 = vmax.f32 %v3636_v1, %v3637_v24  ;;  %v3580_v60 = vmax.f32 %v3578_v30, %v3579_v48  ;;  %v3593_v19 = vrot.slane %v3592_v25, 2  ;;  %v3599_v55 = vmax.f32 %v3597_v21, %v3598_v31 }
 0x2f2   : > { %v3645_v20 = vmax.f32 %v3643_v26, %v3644_v57  ;;  %v3652_v9 = vmax.f32 %v3650_v28, %v3651_v22  ;;  %v3658_v62 = vrot.slane %v3657_v16, 1  ;;  %v3587_v43 = vmax.f32 %v3585_v33, %v3586_v3 }
 0x2f3   : > { %v3581_v27 = vrot.slane %v3580_v60, 1  ;;  %v3594_v53 = vmax.f32 %v3592_v25, %v3593_v19  ;;  %v3600_v11 = vrot.slane %v3599_v55, 2  ;;  %v5275_v52 = vsel %vm4802_vm8, %v5216_v2, %v12455_v12  ;;  %v12491_v25 = vpop.f32.mrb[54].mxu0 }
 0x2f4   : > { %v3659_v56 = vmax.f32 %v3657_v16, %v3658_v62  ;;  %v3588_v5 = vrot.slane %v3587_v43, 1  ;;  %v885_v29 = vadd.f32 %v12477_v39, %v12304_v10  ;;  %v877_v14 = vadd.f32 %v12477_v39, %v12306_v18 }
 0x2f5   : > { %v3582_v7 = vmax.f32 %v3580_v60, %v3581_v27  ;;  %v3595_v50 = vrot.slane %v3594_v53, 1  ;;  %v3601_v15 = vmax.f32 %v3599_v55, %v3600_v11  ;;  %v5502_v46 = vshrl.u32 %v12470_v6, 16 }
 0x2f6   : > { %v3589_v8 = vmax.f32 %v3587_v43, %v3588_v5  ;;  %v1001_v12 = vmax.f32 %v885_v29, 0.0  ;;  %v999_v2 = vmax.f32 %v877_v14, 0.0  ;;  %v5505_v0 = vshll.u32 %v12470_v6, 16  ;;  %v5354_v29 = vld [vmem:[#allocation2 + $0x68] sm:$0xf] }
 0x2f7   : > { %v3596_v63 = vmax.f32 %v3594_v53, %v3595_v50  ;;  %v3602_v4 = vrot.slane %v3601_v15, 1  ;;  %v4304_v17 = vmax.f32 %v3582_v7, %v3638_v47  ;;  %v12485_v42 = vrot.slane %v5502_v46, 4  ;;  %v5357_v47 = vld [vmem:[#allocation2 + $0x6c] sm:$0x1] }
 0x2f8   : > { %v4305_v1 = vmax.f32 %v3589_v8, %v3645_v20  ;;  %v1865_v10 = vcombine.high %v1001_v12, %v1001_v12  ;;  %v1872_v30 = vrot.slane %v1001_v12, %v11488_v58  ;;  %v1831_v18 = vcombine.high %v999_v2, %v999_v2 }
 0x2f9   : > { %v3603_v49 = vmax.f32 %v3601_v15, %v3602_v4  ;;  %v4306_v21 = vmax.f32 %v3596_v63, %v3652_v9  ;;  %v10471_v26 = vpack.c.bf16 %v4304_v17, %v4304_v17  ;;  %v1838_v28 = vrot.slane %v999_v2, %v11488_v58 }
 0x2fa   : > { %v10472_v34 = vpack.c.bf16 %v4305_v1, %v4305_v1  ;;  %v1879_v33 = vrot.slane %v1865_v10, %v11488_v58  ;;  %v1880_v24 = vcombine.high %v1872_v30, %v1872_v30  ;;  %v3716_v48 = vsel %vm2427_vm5, %v1872_v30, -inf }
 0x2fb   : > { %v4307_v31 = vmax.f32 %v3603_v49, %v3659_v56  ;;  %v10473_v57 = vpack.c.bf16 %v4306_v21, %v4306_v21  ;;  %v5217_v22 = vunpack.c.l.b16 %v10471_v26  ;;  %v3717_v16 = vrot.slane %v3716_v48, 4 }
 0x2fc   : > { %v5218_v3 = vunpack.c.l.b16 %v10472_v34  ;;  %v1881_v60 = vcombine.high %v1879_v33, %v1879_v33  ;;  %v3723_v19 = vsel %vm2427_vm5, %v1880_v24, -inf  ;;  %v3730_v55 = vsel %vm2427_vm5, %v1879_v33, -inf }
 0x2fd   : > { %v5219_v20 = vunpack.c.l.b16 %v10473_v57  ;;  %v5276_v9 = vsel %vm4804_vm9, %v5217_v22, %v5275_v52  ;;  %v10517_v62 = vpack.c.bf16 %v4307_v31, %v4307_v31  ;;  %v3718_v43 = vmax.f32 %v3716_v48, %v3717_v16 }
 0x2fe   : > { %v5277_v27 = vsel %vm4806_vm10, %v5218_v3, %v5276_v9  ;;  %v3724_v53 = vrot.slane %v3723_v19, 4  ;;  %v3731_v11 = vrot.slane %v3730_v55, 4  ;;  %v3737_v56 = vsel %vm2427_vm5, %v1881_v60, -inf }
 0x2ff   : > { %v5278_v5 = vsel %vm4808_vm11, %v5219_v20, %v5277_v27  ;;  %v5358_v14 = vsel %vm11469_vm4, %v10517_v62, %v5357_v47  ;;  %v3719_v7 = vrot.slane %v3718_v43, 2  ;;  %v3738_v50 = vrot.slane %v3737_v56, 4  ;;  %v12508_v27 = vpop.f32.mrb[55].mxu0 }
 0x300   : > { %v5313_v15 = vpack.c.b16 %v5278_v5, %v5278_v5  ;;  %5359 = vst [vmem:[#allocation2 + $0x6c] sm:$0x1] %v5358_v14  ;;  %v3725_v46 = vmax.f32 %v3723_v19, %v3724_v53  ;;  %v3732_v52 = vmax.f32 %v3730_v55, %v3731_v11  ;;  %v1845_v8 = vrot.slane %v1831_v18, %v11488_v58  ;;  %v5435_v19 = vld [vmem:[#allocation2 + $0x24] sm:$0x1] }
 0x301   : > { %v3720_v12 = vmax.f32 %v3718_v43, %v3719_v7  ;;  %v3739_v2 = vmax.f32 %v3737_v56, %v3738_v50  ;;  %v1846_v63 = vcombine.high %v1838_v28, %v1838_v28  ;;  %v3660_v4 = vsel %vm2427_vm5, %v1838_v28, -inf  ;;  %v5436_v43 = vld [vmem:[#allocation2 + $0x28] sm:$0xf] }
 0x302   : > { %v5355_v17 = vsel %vm11616_vm13, %v5313_v15, %v5354_v29  ;;  %v3726_v1 = vrot.slane %v3725_v46, 2  ;;  %v3733_v10 = vrot.slane %v3732_v52, 2  ;;  %v1847_v30 = vcombine.high %v1845_v8, %v1845_v8  ;;  %v5437_v15 = vld [vmem:[#allocation2 + $0x2c] sm:$0x1] }
 0x303   : > { %5356 = vst [vmem:[#allocation2 + $0x68] sm:$0xf] %v5355_v17  ;;  %v3721_v49 = vrot.slane %v3720_v12, 1  ;;  %v3740_v21 = vrot.slane %v3739_v2, 2  ;;  %v3661_v26 = vrot.slane %v3660_v4, 4  ;;  %v3667_v34 = vsel %vm2427_vm5, %v1846_v63, -inf }
 0x304   : > { %v3727_v33 = vmax.f32 %v3725_v46, %v3726_v1  ;;  %v3734_v24 = vmax.f32 %v3732_v52, %v3733_v10  ;;  %v3668_v18 = vrot.slane %v3667_v34, 4  ;;  %v3674_v48 = vsel %vm2427_vm5, %v1845_v8, -inf }
 0x305   : > { %v3722_v31 = vmax.f32 %v3720_v12, %v3721_v49  ;;  %v3741_v57 = vmax.f32 %v3739_v2, %v3740_v21  ;;  %v3662_v28 = vmax.f32 %v3660_v4, %v3661_v26  ;;  %v3675_v22 = vrot.slane %v3674_v48, 4 }
 0x306   : > { %v3728_v16 = vrot.slane %v3727_v33, 1  ;;  %v3735_v3 = vrot.slane %v3734_v24, 1  ;;  %v3669_v47 = vmax.f32 %v3667_v34, %v3668_v18  ;;  %v3681_v60 = vsel %vm2427_vm5, %v1847_v30, -inf }
 0x307   : > { %v3742_v55 = vrot.slane %v3741_v57, 1  ;;  %v3663_v20 = vrot.slane %v3662_v28, 2  ;;  %v3676_v9 = vmax.f32 %v3674_v48, %v3675_v22  ;;  %v3682_v62 = vrot.slane %v3681_v60, 4 }
 0x308   : > { %v3729_v53 = vmax.f32 %v3727_v33, %v3728_v16  ;;  %v3736_v11 = vmax.f32 %v3734_v24, %v3735_v3  ;;  %v3670_v56 = vrot.slane %v3669_v47, 2  ;;  %v5507_v5 = vrot.slane %v5505_v0, 5 }
 0x309   : > { %v3743_v29 = vmax.f32 %v3741_v57, %v3742_v55  ;;  %v3664_v14 = vmax.f32 %v3662_v28, %v3663_v20  ;;  %v3677_v7 = vrot.slane %v3676_v9, 2  ;;  %v3683_v50 = vmax.f32 %v3681_v60, %v3682_v62 }
 0x30a   : > { %v3671_v46 = vmax.f32 %v3669_v47, %v3670_v56  ;;  %v5508_v52 = vor.u32 %v5507_v5, %v12485_v42  ;;  %v5511_v8 = vshll.u32 %v5435_v19, 16  ;;  %v5516_v12 = vshrl.u32 %v5436_v43, 16 }
 0x30b   : > { %v3665_v2 = vrot.slane %v3664_v14, 1  ;;  %v3678_v63 = vmax.f32 %v3676_v9, %v3677_v7  ;;  %v3684_v4 = vrot.slane %v3683_v50, 2  ;;  %v5519_v17 = vshll.u32 %v5436_v43, 16 }
 0x30c   : > { %v3672_v1 = vrot.slane %v3671_v46, 1  ;;  %v5509_v10 = vrot.slane %v5508_v52, 4  ;;  %v5513_v30 = vrot.slane %v5511_v8, 5  ;;  %v5518_v49 = vrot.slane %v5516_v12, 4  ;;  %v11142_v52 = vld [vmem:[#allocation2 + $0x20] ss:$8 sps:$4 sm:$0xff]  }
 0x30d   : > { %v3666_v6 = vmax.f32 %v3664_v14, %v3665_v2  ;;  %v3679_v0 = vrot.slane %v3678_v63, 1  ;;  %v3685_v21 = vmax.f32 %v3683_v50, %v3684_v4  ;;  %v5521_v26 = vrot.slane %v5519_v17, 5  ;;  %v12524_v12 = vpop.f32.mrb[56].mxu0  ;;  %v4393_v17 = vld [vmem:[#allocation2 + $0x70] sm:$0x1] }
 0x30e   : > { %v3673_v34 = vmax.f32 %v3671_v46, %v3672_v1  ;;  %v5514_v33 = vsel %vm12228_vm0, %v5509_v10, %v5513_v30  ;;  %v5525_v24 = vshll.u32 %v5437_v15, 16  ;;  %v888_v42 = vadd.f32 %v12477_v39, %v12353_v51 }
 0x30f   : > { %v3680_v18 = vmax.f32 %v3678_v63, %v3679_v0  ;;  %v3686_v48 = vrot.slane %v3685_v21, 1  ;;  %v4308_v57 = vmax.f32 %v3666_v6, %v3722_v31  ;;  %v5522_v28 = vor.u32 %v5521_v26, %v5518_v49 }
 0x310   : > { %v4309_v22 = vmax.f32 %v3673_v34, %v3729_v53  ;;  %v5527_v16 = vrot.slane %v5525_v24, 5  ;;  %v1002_v3 = vmax.f32 %v888_v42, 0.0  ;;  %v880_v47 = vadd.f32 %v12477_v39, %v12372_v41 }
 0x311   : > { %v3687_v60 = vmax.f32 %v3685_v21, %v3686_v48  ;;  %v4310_v19 = vmax.f32 %v3680_v18, %v3736_v11  ;;  %v10475_v55 = vpack.c.bf16 %v4308_v57, %v4308_v57  ;;  %v5523_v20 = vrot.slane %v5522_v28, 4 }
 0x312   : > { %v10476_v9 = vpack.c.bf16 %v4309_v22, %v4309_v22  ;;  %v1882_v62 = vcombine.high %v1002_v3, %v1002_v3  ;;  %v1889_v43 = vrot.slane %v1002_v3, %v11488_v58  ;;  %v1000_v56 = vmax.f32 %v880_v47, 0.0 }
 0x313   : > { %v4311_v51 = vmax.f32 %v3687_v60, %v3743_v29  ;;  %v10477_v5 = vpack.c.bf16 %v4310_v19, %v4310_v19  ;;  %v5221_v14 = vunpack.c.l.b16 %v10475_v55  ;;  %v5528_v31 = vsel %vm12228_vm0, %v5523_v20, %v5527_v16 }
 0x314   : > { %v5222_v53 = vunpack.c.l.b16 %v10476_v9  ;;  %v10131_v7 = vcombine.low %v5514_v33, %v5528_v31  ;;  %v1896_v50 = vrot.slane %v1882_v62, %v11488_v58  ;;  %v1897_v41 = vcombine.high %v1889_v43, %v1889_v43 }
 0x315   : > { %v10478_v15 = vpack.c.bf16 %v4311_v51, %v4311_v51  ;;  %v5223_v11 = vunpack.c.l.b16 %v10477_v5  ;;  %v3744_v46 = vsel %vm2427_vm5, %v1889_v43, -inf  ;;  %v1848_v8 = vcombine.high %v1000_v56, %v1000_v56 }
 0x316   : > { %v5279_v29 = vsel %vm4798_vm6, %v5222_v53, %v5221_v14  ;;  %7709 = vmatprep.mubr.bf16.mxu1 %v10131_v7  ;;  %v1898_v2 = vcombine.high %v1896_v50, %v1896_v50  ;;  %v3745_v63 = vrot.slane %v3744_v46, 4  ;;  %v3751_v4 = vsel %vm2427_vm5, %v1897_v41, -inf  ;;  %v12539_v53 = vpop.f32.mrb[57].mxu0 }
 0x317   : > { %v5224_v1 = vunpack.c.l.b16 %v10478_v15  ;;  %v5280_v10 = vsel %vm4800_vm7, %v5223_v11, %v5279_v29  ;;  %v3752_v30 = vrot.slane %v3751_v4, 4  ;;  %v3758_v49 = vsel %vm2427_vm5, %v1896_v50, -inf  ;;  %7710 = vmatmul.mubr.bf16.gmra.mrb[8].mxu1 %v11142_v52  ;;  %v4455_v11 = vld [vmem:[#allocation2 + $0x74] sm:$0x1] }
 0x318   : > { %v3746_v6 = vmax.f32 %v3744_v46, %v3745_v63  ;;  %v3759_v0 = vrot.slane %v3758_v49, 4  ;;  %v3765_v21 = vsel %vm2427_vm5, %v1898_v2, -inf  ;;  %v1855_v26 = vrot.slane %v1000_v56, %v11488_v58 }
 0x319   : > { %v3753_v34 = vmax.f32 %v3751_v4, %v3752_v30  ;;  %v3766_v33 = vrot.slane %v3765_v21, 4  ;;  %v1862_v24 = vrot.slane %v1848_v8, %v11488_v58  ;;  %v4394_v42 = vsel %vm11469_vm4, 0, %v4393_v17  ;;  %v5856_v30 = vld [vmem:[#allocation2 + $0x28] sm:$0xe] }
 0x31a   : > { %v3747_v18 = vrot.slane %v3746_v6, 2  ;;  %v3760_v48 = vmax.f32 %v3758_v49, %v3759_v0  ;;  %v1863_v57 = vcombine.high %v1855_v26, %v1855_v26  ;;  %v3688_v28 = vsel %vm2427_vm5, %v1855_v26, -inf  ;;  %4395 = vst [vmem:[#allocation2 + $0x70] sm:$0x1] %v4394_v42  ;;  %v5857_v49 = vld [vmem:[#allocation2 + $0x2c] sm:$0x1] }
 0x31b   : > { %v3754_v22 = vrot.slane %v3753_v34, 2  ;;  %v3767_v16 = vmax.f32 %v3765_v21, %v3766_v33  ;;  %v1864_v3 = vcombine.high %v1862_v24, %v1862_v24  ;;  %v3689_v47 = vrot.slane %v3688_v28, 4  ;;  %v5859_v33 = vld [vmem:[#allocation2 + $0x34] sm:$0x1] }
 0x31c   : > { %v3748_v60 = vmax.f32 %v3746_v6, %v3747_v18  ;;  %v3761_v19 = vrot.slane %v3760_v48, 2  ;;  %v3695_v55 = vsel %vm2427_vm5, %v1863_v57, -inf  ;;  %v3702_v20 = vsel %vm2427_vm5, %v1862_v24, -inf }
 0x31d   : > { %v3755_v9 = vmax.f32 %v3753_v34, %v3754_v22  ;;  %v3768_v62 = vrot.slane %v3767_v16, 2  ;;  %v3690_v43 = vmax.f32 %v3688_v28, %v3689_v47  ;;  %v3696_v56 = vrot.slane %v3695_v55, 4  ;;  %v5858_v34 = vld [vmem:[#allocation2 + $0x30] sm:$0xe] }
 0x31e   : > { %v3749_v51 = vrot.slane %v3748_v60, 1  ;;  %v3762_v5 = vmax.f32 %v3760_v48, %v3761_v19  ;;  %v3703_v14 = vrot.slane %v3702_v20, 4  ;;  %v3709_v31 = vsel %vm2427_vm5, %v1864_v3, -inf }
 0x31f   : > { %v3756_v7 = vrot.slane %v3755_v9, 1  ;;  %v3769_v50 = vmax.f32 %v3767_v16, %v3768_v62  ;;  %v3691_v41 = vrot.slane %v3690_v43, 2  ;;  %v3697_v15 = vmax.f32 %v3695_v55, %v3696_v56 }
 0x320   : > { %v3750_v46 = vmax.f32 %v3748_v60, %v3749_v51  ;;  %v3763_v52 = vrot.slane %v3762_v5, 1  ;;  %v3704_v8 = vmax.f32 %v3702_v20, %v3703_v14  ;;  %v3710_v29 = vrot.slane %v3709_v31, 4 }
 0x321   : > { %v3757_v2 = vmax.f32 %v3755_v9, %v3756_v7  ;;  %v3770_v63 = vrot.slane %v3769_v50, 1  ;;  %v3692_v4 = vmax.f32 %v3690_v43, %v3691_v41  ;;  %v3698_v17 = vrot.slane %v3697_v15, 2  ;;  %v12548_v43 = vld [vmem:[#allocation2 + $0x28] sm:$0xf] }
 0x322   : > { %v3764_v6 = vmax.f32 %v3762_v5, %v3763_v52  ;;  %v3705_v0 = vrot.slane %v3704_v8, 2  ;;  %v3711_v21 = vmax.f32 %v3709_v31, %v3710_v29  ;;  %v4456_v26 = vsel %vm11463_vm2, 0, %v4455_v11  ;;  %v11144_v29 = vld [vmem:[%s14086_s3 + $0xc0] sm:$0xff]  }
 0x323   : > { %v3771_v24 = vmax.f32 %v3769_v50, %v3770_v63  ;;  %v3693_v42 = vrot.slane %v3692_v4, 1  ;;  %v3699_v18 = vmax.f32 %v3697_v15, %v3698_v17  ;;  %4457 = vst [vmem:[#allocation2 + $0x74] sm:$0x1] %v4456_v26  ;;  %v5281_v48 = vsel %vm4802_vm8, %v5224_v1, %v5280_v10  ;;  %10690 = vmatprep.subr.bf16.mxu1 %v11144_v29 }
 0x324   : > { %v3706_v57 = vmax.f32 %v3704_v8, %v3705_v0  ;;  %v3712_v28 = vrot.slane %v3711_v21, 2  ;;  %v10157_v22 = vrot.slane %v5856_v30, 9  ;;  %v5898_v16 = vrot.slane %v5857_v49, 5 }
 0x325   : > { %v3694_v3 = vmax.f32 %v3692_v4, %v3693_v42  ;;  %v3700_v47 = vrot.slane %v3699_v18, 1  ;;  %v10158_v60 = vrot.slane %v5858_v34, 9  ;;  %v5902_v19 = vrot.slane %v5859_v33, 5 }
 0x326   : > { %v3707_v55 = vrot.slane %v3706_v57, 1  ;;  %v3713_v20 = vmax.f32 %v3711_v21, %v3712_v28  ;;  %v5899_v9 = vsel %vm12263_vm12, %v10157_v22, %v5898_v16  ;;  %v901_v62 = vadd.f32 %v12477_v39, %v12392_v32 }
 0x327   : > { %v3701_v56 = vmax.f32 %v3699_v18, %v3700_v47  ;;  %v4312_v1 = vmax.f32 %v3694_v3, %v3750_v46  ;;  %v5903_v10 = vsel %vm12263_vm12, %v10158_v60, %v5902_v19  ;;  %v893_v51 = vadd.f32 %v12477_v39, %v12404_v13  ;;  %v5360_v19 = vld [vmem:[#allocation2 + $0x70] sm:$0xf] }
 0x328   : > { %v3708_v5 = vmax.f32 %v3706_v57, %v3707_v55  ;;  %v3714_v14 = vrot.slane %v3713_v20, 1  ;;  %v10163_v31 = vcombine.low %v5899_v9, %v5903_v10  ;;  %v1005_v7 = vmax.f32 %v901_v62, 0.0 }
 0x329   : > { %v4313_v50 = vmax.f32 %v3701_v56, %v3757_v2  ;;  %v10479_v41 = vpack.c.bf16 %v4312_v1, %v4312_v1  ;;  %v1003_v15 = vmax.f32 %v893_v51, 0.0  ;;  %v5773_v11 = vshrl.u32 %v12548_v43, 16 }
 0x32a   : > { %v3715_v32 = vmax.f32 %v3713_v20, %v3714_v14  ;;  %v4314_v52 = vmax.f32 %v3708_v5, %v3764_v6  ;;  %7903 = vmatprep.mubr.bf16.mxu0 %v10163_v31  ;;  %v1933_v8 = vcombine.high %v1005_v7, %v1005_v7  ;;  %v1940_v46 = vrot.slane %v1005_v7, %v11488_v58  ;;  %v12561_v6 = vpop.f32.mrb[58].mxu0  ;;  %v5363_v34 = vld [vmem:[#allocation2 + $0x74] sm:$0x1] }
 0x32b   : > { %v10480_v13 = vpack.c.bf16 %v4313_v50, %v4313_v50  ;;  %v5225_v63 = vunpack.c.l.b16 %v10479_v41  ;;  %v1899_v4 = vcombine.high %v1003_v15, %v1003_v15  ;;  %v1906_v17 = vrot.slane %v1003_v15, %v11488_v58 }
 0x32c   : > { %v4315_v2 = vmax.f32 %v3715_v32, %v3771_v24  ;;  %v10481_v30 = vpack.c.bf16 %v4314_v52, %v4314_v52  ;;  %v1947_v49 = vrot.slane %v1933_v8, %v11488_v58  ;;  %v1948_v0 = vcombine.high %v1940_v46, %v1940_v46 }
 0x32d   : > { %v5226_v21 = vunpack.c.l.b16 %v10480_v13  ;;  %v5282_v26 = vsel %vm4804_vm9, %v5225_v63, %v5281_v48  ;;  %v3828_v33 = vsel %vm2427_vm5, %v1940_v46, -inf  ;;  %v1913_v42 = vrot.slane %v1899_v4, %v11488_v58 }
 0x32e   : > { %v5227_v18 = vunpack.c.l.b16 %v10481_v30  ;;  %v10518_v57 = vpack.c.bf16 %v4315_v2, %v4315_v2  ;;  %v1949_v28 = vcombine.high %v1947_v49, %v1947_v49  ;;  %v3829_v22 = vrot.slane %v3828_v33, 4 }
 0x32f   : > { %v5283_v24 = vsel %vm4806_vm10, %v5226_v21, %v5282_v26  ;;  %v3835_v16 = vsel %vm2427_vm5, %v1948_v0, -inf  ;;  %v3842_v3 = vsel %vm2427_vm5, %v1947_v49, -inf  ;;  %v1914_v47 = vcombine.high %v1906_v17, %v1906_v17 }
 0x330   : > { %v5284_v60 = vsel %vm4808_vm11, %v5227_v18, %v5283_v24  ;;  %v5364_v48 = vsel %vm11469_vm4, %v10518_v57, %v5363_v34  ;;  %v3830_v55 = vmax.f32 %v3828_v33, %v3829_v22  ;;  %v3836_v20 = vrot.slane %v3835_v16, 4 }
 0x331   : > { %v5315_v9 = vpack.c.b16 %v5284_v60, %v5284_v60  ;;  %5365 = vst [vmem:[#allocation2 + $0x74] sm:$0x1] %v5364_v48  ;;  %v3843_v62 = vrot.slane %v3842_v3, 4  ;;  %v3849_v56 = vsel %vm2427_vm5, %v1949_v28, -inf  ;;  %v1915_v1 = vcombine.high %v1913_v42, %v1913_v42 }
 0x332   : > { %v3831_v10 = vrot.slane %v3830_v55, 2  ;;  %v3837_v51 = vmax.f32 %v3835_v16, %v3836_v20  ;;  %v3850_v5 = vrot.slane %v3849_v56, 4  ;;  %v3772_v14 = vsel %vm2427_vm5, %v1906_v17, -inf }
 0x333   : > { %v5361_v31 = vsel %vm11616_vm13, %v5315_v9, %v5360_v19  ;;  %v3844_v7 = vmax.f32 %v3842_v3, %v3843_v62  ;;  %v3773_v50 = vrot.slane %v3772_v14, 4  ;;  %v3779_v41 = vsel %vm2427_vm5, %v1914_v47, -inf  ;;  %v5709_v3 = vld [vmem:[#allocation2 + $0x2c] sm:$0x1]  ;;  %v12582_v47 = vpop.f32.mrb[59].mxu0 }
 0x334   : > { %5362 = vst [vmem:[#allocation2 + $0x70] sm:$0xf] %v5361_v31  ;;  %v3832_v15 = vmax.f32 %v3830_v55, %v3831_v10  ;;  %v3838_v32 = vrot.slane %v3837_v51, 2  ;;  %v3851_v52 = vmax.f32 %v3849_v56, %v3850_v5  ;;  %v3780_v8 = vrot.slane %v3779_v41, 4  ;;  %v5710_v55 = vld [vmem:[#allocation2 + $0x30] sm:$0xf] }
 0x335   : > { %v3845_v46 = vrot.slane %v3844_v7, 2  ;;  %v3774_v29 = vmax.f32 %v3772_v14, %v3773_v50  ;;  %v3786_v13 = vsel %vm2427_vm5, %v1913_v42, -inf  ;;  %v3793_v63 = vsel %vm2427_vm5, %v1915_v1, -inf  ;;  %v11145_v42 = vld [vmem:[%s14086_s3 + $0x80] sm:$0xff]  }
 0x336   : > { %v3833_v4 = vrot.slane %v3832_v15, 1  ;;  %v3839_v17 = vmax.f32 %v3837_v51, %v3838_v32  ;;  %v3852_v2 = vrot.slane %v3851_v52, 2  ;;  %v3781_v30 = vmax.f32 %v3779_v41, %v3780_v8  ;;  %10691 = vmatpush3.bf16.msra.mxu1 %v11145_v42  ;;  %v5711_v41 = vld [vmem:[#allocation2 + $0x34] sm:$0x1]  ;;  %v4396_v42 = vld [vmem:[#allocation2 + $0x78] sm:$0x1] }
 0x337   : > { %v3846_v49 = vmax.f32 %v3844_v7, %v3845_v46  ;;  %v3775_v0 = vrot.slane %v3774_v29, 2  ;;  %v3787_v21 = vrot.slane %v3786_v13, 4  ;;  %v3794_v26 = vrot.slane %v3793_v63, 4 }
 0x338   : > { %v3834_v34 = vmax.f32 %v3832_v15, %v3833_v4  ;;  %v3840_v33 = vrot.slane %v3839_v17, 1  ;;  %v3853_v18 = vmax.f32 %v3851_v52, %v3852_v2  ;;  %v3782_v57 = vrot.slane %v3781_v30, 2  ;;  %v12587_v4 = vpop.f32.mrb[60].mxu0 }
 0x339   : > { %v3847_v28 = vrot.slane %v3846_v49, 1  ;;  %v3776_v22 = vmax.f32 %v3774_v29, %v3775_v0  ;;  %v3788_v24 = vmax.f32 %v3786_v13, %v3787_v21  ;;  %v3795_v16 = vmax.f32 %v3793_v63, %v3794_v26 }
 0x33a   : > { %v3841_v60 = vmax.f32 %v3839_v17, %v3840_v33  ;;  %v3854_v19 = vrot.slane %v3853_v18, 1  ;;  %v3783_v48 = vmax.f32 %v3781_v30, %v3782_v57  ;;  %v5775_v20 = vrot.slane %v5773_v11, 4  ;;  %v12591_v33 = vpop.f32.mrb[61].mxu0 }
 0x33b   : > { %v3848_v9 = vmax.f32 %v3846_v49, %v3847_v28  ;;  %v3777_v62 = vrot.slane %v3776_v22, 1  ;;  %v3789_v56 = vrot.slane %v3788_v24, 2  ;;  %v3796_v1 = vrot.slane %v3795_v16, 2 }
 0x33c   : > { %v3855_v10 = vmax.f32 %v3853_v18, %v3854_v19  ;;  %v3784_v51 = vrot.slane %v3783_v48, 1  ;;  %v5776_v5 = vshll.u32 %v12548_v43, 16  ;;  %v5782_v14 = vshll.u32 %v5709_v3, 16 }
 0x33d   : > { %v3778_v31 = vmax.f32 %v3776_v22, %v3777_v62  ;;  %v3790_v7 = vmax.f32 %v3788_v24, %v3789_v56  ;;  %v3797_v50 = vmax.f32 %v3795_v16, %v3796_v1  ;;  %v5787_v15 = vshrl.u32 %v5710_v55, 16 }
 0x33e   : > { %v3785_v32 = vmax.f32 %v3783_v48, %v3784_v51  ;;  %v5778_v52 = vrot.slane %v5776_v5, 5  ;;  %v5784_v8 = vrot.slane %v5782_v14, 5  ;;  %v5790_v46 = vshll.u32 %v5710_v55, 16 }
 0x33f   : > { %v3791_v11 = vrot.slane %v3790_v7, 1  ;;  %v3798_v29 = vrot.slane %v3797_v50, 1  ;;  %v4316_v13 = vmax.f32 %v3778_v31, %v3834_v34  ;;  %v5789_v63 = vrot.slane %v5787_v15, 4 }
 0x340   : > { %v4317_v17 = vmax.f32 %v3785_v32, %v3841_v60  ;;  %v5779_v2 = vor.u32 %v5778_v52, %v5775_v20  ;;  %v5792_v30 = vrot.slane %v5790_v46, 5  ;;  %v5796_v43 = vshll.u32 %v5711_v41, 16 }
 0x341   : > { %v3792_v49 = vmax.f32 %v3790_v7, %v3791_v11  ;;  %v3799_v0 = vmax.f32 %v3797_v50, %v3798_v29  ;;  %v10483_v21 = vpack.c.bf16 %v4316_v13, %v4316_v13  ;;  %v904_v26 = vadd.f32 %v12477_v39, %v12418_v61 }
 0x342   : > { %v10484_v18 = vpack.c.bf16 %v4317_v17, %v4317_v17  ;;  %v5780_v57 = vrot.slane %v5779_v2, 4  ;;  %v5793_v28 = vor.u32 %v5792_v30, %v5789_v63  ;;  %v5798_v22 = vrot.slane %v5796_v43, 5 }
 0x343   : > { %v4318_v34 = vmax.f32 %v3792_v49, %v3848_v9  ;;  %v4319_v24 = vmax.f32 %v3799_v0, %v3855_v10  ;;  %v5229_v16 = vunpack.c.l.b16 %v10483_v21  ;;  %v1006_v3 = vmax.f32 %v904_v26, 0.0 }
 0x344   : > { %v5230_v60 = vunpack.c.l.b16 %v10484_v18  ;;  %v5785_v19 = vsel %vm12228_vm0, %v5780_v57, %v5784_v8  ;;  %v5794_v48 = vrot.slane %v5793_v28, 4  ;;  %v896_v55 = vadd.f32 %v12477_v39, %v12436_v38 }
 0x345   : > { %v10485_v61 = vpack.c.bf16 %v4318_v34, %v4318_v34  ;;  %v10486_v20 = vpack.c.bf16 %v4319_v24, %v4319_v24  ;;  %v1950_v62 = vcombine.high %v1006_v3, %v1006_v3  ;;  %v1957_v56 = vrot.slane %v1006_v3, %v11488_v58 }
 0x346   : > { %v5285_v1 = vsel %vm4798_vm6, %v5230_v60, %v5229_v16  ;;  %v5799_v9 = vsel %vm12228_vm0, %v5794_v48, %v5798_v22  ;;  %v1004_v10 = vmax.f32 %v896_v55, 0.0  ;;  %v4397_v51 = vsel %vm11469_vm4, 0, %v4396_v42 }
 0x347   : > { %v5231_v5 = vunpack.c.l.b16 %v10485_v61  ;;  %v12603_v14 = vunpack.c.l.b16 %v10486_v20  ;;  %v10151_v31 = vcombine.low %v5785_v19, %v5799_v9  ;;  %v1964_v38 = vrot.slane %v1950_v62, %v11488_v58  ;;  %4398 = vst [vmem:[#allocation2 + $0x78] sm:$0x1] %v4397_v51 }
 0x348   : > { %v1965_v7 = vcombine.high %v1957_v56, %v1957_v56  ;;  %v3856_v50 = vsel %vm2427_vm5, %v1957_v56, -inf  ;;  %v1916_v41 = vcombine.high %v1004_v10, %v1004_v10  ;;  %v1923_v15 = vrot.slane %v1004_v10, %v11488_v58 }
 0x349   : > { %v5286_v32 = vsel %vm4800_vm7, %v5231_v5, %v5285_v1  ;;  %7904 = vmatmul.mubr.bf16.gmra.mrb[72].mxu0 %v10151_v31  ;;  %v1966_v52 = vcombine.high %v1964_v38, %v1964_v38  ;;  %v3857_v8 = vrot.slane %v3856_v50, 4  ;;  %v3870_v46 = vsel %vm2427_vm5, %v1964_v38, -inf }
 0x34a   : > { %v3863_v11 = vsel %vm2427_vm5, %v1965_v7, -inf  ;;  %v3871_v29 = vrot.slane %v3870_v46, 4  ;;  %v1930_v13 = vrot.slane %v1916_v41, %v11488_v58  ;;  %v1931_v63 = vcombine.high %v1923_v15, %v1923_v15  ;;  %v4458_v7 = vld [vmem:[#allocation2 + $0x7c] sm:$0x1] }
 0x34b   : > { %v3858_v17 = vmax.f32 %v3856_v50, %v3857_v8  ;;  %v3864_v2 = vrot.slane %v3863_v11, 4  ;;  %v3877_v30 = vsel %vm2427_vm5, %v1966_v52, -inf  ;;  %v3800_v43 = vsel %vm2427_vm5, %v1923_v15, -inf }
 0x34c   : > { %v3872_v49 = vmax.f32 %v3870_v46, %v3871_v29  ;;  %v3878_v0 = vrot.slane %v3877_v30, 4  ;;  %v1932_v21 = vcombine.high %v1930_v13, %v1930_v13  ;;  %v3801_v26 = vrot.slane %v3800_v43, 4 }
 0x34d   : > { %v3859_v18 = vrot.slane %v3858_v17, 2  ;;  %v3865_v57 = vmax.f32 %v3863_v11, %v3864_v2  ;;  %v3807_v28 = vsel %vm2427_vm5, %v1931_v63, -inf  ;;  %v3814_v22 = vsel %vm2427_vm5, %v1930_v13, -inf }
 0x34e   : > { %v3873_v34 = vrot.slane %v3872_v49, 2  ;;  %v3879_v24 = vmax.f32 %v3877_v30, %v3878_v0  ;;  %v3802_v16 = vmax.f32 %v3800_v43, %v3801_v26  ;;  %v3808_v3 = vrot.slane %v3807_v28, 4  ;;  %v5438_v30 = vld [vmem:[#allocation2 + $0x30] sm:$0xf] }
 0x34f   : > { %v3860_v42 = vmax.f32 %v3858_v17, %v3859_v18  ;;  %v3866_v60 = vrot.slane %v3865_v57, 2  ;;  %v3815_v19 = vrot.slane %v3814_v22, 4  ;;  %v3821_v48 = vsel %vm2427_vm5, %v1932_v21, -inf }
 0x350   : > { %v3874_v55 = vmax.f32 %v3872_v49, %v3873_v34  ;;  %v3880_v61 = vrot.slane %v3879_v24, 2  ;;  %v3803_v20 = vrot.slane %v3802_v16, 2  ;;  %v3809_v62 = vmax.f32 %v3807_v28, %v3808_v3 }
 0x351   : > { %v3861_v56 = vrot.slane %v3860_v42, 1  ;;  %v3867_v1 = vmax.f32 %v3865_v57, %v3866_v60  ;;  %v3816_v9 = vmax.f32 %v3814_v22, %v3815_v19  ;;  %v3822_v10 = vrot.slane %v3821_v48, 4 }
 0x352   : > { %v3875_v51 = vrot.slane %v3874_v55, 1  ;;  %v3881_v5 = vmax.f32 %v3879_v24, %v3880_v61  ;;  %v3804_v31 = vmax.f32 %v3802_v16, %v3803_v20  ;;  %v3810_v38 = vrot.slane %v3809_v62, 2 }
 0x353   : > { %v3862_v50 = vmax.f32 %v3860_v42, %v3861_v56  ;;  %v3868_v41 = vrot.slane %v3867_v1, 1  ;;  %v3817_v15 = vrot.slane %v3816_v9, 2  ;;  %v3823_v52 = vmax.f32 %v3821_v48, %v3822_v10 }
 0x354   : > { %v3876_v8 = vmax.f32 %v3874_v55, %v3875_v51  ;;  %v3882_v46 = vrot.slane %v3881_v5, 1  ;;  %v3805_v11 = vrot.slane %v3804_v31, 1  ;;  %v3811_v29 = vmax.f32 %v3809_v62, %v3810_v38 }
 0x355   : > { %v3869_v13 = vmax.f32 %v3867_v1, %v3868_v41  ;;  %v3818_v63 = vmax.f32 %v3816_v9, %v3817_v15  ;;  %v3824_v17 = vrot.slane %v3823_v52, 2  ;;  %v4459_v2 = vsel %vm11463_vm2, 0, %v4458_v7 }
 0x356   : > { %v3883_v43 = vmax.f32 %v3881_v5, %v3882_v46  ;;  %v3806_v49 = vmax.f32 %v3804_v31, %v3805_v11  ;;  %v3812_v0 = vrot.slane %v3811_v29, 1  ;;  %4460 = vst [vmem:[#allocation2 + $0x7c] sm:$0x1] %v4459_v2  ;;  %v5287_v21 = vsel %vm4802_vm8, %v12603_v14, %v5286_v32  ;;  %v11146_v31 = vld [vmem:[%s14086_s3 + $0xc8] sm:$0xff]  }
 0x357   : > { %v3819_v26 = vrot.slane %v3818_v63, 1  ;;  %v3825_v18 = vmax.f32 %v3823_v52, %v3824_v17  ;;  %v917_v57 = vadd.f32 %v12477_v39, %v12438_v37  ;;  %v909_v28 = vadd.f32 %v12477_v39, %v12440_v36  ;;  %v11148_v52 = vld [vmem:[%s14086_s3 + $0x88] sm:$0xff]   ;;  %10692 = vmatprep.subr.bf16.mxu1 %v11146_v31 }
 0x358   : > { %v3813_v22 = vmax.f32 %v3811_v29, %v3812_v0  ;;  %v4320_v34 = vmax.f32 %v3806_v49, %v3862_v50  ;;  %v5530_v24 = vshrl.u32 %v5438_v30, 16  ;;  %v5533_v16 = vshll.u32 %v5438_v30, 16  ;;  %10693 = vmatpush3.bf16.msra.mxu1 %v11148_v52  ;;  %v5366_v49 = vld [vmem:[#allocation2 + $0x78] sm:$0xf] }
 0x359   : > { %v3820_v3 = vmax.f32 %v3818_v63, %v3819_v26  ;;  %v3826_v42 = vrot.slane %v3825_v18, 1  ;;  %v1009_v60 = vmax.f32 %v917_v57, 0.0  ;;  %v1007_v19 = vmax.f32 %v909_v28, 0.0 }
 0x35a   : > { %v4321_v48 = vmax.f32 %v3813_v22, %v3869_v13  ;;  %v10487_v55 = vpack.c.bf16 %v4320_v34, %v4320_v34  ;;  %v12625_v61 = vrot.slane %v5530_v24, 4  ;;  %v12627_v14 = vrot.slane %v5533_v16, 5 }
 0x35b   : > { %v3827_v32 = vmax.f32 %v3825_v18, %v3826_v42  ;;  %v4322_v20 = vmax.f32 %v3820_v3, %v3876_v8  ;;  %v2001_v37 = vcombine.high %v1009_v60, %v1009_v60  ;;  %v2008_v62 = vrot.slane %v1009_v60, %v11488_v58  ;;  %v12641_v8 = vpop.f32.mrb[62].mxu0 }
 0x35c   : > { %v10488_v36 = vpack.c.bf16 %v4321_v48, %v4321_v48  ;;  %v5233_v39 = vunpack.c.l.b16 %v10487_v55  ;;  %v1967_v56 = vcombine.high %v1007_v19, %v1007_v19  ;;  %v1974_v1 = vrot.slane %v1007_v19, %v11488_v58 }
 0x35d   : > { %v4323_v9 = vmax.f32 %v3827_v32, %v3883_v43  ;;  %v10489_v10 = vpack.c.bf16 %v4322_v20, %v4322_v20  ;;  %v2015_v51 = vrot.slane %v2001_v37, %v11488_v58  ;;  %v2016_v5 = vcombine.high %v2008_v62, %v2008_v62  ;;  %v5369_v50 = vld [vmem:[#allocation2 + $0x7c] sm:$0x1] }
 0x35e   : > { %v5234_v38 = vunpack.c.l.b16 %v10488_v36  ;;  %v5288_v7 = vsel %vm4804_vm9, %v5233_v39, %v5287_v21  ;;  %v3940_v41 = vsel %vm2427_vm5, %v2008_v62, -inf  ;;  %v1981_v15 = vrot.slane %v1967_v56, %v11488_v58 }
 0x35f   : > { %v5235_v46 = vunpack.c.l.b16 %v10489_v10  ;;  %v10519_v11 = vpack.c.bf16 %v4323_v9, %v4323_v9  ;;  %v2017_v29 = vcombine.high %v2015_v51, %v2015_v51  ;;  %v3941_v13 = vrot.slane %v3940_v41, 4 }
 0x360   : > { %v5289_v63 = vsel %vm4806_vm10, %v5234_v38, %v5288_v7  ;;  %v3947_v17 = vsel %vm2427_vm5, %v2016_v5, -inf  ;;  %v3954_v2 = vsel %vm2427_vm5, %v2015_v51, -inf  ;;  %v1982_v30 = vcombine.high %v1974_v1, %v1974_v1 }
 0x361   : > { %v5290_v43 = vsel %vm4808_vm11, %v5235_v46, %v5289_v63  ;;  %v5370_v0 = vsel %vm11469_vm4, %v10519_v11, %v5369_v50  ;;  %v3942_v21 = vmax.f32 %v3940_v41, %v3941_v13  ;;  %v3948_v26 = vrot.slane %v3947_v17, 4  ;;  %v12656_v11 = vpop.f32.mrb[63].mxu0 }
 0x362   : > { %v5317_v18 = vpack.c.b16 %v5290_v43, %v5290_v43  ;;  %5371 = vst [vmem:[#allocation2 + $0x7c] sm:$0x1] %v5370_v0  ;;  %v3955_v57 = vrot.slane %v3954_v2, 4  ;;  %v3961_v28 = vsel %vm2427_vm5, %v2017_v29, -inf  ;;  %v1983_v22 = vcombine.high %v1981_v15, %v1981_v15  ;;  %v5441_v0 = vld [vmem:[#allocation2 + $0x3c] sm:$0x1] }
 0x363   : > { %v3943_v34 = vrot.slane %v3942_v21, 2  ;;  %v3949_v24 = vmax.f32 %v3947_v17, %v3948_v26  ;;  %v3962_v16 = vrot.slane %v3961_v28, 4  ;;  %v3884_v3 = vsel %vm2427_vm5, %v1974_v1, -inf  ;;  %v5439_v17 = vld [vmem:[#allocation2 + $0x34] sm:$0x1] }
 0x364   : > { %v5367_v42 = vsel %vm11616_vm13, %v5317_v18, %v5366_v49  ;;  %v3956_v60 = vmax.f32 %v3954_v2, %v3955_v57  ;;  %v3885_v19 = vrot.slane %v3884_v3, 4  ;;  %v3891_v48 = vsel %vm2427_vm5, %v1982_v30, -inf  ;;  %v5440_v49 = vld [vmem:[#allocation2 + $0x38] sm:$0xf] }
 0x365   : > { %5368 = vst [vmem:[#allocation2 + $0x78] sm:$0xf] %v5367_v42  ;;  %v3944_v55 = vmax.f32 %v3942_v21, %v3943_v34  ;;  %v3950_v32 = vrot.slane %v3949_v24, 2  ;;  %v3963_v20 = vmax.f32 %v3961_v28, %v3962_v16  ;;  %v3892_v37 = vrot.slane %v3891_v48, 4 }
 0x366   : > { %v3957_v62 = vrot.slane %v3956_v60, 2  ;;  %v3886_v36 = vmax.f32 %v3884_v3, %v3885_v19  ;;  %v3898_v39 = vsel %vm2427_vm5, %v1981_v15, -inf  ;;  %v3905_v56 = vsel %vm2427_vm5, %v1983_v22, -inf }
 0x367   : > { %v3945_v9 = vrot.slane %v3944_v55, 1  ;;  %v3951_v1 = vmax.f32 %v3949_v24, %v3950_v32  ;;  %v3964_v10 = vrot.slane %v3963_v20, 2  ;;  %v3893_v51 = vmax.f32 %v3891_v48, %v3892_v37 }
 0x368   : > { %v3958_v5 = vmax.f32 %v3956_v60, %v3957_v62  ;;  %v3887_v31 = vrot.slane %v3886_v36, 2  ;;  %v3899_v38 = vrot.slane %v3898_v39, 4  ;;  %v3906_v7 = vrot.slane %v3905_v56, 4 }
 0x369   : > { %v3946_v50 = vmax.f32 %v3944_v55, %v3945_v9  ;;  %v3952_v41 = vrot.slane %v3951_v1, 1  ;;  %v3965_v52 = vmax.f32 %v3963_v20, %v3964_v10  ;;  %v3894_v46 = vrot.slane %v3893_v51, 2 }
 0x36a   : > { %v3959_v29 = vrot.slane %v3958_v5, 1  ;;  %v3888_v13 = vmax.f32 %v3886_v36, %v3887_v31  ;;  %v3900_v63 = vmax.f32 %v3898_v39, %v3899_v38  ;;  %v3907_v15 = vmax.f32 %v3905_v56, %v3906_v7  ;;  %v12665_v31 = vld [vmem:[%s14085_s2] ss:$0 sm:$0xff]  ;;  %v4461_v7 = vld [vmem:[#allocation2 + $0x84] sm:$0x1] }
 0x36b   : > { %v3953_v2 = vmax.f32 %v3951_v1, %v3952_v41  ;;  %v3966_v30 = vrot.slane %v3965_v52, 1  ;;  %v3895_v43 = vmax.f32 %v3893_v51, %v3894_v46  ;;  %v5536_v21 = vor.u32 %v12627_v14, %v12625_v61  ;;  %v4399_v14 = vld [vmem:[#allocation2 + $0x80] sm:$0x1] }
 0x36c   : > { %v3960_v26 = vmax.f32 %v3958_v5, %v3959_v29  ;;  %v3889_v18 = vrot.slane %v3888_v13, 1  ;;  %v3901_v57 = vrot.slane %v3900_v63, 2  ;;  %v3908_v28 = vrot.slane %v3907_v15, 2 }
 0x36d   : > { %v3967_v22 = vmax.f32 %v3965_v52, %v3966_v30  ;;  %v3896_v34 = vrot.slane %v3895_v43, 1  ;;  %v5537_v24 = vrot.slane %v5536_v21, 4  ;;  %v5539_v16 = vshll.u32 %v5439_v17, 16 }
 0x36e   : > { %v3890_v3 = vmax.f32 %v3888_v13, %v3889_v18  ;;  %v3902_v42 = vmax.f32 %v3900_v63, %v3901_v57  ;;  %v3909_v60 = vmax.f32 %v3907_v15, %v3908_v28  ;;  %v5544_v19 = vshrl.u32 %v5440_v49, 16 }
 0x36f   : > { %v3897_v48 = vmax.f32 %v3895_v43, %v3896_v34  ;;  %v5541_v55 = vrot.slane %v5539_v16, 5  ;;  %v5547_v32 = vshll.u32 %v5440_v49, 16  ;;  %v5553_v20 = vshll.u32 %v5441_v0, 16 }
 0x370   : > { %v3903_v37 = vrot.slane %v3902_v42, 1  ;;  %v3910_v62 = vrot.slane %v3909_v60, 1  ;;  %v4324_v36 = vmax.f32 %v3890_v3, %v3946_v50  ;;  %v5546_v61 = vrot.slane %v5544_v19, 4 }
 0x371   : > { %v4325_v39 = vmax.f32 %v3897_v48, %v3953_v2  ;;  %v5542_v56 = vsel %vm12228_vm0, %v5537_v24, %v5541_v55  ;;  %v5549_v9 = vrot.slane %v5547_v32, 5  ;;  %v5555_v1 = vrot.slane %v5553_v20, 5 }
 0x372   : > { %v3904_v10 = vmax.f32 %v3902_v42, %v3903_v37  ;;  %v3911_v51 = vmax.f32 %v3909_v60, %v3910_v62  ;;  %v10491_v5 = vpack.c.bf16 %v4324_v36, %v4324_v36  ;;  %v920_v38 = vadd.f32 %v12665_v31, %v12491_v25  ;;  %v11143_v42 = vld [vmem:[#allocation2 + $0x30] ss:$8 sps:$4 sm:$0xff]  }
 0x373   : > { %v10492_v50 = vpack.c.bf16 %v4325_v39, %v4325_v39  ;;  %v5550_v41 = vor.u32 %v5549_v9, %v5546_v61  ;;  %v912_v52 = vadd.f32 %v12665_v31, %v12508_v27  ;;  %v4400_v46 = vsel %vm11469_vm4, 0, %v4399_v14 }
 0x374   : > { %v4326_v29 = vmax.f32 %v3904_v10, %v3960_v26  ;;  %v4327_v13 = vmax.f32 %v3911_v51, %v3967_v22  ;;  %v5237_v63 = vunpack.c.l.b16 %v10491_v5  ;;  %v1010_v15 = vmax.f32 %v920_v38, 0.0  ;;  %4401 = vst [vmem:[#allocation2 + $0x80] sm:$0x1] %v4400_v46  ;;  %v11150_v10 = vld [vmem:[%s14086_s3 + $0x90] sm:$0xff]  }
 0x375   : > { %v5238_v17 = vunpack.c.l.b16 %v10492_v50  ;;  %v5551_v2 = vrot.slane %v5550_v41, 4  ;;  %v1008_v30 = vmax.f32 %v912_v52, 0.0  ;;  %v4462_v25 = vsel %vm11463_vm2, 0, %v4461_v7 }
 0x376   : > { %v10493_v43 = vpack.c.bf16 %v4326_v29, %v4326_v29  ;;  %v10494_v49 = vpack.c.bf16 %v4327_v13, %v4327_v13  ;;  %v2018_v0 = vcombine.high %v1010_v15, %v1010_v15  ;;  %v2025_v21 = vrot.slane %v1010_v15, %v11488_v58  ;;  %4463 = vst [vmem:[#allocation2 + $0x84] sm:$0x1] %v4462_v25 }
 0x377   : > { %v5291_v27 = vsel %vm4798_vm6, %v5238_v17, %v5237_v63  ;;  %v5556_v26 = vsel %vm12228_vm0, %v5551_v2, %v5555_v1  ;;  %v1984_v18 = vcombine.high %v1008_v30, %v1008_v30  ;;  %v1991_v57 = vrot.slane %v1008_v30, %v11488_v58  ;;  %v11149_v1 = vld [vmem:[%s14086_s3 + $0xd0] sm:$0xff]  }
 0x378   : > { %v5239_v28 = vunpack.c.l.b16 %v10493_v43  ;;  %v12680_v22 = vunpack.c.l.b16 %v10494_v49  ;;  %v10132_v34 = vcombine.low %v5542_v56, %v5556_v26  ;;  %v2032_v24 = vrot.slane %v2018_v0, %v11488_v58  ;;  %10694 = vmatprep.subr.bf16.mxu1 %v11149_v1 }
 0x379   : > { %v2033_v16 = vcombine.high %v2025_v21, %v2025_v21  ;;  %v3968_v3 = vsel %vm2427_vm5, %v2025_v21, -inf  ;;  %v1998_v60 = vrot.slane %v1984_v18, %v11488_v58  ;;  %v1999_v19 = vcombine.high %v1991_v57, %v1991_v57  ;;  %10695 = vmatpush3.bf16.msra.mxu1 %v11150_v10 }
 0x37a   : > { %v12686_v48 = vsel %vm4800_vm7, %v5239_v28, %v5291_v27  ;;  %7717 = vmatprep.mubr.bf16.mxu1 %v10132_v34  ;;  %v2034_v55 = vcombine.high %v2032_v24, %v2032_v24  ;;  %v3969_v32 = vrot.slane %v3968_v3, 4  ;;  %v3982_v20 = vsel %vm2427_vm5, %v2032_v24, -inf  ;;  %v11151_v27 = vld [vmem:[%s14086_s3 + $0xd8] sm:$0xff]   ;;  %v11154_v24 = vld [vmem:[%s14086_s3 + $0xe0] sm:$0xff]  }
 0x37b   : > { %v3975_v37 = vsel %vm2427_vm5, %v2033_v16, -inf  ;;  %v3983_v62 = vrot.slane %v3982_v20, 4  ;;  %7718 = vmatmul.mubr.bf16.gmra.mrb[12].mxu1 %v11143_v42  ;;  %v2000_v36 = vcombine.high %v1998_v60, %v1998_v60  ;;  %v3912_v61 = vsel %vm2427_vm5, %v1991_v57, -inf  ;;  %v11153_v34 = vld [vmem:[%s14086_s3 + $0x98] sm:$0xff]   ;;  %10696 = vmatprep.subr.bf16.mxu1 %v11151_v27 }
 0x37c   : > { %v3970_v14 = vmax.f32 %v3968_v3, %v3969_v32  ;;  %v3976_v39 = vrot.slane %v3975_v37, 4  ;;  %v3989_v56 = vsel %vm2427_vm5, %v2034_v55, -inf  ;;  %v3913_v9 = vrot.slane %v3912_v61, 4 }
 0x37d   : > { %v3984_v51 = vmax.f32 %v3982_v20, %v3983_v62  ;;  %v3990_v5 = vrot.slane %v3989_v56, 4  ;;  %v3919_v38 = vsel %vm2427_vm5, %v1999_v19, -inf  ;;  %v3926_v7 = vsel %vm2427_vm5, %v1998_v60, -inf  ;;  %10697 = vmatpush3.bf16.msra.mxu1 %v11153_v34  ;;  %v11157_v34 = vld [vmem:[%s14086_s3 + $0x200] sm:$0xff]  }
 0x37e   : > { %v3971_v50 = vrot.slane %v3970_v14, 2  ;;  %v3977_v41 = vmax.f32 %v3975_v37, %v3976_v39  ;;  %v3914_v52 = vmax.f32 %v3912_v61, %v3913_v9  ;;  %v3920_v46 = vrot.slane %v3919_v38, 4  ;;  %v5860_v37 = vld [vmem:[#allocation2 + $0x38] sm:$0xe]  ;;  %v5861_v39 = vld [vmem:[#allocation2 + $0x3c] sm:$0x1]  ;;  %10698 = vmatprep.subr.bf16.mxu1 %v11154_v24  ;;  %10994 = vmatprep.subr.bf16.mxu0 %v11157_v34 }
 0x37f   : > { %v3985_v29 = vrot.slane %v3984_v51, 2  ;;  %v3991_v13 = vmax.f32 %v3989_v56, %v3990_v5  ;;  %v3927_v63 = vrot.slane %v3926_v7, 4  ;;  %v3933_v15 = vsel %vm2427_vm5, %v2000_v36, -inf  ;;  %v5862_v56 = vld [vmem:[#allocation2 + $0x40] sm:$0xe]  ;;  %10995 = vmatpush3.bf16.msra.mxu0 %v11157_v34 }
 0x380   : > { %v3972_v17 = vmax.f32 %v3970_v14, %v3971_v50  ;;  %v3978_v2 = vrot.slane %v3977_v41, 2  ;;  %v3915_v30 = vrot.slane %v3914_v52, 2  ;;  %v3921_v25 = vmax.f32 %v3919_v38, %v3920_v46  ;;  %v5863_v5 = vld [vmem:[#allocation2 + $0x44] sm:$0x1] }
 0x381   : > { %v3986_v43 = vmax.f32 %v3984_v51, %v3985_v29  ;;  %v3992_v49 = vrot.slane %v3991_v13, 2  ;;  %v3928_v0 = vmax.f32 %v3926_v7, %v3927_v63  ;;  %v3934_v21 = vrot.slane %v3933_v15, 4  ;;  %v11155_v63 = vld [vmem:[%s14086_s3 + $0xa0] sm:$0xff]  }
 0x382   : > { %v3973_v26 = vrot.slane %v3972_v17, 1  ;;  %v3979_v18 = vmax.f32 %v3977_v41, %v3978_v2  ;;  %v3916_v57 = vmax.f32 %v3914_v52, %v3915_v30  ;;  %v3922_v28 = vrot.slane %v3921_v25, 2  ;;  %10699 = vmatpush3.bf16.msra.mxu1 %v11155_v63 }
 0x383   : > { %v3987_v16 = vrot.slane %v3986_v43, 1  ;;  %v3993_v3 = vmax.f32 %v3991_v13, %v3992_v49  ;;  %v3929_v42 = vrot.slane %v3928_v0, 2  ;;  %v3935_v60 = vmax.f32 %v3933_v15, %v3934_v21 }
 0x384   : > { %v3974_v19 = vmax.f32 %v3972_v17, %v3973_v26  ;;  %v3980_v55 = vrot.slane %v3979_v18, 1  ;;  %v3917_v32 = vrot.slane %v3916_v57, 1  ;;  %v3923_v20 = vmax.f32 %v3921_v25, %v3922_v28 }
 0x385   : > { %v3988_v62 = vmax.f32 %v3986_v43, %v3987_v16  ;;  %v3994_v36 = vrot.slane %v3993_v3, 1  ;;  %v3930_v61 = vmax.f32 %v3928_v0, %v3929_v42  ;;  %v3936_v14 = vrot.slane %v3935_v60, 2  ;;  %v11159_v42 = vld [vmem:[%s14086_s3 + $0xa8] sm:$0xff]  }
 0x386   : > { %v3981_v9 = vmax.f32 %v3979_v18, %v3980_v55  ;;  %v3918_v1 = vmax.f32 %v3916_v57, %v3917_v32  ;;  %v3924_v10 = vrot.slane %v3923_v20, 1  ;;  %v5293_v51 = vsel %vm4802_vm8, %v12680_v22, %v12686_v48  ;;  %v5375_v32 = vld [vmem:[#allocation2 + $0x84] sm:$0x1] }
 0x387   : > { %v3995_v38 = vmax.f32 %v3993_v3, %v3994_v36  ;;  %v3931_v7 = vrot.slane %v3930_v61, 1  ;;  %v3937_v50 = vmax.f32 %v3935_v60, %v3936_v14  ;;  %v10159_v41 = vrot.slane %v5860_v37, 9  ;;  %v11160_v60 = vld [vmem:[%s14086_s3 + $0x208] sm:$0xff]  }
 0x388   : > { %v3925_v52 = vmax.f32 %v3923_v20, %v3924_v10  ;;  %v4328_v46 = vmax.f32 %v3918_v1, %v3974_v19  ;;  %v5906_v29 = vrot.slane %v5861_v39, 5  ;;  %v10160_v13 = vrot.slane %v5862_v56, 9  ;;  %10996 = vmatprep.subr.bf16.mxu0 %v11160_v60 }
 0x389   : > { %v3932_v15 = vmax.f32 %v3930_v61, %v3931_v7  ;;  %v3938_v17 = vrot.slane %v3937_v50, 1  ;;  %v5910_v2 = vrot.slane %v5863_v5, 5  ;;  %v933_v30 = vadd.f32 %v12665_v31, %v12524_v12  ;;  %v11156_v12 = vld [vmem:[%s14086_s3 + $0xe8] sm:$0xff]   ;;  %v5372_v5 = vld [vmem:[#allocation2 + $0x80] sm:$0xf]  ;;  %10997 = vmatpush3.bf16.msra.mxu0 %v11160_v60 }
 0x38a   : > { %v4329_v22 = vmax.f32 %v3925_v52, %v3981_v9  ;;  %v10495_v48 = vpack.c.bf16 %v4328_v46, %v4328_v46  ;;  %v5907_v25 = vsel %vm12263_vm12, %v10159_v41, %v5906_v29  ;;  %v925_v43 = vadd.f32 %v12665_v31, %v12539_v53  ;;  %10700 = vmatprep.subr.bf16.mxu1 %v11156_v12 }
 0x38b   : > { %v3939_v49 = vmax.f32 %v3937_v50, %v3938_v17  ;;  %v4330_v0 = vmax.f32 %v3932_v15, %v3988_v62  ;;  %v5911_v21 = vsel %vm12263_vm12, %v10160_v13, %v5910_v2  ;;  %v1013_v27 = vmax.f32 %v933_v30, 0.0  ;;  %v11161_v62 = vld [vmem:[%s14086_s3 + $0xf0] sm:$0xff]   ;;  %10701 = vmatpush3.bf16.msra.mxu1 %v11159_v42 }
 0x38c   : > { %v10496_v26 = vpack.c.bf16 %v4329_v22, %v4329_v22  ;;  %v5241_v18 = vunpack.c.l.b16 %v10495_v48  ;;  %v10164_v57 = vcombine.low %v5907_v25, %v5911_v21  ;;  %v1011_v28 = vmax.f32 %v925_v43, 0.0  ;;  %10702 = vmatprep.subr.bf16.mxu1 %v11161_v62  ;;  %v11162_v25 = vld [vmem:[%s14086_s3 + $0x210] sm:$0xff]  }
 0x38d   : > { %v4331_v53 = vmax.f32 %v3939_v49, %v3995_v38  ;;  %v10497_v24 = vpack.c.bf16 %v4330_v0, %v4330_v0  ;;  %v2069_v16 = vcombine.high %v1013_v27, %v1013_v27  ;;  %v2076_v3 = vrot.slane %v1013_v27, %v11488_v58  ;;  %v11163_v43 = vld [vmem:[%s14086_s3 + $0xb0] sm:$0xff]   ;;  %10998 = vmatprep.subr.bf16.mxu0 %v11162_v25 }
 0x38e   : > { %v5242_v19 = vunpack.c.l.b16 %v10496_v26  ;;  %v5294_v55 = vsel %vm4804_vm9, %v5241_v18, %v5293_v51  ;;  %7911 = vmatprep.mubr.bf16.mxu0 %v10164_v57  ;;  %v2035_v20 = vcombine.high %v1011_v28, %v1011_v28  ;;  %v2042_v37 = vrot.slane %v1011_v28, %v11488_v58  ;;  %v11164_v26 = vld [vmem:[%s14086_s3 + $0x218] sm:$0xff]   ;;  %10999 = vmatpush3.bf16.msra.mxu0 %v11162_v25 }
 0x38f   : > { %v5243_v36 = vunpack.c.l.b16 %v10497_v24  ;;  %v10520_v61 = vpack.c.bf16 %v4331_v53, %v4331_v53  ;;  %v2083_v14 = vrot.slane %v2069_v16, %v11488_v58  ;;  %v2084_v39 = vcombine.high %v2076_v3, %v2076_v3  ;;  %10703 = vmatpush3.bf16.msra.mxu1 %v11163_v43  ;;  %11000 = vmatprep.subr.bf16.mxu0 %v11164_v26 }
 0x390   : > { %v5295_v56 = vsel %vm4806_vm10, %v5242_v19, %v5294_v55  ;;  %v4052_v9 = vsel %vm2427_vm5, %v2076_v3, -inf  ;;  %v2049_v1 = vrot.slane %v2035_v20, %v11488_v58  ;;  %v2050_v10 = vcombine.high %v2042_v37, %v2042_v37  ;;  %v11165_v3 = vld [vmem:[%s14086_s3 + $0xf8] sm:$0xff]  }
 0x391   : > { %v5296_v51 = vsel %vm4808_vm11, %v5243_v36, %v5295_v56  ;;  %v5376_v38 = vsel %vm11469_vm4, %v10520_v61, %v5375_v32  ;;  %v2085_v7 = vcombine.high %v2083_v14, %v2083_v14  ;;  %v4053_v50 = vrot.slane %v4052_v9, 4  ;;  %v11168_v32 = vld [vmem:[%s14086_s3 + $0xb8] sm:$0xff]   ;;  %10704 = vmatprep.subr.bf16.mxu1 %v11165_v3  ;;  %v11166_v61 = vld [vmem:[%s14086_s3 + $0x220] sm:$0xff]   ;;  %v11172_v3 = vld [vmem:[%s14086_s3 + $0x230] sm:$0xff]  }
 0x392   : > { %v5319_v41 = vpack.c.b16 %v5296_v51, %v5296_v51  ;;  %5377 = vst [vmem:[#allocation2 + $0x84] sm:$0x1] %v5376_v38  ;;  %v4059_v52 = vsel %vm2427_vm5, %v2084_v39, -inf  ;;  %v4066_v46 = vsel %vm2427_vm5, %v2083_v14, -inf  ;;  %v2051_v29 = vcombine.high %v2049_v1, %v2049_v1  ;;  %11001 = vmatpush3.bf16.msra.mxu0 %v11164_v26 }
 0x393   : > { %v4054_v13 = vmax.f32 %v4052_v9, %v4053_v50  ;;  %v4060_v63 = vrot.slane %v4059_v52, 4  ;;  %v4067_v15 = vrot.slane %v4066_v46, 4  ;;  %v4073_v17 = vsel %vm2427_vm5, %v2085_v7, -inf  ;;  %10705 = vmatpush3.bf16.msra.mxu1 %v11168_v32  ;;  %11002 = vmatprep.subr.bf16.mxu0 %v11166_v61 }
 0x394   : > { %v5373_v2 = vsel %vm11616_vm13, %v5319_v41, %v5372_v5  ;;  %v4074_v30 = vrot.slane %v4073_v17, 4  ;;  %v3996_v22 = vsel %vm2427_vm5, %v2042_v37, -inf  ;;  %v4003_v48 = vsel %vm2427_vm5, %v2050_v10, -inf }
 0x395   : > { %5374 = vst [vmem:[#allocation2 + $0x80] sm:$0xf] %v5373_v2  ;;  %v4055_v49 = vrot.slane %v4054_v13, 2  ;;  %v4061_v0 = vmax.f32 %v4059_v52, %v4060_v63  ;;  %v4068_v21 = vmax.f32 %v4066_v46, %v4067_v15  ;;  %v3997_v27 = vrot.slane %v3996_v22, 4  ;;  %v5713_v46 = vld [vmem:[#allocation2 + $0x3c] sm:$0x1] }
 0x396   : > { %v4075_v18 = vmax.f32 %v4073_v17, %v4074_v30  ;;  %v4004_v57 = vrot.slane %v4003_v48, 4  ;;  %v4010_v28 = vsel %vm2427_vm5, %v2049_v1, -inf  ;;  %v4017_v12 = vsel %vm2427_vm5, %v2051_v29, -inf  ;;  %v5712_v1 = vld [vmem:[#allocation2 + $0x38] sm:$0xf]  ;;  %v11170_v2 = vld [vmem:[%s14086_s3 + $0x228] sm:$0xff]   ;;  %11003 = vmatpush3.bf16.msra.mxu0 %v11166_v61 }
 0x397   : > { %v4056_v34 = vmax.f32 %v4054_v13, %v4055_v49  ;;  %v4062_v53 = vrot.slane %v4061_v0, 2  ;;  %v4069_v24 = vrot.slane %v4068_v21, 2  ;;  %v3998_v16 = vmax.f32 %v3996_v22, %v3997_v27  ;;  %v5714_v15 = vld [vmem:[#allocation2 + $0x40] sm:$0xf]  ;;  %11004 = vmatprep.subr.bf16.mxu0 %v11170_v2 }
 0x398   : > { %v4076_v42 = vrot.slane %v4075_v18, 2  ;;  %v4005_v60 = vmax.f32 %v4003_v48, %v4004_v57  ;;  %v4011_v19 = vrot.slane %v4010_v28, 4  ;;  %v4018_v55 = vrot.slane %v4017_v12, 4  ;;  %v11171_v27 = vld [vmem:[%s14086_s3 + $0x1c0] sm:$0xff]  }
 0x399   : > { %v4057_v20 = vrot.slane %v4056_v34, 1  ;;  %v4063_v37 = vmax.f32 %v4061_v0, %v4062_v53  ;;  %v4070_v62 = vmax.f32 %v4068_v21, %v4069_v24  ;;  %v3999_v36 = vrot.slane %v3998_v16, 2  ;;  %10818 = vmatprep.subr.bf16.mxu1 %v11171_v27 }
 0x39a   : > { %v4077_v14 = vmax.f32 %v4075_v18, %v4076_v42  ;;  %v4006_v39 = vrot.slane %v4005_v60, 2  ;;  %v4012_v56 = vmax.f32 %v4010_v28, %v4011_v19  ;;  %v4019_v9 = vmax.f32 %v4017_v12, %v4018_v55  ;;  %v5715_v28 = vld [vmem:[#allocation2 + $0x44] sm:$0x1]  ;;  %11005 = vmatpush3.bf16.msra.mxu0 %v11170_v2 }
 0x39b   : > { %v4058_v10 = vmax.f32 %v4056_v34, %v4057_v20  ;;  %v4064_v51 = vrot.slane %v4063_v37, 1  ;;  %v4071_v5 = vrot.slane %v4070_v62, 1  ;;  %v4000_v38 = vmax.f32 %v3998_v16, %v3999_v36  ;;  %11006 = vmatprep.subr.bf16.mxu0 %v11172_v3 }
 0x39c   : > { %v4078_v7 = vrot.slane %v4077_v14, 1  ;;  %v4007_v50 = vmax.f32 %v4005_v60, %v4006_v39  ;;  %v4013_v41 = vrot.slane %v4012_v56, 2  ;;  %v4020_v52 = vrot.slane %v4019_v9, 2 }
 0x39d   : > { %v4065_v29 = vmax.f32 %v4063_v37, %v4064_v51  ;;  %v4072_v13 = vmax.f32 %v4070_v62, %v4071_v5  ;;  %v4001_v63 = vrot.slane %v4000_v38, 1  ;;  %v5801_v17 = vshrl.u32 %v5712_v1, 16  ;;  %v11175_v5 = vld [vmem:[%s14086_s3 + $0x238] sm:$0xff]  }
 0x39e   : > { %v4079_v30 = vmax.f32 %v4077_v14, %v4078_v7  ;;  %v4008_v22 = vrot.slane %v4007_v50, 1  ;;  %v4014_v48 = vmax.f32 %v4012_v56, %v4013_v41  ;;  %v4021_v25 = vmax.f32 %v4019_v9, %v4020_v52  ;;  %v4402_v56 = vld [vmem:[#allocation2 + $0x88] sm:$0x1]  ;;  %v4464_v52 = vld [vmem:[#allocation2 + $0x8c] sm:$0x1]  ;;  %11007 = vmatpush3.bf16.msra.mxu0 %v11172_v3 }
 0x39f   : > { %v4002_v43 = vmax.f32 %v4000_v38, %v4001_v63  ;;  %v5803_v49 = vrot.slane %v5801_v17, 4  ;;  %v5804_v0 = vshll.u32 %v5712_v1, 16  ;;  %v5810_v21 = vshll.u32 %v5713_v46, 16  ;;  %11008 = vmatprep.subr.bf16.mxu0 %v11175_v5 }
 0x3a0   : > { %v4009_v26 = vmax.f32 %v4007_v50, %v4008_v22  ;;  %v4015_v18 = vrot.slane %v4014_v48, 1  ;;  %v4022_v57 = vrot.slane %v4021_v25, 1  ;;  %v5815_v12 = vshrl.u32 %v5714_v15, 16 }
 0x3a1   : > { %v4332_v34 = vmax.f32 %v4002_v43, %v4058_v10  ;;  %v5806_v53 = vrot.slane %v5804_v0, 5  ;;  %v5812_v24 = vrot.slane %v5810_v21, 5  ;;  %v5818_v16 = vshll.u32 %v5714_v15, 16 }
 0x3a2   : > { %v4016_v42 = vmax.f32 %v4014_v48, %v4015_v18  ;;  %v4023_v60 = vmax.f32 %v4021_v25, %v4022_v57  ;;  %v4333_v19 = vmax.f32 %v4009_v26, %v4065_v29  ;;  %v5817_v55 = vrot.slane %v5815_v12, 4  ;;  %11009 = vmatpush3.bf16.msra.mxu0 %v11175_v5 }
 0x3a3   : > { %v10499_v32 = vpack.c.bf16 %v4332_v34, %v4332_v34  ;;  %v5807_v20 = vor.u32 %v5806_v53, %v5803_v49  ;;  %v5820_v37 = vrot.slane %v5818_v16, 5  ;;  %v5824_v62 = vshll.u32 %v5715_v28, 16 }
 0x3a4   : > { %v4334_v36 = vmax.f32 %v4016_v42, %v4072_v13  ;;  %v4335_v61 = vmax.f32 %v4023_v60, %v4079_v30  ;;  %v10500_v14 = vpack.c.bf16 %v4333_v19, %v4333_v19  ;;  %v936_v39 = vadd.f32 %v12665_v31, %v12561_v6 }
 0x3a5   : > { %v5245_v9 = vunpack.c.l.b16 %v10499_v32  ;;  %v5808_v1 = vrot.slane %v5807_v20, 4  ;;  %v5821_v10 = vor.u32 %v5820_v37, %v5817_v55  ;;  %v5826_v51 = vrot.slane %v5824_v62, 5 }
 0x3a6   : > { %v10501_v38 = vpack.c.bf16 %v4334_v36, %v4334_v36  ;;  %v10502_v7 = vpack.c.bf16 %v4335_v61, %v4335_v61  ;;  %v5246_v50 = vunpack.c.l.b16 %v10500_v14  ;;  %v1014_v41 = vmax.f32 %v936_v39, 0.0 }
 0x3a7   : > { %v5813_v46 = vsel %vm12228_vm0, %v5808_v1, %v5812_v24  ;;  %v5822_v6 = vrot.slane %v5821_v10, 4  ;;  %v928_v29 = vadd.f32 %v12665_v31, %v12582_v47  ;;  %v4403_v13 = vsel %vm11469_vm4, 0, %v4402_v56 }
 0x3a8   : > { %v5247_v63 = vunpack.c.l.b16 %v10501_v38  ;;  %v5248_v15 = vunpack.c.l.b16 %v10502_v7  ;;  %v5297_v17 = vsel %vm4798_vm6, %v5246_v50, %v5245_v9  ;;  %v2086_v2 = vcombine.high %v1014_v41, %v1014_v41  ;;  %4404 = vst [vmem:[#allocation2 + $0x88] sm:$0x1] %v4403_v13 }
 0x3a9   : > { %v5827_v30 = vsel %vm12228_vm0, %v5822_v6, %v5826_v51  ;;  %v2093_v22 = vrot.slane %v1014_v41, %v11488_v58  ;;  %v1012_v48 = vmax.f32 %v928_v29, 0.0  ;;  %v4465_v25 = vsel %vm11463_vm2, 0, %v4464_v52 }
 0x3aa   : > { %v5298_v47 = vsel %vm4800_vm7, %v5247_v63, %v5297_v17  ;;  %v10152_v43 = vcombine.low %v5813_v46, %v5827_v30  ;;  %v2100_v49 = vrot.slane %v2086_v2, %v11488_v58  ;;  %4466 = vst [vmem:[#allocation2 + $0x8c] sm:$0x1] %v4465_v25  ;;  %v949_v0 = vadd.f32 %v12665_v31, %v12587_v4 }
 0x3ab   : > { %v2101_v21 = vcombine.high %v2093_v22, %v2093_v22  ;;  %v4080_v27 = vsel %vm2427_vm5, %v2093_v22, -inf  ;;  %v2052_v26 = vcombine.high %v1012_v48, %v1012_v48  ;;  %v2059_v18 = vrot.slane %v1012_v48, %v11488_v58 }
 0x3ac   : > { %7912 = vmatmul.mubr.bf16.gmra.mrb[76].mxu0 %v10152_v43  ;;  %v2102_v57 = vcombine.high %v2100_v49, %v2100_v49  ;;  %v4081_v28 = vrot.slane %v4080_v27, 4  ;;  %v4094_v12 = vsel %vm2427_vm5, %v2100_v49, -inf  ;;  %v12810_v34 = vsel %vm4802_vm8, %v5248_v15, %v5298_v47 }
 0x3ad   : > { %v4087_v53 = vsel %vm2427_vm5, %v2101_v21, -inf  ;;  %v4095_v24 = vrot.slane %v4094_v12, 4  ;;  %v2066_v16 = vrot.slane %v2052_v26, %v11488_v58  ;;  %v2067_v4 = vcombine.high %v2059_v18, %v2059_v18 }
 0x3ae   : > { %v4082_v3 = vmax.f32 %v4080_v27, %v4081_v28  ;;  %v4088_v42 = vrot.slane %v4087_v53, 4  ;;  %v4101_v60 = vsel %vm2427_vm5, %v2102_v57, -inf  ;;  %v4024_v19 = vsel %vm2427_vm5, %v2059_v18, -inf  ;;  %v4381_v28 = vld [vmem:[#allocation2 + $0x50] sm:$0x1] }
 0x3af   : > { %v4096_v55 = vmax.f32 %v4094_v12, %v4095_v24  ;;  %v4102_v32 = vrot.slane %v4101_v60, 4  ;;  %v2068_v20 = vcombine.high %v2066_v16, %v2066_v16  ;;  %v4025_v37 = vrot.slane %v4024_v19, 4 }
 0x3b0   : > { %v4083_v62 = vrot.slane %v4082_v3, 2  ;;  %v4089_v36 = vmax.f32 %v4087_v53, %v4088_v42  ;;  %v4031_v61 = vsel %vm2427_vm5, %v2067_v4, -inf  ;;  %v4038_v14 = vsel %vm2427_vm5, %v2066_v16, -inf }
 0x3b1   : > { %v4097_v39 = vrot.slane %v4096_v55, 2  ;;  %v4103_v56 = vmax.f32 %v4101_v60, %v4102_v32  ;;  %v4026_v9 = vmax.f32 %v4024_v19, %v4025_v37  ;;  %v4032_v1 = vrot.slane %v4031_v61, 4 }
 0x3b2   : > { %v4084_v10 = vmax.f32 %v4082_v3, %v4083_v62  ;;  %v4090_v51 = vrot.slane %v4089_v36, 2  ;;  %v4039_v5 = vrot.slane %v4038_v14, 4  ;;  %v4045_v38 = vsel %vm2427_vm5, %v2068_v20, -inf }
 0x3b3   : > { %v4098_v7 = vmax.f32 %v4096_v55, %v4097_v39  ;;  %v4104_v50 = vrot.slane %v4103_v56, 2  ;;  %v4027_v41 = vrot.slane %v4026_v9, 2  ;;  %v4033_v52 = vmax.f32 %v4031_v61, %v4032_v1 }
 0x3b4   : > { %v4085_v46 = vrot.slane %v4084_v10, 1  ;;  %v4091_v6 = vmax.f32 %v4089_v36, %v4090_v51  ;;  %v4040_v29 = vmax.f32 %v4038_v14, %v4039_v5  ;;  %v4046_v13 = vrot.slane %v4045_v38, 4 }
 0x3b5   : > { %v4099_v63 = vrot.slane %v4098_v7, 1  ;;  %v4105_v15 = vmax.f32 %v4103_v56, %v4104_v50  ;;  %v4028_v17 = vmax.f32 %v4026_v9, %v4027_v41  ;;  %v4034_v2 = vrot.slane %v4033_v52, 2 }
 0x3b6   : > { %v4086_v30 = vmax.f32 %v4084_v10, %v4085_v46  ;;  %v4092_v22 = vrot.slane %v4091_v6, 1  ;;  %v4041_v48 = vrot.slane %v4040_v29, 2  ;;  %v4047_v25 = vmax.f32 %v4045_v38, %v4046_v13  ;;  %v5381_v13 = vld [vmem:[#allocation2 + $0x8c] sm:$0x1] }
 0x3b7   : > { %v4100_v47 = vmax.f32 %v4098_v7, %v4099_v63  ;;  %v4106_v43 = vrot.slane %v4105_v15, 1  ;;  %v4029_v49 = vrot.slane %v4028_v17, 1  ;;  %v4035_v21 = vmax.f32 %v4033_v52, %v4034_v2 }
 0x3b8   : > { %v4093_v27 = vmax.f32 %v4091_v6, %v4092_v22  ;;  %v4042_v26 = vmax.f32 %v4040_v29, %v4041_v48  ;;  %v4048_v18 = vrot.slane %v4047_v25, 2  ;;  %v1017_v57 = vmax.f32 %v949_v0, 0.0 }
 0x3b9   : > { %v4107_v12 = vmax.f32 %v4105_v15, %v4106_v43  ;;  %v4030_v53 = vmax.f32 %v4028_v17, %v4029_v49  ;;  %v4036_v24 = vrot.slane %v4035_v21, 1  ;;  %v941_v16 = vadd.f32 %v12665_v31, %v12591_v33 }
 0x3ba   : > { %v4043_v4 = vrot.slane %v4042_v26, 1  ;;  %v4049_v3 = vmax.f32 %v4047_v25, %v4048_v18  ;;  %v2137_v42 = vcombine.high %v1017_v57, %v1017_v57  ;;  %v2144_v60 = vrot.slane %v1017_v57, %v11488_v58 }
 0x3bb   : > { %v4037_v19 = vmax.f32 %v4035_v21, %v4036_v24  ;;  %v4336_v55 = vmax.f32 %v4030_v53, %v4086_v30  ;;  %v1015_v32 = vmax.f32 %v941_v16, 0.0  ;;  %v4382_v20 = vsel %vm11469_vm4, 0, %v4381_v28  ;;  %v5378_v21 = vld [vmem:[#allocation2 + $0x88] sm:$0xf] }
 0x3bc   : > { %v4044_v37 = vmax.f32 %v4042_v26, %v4043_v4  ;;  %v4050_v0 = vrot.slane %v4049_v3, 1  ;;  %v2151_v62 = vrot.slane %v2137_v42, %v11488_v58  ;;  %v2152_v36 = vcombine.high %v2144_v60, %v2144_v60  ;;  %4383 = vst [vmem:[#allocation2 + $0x50] sm:$0x1] %v4382_v20 }
 0x3bd   : > { %v4337_v61 = vmax.f32 %v4037_v19, %v4093_v27  ;;  %v10503_v14 = vpack.c.bf16 %v4336_v55, %v4336_v55  ;;  %v4164_v33 = vsel %vm2427_vm5, %v2144_v60, -inf  ;;  %v2103_v39 = vcombine.high %v1015_v32, %v1015_v32  ;;  %4936 = vst [vmem:[#allocation2 + $0x50] sm:$0xf] %v14093_v35 }
 0x3be   : > { %v4051_v56 = vmax.f32 %v4049_v3, %v4050_v0  ;;  %v4338_v9 = vmax.f32 %v4044_v37, %v4100_v47  ;;  %v2153_v1 = vcombine.high %v2151_v62, %v2151_v62  ;;  %v4165_v10 = vrot.slane %v4164_v33, 4  ;;  %v4443_v0 = vld [vmem:[#allocation2 + $0x54] sm:$0x1] }
 0x3bf   : > { %v10504_v51 = vpack.c.bf16 %v4337_v61, %v4337_v61  ;;  %v5249_v5 = vunpack.c.l.b16 %v10503_v14  ;;  %v4171_v38 = vsel %vm2427_vm5, %v2152_v36, -inf  ;;  %v4178_v7 = vsel %vm2427_vm5, %v2151_v62, -inf }
 0x3c0   : > { %v4339_v50 = vmax.f32 %v4051_v56, %v4107_v12  ;;  %v10505_v41 = vpack.c.bf16 %v4338_v9, %v4338_v9  ;;  %v4166_v52 = vmax.f32 %v4164_v33, %v4165_v10  ;;  %v4172_v46 = vrot.slane %v4171_v38, 4 }
 0x3c1   : > { %v5250_v6 = vunpack.c.l.b16 %v10504_v51  ;;  %v5300_v29 = vsel %vm4804_vm9, %v5249_v5, %v12810_v34  ;;  %v4179_v63 = vrot.slane %v4178_v7, 4  ;;  %v4185_v15 = vsel %vm2427_vm5, %v2153_v1, -inf }
 0x3c2   : > { %v5251_v17 = vunpack.c.l.b16 %v10505_v41  ;;  %v10521_v2 = vpack.c.bf16 %v4339_v50, %v4339_v50  ;;  %v4167_v30 = vrot.slane %v4166_v52, 2  ;;  %v4173_v22 = vmax.f32 %v4171_v38, %v4172_v46 }
 0x3c3   : > { %v5301_v48 = vsel %vm4806_vm10, %v5250_v6, %v5300_v29  ;;  %v4180_v25 = vmax.f32 %v4178_v7, %v4179_v63  ;;  %v4186_v47 = vrot.slane %v4185_v15, 4  ;;  %v2110_v43 = vrot.slane %v1015_v32, %v11488_v58  ;;  %v6239_v7 = vld [vmem:[#allocation2 + $0x58] sm:$0xf]  ;;  %v6240_v63 = vld [vmem:[#allocation2 + $0x5c] sm:$0x1] }
 0x3c4   : > { %v5302_v49 = vsel %vm4808_vm11, %v5251_v17, %v5301_v48  ;;  %v5382_v34 = vsel %vm11469_vm4, %v10521_v2, %v5381_v13  ;;  %v4168_v27 = vmax.f32 %v4166_v52, %v4167_v30  ;;  %v4174_v26 = vrot.slane %v4173_v22, 2  ;;  %v6237_v33 = vld [vmem:[#allocation2 + $0x50] sm:$0xf] }
 0x3c5   : > { %v5321_v18 = vpack.c.b16 %v5302_v49, %v5302_v49  ;;  %5383 = vst [vmem:[#allocation2 + $0x8c] sm:$0x1] %v5382_v34  ;;  %v4181_v57 = vrot.slane %v4180_v25, 2  ;;  %v4187_v28 = vmax.f32 %v4185_v15, %v4186_v47  ;;  %v2117_v12 = vrot.slane %v2103_v39, %v11488_v58  ;;  %v6653_v49 = vld [vmem:[#allocation2 + $0x58] sm:$0xe] }
 0x3c6   : > { %v4169_v53 = vrot.slane %v4168_v27, 1  ;;  %v4175_v24 = vmax.f32 %v4173_v22, %v4174_v26  ;;  %v2118_v16 = vcombine.high %v2110_v43, %v2110_v43  ;;  %v4108_v4 = vsel %vm2427_vm5, %v2110_v43, -inf }
 0x3c7   : > { %v5379_v3 = vsel %vm11616_vm13, %v5321_v18, %v5378_v21  ;;  %v4182_v42 = vmax.f32 %v4180_v25, %v4181_v57  ;;  %v4188_v60 = vrot.slane %v4187_v28, 2  ;;  %v2119_v19 = vcombine.high %v2117_v12, %v2117_v12 }
 0x3c8   : > { %5380 = vst [vmem:[#allocation2 + $0x88] sm:$0xf] %v5379_v3  ;;  %v4170_v55 = vmax.f32 %v4168_v27, %v4169_v53  ;;  %v4176_v32 = vrot.slane %v4175_v24, 1  ;;  %v4109_v20 = vrot.slane %v4108_v4, 4  ;;  %v4115_v37 = vsel %vm2427_vm5, %v2118_v16, -inf }
 0x3c9   : > { %v4183_v62 = vrot.slane %v4182_v42, 1  ;;  %v4189_v36 = vmax.f32 %v4187_v28, %v4188_v60  ;;  %v4116_v61 = vrot.slane %v4115_v37, 4  ;;  %v4122_v14 = vsel %vm2427_vm5, %v2117_v12, -inf  ;;  %v6654_v53 = vld [vmem:[#allocation2 + $0x5c] sm:$0x1] }
 0x3ca   : > { %v4177_v39 = vmax.f32 %v4175_v24, %v4176_v32  ;;  %v4110_v56 = vmax.f32 %v4108_v4, %v4109_v20  ;;  %v4123_v9 = vrot.slane %v4122_v14, 4  ;;  %v4129_v1 = vsel %vm2427_vm5, %v2119_v19, -inf  ;;  %v6655_v24 = vld [vmem:[#allocation2 + $0x60] sm:$0xe] }
 0x3cb   : > { %v4184_v10 = vmax.f32 %v4182_v42, %v4183_v62  ;;  %v4190_v51 = vrot.slane %v4189_v36, 1  ;;  %v4117_v5 = vmax.f32 %v4115_v37, %v4116_v61  ;;  %v4130_v38 = vrot.slane %v4129_v1, 4  ;;  %v6656_v42 = vld [vmem:[#allocation2 + $0x64] sm:$0x1] }
 0x3cc   : > { %v4111_v50 = vrot.slane %v4110_v56, 2  ;;  %v4124_v41 = vmax.f32 %v4122_v14, %v4123_v9  ;;  %v4444_v52 = vsel %vm11463_vm2, 0, %v4443_v0  ;;  %v6254_v46 = vshrl.u32 %v6237_v33, 16 }
 0x3cd   : > { %v4191_v6 = vmax.f32 %v4189_v36, %v4190_v51  ;;  %v4118_v29 = vrot.slane %v4117_v5, 2  ;;  %v4131_v13 = vmax.f32 %v4129_v1, %v4130_v38  ;;  %4445 = vst [vmem:[#allocation2 + $0x54] sm:$0x1] %v4444_v52  ;;  %v6257_v15 = vshll.u32 %v6237_v33, 16 }
 0x3ce   : > { %v4112_v17 = vmax.f32 %v4110_v56, %v4111_v50  ;;  %v4125_v2 = vrot.slane %v4124_v41, 2  ;;  %4937 = vst [vmem:[#allocation2 + $0x54] sm:$0x1] %v14093_v35  ;;  %v6256_v30 = vrot.slane %v6254_v46, 4  ;;  %v6268_v22 = vshrl.u32 %v6239_v7, 16 }
 0x3cf   : > { %v4119_v48 = vmax.f32 %v4117_v5, %v4118_v29  ;;  %v4132_v25 = vrot.slane %v4131_v13, 2  ;;  %v6259_v47 = vrot.slane %v6257_v15, 5  ;;  %v6271_v43 = vshll.u32 %v6239_v7, 16  ;;  %v4405_v46 = vld [vmem:[#allocation2 + $0x90] sm:$0x1] }
 0x3d0   : > { %v4113_v21 = vrot.slane %v4112_v17, 1  ;;  %v4126_v34 = vmax.f32 %v4124_v41, %v4125_v2  ;;  %v6270_v27 = vrot.slane %v6268_v22, 4  ;;  %v6277_v26 = vshll.u32 %v6240_v63, 16  ;;  %v4467_v29 = vld [vmem:[#allocation2 + $0x94] sm:$0x1] }
 0x3d1   : > { %v4120_v18 = vrot.slane %v4119_v48, 1  ;;  %v4133_v57 = vmax.f32 %v4131_v13, %v4132_v25  ;;  %v6260_v28 = vor.u32 %v6259_v47, %v6256_v30  ;;  %v6273_v12 = vrot.slane %v6271_v43, 5  ;;  %v6505_v22 = vld [vmem:[#allocation2 + $0x58] sm:$0xf] }
 0x3d2   : > { %v4114_v16 = vmax.f32 %v4112_v17, %v4113_v21  ;;  %v4127_v4 = vrot.slane %v4126_v34, 1  ;;  %v6279_v3 = vrot.slane %v6277_v26, 5  ;;  %v10213_v60 = vrot.slane %v6653_v49, 9  ;;  %v6506_v49 = vld [vmem:[#allocation2 + $0x5c] sm:$0x1] }
 0x3d3   : > { %v4121_v19 = vmax.f32 %v4119_v48, %v4120_v18  ;;  %v4134_v32 = vrot.slane %v4133_v57, 1  ;;  %v6261_v20 = vrot.slane %v6260_v28, 4  ;;  %v6274_v37 = vor.u32 %v6273_v12, %v6270_v27  ;;  %v11147_v27 = vld [vmem:[#allocation2 + $0x50] ss:$8 sps:$4 sm:$0xff]  }
 0x3d4   : > { %v4128_v0 = vmax.f32 %v4126_v34, %v4127_v4  ;;  %v4340_v62 = vmax.f32 %v4114_v16, %v4170_v55  ;;  %v6687_v36 = vrot.slane %v6654_v53, 5  ;;  %v10214_v61 = vrot.slane %v6655_v24, 9 }
 0x3d5   : > { %v4135_v14 = vmax.f32 %v4133_v57, %v4134_v32  ;;  %v4341_v33 = vmax.f32 %v4121_v19, %v4177_v39  ;;  %v6238_v56 = vld [vmem:[#allocation2 + $0x54] sm:$0x1]  ;;  %v6275_v9 = vrot.slane %v6274_v37, 4  ;;  %v6691_v1 = vrot.slane %v6656_v42, 5 }
 0x3d6   : > { %v4342_v51 = vmax.f32 %v4128_v0, %v4184_v10  ;;  %v10507_v5 = vpack.c.bf16 %v4340_v62, %v4340_v62  ;;  %v6263_v38 = vshll.u32 %v6238_v56, 16  ;;  %v6688_v7 = vsel %vm12263_vm12, %v10213_v60, %v6687_v36 }
 0x3d7   : > { %v4343_v50 = vmax.f32 %v4135_v14, %v4191_v6  ;;  %v10508_v41 = vpack.c.bf16 %v4341_v33, %v4341_v33  ;;  %v6280_v52 = vsel %vm12228_vm0, %v6275_v9, %v6279_v3  ;;  %v6692_v55 = vsel %vm12263_vm12, %v10214_v61, %v6691_v1  ;;  %v11329_v6 = vld [vmem:[%s14085_s2] ss:$0 sm:$0xff] }
 0x3d8   : > { %v10509_v39 = vpack.c.bf16 %v4342_v51, %v4342_v51  ;;  %v5253_v13 = vunpack.c.l.b16 %v10507_v5  ;;  %v6265_v63 = vrot.slane %v6263_v38, 5  ;;  %v10221_v15 = vcombine.low %v6688_v7, %v6692_v55 }
 0x3d9   : > { %v10510_v10 = vpack.c.bf16 %v4343_v50, %v4343_v50  ;;  %v5254_v17 = vunpack.c.l.b16 %v10508_v41  ;;  %v952_v2 = vadd.f32 %v12665_v31, %v12641_v8  ;;  %v944_v30 = vadd.f32 %v11329_v6, %v12656_v11 }
 0x3da   : > { %v5255_v48 = vunpack.c.l.b16 %v10509_v39  ;;  %v6266_v25 = vsel %vm12228_vm0, %v6261_v20, %v6265_v63  ;;  %7919 = vmatprep.mubr.bf16.mxu0 %v10221_v15  ;;  %v4406_v47 = vsel %vm11469_vm4, 0, %v4405_v46  ;;  %v4468_v43 = vsel %vm11463_vm2, 0, %v4467_v29 }
 0x3db   : > { %v5256_v8 = vunpack.c.l.b16 %v10510_v10  ;;  %v5303_v31 = vsel %vm4798_vm6, %v5254_v17, %v5253_v13  ;;  %v10189_v21 = vcombine.low %v6266_v25, %v6280_v52  ;;  %v1018_v34 = vmax.f32 %v952_v2, 0.0  ;;  %4407 = vst [vmem:[#allocation2 + $0x90] sm:$0x1] %v4406_v47  ;;  %4469 = vst [vmem:[#allocation2 + $0x94] sm:$0x1] %v4468_v43 }
 0x3dc   : > { %v5304_v11 = vsel %vm4800_vm7, %v5255_v48, %v5303_v31  ;;  %v1016_v26 = vmax.f32 %v944_v30, 0.0  ;;  %v6522_v18 = vshrl.u32 %v6505_v22, 16  ;;  %v6525_v57 = vshll.u32 %v6505_v22, 16 }
 0x3dd   : > { %7725 = vmatprep.mubr.bf16.mxu1 %v10189_v21  ;;  %v2154_v28 = vcombine.high %v1018_v34, %v1018_v34  ;;  %v2161_v12 = vrot.slane %v1018_v34, %v11488_v58  ;;  %v12869_v53 = vsel %vm4802_vm8, %v5256_v8, %v5304_v11  ;;  %v6531_v24 = vshll.u32 %v6506_v49, 16 }
 0x3de   : > { %7726 = vmatmul.mubr.bf16.gmra.mrb[16].mxu1 %v11147_v27  ;;  %v2120_v16 = vcombine.high %v1016_v26, %v1016_v26  ;;  %v2127_v4 = vrot.slane %v1016_v26, %v11488_v58  ;;  %v12872_v3 = vrot.slane %v6522_v18, 4  ;;  %v12874_v42 = vrot.slane %v6525_v57, 5 }
 0x3df   : > { %v2168_v60 = vrot.slane %v2154_v28, %v11488_v58  ;;  %v2169_v19 = vcombine.high %v2161_v12, %v2161_v12  ;;  %v4192_v32 = vsel %vm2427_vm5, %v2161_v12, -inf  ;;  %v12878_v20 = vrot.slane %v6531_v24, 5 }
 0x3e0   : > { %v4193_v37 = vrot.slane %v4192_v32, 4  ;;  %v2134_v0 = vrot.slane %v2120_v16, %v11488_v58  ;;  %v2135_v62 = vcombine.high %v2127_v4, %v2127_v4  ;;  %v4136_v36 = vsel %vm2427_vm5, %v2127_v4, -inf  ;;  %v6507_v4 = vld [vmem:[#allocation2 + $0x60] sm:$0xf] }
 0x3e1   : > { %v2170_v61 = vcombine.high %v2168_v60, %v2168_v60  ;;  %v4199_v14 = vsel %vm2427_vm5, %v2169_v19, -inf  ;;  %v4206_v33 = vsel %vm2427_vm5, %v2168_v60, -inf  ;;  %v4137_v56 = vrot.slane %v4136_v36, 4 }
 0x3e2   : > { %v4194_v9 = vmax.f32 %v4192_v32, %v4193_v37  ;;  %v4200_v1 = vrot.slane %v4199_v14, 4  ;;  %v4207_v51 = vrot.slane %v4206_v33, 4  ;;  %v2136_v5 = vcombine.high %v2134_v0, %v2134_v0 }
 0x3e3   : > { %v4213_v38 = vsel %vm2427_vm5, %v2170_v61, -inf  ;;  %v4138_v7 = vmax.f32 %v4136_v36, %v4137_v56  ;;  %v4143_v50 = vsel %vm2427_vm5, %v2135_v62, -inf  ;;  %v4150_v41 = vsel %vm2427_vm5, %v2134_v0, -inf }
 0x3e4   : > { %v4195_v52 = vrot.slane %v4194_v9, 2  ;;  %v4201_v55 = vmax.f32 %v4199_v14, %v4200_v1  ;;  %v4208_v46 = vmax.f32 %v4206_v33, %v4207_v51  ;;  %v4214_v29 = vrot.slane %v4213_v38, 4  ;;  %v6508_v14 = vld [vmem:[#allocation2 + $0x64] sm:$0x1] }
 0x3e5   : > { %v4139_v39 = vrot.slane %v4138_v7, 2  ;;  %v4144_v13 = vrot.slane %v4143_v50, 4  ;;  %v4151_v63 = vrot.slane %v4150_v41, 4  ;;  %v4157_v15 = vsel %vm2427_vm5, %v2136_v5, -inf }
 0x3e6   : > { %v4196_v10 = vmax.f32 %v4194_v9, %v4195_v52  ;;  %v4202_v17 = vrot.slane %v4201_v55, 2  ;;  %v4209_v2 = vrot.slane %v4208_v46, 2  ;;  %v4215_v6 = vmax.f32 %v4213_v38, %v4214_v29 }
 0x3e7   : > { %v4140_v30 = vmax.f32 %v4138_v7, %v4139_v39  ;;  %v4145_v22 = vmax.f32 %v4143_v50, %v4144_v13  ;;  %v4152_v48 = vmax.f32 %v4150_v41, %v4151_v63  ;;  %v4158_v25 = vrot.slane %v4157_v15, 4  ;;  %v6241_v50 = vld [vmem:[#allocation2 + $0x60] sm:$0xf]  ;;  %v6242_v13 = vld [vmem:[#allocation2 + $0x64] sm:$0x1] }
 0x3e8   : > { %v4197_v47 = vrot.slane %v4196_v10, 1  ;;  %v4203_v43 = vmax.f32 %v4201_v55, %v4202_v17  ;;  %v4210_v49 = vmax.f32 %v4208_v46, %v4209_v2  ;;  %v4216_v8 = vrot.slane %v4215_v6, 2 }
 0x3e9   : > { %v4141_v31 = vrot.slane %v4140_v30, 1  ;;  %v4146_v21 = vrot.slane %v4145_v22, 2  ;;  %v4153_v34 = vrot.slane %v4152_v48, 2  ;;  %v4159_v11 = vmax.f32 %v4157_v15, %v4158_v25 }
 0x3ea   : > { %v4198_v27 = vmax.f32 %v4196_v10, %v4197_v47  ;;  %v4204_v26 = vrot.slane %v4203_v43, 1  ;;  %v4211_v18 = vrot.slane %v4210_v49, 1  ;;  %v4217_v57 = vmax.f32 %v4215_v6, %v4216_v8  ;;  %v6243_v10 = vld [vmem:[#allocation2 + $0x68] sm:$0xf] }
 0x3eb   : > { %v4142_v28 = vmax.f32 %v4140_v30, %v4141_v31  ;;  %v4147_v12 = vmax.f32 %v4145_v22, %v4146_v21  ;;  %v4154_v24 = vmax.f32 %v4152_v48, %v4153_v34  ;;  %v4160_v16 = vrot.slane %v4159_v11, 2  ;;  %v6244_v34 = vld [vmem:[#allocation2 + $0x6c] sm:$0x1] }
 0x3ec   : > { %v4205_v60 = vmax.f32 %v4203_v43, %v4204_v26  ;;  %v4212_v19 = vmax.f32 %v4210_v49, %v4211_v18  ;;  %v4218_v32 = vrot.slane %v4217_v57, 1  ;;  %v6528_v37 = vor.u32 %v12874_v42, %v12872_v3 }
 0x3ed   : > { %v4148_v0 = vrot.slane %v4147_v12, 1  ;;  %v4155_v62 = vrot.slane %v4154_v24, 1  ;;  %v4161_v36 = vmax.f32 %v4159_v11, %v4160_v16  ;;  %v4344_v61 = vmax.f32 %v4142_v28, %v4198_v27  ;;  %v6658_v27 = vld [vmem:[#allocation2 + $0x6c] sm:$0x1] }
 0x3ee   : > { %v4219_v33 = vmax.f32 %v4217_v57, %v4218_v32  ;;  %v6529_v56 = vrot.slane %v6528_v37, 4  ;;  %v6536_v9 = vshrl.u32 %v6507_v4, 16  ;;  %v6539_v1 = vshll.u32 %v6507_v4, 16  ;;  %v6509_v32 = vld [vmem:[#allocation2 + $0x68] sm:$0xf] }
 0x3ef   : > { %v4149_v51 = vmax.f32 %v4147_v12, %v4148_v0  ;;  %v4156_v5 = vmax.f32 %v4154_v24, %v4155_v62  ;;  %v4162_v38 = vrot.slane %v4161_v36, 1  ;;  %v10511_v7 = vpack.c.bf16 %v4344_v61, %v4344_v61  ;;  %v6657_v12 = vld [vmem:[#allocation2 + $0x68] sm:$0xe]  ;;  %v6659_v24 = vld [vmem:[#allocation2 + $0x70] sm:$0xe] }
 0x3f0   : > { %v6534_v41 = vsel %vm12228_vm0, %v6529_v56, %v12878_v20  ;;  %v6538_v52 = vrot.slane %v6536_v9, 4  ;;  %v6541_v3 = vrot.slane %v6539_v1, 5  ;;  %v6545_v42 = vshll.u32 %v6508_v14, 16  ;;  %v5387_v20 = vld [vmem:[#allocation2 + $0x94] sm:$0x1] }
 0x3f1   : > { %v4163_v55 = vmax.f32 %v4161_v36, %v4162_v38  ;;  %v4345_v46 = vmax.f32 %v4149_v51, %v4205_v60  ;;  %v4346_v29 = vmax.f32 %v4156_v5, %v4212_v19  ;;  %v5257_v39 = vunpack.c.l.b16 %v10511_v7  ;;  %v6660_v19 = vld [vmem:[#allocation2 + $0x74] sm:$0x1]  ;;  %v6510_v37 = vld [vmem:[#allocation2 + $0x6c] sm:$0x1]  ;;  %v5384_v62 = vld [vmem:[#allocation2 + $0x90] sm:$0xf] }
 0x3f2   : > { %v6542_v63 = vor.u32 %v6541_v3, %v6538_v52  ;;  %v6547_v15 = vrot.slane %v6545_v42, 5  ;;  %v6282_v17 = vshrl.u32 %v6241_v50, 16  ;;  %v6285_v2 = vshll.u32 %v6241_v50, 16  ;;  %v6511_v51 = vld [vmem:[#allocation2 + $0x70] sm:$0xf]  ;;  %v12901_v5 = vpop.f32.mrb[0].mxu1 }
 0x3f3   : > { %v4347_v6 = vmax.f32 %v4163_v55, %v4219_v33  ;;  %v10512_v30 = vpack.c.bf16 %v4345_v46, %v4345_v46  ;;  %v10513_v22 = vpack.c.bf16 %v4346_v29, %v4346_v29  ;;  %v5306_v48 = vsel %vm4804_vm9, %v5257_v39, %v12869_v53  ;;  %v6512_v52 = vld [vmem:[#allocation2 + $0x74] sm:$0x1]  ;;  %v12909_v39 = vpop.f32.mrb[1].mxu1 }
 0x3f4   : > { %v6543_v25 = vrot.slane %v6542_v63, 4  ;;  %v6284_v47 = vrot.slane %v6282_v17, 4  ;;  %v6287_v43 = vrot.slane %v6285_v2, 5  ;;  %v6291_v49 = vshll.u32 %v6242_v13, 16  ;;  %v6246_v29 = vld [vmem:[#allocation2 + $0x74] sm:$0x1] }
 0x3f5   : > { %v5258_v8 = vunpack.c.l.b16 %v10512_v30  ;;  %v5259_v31 = vunpack.c.l.b16 %v10513_v22  ;;  %v10522_v21 = vpack.c.bf16 %v4347_v6, %v4347_v6  ;;  %v6296_v11 = vshrl.u32 %v6243_v10, 16  ;;  %v6245_v17 = vld [vmem:[#allocation2 + $0x70] sm:$0xf]  ;;  %v12913_v2 = vpop.f32.mrb[2].mxu1 }
 0x3f6   : > { %v6548_v26 = vsel %vm12228_vm0, %v6543_v25, %v6547_v15  ;;  %v6288_v18 = vor.u32 %v6287_v43, %v6284_v47  ;;  %v6293_v57 = vrot.slane %v6291_v49, 5  ;;  %v6299_v28 = vshll.u32 %v6243_v10, 16  ;;  %v11152_v47 = vld [vmem:[#allocation2 + $0x60] ss:$8 sps:$4 sm:$0xff]  }
 0x3f7   : > { %v5307_v53 = vsel %vm4806_vm10, %v5258_v8, %v5306_v48  ;;  %v5388_v16 = vsel %vm11469_vm4, %v10522_v21, %v5387_v20  ;;  %v10209_v4 = vcombine.low %v6534_v41, %v6548_v26  ;;  %v6298_v60 = vrot.slane %v6296_v11, 4  ;;  %v6247_v48 = vld [vmem:[#allocation2 + $0x78] sm:$0xf]  ;;  %v12915_v20 = vpop.f32.mrb[3].mxu1 }
 0x3f8   : > { %v5308_v0 = vsel %vm4808_vm11, %v5259_v31, %v5307_v53  ;;  %5389 = vst [vmem:[#allocation2 + $0x94] sm:$0x1] %v5388_v16  ;;  %v6289_v36 = vrot.slane %v6288_v18, 4  ;;  %v6301_v61 = vrot.slane %v6299_v28, 5  ;;  %v6305_v14 = vshll.u32 %v6244_v34, 16 }
 0x3f9   : > { %v5323_v33 = vpack.c.b16 %v5308_v0, %v5308_v0  ;;  %7920 = vmatmul.mubr.bf16.gmra.mrb[80].mxu0 %v10209_v4  ;;  %v10215_v56 = vrot.slane %v6657_v12, 9  ;;  %v6695_v9 = vrot.slane %v6658_v27, 5  ;;  %v10216_v1 = vrot.slane %v6659_v24, 9  ;;  %v6248_v31 = vld [vmem:[#allocation2 + $0x7c] sm:$0x1] }
 0x3fa   : > { %v6294_v38 = vsel %vm12228_vm0, %v6289_v36, %v6293_v57  ;;  %v6302_v7 = vor.u32 %v6301_v61, %v6298_v60  ;;  %v6307_v50 = vrot.slane %v6305_v14, 5  ;;  %v6699_v41 = vrot.slane %v6660_v19, 5  ;;  %v6661_v26 = vld [vmem:[#allocation2 + $0x78] sm:$0xe]  ;;  %v6662_v18 = vld [vmem:[#allocation2 + $0x7c] sm:$0x1] }
 0x3fb   : > { %v5385_v3 = vsel %vm11616_vm13, %v5323_v33, %v5384_v62  ;;  %v6696_v42 = vsel %vm12263_vm12, %v10215_v56, %v6695_v9  ;;  %v6550_v55 = vshrl.u32 %v6509_v32, 16  ;;  %v6553_v46 = vshll.u32 %v6509_v32, 16  ;;  %v6513_v53 = vld [vmem:[#allocation2 + $0x78] sm:$0xf]  ;;  %v6663_v32 = vld [vmem:[#allocation2 + $0x80] sm:$0xe] }
 0x3fc   : > { %5386 = vst [vmem:[#allocation2 + $0x90] sm:$0xf] %v5385_v3  ;;  %v6303_v13 = vrot.slane %v6302_v7, 4  ;;  %v6700_v63 = vsel %vm12263_vm12, %v10216_v1, %v6699_v41  ;;  %v6559_v15 = vshll.u32 %v6510_v37, 16  ;;  %v6564_v10 = vshrl.u32 %v6511_v51, 16  ;;  %v12919_v37 = vpop.f32.mrb[64].mxu0 }
 0x3fd   : > { %v10222_v23 = vcombine.low %v6696_v42, %v6700_v63  ;;  %v6552_v6 = vrot.slane %v6550_v55, 4  ;;  %v6555_v30 = vrot.slane %v6553_v46, 5  ;;  %v6567_v22 = vshll.u32 %v6511_v51, 16  ;;  %v6664_v14 = vld [vmem:[#allocation2 + $0x84] sm:$0x1]  ;;  %v12923_v51 = vpop.f32.mrb[65].mxu0 }
 0x3fe   : > { %v6308_v25 = vsel %vm12228_vm0, %v6303_v13, %v6307_v50  ;;  %v6561_v43 = vrot.slane %v6559_v15, 5  ;;  %v6566_v49 = vrot.slane %v6564_v10, 4  ;;  %v6573_v8 = vshll.u32 %v6512_v52, 16  ;;  %v6514_v52 = vld [vmem:[#allocation2 + $0x7c] sm:$0x1]  ;;  %v12925_v3 = vpop.f32.mrb[66].mxu0 }
 0x3ff   : > { %v10190_v21 = vcombine.low %v6294_v38, %v6308_v25  ;;  %7927 = vmatprep.mubr.bf16.mxu0 %v10222_v23  ;;  %v6556_v34 = vor.u32 %v6555_v30, %v6552_v6  ;;  %v6569_v11 = vrot.slane %v6567_v22, 5  ;;  %v6310_v27 = vshrl.u32 %v6245_v17, 16  ;;  %v6249_v25 = vld [vmem:[#allocation2 + $0x80] sm:$0xf] }
 0x400   : > { %v6575_v57 = vrot.slane %v6573_v8, 5  ;;  %v6313_v28 = vshll.u32 %v6245_v17, 16  ;;  %v6319_v12 = vshll.u32 %v6246_v29, 16  ;;  %v6324_v24 = vshrl.u32 %v6247_v48, 16  ;;  %v6515_v29 = vld [vmem:[#allocation2 + $0x80] sm:$0xf] }
 0x401   : > { %7733 = vmatprep.mubr.bf16.mxu1 %v10190_v21  ;;  %v6557_v16 = vrot.slane %v6556_v34, 4  ;;  %v6570_v4 = vor.u32 %v6569_v11, %v6566_v49  ;;  %v6312_v60 = vrot.slane %v6310_v27, 4  ;;  %v6327_v19 = vshll.u32 %v6247_v48, 16  ;;  %v6516_v17 = vld [vmem:[#allocation2 + $0x84] sm:$0x1] }
 0x402   : > { %7734 = vmatmul.mubr.bf16.gmra.mrb[20].mxu1 %v11152_v47  ;;  %v6315_v0 = vrot.slane %v6313_v28, 5  ;;  %v6321_v62 = vrot.slane %v6319_v12, 5  ;;  %v6326_v36 = vrot.slane %v6324_v24, 4  ;;  %v6333_v61 = vshll.u32 %v6248_v31, 16  ;;  %v12933_v47 = vpop.f32.mrb[67].mxu0  ;;  %v12939_v12 = vpop.f32.mrb[4].mxu1 }
 0x403   : > { %v6562_v33 = vsel %vm12228_vm0, %v6557_v16, %v6561_v43  ;;  %v6571_v56 = vrot.slane %v6570_v4, 4  ;;  %v6329_v9 = vrot.slane %v6327_v19, 5  ;;  %v10217_v1 = vrot.slane %v6661_v26, 9  ;;  %v6250_v21 = vld [vmem:[#allocation2 + $0x84] sm:$0x1] }
 0x404   : > { %v6316_v38 = vor.u32 %v6315_v0, %v6312_v60  ;;  %v6335_v7 = vrot.slane %v6333_v61, 5  ;;  %v6703_v50 = vrot.slane %v6662_v18, 5  ;;  %v10218_v41 = vrot.slane %v6663_v32, 9  ;;  %v6252_v34 = vld [vmem:[#allocation2 + $0x8c] sm:$0x1] }
 0x405   : > { %v6576_v42 = vsel %vm12228_vm0, %v6571_v56, %v6575_v57  ;;  %v6330_v55 = vor.u32 %v6329_v9, %v6326_v36  ;;  %v6707_v46 = vrot.slane %v6664_v14, 5  ;;  %v6578_v13 = vshrl.u32 %v6513_v53, 16  ;;  %v11158_v27 = vld [vmem:[#allocation2 + $0x70] ss:$8 sps:$4 sm:$0xff]   ;;  %v6251_v28 = vld [vmem:[#allocation2 + $0x88] sm:$0xf] }
 0x406   : > { %v10210_v63 = vcombine.low %v6562_v33, %v6576_v42  ;;  %v6317_v15 = vrot.slane %v6316_v38, 4  ;;  %v6704_v10 = vsel %vm12263_vm12, %v10217_v1, %v6703_v50  ;;  %v6581_v23 = vshll.u32 %v6513_v53, 16  ;;  %v6665_v60 = vld [vmem:[#allocation2 + $0x88] sm:$0xe]  ;;  %v6666_v19 = vld [vmem:[#allocation2 + $0x8c] sm:$0x1] }
 0x407   : > { %v6331_v6 = vrot.slane %v6330_v55, 4  ;;  %v6708_v30 = vsel %vm12263_vm12, %v10218_v41, %v6707_v46  ;;  %v6580_v22 = vrot.slane %v6578_v13, 4  ;;  %v6587_v48 = vshll.u32 %v6514_v52, 16  ;;  %v6668_v61 = vld [vmem:[#allocation2 + $0x94] sm:$0x1]  ;;  %v12941_v33 = vpop.f32.mrb[5].mxu1 }
 0x408   : > { %7928 = vmatmul.mubr.bf16.gmra.mrb[84].mxu0 %v10210_v63  ;;  %v6322_v43 = vsel %vm12228_vm0, %v6317_v15, %v6321_v62  ;;  %v10223_v49 = vcombine.low %v6704_v10, %v6708_v30  ;;  %v6583_v8 = vrot.slane %v6581_v23, 5  ;;  %v6592_v31 = vshrl.u32 %v6515_v29, 16  ;;  %v6517_v14 = vld [vmem:[#allocation2 + $0x88] sm:$0xf]  ;;  %v6667_v55 = vld [vmem:[#allocation2 + $0x90] sm:$0xe] }
 0x409   : > { %v6336_v11 = vsel %vm12228_vm0, %v6331_v6, %v6335_v7  ;;  %v6589_v26 = vrot.slane %v6587_v48, 5  ;;  %v6595_v18 = vshll.u32 %v6515_v29, 16  ;;  %v6601_v57 = vshll.u32 %v6516_v17, 16  ;;  %v12943_v7 = vpop.f32.mrb[6].mxu1 }
 0x40a   : > { %v10191_v24 = vcombine.low %v6322_v43, %v6336_v11  ;;  %7935 = vmatprep.mubr.bf16.mxu0 %v10223_v49  ;;  %v6584_v53 = vor.u32 %v6583_v8, %v6580_v22  ;;  %v6594_v16 = vrot.slane %v6592_v31, 4  ;;  %v6338_v4 = vshrl.u32 %v6249_v25, 16  ;;  %v12945_v46 = vpop.f32.mrb[7].mxu1  ;;  %v12953_v11 = vpop.f32.mrb[68].mxu0 }
 0x40b   : > { %v6597_v32 = vrot.slane %v6595_v18, 5  ;;  %v6603_v0 = vrot.slane %v6601_v57, 5  ;;  %v6341_v62 = vshll.u32 %v6249_v25, 16  ;;  %v6347_v36 = vshll.u32 %v6250_v21, 16  ;;  %v6520_v25 = vld [vmem:[#allocation2 + $0x94] sm:$0x1] }
 0x40c   : > { %7741 = vmatprep.mubr.bf16.mxu1 %v10191_v24  ;;  %v6585_v56 = vrot.slane %v6584_v53, 4  ;;  %v6340_v9 = vrot.slane %v6338_v4, 4  ;;  %v6352_v1 = vshrl.u32 %v6251_v28, 16  ;;  %v6355_v38 = vshll.u32 %v6251_v28, 16  ;;  %v6519_v21 = vld [vmem:[#allocation2 + $0x90] sm:$0xf] }
 0x40d   : > { %7742 = vmatmul.mubr.bf16.gmra.mrb[24].mxu1 %v11158_v27  ;;  %v6598_v50 = vor.u32 %v6597_v32, %v6594_v16  ;;  %v6343_v41 = vrot.slane %v6341_v62, 5  ;;  %v6349_v52 = vrot.slane %v6347_v36, 5  ;;  %v6361_v42 = vshll.u32 %v6252_v34, 16  ;;  %v5577_v28 = vld [vmem:[#allocation2] sm:$0xe]  ;;  %v12957_v24 = vpop.f32.mrb[69].mxu0 }
 0x40e   : > { %v6590_v29 = vsel %vm12228_vm0, %v6585_v56, %v6589_v26  ;;  %v6354_v13 = vrot.slane %v6352_v1, 4  ;;  %v6357_v63 = vrot.slane %v6355_v38, 5  ;;  %v10219_v15 = vrot.slane %v6665_v60, 9  ;;  %v6518_v4 = vld [vmem:[#allocation2 + $0x8c] sm:$0x1]  ;;  %v12961_v32 = vpop.f32.mrb[70].mxu0 }
 0x40f   : > { %v6599_v10 = vrot.slane %v6598_v50, 4  ;;  %v6344_v17 = vor.u32 %v6343_v41, %v6340_v9  ;;  %v6363_v23 = vrot.slane %v6361_v42, 5  ;;  %v6711_v6 = vrot.slane %v6666_v19, 5  ;;  %v5578_v19 = vld [vmem:[#allocation2 + $0x4] sm:$0x1]  ;;  %v12965_v9 = vpop.f32.mrb[71].mxu0 }
 0x410   : > { %v6358_v30 = vor.u32 %v6357_v63, %v6354_v13  ;;  %v10220_v22 = vrot.slane %v6667_v55, 9  ;;  %v6715_v48 = vrot.slane %v6668_v61, 5  ;;  %v6606_v43 = vshrl.u32 %v6517_v14, 16  ;;  %v5580_v56 = vld [vmem:[#allocation2 + $0xc] sm:$0x1] }
 0x411   : > { %v6604_v49 = vsel %vm12228_vm0, %v6599_v10, %v6603_v0  ;;  %v6345_v8 = vrot.slane %v6344_v17, 4  ;;  %v6712_v31 = vsel %vm12263_vm12, %v10219_v15, %v6711_v6  ;;  %v6609_v34 = vshll.u32 %v6517_v14, 16  ;;  %v5579_v14 = vld [vmem:[#allocation2 + $0x8] sm:$0xe]  ;;  %v6117_v50 = vld [vmem:[#allocation2 + $0x10] sm:$0xe] }
 0x412   : > { %v10211_v27 = vcombine.low %v6590_v29, %v6604_v49  ;;  %v6359_v26 = vrot.slane %v6358_v30, 4  ;;  %v6716_v18 = vsel %vm12263_vm12, %v10220_v22, %v6715_v48  ;;  %v6608_v57 = vrot.slane %v6606_v43, 4  ;;  %v6119_v41 = vld [vmem:[#allocation2 + $0x18] sm:$0xe]  ;;  %v11167_v42 = vld [vmem:[#allocation2 + $0x80] ss:$8 sps:$4 sm:$0xff]  }
 0x413   : > { %v6350_v53 = vsel %vm12228_vm0, %v6345_v8, %v6349_v52  ;;  %v10224_v16 = vcombine.low %v6712_v31, %v6716_v18  ;;  %v6611_v60 = vrot.slane %v6609_v34, 5  ;;  %v6620_v62 = vshrl.u32 %v6519_v21, 16  ;;  %v6120_v52 = vld [vmem:[#allocation2 + $0x1c] sm:$0x1]  ;;  %v11169_v63 = vld [vmem:[#allocation2 + $0x8] ss:$8 sps:$4 sm:$0xff]  }
 0x414   : > { %7936 = vmatmul.mubr.bf16.gmra.mrb[88].mxu0 %v10211_v27  ;;  %v6364_v0 = vsel %vm12228_vm0, %v6359_v26, %v6363_v23  ;;  %v6623_v36 = vshll.u32 %v6519_v21, 16  ;;  %v6629_v61 = vshll.u32 %v6520_v25, 16  ;;  %v6615_v55 = vshll.u32 %v6518_v4, 16  ;;  %v6118_v22 = vld [vmem:[#allocation2 + $0x14] sm:$0x1]  ;;  %v12967_v25 = vpop.f32.mrb[8].mxu1 }
 0x415   : > { %v10192_v1 = vcombine.low %v6350_v53, %v6364_v0  ;;  %7943 = vmatprep.mubr.bf16.mxu0 %v10224_v16  ;;  %v6612_v38 = vor.u32 %v6611_v60, %v6608_v57  ;;  %v6622_v29 = vrot.slane %v6620_v62, 4  ;;  %v10133_v15 = vrot.slane %v5577_v28, 9  ;;  %v12969_v31 = vpop.f32.mrb[9].mxu1  ;;  %v6123_v27 = vld [vmem:[#allocation2 + $0x28] sm:$0xe] }
 0x416   : > { %v6625_v13 = vrot.slane %v6623_v36, 5  ;;  %v5614_v10 = vrot.slane %v5578_v19, 5  ;;  %v10134_v17 = vrot.slane %v5579_v14, 9  ;;  %v6631_v30 = vrot.slane %v6629_v61, 5  ;;  %v12971_v26 = vpop.f32.mrb[10].mxu1  ;;  %v11173_v36 = vld [vmem:[%s14086_s3 + $0x180] sm:$0xff]  }
 0x417   : > { %7749 = vmatprep.mubr.bf16.mxu1 %v10192_v1  ;;  %v6613_v23 = vrot.slane %v6612_v38, 4  ;;  %v10174_v48 = vrot.slane %v6119_v41, 9  ;;  %v5618_v43 = vrot.slane %v5580_v56, 5  ;;  %v10173_v49 = vrot.slane %v6117_v50, 9  ;;  %v6121_v16 = vld [vmem:[#allocation2 + $0x20] sm:$0xe] }
 0x418   : > { %7750 = vmatmul.mubr.bf16.gmra.mrb[28].mxu1 %v11167_v42  ;;  %v6626_v6 = vor.u32 %v6625_v13, %v6622_v29  ;;  %v6155_v8 = vrot.slane %v6120_v52, 5  ;;  %v6617_v21 = vrot.slane %v6615_v55, 5  ;;  %v5615_v18 = vsel %vm12263_vm12, %v10133_v15, %v5614_v10  ;;  %v6124_v4 = vld [vmem:[#allocation2 + $0x2c] sm:$0x1]  ;;  %v5583_v60 = vld [vmem:[#allocation2 + $0x18] sm:$0xe] }
 0x419   : > { %7790 = vmatprep.mubr.bf16.mxu1 %v11169_v63  ;;  %v5619_v57 = vsel %vm12263_vm12, %v10134_v17, %v5618_v43  ;;  %v6151_v28 = vrot.slane %v6118_v22, 5  ;;  %v12979_v19 = vpop.f32.mrb[11].mxu1  ;;  %v5581_v61 = vld [vmem:[#allocation2 + $0x10] sm:$0xe]  ;;  %v6127_v14 = vld [vmem:[#allocation2 + $0x38] sm:$0xe] }
 0x41a   : > { %v6627_v34 = vrot.slane %v6626_v6, 4  ;;  %v6156_v53 = vsel %vm12263_vm12, %v10174_v48, %v6155_v8  ;;  %v6618_v0 = vsel %vm12228_vm0, %v6613_v23, %v6617_v21  ;;  %v4378_v56 = vld [vmem:[#allocation2 + $0x48] sm:$0x1]  ;;  %v11174_v41 = vld [vmem:[#allocation2 + $0x18] ss:$8 sps:$4 sm:$0xff]   ;;  %v10141_v13 = vcombine.low %v5615_v18, %v5619_v57 }
 0x41b   : > { %v6152_v50 = vsel %vm12263_vm12, %v10173_v49, %v6151_v28  ;;  %v11176_v52 = vld [vmem:[%s14086_s3 + $0x1c8] sm:$0xff]   ;;  %v5584_v42 = vld [vmem:[#allocation2 + $0x1c] sm:$0x1]  ;;  %v10176_v15 = vrot.slane %v6123_v27, 9  ;;  %v5582_v10 = vld [vmem:[#allocation2 + $0x14] sm:$0x1] }
 0x41c   : > { %v6632_v62 = vsel %vm12228_vm0, %v6627_v34, %v6631_v30  ;;  %v12988_v1 = vpop.f32.mrb[72].mxu0  ;;  %v4440_v55 = vld [vmem:[#allocation2 + $0x4c] sm:$0x1]  ;;  %v10181_v63 = vcombine.low %v6152_v50, %v6156_v53  ;;  %v6125_v17 = vld [vmem:[#allocation2 + $0x30] sm:$0xe]  ;;  %v10136_v22 = vrot.slane %v5583_v60, 9 }
 0x41d   : > { %v10212_v38 = vcombine.low %v6618_v0, %v6632_v62  ;;  %v12995_v29 = vpop.f32.mrb[73].mxu0  ;;  %v6128_v23 = vld [vmem:[#allocation2 + $0x3c] sm:$0x1]  ;;  %v6122_v30 = vld [vmem:[#allocation2 + $0x24] sm:$0x1]  ;;  %v10178_v48 = vrot.slane %v6127_v14, 9 }
 0x41e   : > { %v12997_v6 = vpop.f32.mrb[74].mxu0  ;;  %v4379_v43 = vsel %vm11469_vm4, 0, %v4378_v56  ;;  %v10175_v8 = vrot.slane %v6121_v16, 9  ;;  %v6163_v21 = vrot.slane %v6124_v4, 5  ;;  %v6126_v34 = vld [vmem:[#allocation2 + $0x34] sm:$0x1] }
 0x41f   : > { %7944 = vmatmul.mubr.bf16.gmra.mrb[92].mxu0 %v10212_v38  ;;  %v13001_v49 = vpop.f32.mrb[75].mxu0  ;;  %4380 = vst [vmem:[#allocation2 + $0x48] sm:$0x1] %v4379_v43  ;;  %v4441_v27 = vsel %vm11463_vm2, 0, %v4440_v55  ;;  %v10135_v18 = vrot.slane %v5581_v61, 9  ;;  %v5626_v57 = vrot.slane %v5584_v42, 5 }
 0x420   : > { %7791 = vmatmul.mubr.bf16.vlgmr.msra.gmra.mrb[32].mxu1 %v10141_v13  ;;  %11010 = vmatprep.mubr.bf16.mxu0 %v10181_v63  ;;  %v11177_v28 = vld [vmem:[%s14086_s3 + $0x188] sm:$0xff]   ;;  %v10177_v53 = vrot.slane %v6125_v17, 9  ;;  %v6171_v60 = vrot.slane %v6128_v23, 5  ;;  %4442 = vst [vmem:[#allocation2 + $0x4c] sm:$0x1] %v4441_v27  ;;  %v6159_v16 = vrot.slane %v6122_v30, 5  ;;  %v6164_v4 = vsel %vm12263_vm12, %v10176_v15, %v6163_v21 }
 0x421   : > { %10819 = vmatpush3.bf16.msra.mxu1 %v11173_v36  ;;  %7798 = vmatprep.mubr.bf16.mxu1 %v11174_v41  ;;  %4476 = vst [vmem:[#allocation2 + $0x48] sm:$0xf] %v14093_v35  ;;  %v11179_v0 = vld [vmem:[%s14086_s3 + $0x1d0] sm:$0xff]   ;;  %4477 = vst [vmem:[#allocation2 + $0x4c] sm:$0x1] %v14093_v35  ;;  %v5622_v62 = vrot.slane %v5582_v10, 5  ;;  %v5627_v36 = vsel %vm12263_vm12, %v10136_v22, %v5626_v57 }
 0x422   : > { %10820 = vmatprep.subr.bf16.mxu1 %v11176_v52  ;;  %v6167_v61 = vrot.slane %v6126_v34, 5  ;;  %v6172_v14 = vsel %vm12263_vm12, %v10178_v48, %v6171_v60  ;;  %v6129_v56 = vld [vmem:[#allocation2 + $0x40] sm:$0xe]  ;;  %v6160_v38 = vsel %vm12263_vm12, %v10175_v8, %v6159_v16  ;;  %v6130_v50 = vld [vmem:[#allocation2 + $0x44] sm:$0x1]  ;;  %v11180_v17 = vld [vmem:[%s14086_s3 + $0x190] sm:$0xff]  }
 0x423   : > { %v5587_v41 = vld [vmem:[#allocation2 + $0x28] sm:$0xe]  ;;  %v10182_v42 = vcombine.low %v6160_v38, %v6164_v4  ;;  %v5623_v55 = vsel %vm12263_vm12, %v10135_v18, %v5622_v62  ;;  %v5585_v15 = vld [vmem:[#allocation2 + $0x20] sm:$0xe]  ;;  %v5588_v10 = vld [vmem:[#allocation2 + $0x2c] sm:$0x1] }
 0x424   : > { %v6924_v52 = vld [vmem:[#allocation2 + $0x68] sm:$0xe]  ;;  %v6168_v13 = vsel %vm12263_vm12, %v10177_v53, %v6167_v61  ;;  %v10142_v23 = vcombine.low %v5623_v55, %v5627_v36  ;;  %v10179_v22 = vrot.slane %v6129_v56, 9  ;;  %v6922_v48 = vld [vmem:[#allocation2 + $0x60] sm:$0xe]  ;;  %v11182_v8 = vld [vmem:[%s14086_s3 + $0x1d8] sm:$0xff]  }
 0x425   : > { %10821 = vmatpush3.bf16.msra.mxu1 %v11177_v28  ;;  %v11178_v63 = vld [vmem:[#allocation2 + $0x28] ss:$8 sps:$4 sm:$0xff]   ;;  %v10183_v30 = vcombine.low %v6168_v13, %v6172_v14  ;;  %v6925_v43 = vld [vmem:[#allocation2 + $0x6c] sm:$0x1]  ;;  %v5586_v21 = vld [vmem:[#allocation2 + $0x24] sm:$0x1] }
 0x426   : > { %10822 = vmatprep.subr.bf16.mxu1 %v11179_v0  ;;  %v10138_v34 = vrot.slane %v5587_v41, 9  ;;  %v6923_v27 = vld [vmem:[#allocation2 + $0x64] sm:$0x1]  ;;  %v10234_v18 = vrot.slane %v6924_v52, 9  ;;  %v6175_v28 = vrot.slane %v6130_v50, 5  ;;  %v10137_v53 = vrot.slane %v5585_v15, 9 }
 0x427   : > { %11011 = vmatmul.mubr.bf16.vlgmr.msra.gmra.mrb[96].mxu0 %v10182_v42  ;;  %v6928_v60 = vld [vmem:[#allocation2 + $0x78] sm:$0xe]  ;;  %v5634_v62 = vrot.slane %v5588_v10, 5  ;;  %v10233_v36 = vrot.slane %v6922_v48, 9  ;;  %v6960_v61 = vrot.slane %v6925_v43, 5  ;;  %v11185_v41 = vld [vmem:[%s14086_s3 + $0x1e0] sm:$0xff]  }
 0x428   : > { %7799 = vmatmul.mubr.bf16.gmra.mrb[36].mxu1 %v10142_v23  ;;  %11014 = vmatprep.mubr.bf16.mxu0 %v10183_v30  ;;  %v6131_v57 = vld [vmem:[#allocation2 + $0x48] sm:$0xe]  ;;  %v11183_v16 = vld [vmem:[%s14086_s3 + $0x198] sm:$0xff]   ;;  %v6132_v4 = vld [vmem:[#allocation2 + $0x4c] sm:$0x1]  ;;  %v6176_v56 = vsel %vm12263_vm12, %v10179_v22, %v6175_v28  ;;  %v5630_v52 = vrot.slane %v5586_v21, 5 }
 0x429   : > { %7806 = vmatprep.mubr.bf16.mxu1 %v11178_v63  ;;  %v10180_v0 = vrot.slane %v6131_v57, 9  ;;  %10823 = vmatpush3.bf16.msra.mxu1 %v11180_v17  ;;  %v6926_v14 = vld [vmem:[#allocation2 + $0x70] sm:$0xe]  ;;  %v6179_v38 = vrot.slane %v6132_v4, 5  ;;  %v6929_v50 = vld [vmem:[#allocation2 + $0x7c] sm:$0x1]  ;;  %v5635_v42 = vsel %vm12263_vm12, %v10138_v34, %v5634_v62  ;;  %v6961_v13 = vsel %vm12263_vm12, %v10234_v18, %v6960_v61 }
 0x42a   : > { %10824 = vmatprep.subr.bf16.mxu1 %v11182_v8  ;;  %v6956_v55 = vrot.slane %v6923_v27, 5  ;;  %v6927_v63 = vld [vmem:[#allocation2 + $0x74] sm:$0x1]  ;;  %v5589_v15 = vld [vmem:[#allocation2 + $0x30] sm:$0xe]  ;;  %v5631_v43 = vsel %vm12263_vm12, %v10137_v53, %v5630_v52  ;;  %v10236_v21 = vrot.slane %v6928_v60, 9 }
 0x42b   : > { %v4408_v10 = vld [vmem:[#allocation2 + $0x98] sm:$0x1]  ;;  %v6180_v17 = vsel %vm12263_vm12, %v10180_v0, %v6179_v38  ;;  %v5591_v23 = vld [vmem:[#allocation2 + $0x38] sm:$0xe]  ;;  %v6932_v30 = vld [vmem:[#allocation2 + $0x88] sm:$0xe]  ;;  %v10143_v57 = vcombine.low %v5631_v43, %v5635_v42 }
 0x42c   : > { %v4470_v22 = vld [vmem:[#allocation2 + $0x9c] sm:$0x1]  ;;  %v10184_v48 = vcombine.low %v6176_v56, %v6180_v17  ;;  %v6957_v8 = vsel %vm12263_vm12, %v10233_v36, %v6956_v55  ;;  %v6930_v27 = vld [vmem:[#allocation2 + $0x80] sm:$0xe]  ;;  %v10235_v4 = vrot.slane %v6926_v14, 9  ;;  %v11188_v53 = vld [vmem:[%s14086_s3 + $0x1e8] sm:$0xff]  }
 0x42d   : > { %v5592_v34 = vld [vmem:[#allocation2 + $0x3c] sm:$0x1]  ;;  %10825 = vmatpush3.bf16.msra.mxu1 %v11183_v16  ;;  %v11186_v18 = vld [vmem:[%s14086_s3 + $0x1a0] sm:$0xff]   ;;  %v10241_v28 = vcombine.low %v6957_v8, %v6961_v13  ;;  %v6933_v0 = vld [vmem:[#allocation2 + $0x8c] sm:$0x1]  ;;  %v4409_v62 = vsel %vm11469_vm4, 0, %v4408_v10 }
 0x42e   : > { %10826 = vmatprep.subr.bf16.mxu1 %v11185_v41  ;;  %v11181_v60 = vld [vmem:[#allocation2 + $0x38] ss:$8 sps:$4 sm:$0xff]   ;;  %v6968_v16 = vrot.slane %v6929_v50, 5  ;;  %v10140_v36 = vrot.slane %v5591_v23, 9  ;;  %v10238_v61 = vrot.slane %v6932_v30, 9  ;;  %v4471_v56 = vsel %vm11463_vm2, 0, %v4470_v22 }
 0x42f   : > { %11015 = vmatmul.mubr.bf16.gmra.mrb[100].mxu0 %v10184_v48  ;;  %4410 = vst [vmem:[#allocation2 + $0x98] sm:$0x1] %v4409_v62  ;;  %v6964_v14 = vrot.slane %v6927_v63, 5  ;;  %v5590_v38 = vld [vmem:[#allocation2 + $0x34] sm:$0x1]  ;;  %v10139_v41 = vrot.slane %v5589_v15, 9 }
 0x430   : > { %7807 = vmatmul.mubr.bf16.gmra.mrb[40].mxu1 %v10143_v57  ;;  %11018 = vmatprep.mubr.bf16.mxu0 %v10241_v28  ;;  %v6931_v52 = vld [vmem:[#allocation2 + $0x84] sm:$0x1]  ;;  %4472 = vst [vmem:[#allocation2 + $0x9c] sm:$0x1] %v4471_v56  ;;  %4939 = vst [vmem:[#allocation2 + $0x98] sm:$0xf] %v14093_v35  ;;  %v6969_v44 = vsel %vm12263_vm12, %v10236_v21, %v6968_v16 }
 0x431   : > { %7814 = vmatprep.mubr.bf16.mxu1 %v11181_v60  ;;  %v5642_v50 = vrot.slane %v5592_v34, 5  ;;  %v10237_v42 = vrot.slane %v6930_v27, 9  ;;  %v6976_v55 = vrot.slane %v6933_v0, 5  ;;  %10827 = vmatpush3.bf16.msra.mxu1 %v11186_v18  ;;  %4940 = vst [vmem:[#allocation2 + $0x9c] sm:$0x1] %v14093_v35  ;;  %v6965_v13 = vsel %vm12263_vm12, %v10235_v4, %v6964_v14  ;;  %v11191_v10 = vld [vmem:[%s14086_s3 + $0x1f0] sm:$0xff]  }
 0x432   : > { %10828 = vmatprep.subr.bf16.mxu1 %v11188_v53  ;;  %v6934_v63 = vld [vmem:[#allocation2 + $0x90] sm:$0xe]  ;;  %v6935_v15 = vld [vmem:[#allocation2 + $0x94] sm:$0x1]  ;;  %v5638_v17 = vrot.slane %v5590_v38, 5  ;;  %v6972_v30 = vrot.slane %v6931_v52, 5  ;;  %v10242_v48 = vcombine.low %v6965_v13, %v6969_v44 }
 0x433   : > { %v5643_v23 = vsel %vm12263_vm12, %v10140_v36, %v5642_v50  ;;  %v6977_v22 = vsel %vm12263_vm12, %v10238_v61, %v6976_v55  ;;  %v6385_v43 = vld [vmem:[#allocation2 + $0x50] sm:$0xe]  ;;  %v6386_v8 = vld [vmem:[#allocation2 + $0x54] sm:$0x1]  ;;  %v6387_v21 = vld [vmem:[#allocation2 + $0x58] sm:$0xe] }
 0x434   : > { %v5639_v34 = vsel %vm12263_vm12, %v10139_v41, %v5638_v17  ;;  %v6973_v27 = vsel %vm12263_vm12, %v10237_v42, %v6972_v30  ;;  %v10239_v18 = vrot.slane %v6934_v63, 9  ;;  %v6980_v57 = vrot.slane %v6935_v15, 5  ;;  %v11192_v28 = vld [vmem:[%s14086_s3 + $0x1b0] sm:$0xff]   ;;  %v11184_v53 = vld [vmem:[#allocation2 + $0x58] ss:$8 sps:$4 sm:$0xff]  }
 0x435   : > { %10829 = vmatpush3.bf16.msra.mxu1 %v11189_v40  ;;  %v10144_v4 = vcombine.low %v5639_v34, %v5643_v23  ;;  %v10243_v0 = vcombine.low %v6973_v27, %v6977_v22  ;;  %v6388_v62 = vld [vmem:[#allocation2 + $0x5c] sm:$0x1]  ;;  %v10193_v16 = vrot.slane %v6385_v43, 9  ;;  %v6419_v36 = vrot.slane %v6386_v8, 5  ;;  %v6391_v13 = vld [vmem:[#allocation2 + $0x68] sm:$0xe] }
 0x436   : > { %10830 = vmatprep.subr.bf16.mxu1 %v11191_v10  ;;  %v11194_v60 = vld [vmem:[%s14086_s3 + $0x1f8] sm:$0xff]   ;;  %v10194_v61 = vrot.slane %v6387_v21, 9  ;;  %v6423_v41 = vrot.slane %v6388_v62, 5  ;;  %v6981_v52 = vsel %vm12263_vm12, %v10239_v18, %v6980_v57  ;;  %v6389_v10 = vld [vmem:[#allocation2 + $0x60] sm:$0xe]  ;;  %v10196_v30 = vrot.slane %v6391_v13, 9 }
 0x437   : > { %11019 = vmatmul.mubr.bf16.gmra.mrb[104].mxu0 %v10242_v48  ;;  %v6936_v56 = vld [vmem:[#allocation2 + $0x98] sm:$0xe]  ;;  %v6420_v42 = vsel %vm12263_vm12, %v10193_v16, %v6419_v36  ;;  %v6392_v17 = vld [vmem:[#allocation2 + $0x6c] sm:$0x1]  ;;  %v11187_v23 = vld [vmem:[#allocation2 + $0x68] ss:$8 sps:$4 sm:$0xff]  }
 0x438   : > { %7815 = vmatmul.mubr.bf16.gmra.mrb[44].mxu1 %v10144_v4  ;;  %11022 = vmatprep.mubr.bf16.mxu0 %v10243_v0  ;;  %v6937_v14 = vld [vmem:[#allocation2 + $0x9c] sm:$0x1]  ;;  %v10240_v38 = vrot.slane %v6936_v56, 9  ;;  %v6424_v55 = vsel %vm12263_vm12, %v10194_v61, %v6423_v41  ;;  %v6390_v22 = vld [vmem:[#allocation2 + $0x64] sm:$0x1]  ;;  %v10195_v48 = vrot.slane %v6389_v10, 9 }
 0x439   : > { %7822 = vmatprep.mubr.bf16.mxu1 %v11184_v53  ;;  %v6984_v44 = vrot.slane %v6937_v14, 5  ;;  %10831 = vmatpush3.bf16.msra.mxu1 %v11192_v28  ;;  %v11195_v50 = vld [vmem:[%s14086_s3 + $0x1b8] sm:$0xff]   ;;  %v10201_v15 = vcombine.low %v6420_v42, %v6424_v55  ;;  %v6431_v43 = vrot.slane %v6392_v17, 5  ;;  %v6427_v21 = vrot.slane %v6390_v22, 5  ;;  %v5969_v27 = vld [vmem:[#allocation2 + $0x10] sm:$0xf] }
 0x43a   : > { %10832 = vmatprep.subr.bf16.mxu1 %v11194_v60  ;;  %v5971_v8 = vld [vmem:[#allocation2 + $0x18] sm:$0xf]  ;;  %v6393_v53 = vld [vmem:[#allocation2 + $0x70] sm:$0xe]  ;;  %v6396_v62 = vld [vmem:[#allocation2 + $0x7c] sm:$0x1]  ;;  %v13103_v42 = vadd.f32 %v12909_v39, %v12901_v5 }
 0x43b   : > { %v6985_v40 = vsel %vm12263_vm12, %v10240_v38, %v6984_v44  ;;  %v6432_v34 = vsel %vm12263_vm12, %v10196_v30, %v6431_v43  ;;  %v6395_v18 = vld [vmem:[#allocation2 + $0x78] sm:$0xe]  ;;  %v6000_v57 = vshrl.u32 %v5971_v8, 16  ;;  %v6003_v28 = vshll.u32 %v5971_v8, 16  ;;  %v6394_v56 = vld [vmem:[#allocation2 + $0x74] sm:$0x1] }
 0x43c   : > { %v10244_v63 = vcombine.low %v6981_v52, %v6985_v40  ;;  %v6428_v4 = vsel %vm12263_vm12, %v10195_v48, %v6427_v21  ;;  %v5986_v60 = vshrl.u32 %v5969_v27, 16  ;;  %v5989_v16 = vshll.u32 %v5969_v27, 16  ;;  %v11190_v36 = vld [vmem:[#allocation2 + $0x78] ss:$8 sps:$4 sm:$0xff]   ;;  %v5975_v41 = vld [vmem:[#allocation2 + $0x28] sm:$0xf] }
 0x43d   : > { %10833 = vmatpush3.bf16.msra.mxu1 %v11195_v50  ;;  %v10202_v0 = vcombine.low %v6428_v4, %v6432_v34  ;;  %v10198_v61 = vrot.slane %v6395_v18, 9  ;;  %v6002_v14 = vrot.slane %v6000_v57, 4  ;;  %v6005_v38 = vrot.slane %v6003_v28, 5  ;;  %v5972_v50 = vld [vmem:[#allocation2 + $0x1c] sm:$0x1] }
 0x43e   : > { %v10197_v52 = vrot.slane %v6393_v53, 9  ;;  %v6439_v44 = vrot.slane %v6396_v62, 5  ;;  %v6399_v55 = vld [vmem:[#allocation2 + $0x88] sm:$0xe]  ;;  %v5988_v40 = vrot.slane %v5986_v60, 4  ;;  %v5991_v13 = vrot.slane %v5989_v16, 5 }
 0x43f   : > { %11023 = vmatmul.mubr.bf16.gmra.mrb[108].mxu0 %v10244_v63  ;;  %v5973_v63 = vld [vmem:[#allocation2 + $0x20] sm:$0xf]  ;;  %v6435_v10 = vrot.slane %v6394_v56, 5  ;;  %v6028_v30 = vshrl.u32 %v5975_v41, 16  ;;  %v6031_v22 = vshll.u32 %v5975_v41, 16  ;;  %v6006_v43 = vor.u32 %v6005_v38, %v6002_v14 }
 0x440   : > { %7823 = vmatmul.mubr.bf16.gmra.mrb[48].mxu1 %v10201_v15  ;;  %9422 = vmatprep.mubr.bf16.mxu0 %v14093_v35  ;;  %v13107_v15 = vadd.f32 %v12915_v20, %v12913_v2  ;;  %v6440_v17 = vsel %vm12263_vm12, %v10198_v61, %v6439_v44  ;;  %v6400_v48 = vld [vmem:[#allocation2 + $0x8c] sm:$0x1]  ;;  %v10200_v39 = vrot.slane %v6399_v55, 9  ;;  %v5970_v8 = vld [vmem:[#allocation2 + $0x14] sm:$0x1]  ;;  %v6014_v21 = vshrl.u32 %v5973_v63, 16 }
 0x441   : > { %7830 = vmatprep.mubr.bf16.mxu1 %v11187_v23  ;;  %v6397_v23 = vld [vmem:[#allocation2 + $0x80] sm:$0xe]  ;;  %v6436_v5 = vsel %vm12263_vm12, %v10197_v52, %v6435_v10  ;;  %v6017_v34 = vshll.u32 %v5973_v63, 16  ;;  %v6398_v18 = vld [vmem:[#allocation2 + $0x84] sm:$0x1]  ;;  %v5992_v20 = vor.u32 %v5991_v13, %v5988_v40  ;;  %v6009_v57 = vshll.u32 %v5972_v50, 16 }
 0x442   : > { %v10203_v27 = vcombine.low %v6436_v5, %v6440_v17  ;;  %v10199_v2 = vrot.slane %v6397_v23, 9  ;;  %v11193_v4 = vld [vmem:[#allocation2 + $0x88] ss:$8 sps:$4 sm:$0xff]   ;;  %v6030_v53 = vrot.slane %v6028_v30, 4  ;;  %v6033_v62 = vrot.slane %v6031_v22, 5 }
 0x443   : > { %v13117_v60 = vadd.f32 %v12923_v51, %v12919_v37  ;;  %v6007_v61 = vrot.slane %v6006_v43, 4  ;;  %v5979_v56 = vld [vmem:[#allocation2 + $0x38] sm:$0xf]  ;;  %v13123_v14 = vadd.f32 %v12933_v47, %v12925_v3  ;;  %v6443_v41 = vrot.slane %v6398_v18, 5  ;;  %v5974_v40 = vld [vmem:[#allocation2 + $0x24] sm:$0x1] }
 0x444   : > { %v6016_v44 = vrot.slane %v6014_v21, 4  ;;  %v6019_v50 = vrot.slane %v6017_v34, 5  ;;  %v5993_v51 = vrot.slane %v5992_v20, 4  ;;  %v6011_v55 = vrot.slane %v6009_v57, 5  ;;  %v5976_v13 = vld [vmem:[#allocation2 + $0x2c] sm:$0x1] }
 0x445   : > { %v6444_v63 = vsel %vm12263_vm12, %v10199_v2, %v6443_v41  ;;  %v6034_v10 = vor.u32 %v6033_v62, %v6030_v53  ;;  %v5977_v17 = vld [vmem:[#allocation2 + $0x30] sm:$0xf]  ;;  %v6056_v3 = vshrl.u32 %v5979_v56, 16  ;;  %v6059_v47 = vshll.u32 %v5979_v56, 16  ;;  %v5981_v57 = vld [vmem:[#allocation2 + $0x40] sm:$0xf] }
 0x446   : > { %v6012_v22 = vsel %vm12228_vm0, %v6007_v61, %v6011_v55  ;;  %v6023_v43 = vshll.u32 %v5974_v40, 16  ;;  %v6037_v5 = vshll.u32 %v5976_v13, 16  ;;  %v6045_v21 = vshll.u32 %v5977_v17, 16 }
 0x447   : > { %v13139_v34 = vadd.f32 %v12945_v46, %v12943_v7  ;;  %v6035_v18 = vrot.slane %v6034_v10, 4  ;;  %v6058_v2 = vrot.slane %v6056_v3, 4  ;;  %v6061_v20 = vrot.slane %v6059_v47, 5  ;;  %v5980_v46 = vld [vmem:[#allocation2 + $0x3c] sm:$0x1] }
 0x448   : > { %7831 = vmatmul.mubr.bf16.gmra.mrb[52].mxu1 %v10202_v0  ;;  %v6447_v0 = vrot.slane %v6400_v48, 5  ;;  %v6020_v48 = vor.u32 %v6019_v50, %v6016_v44  ;;  %v6047_v62 = vrot.slane %v6045_v21, 5  ;;  %v13143_v61 = vadd.f32 %v12957_v24, %v12953_v11  ;;  %v5978_v44 = vld [vmem:[#allocation2 + $0x34] sm:$0x1] }
 0x449   : > { %7838 = vmatprep.mubr.bf16.mxu1 %v11190_v36  ;;  %v5995_v36 = vshll.u32 %v5970_v8, 16  ;;  %v6042_v8 = vshrl.u32 %v5977_v17, 16  ;;  %v6062_v56 = vor.u32 %v6061_v20, %v6058_v2  ;;  %v6073_v41 = vshll.u32 %v5981_v57, 16 }
 0x44a   : > { %v6448_v52 = vsel %vm12263_vm12, %v10200_v39, %v6447_v0  ;;  %v13133_v39 = vadd.f32 %v12941_v33, %v12939_v12  ;;  %v6021_v0 = vrot.slane %v6020_v48, 4  ;;  %v6025_v12 = vrot.slane %v6023_v43, 5 }
 0x44b   : > { %v10204_v23 = vcombine.low %v6444_v63, %v6448_v52  ;;  %v5997_v30 = vrot.slane %v5995_v36, 5  ;;  %v6039_v33 = vrot.slane %v6037_v5, 5  ;;  %v6044_v53 = vrot.slane %v6042_v8, 4 }
 0x44c   : > { %v6070_v36 = vshrl.u32 %v5981_v57, 16  ;;  %v13153_v55 = vadd.f32 %v12969_v31, %v12967_v25  ;;  %v13157_v11 = vadd.f32 %v12979_v19, %v12971_v26  ;;  %v6026_v24 = vsel %vm12228_vm0, %v6021_v0, %v6025_v12 }
 0x44d   : > { %v5998_v45 = vsel %vm12228_vm0, %v5993_v51, %v5997_v30  ;;  %v6040_v7 = vsel %vm12228_vm0, %v6035_v18, %v6039_v33  ;;  %v13149_v51 = vadd.f32 %v12965_v9, %v12961_v32  ;;  %v13163_v40 = vadd.f32 %v12995_v29, %v12988_v1  ;;  %v11196_v32 = vld [vmem:[#allocation2 + $0x10] ss:$8 sps:$4 sm:$0xff]   ;;  %v5984_v29 = vld [vmem:[#allocation2 + $0x4c] sm:$0x1] }
 0x44e   : > { %v13113_v28 = vpop.f32.mrb[12].mxu1  ;;  %v13167_v13 = vadd.f32 %v13001_v49, %v12997_v6  ;;  %v6048_v9 = vor.u32 %v6047_v62, %v6044_v53  ;;  %v6065_v63 = vshll.u32 %v5980_v46, 16  ;;  %v10170_v26 = vcombine.low %v6026_v24, %v6040_v7  ;;  %v6776_v6 = vld [vmem:[#allocation2 + $0x68] sm:$0xf]  ;;  %v6780_v33 = vld [vmem:[#allocation2 + $0x78] sm:$0xf] }
 0x44f   : > { %v13119_v16 = vpop.f32.mrb[13].mxu1  ;;  %v6051_v19 = vshll.u32 %v5978_v44, 16  ;;  %v6072_v10 = vrot.slane %v6070_v36, 4  ;;  %v6075_v17 = vrot.slane %v6073_v41, 5  ;;  %v6063_v1 = vrot.slane %v6062_v56, 4 }
 0x450   : > { %7839 = vmatmul.mubr.bf16.gmra.mrb[56].mxu1 %v10203_v27  ;;  %v10663_v38 = vpop.f32.mrb[14].mxu1  ;;  %v10169_v27 = vcombine.low %v5998_v45, %v6012_v22  ;;  %v13171_v25 = vadd.f32 %v13119_v16, %v13113_v28  ;;  %v6049_v49 = vrot.slane %v6048_v9, 4  ;;  %v5982_v22 = vld [vmem:[#allocation2 + $0x44] sm:$0x1]  ;;  %v6093_v28 = vshll.u32 %v5984_v29, 16 }
 0x451   : > { %7846 = vmatprep.mubr.bf16.mxu1 %v11193_v4  ;;  %v10664_v37 = vpop.f32.mrb[15].mxu1  ;;  %v5983_v4 = vld [vmem:[#allocation2 + $0x48] sm:$0xf]  ;;  %v6053_v30 = vrot.slane %v6051_v19, 5  ;;  %v6076_v48 = vor.u32 %v6075_v17, %v6072_v10  ;;  %v6774_v16 = vld [vmem:[#allocation2 + $0x60] sm:$0xf] }
 0x452   : > { %v6084_v52 = vshrl.u32 %v5983_v4, 16  ;;  %v6087_v50 = vshll.u32 %v5983_v4, 16  ;;  %v13173_v31 = vadd.f32 %v10664_v37, %v10663_v38  ;;  %v6805_v43 = vshrl.u32 %v6776_v6, 16  ;;  %v11197_v45 = vld [vmem:[#allocation2 + $0x20] ss:$8 sps:$4 sm:$0xff]  }
 0x453   : > { %v6808_v5 = vshll.u32 %v6776_v6, 16  ;;  %v6054_v8 = vsel %vm12228_vm0, %v6049_v49, %v6053_v30  ;;  %v6079_v21 = vshll.u32 %v5982_v22, 16  ;;  %v6794_v18 = vshll.u32 %v6774_v16, 16  ;;  %v6777_v7 = vld [vmem:[#allocation2 + $0x6c] sm:$0x1] }
 0x454   : > { %v6086_v3 = vrot.slane %v6084_v52, 4  ;;  %v6089_v47 = vrot.slane %v6087_v50, 5  ;;  %v6095_v20 = vrot.slane %v6093_v28, 5  ;;  %v6077_v57 = vrot.slane %v6076_v48, 4  ;;  %v6778_v46 = vld [vmem:[#allocation2 + $0x70] sm:$0xf] }
 0x455   : > { %v6807_v0 = vrot.slane %v6805_v43, 4  ;;  %v6810_v12 = vrot.slane %v6808_v5, 5  ;;  %v6081_v53 = vrot.slane %v6079_v21, 5  ;;  %v6796_v36 = vrot.slane %v6794_v18, 5  ;;  %v6775_v24 = vld [vmem:[#allocation2 + $0x64] sm:$0x1] }
 0x456   : > { %v6090_v37 = vor.u32 %v6089_v47, %v6086_v3  ;;  %v6833_v56 = vshrl.u32 %v6780_v33, 16  ;;  %v6836_v41 = vshll.u32 %v6780_v33, 16  ;;  %v6822_v19 = vshll.u32 %v6778_v46, 16  ;;  %v6784_v47 = vld [vmem:[#allocation2 + $0x88] sm:$0xf] }
 0x457   : > { %v6082_v52 = vsel %vm12228_vm0, %v6077_v57, %v6081_v53  ;;  %v6811_v50 = vor.u32 %v6810_v12, %v6807_v0  ;;  %v6800_v29 = vshll.u32 %v6775_v24, 16  ;;  %v6779_v6 = vld [vmem:[#allocation2 + $0x74] sm:$0x1]  ;;  %v6781_v30 = vld [vmem:[#allocation2 + $0x7c] sm:$0x1]  ;;  %vm9144_vm2 = vcmask 1041409  }
 0x458   : > { %7847 = vmatmul.mubr.bf16.gmra.mrb[60].mxu1 %v10204_v23  ;;  %v6067_v23 = vrot.slane %v6065_v63, 5  ;;  %v6091_v4 = vrot.slane %v6090_v37, 4  ;;  %v6814_v63 = vshll.u32 %v6777_v7, 16  ;;  %v6835_v17 = vrot.slane %v6833_v56, 4  ;;  %v11199_v21 = vld [vmem:[#allocation2 + $0x40] ss:$8 sps:$4 sm:$0xff]  }
 0x459   : > { %7984 = vmatprep.mubr.bf16.mxu1 %v10169_v27  ;;  %v6791_v27 = vshrl.u32 %v6774_v16, 16  ;;  %v6812_v3 = vrot.slane %v6811_v50, 4  ;;  %v6824_v48 = vrot.slane %v6822_v19, 5  ;;  %v6782_v16 = vld [vmem:[#allocation2 + $0x80] sm:$0xf]  ;;  %v6864_v37 = vshll.u32 %v6784_v47, 16 }
 0x45a   : > { %v6068_v38 = vsel %vm12228_vm0, %v6063_v1, %v6067_v23  ;;  %v6096_v44 = vsel %vm12228_vm0, %v6091_v4, %v6095_v20  ;;  %v6838_v1 = vrot.slane %v6836_v41, 5  ;;  %v6816_v23 = vrot.slane %v6814_v63, 5  ;;  %v6786_v53 = vld [vmem:[#allocation2 + $0x90] sm:$0xf]  ;;  %v6783_v50 = vld [vmem:[#allocation2 + $0x84] sm:$0x1] }
 0x45b   : > { %v10171_v2 = vcombine.low %v6054_v8, %v6068_v38  ;;  %v6793_v62 = vrot.slane %v6791_v27, 4  ;;  %v10172_v10 = vcombine.low %v6082_v52, %v6096_v44  ;;  %v6861_v38 = vshrl.u32 %v6784_v47, 16  ;;  %v6785_v52 = vld [vmem:[#allocation2 + $0x8c] sm:$0x1]  ;;  %v6787_v47 = vld [vmem:[#allocation2 + $0x94] sm:$0x1] }
 0x45c   : > { %v6839_v28 = vor.u32 %v6838_v1, %v6835_v17  ;;  %v6802_v43 = vrot.slane %v6800_v29, 5  ;;  %v6817_v5 = vsel %vm12228_vm0, %v6812_v3, %v6816_v23  ;;  %v6842_v8 = vshll.u32 %v6781_v30, 16 }
 0x45d   : > { %v6797_v9 = vor.u32 %v6796_v36, %v6793_v62  ;;  %v6850_v20 = vshll.u32 %v6782_v16, 16  ;;  %v6863_v0 = vrot.slane %v6861_v38, 4  ;;  %v6866_v12 = vrot.slane %v6864_v37, 5  ;;  %v6788_v62 = vld [vmem:[#allocation2 + $0x98] sm:$0xf] }
 0x45e   : > { %v6840_v4 = vrot.slane %v6839_v28, 4  ;;  %v6844_v33 = vrot.slane %v6842_v8, 5  ;;  %v6875_v24 = vshrl.u32 %v6786_v53, 16  ;;  %v6892_v63 = vshll.u32 %v6788_v62, 16  ;;  %v6789_v28 = vld [vmem:[#allocation2 + $0x9c] sm:$0x1] }
 0x45f   : > { %v6798_v49 = vrot.slane %v6797_v9, 4  ;;  %v6867_v44 = vor.u32 %v6866_v12, %v6863_v0  ;;  %v6889_v9 = vshrl.u32 %v6788_v62, 16  ;;  %v6870_v17 = vshll.u32 %v6785_v52, 16 }
 0x460   : > { %7985 = vmatmul.mubr.bf16.vlgmr.msra.gmra.mrb[64].mxu1 %v11196_v32  ;;  %v11198_v32 = vld [vmem:[#allocation2 + $0x30] ss:$8 sps:$4 sm:$0xff]   ;;  %v6845_v41 = vsel %vm12228_vm0, %v6840_v4, %v6844_v33  ;;  %v6856_v29 = vshll.u32 %v6783_v50, 16  ;;  %v6884_v8 = vshll.u32 %v6787_v47, 16 }
 0x461   : > { %7992 = vmatprep.mubr.bf16.mxu1 %v10170_v26  ;;  %v6819_v26 = vshrl.u32 %v6778_v46, 16  ;;  %v6803_v27 = vsel %vm12228_vm0, %v6798_v49, %v6802_v43  ;;  %v6852_v46 = vrot.slane %v6850_v20, 5  ;;  %v6868_v3 = vrot.slane %v6867_v44, 4 }
 0x462   : > { %v10229_v57 = vcombine.low %v6803_v27, %v6817_v5  ;;  %v6877_v49 = vrot.slane %v6875_v24, 4  ;;  %v6891_v30 = vrot.slane %v6889_v9, 4  ;;  %v6872_v43 = vrot.slane %v6870_v17, 5 }
 0x463   : > { %v6821_v22 = vrot.slane %v6819_v26, 4  ;;  %v11200_v26 = vld [vmem:[#allocation2 + $0x60] ss:$8 sps:$4 sm:$0xff]   ;;  %v6898_v20 = vshll.u32 %v6789_v28, 16  ;;  %v6886_v33 = vrot.slane %v6884_v8, 5 }
 0x464   : > { %v6873_v27 = vsel %vm12228_vm0, %v6868_v3, %v6872_v43 }
 0x465   : > { %v6825_v18 = vor.u32 %v6824_v48, %v6821_v22  ;;  %v6894_v22 = vrot.slane %v6892_v63, 5  ;;  %v6900_v62 = vrot.slane %v6898_v20, 5 }
 0x467   : > { %v6826_v36 = vrot.slane %v6825_v18, 4 }
 0x468   : > { %7993 = vmatmul.mubr.bf16.gmra.mrb[68].mxu1 %v11197_v45  ;;  %v6828_v45 = vshll.u32 %v6779_v6, 16 }
 0x469   : > { %8000 = vmatprep.mubr.bf16.mxu1 %v10171_v2  ;;  %v6847_v2 = vshrl.u32 %v6782_v16, 16 }
 0x46a   : > { %v6830_v56 = vrot.slane %v6828_v45, 5  ;;  %v6858_v45 = vrot.slane %v6856_v29, 5 }
 0x46b   : > { %v6849_v7 = vrot.slane %v6847_v2, 4  ;;  %v6895_v2 = vor.u32 %v6894_v22, %v6891_v30 }
 0x46c   : > { %v6831_v19 = vsel %vm12228_vm0, %v6826_v36, %v6830_v56 }
 0x46d   : > { %v10230_v1 = vcombine.low %v6831_v19, %v6845_v41  ;;  %v11203_v41 = vld [vmem:[#allocation2 + $0x90] ss:$8 sps:$4 sm:$0xff]  }
 0x470   : > { %8001 = vmatmul.mubr.bf16.gmra.mrb[72].mxu1 %v11198_v32  ;;  %v6878_v32 = vshll.u32 %v6786_v53, 16  ;;  %v6896_v53 = vrot.slane %v6895_v2, 4 }
 0x471   : > { %8008 = vmatprep.mubr.bf16.mxu1 %v10172_v10  ;;  %v6853_v10 = vor.u32 %v6852_v46, %v6849_v7  ;;  %v11202_v46 = vld [vmem:[#allocation2 + $0x80] ss:$8 sps:$4 sm:$0xff]  }
 0x472   : > { %v6880_v23 = vrot.slane %v6878_v32, 5  ;;  %v6901_v7 = vsel %vm12228_vm0, %v6896_v53, %v6900_v62 }
 0x473   : > { %v6854_v37 = vrot.slane %v6853_v10, 4 }
 0x474   : > { %v6881_v18 = vor.u32 %v6880_v23, %v6877_v49 }
 0x475   : > { %v6859_v4 = vsel %vm12228_vm0, %v6854_v37, %v6858_v45 }
 0x476   : > { %v10231_v0 = vcombine.low %v6859_v4, %v6873_v27  ;;  %v6882_v12 = vrot.slane %v6881_v18, 4 }
 0x478   : > { %8009 = vmatmul.mubr.bf16.gmra.mrb[76].mxu1 %v11199_v21  ;;  %v6887_v36 = vsel %vm12228_vm0, %v6882_v12, %v6886_v33 }
 0x479   : > { %8016 = vmatprep.mubr.bf16.mxu1 %v10229_v57  ;;  %v11201_v57 = vld [vmem:[#allocation2 + $0x70] ss:$8 sps:$4 sm:$0xff]   ;;  %v10232_v56 = vcombine.low %v6887_v36, %v6901_v7 }
 0x47f   : > { %v10788_v6 = vpop.f32.mrb[76].mxu0 }
 0x480   : > { %8017 = vmatmul.mubr.bf16.gmra.mrb[80].mxu1 %v11200_v26  ;;  %v10789_v48 = vpop.f32.mrb[77].mxu0 }
 0x481   : > { %8024 = vmatprep.mubr.bf16.mxu1 %v10230_v1  ;;  %v13191_v16 = vadd.f32 %v10789_v48, %v10788_v6  ;;  %v10791_v38 = vpop.f32.mrb[78].mxu0 }
 0x482   : > { %v10792_v5 = vpop.f32.mrb[79].mxu0 }
 0x483   : > { %v13193_v21 = vadd.f32 %v10792_v5, %v10791_v38 }
 0x488   : > { %8025 = vmatmul.mubr.bf16.gmra.mrb[84].mxu1 %v11201_v57 }
 0x489   : > { %8032 = vmatprep.mubr.bf16.mxu1 %v10231_v0 }
 0x490   : > { %8033 = vmatmul.mubr.bf16.gmra.mrb[88].mxu1 %v11202_v46  ;;  %v13235_v46 = vld [vmem:[%s14087_s4] ss:$0 sm:$0xff] }
 0x491   : > { %8040 = vmatprep.mubr.bf16.mxu1 %v10232_v56 }
 0x498   : > { %8041 = vmatmul.mubr.bf16.gmra.mrb[92].mxu1 %v11203_v41 }
 0x499   : > { %9369 = vmatprep.mubr.bf16.mxu1 %v14093_v35 }
 0x4b1   : > { %v10666_v52 = vpop.f32.mrb[16].mxu1 }
 0x4b2   : > { %v10667_v44 = vpop.f32.mrb[17].mxu1 }
 0x4b3   : > { %v13204_v50 = vadd.f32 %v10667_v44, %v10666_v52  ;;  %v10669_v24 = vpop.f32.mrb[18].mxu1 }
 0x4b4   : > { %v10670_v32 = vpop.f32.mrb[19].mxu1 }
 0x4b5   : > { %v13206_v9 = vadd.f32 %v10670_v32, %v10669_v24 }
 0x4cc   : > { %v10794_v63 = vpop.f32.mrb[80].mxu0 }
 0x4cd   : > { %v10795_v26 = vpop.f32.mrb[81].mxu0 }
 0x4ce   : > { %v13208_v59 = vadd.f32 %v10795_v26, %v10794_v63  ;;  %v10797_v19 = vpop.f32.mrb[82].mxu0  ;;  %v7696_v63 = vadd.f32 %v13103_v42, %v13235_v46 }
 0x4cf   : > { %v10798_v10 = vpop.f32.mrb[83].mxu0 }
 0x4d0   : > { %v13210_v17 = vadd.f32 %v10798_v10, %v10797_v19 }
 0x4d5   : > { %v10672_v1 = vpop.f32.mrb[20].mxu1 }
 0x4d6   : > { %v10673_v29 = vpop.f32.mrb[21].mxu1 }
 0x4d7   : > { %v13212_v3 = vadd.f32 %v10673_v29, %v10672_v1  ;;  %v10675_v47 = vpop.f32.mrb[22].mxu1 }
 0x4d8   : > { %v10676_v6 = vpop.f32.mrb[23].mxu1 }
 0x4d9   : > { %v13214_v49 = vadd.f32 %v10676_v6, %v10675_v47  ;;  %v7699_v47 = vadd.f32 %v13107_v15, %v13235_v46  ;;  %v7704_v15 = vadd.f32 %v13133_v39, %v13235_v46 }
 0x4db   : > { %v10800_v23 = vpop.f32.mrb[84].mxu0 }
 0x4dc   : > { %v10801_v30 = vpop.f32.mrb[85].mxu0 }
 0x4dd   : > { %v13216_v22 = vadd.f32 %v10801_v30, %v10800_v23  ;;  %v10803_v48 = vpop.f32.mrb[86].mxu0 }
 0x4de   : > { %v10804_v28 = vpop.f32.mrb[87].mxu0 }
 0x4df   : > { %v13218_v38 = vadd.f32 %v10804_v28, %v10803_v48 }
 0x4e0   : > { %v10678_v37 = vpop.f32.mrb[24].mxu1 }
 0x4e1   : > { %v10679_v43 = vpop.f32.mrb[25].mxu1 }
 0x4e2   : > { %v13220_v5 = vadd.f32 %v10679_v43, %v10678_v37  ;;  %v10681_v45 = vpop.f32.mrb[26].mxu1 }
 0x4e3   : > { %v10682_v8 = vpop.f32.mrb[27].mxu1 }
 0x4e4   : > { %v13222_v27 = vadd.f32 %v10682_v8, %v10681_v45 }
 0x4e7   : > { %v10806_v18 = vpop.f32.mrb[88].mxu0 }
 0x4e8   : > { %v10807_v2 = vpop.f32.mrb[89].mxu0 }
 0x4e9   : > { %v13224_v20 = vadd.f32 %v10807_v2, %v10806_v18  ;;  %v10809_v57 = vpop.f32.mrb[90].mxu0 }
 0x4ea   : > { %v10810_v4 = vpop.f32.mrb[91].mxu0 }
 0x4eb   : > { %v13226_v0 = vadd.f32 %v10810_v4, %v10809_v57  ;;  %v10684_v12 = vpop.f32.mrb[28].mxu1  ;;  %v7707_v4 = vadd.f32 %v13139_v34, %v13235_v46  ;;  %v7712_v34 = vadd.f32 %v13153_v55, %v13235_v46  ;;  %v11206_v55 = vld [vmem:[%s14088_s5 + $0x4] ss:$16 sps:$4 sm:$0xff]  }
 0x4ec   : > { %v10685_v33 = vpop.f32.mrb[29].mxu1  ;;  %9337 = vmatprep.subr.bf16.mxu1 %v11206_v55 }
 0x4ed   : > { %14108 = vst [vmem:[#allocation6_spill] sm:$0xff] %v13226_v0  ;;  %v13228_v53 = vadd.f32 %v10685_v33, %v10684_v12  ;;  %v10687_v62 = vpop.f32.mrb[30].mxu1 }
 0x4ee   : > { %v10688_v36 = vpop.f32.mrb[31].mxu1 }
 0x4ef   : > { %v13230_v7 = vadd.f32 %v10688_v36, %v10687_v62 }
 0x4f2   : > { %v10812_v56 = vpop.f32.mrb[92].mxu0 }
 0x4f3   : > { %v10706_v41 = vpop.f32.mrb[32].mxu1  ;;  %v10813_v52 = vpop.f32.mrb[93].mxu0 }
 0x4f4   : > { %v13237_v44 = vadd.f32 %v10813_v52, %v10812_v56  ;;  %v10707_v24 = vpop.f32.mrb[33].mxu1  ;;  %v10815_v32 = vpop.f32.mrb[94].mxu0 }
 0x4f5   : > { %v10708_v26 = vadd.f32 %v10707_v24, %v10706_v41  ;;  %v10709_v19 = vpop.f32.mrb[34].mxu1  ;;  %v10816_v10 = vpop.f32.mrb[95].mxu0 }
 0x4f6   : > { %14109 = vst [vmem:[#allocation7_spill] sm:$0xff] %v13237_v44  ;;  %v13241_v1 = vadd.f32 %v10816_v10, %v10815_v32  ;;  %v10710_v29 = vpop.f32.mrb[35].mxu1 }
 0x4f7   : > { %v7793_v6 = vadd.f32 %v10708_v26, %v7696_v63  ;;  %v10711_v23 = vadd.f32 %v10710_v29, %v10709_v19  ;;  %v7715_v19 = vadd.f32 %v13157_v11, %v13235_v46 }
 0x4f8   : > { %14110 = vst [vmem:[#allocation8_spill] sm:$0xff] %v13241_v1 }
 0x4f9   : > { %v7796_v30 = vadd.f32 %v10711_v23, %v7699_v47  ;;  %v13246_v48 = vadd.f32 %v13117_v60, %v7793_v6  ;;  %v11204_v6 = vld [vmem:[%s14088_s5] ss:$16 sps:$4 sm:$0xff]  }
 0x4fa   : > { %v13248_v28 = vpop.f32.mrb[96].mxu0  ;;  %9338 = vmatpush1.bf16.msra.mxu1 %v11204_v6 }
 0x4fb   : > { %v10712_v37 = vpop.f32.mrb[36].mxu1  ;;  %v13250_v43 = vpop.f32.mrb[97].mxu0  ;;  %v13253_v42 = vadd.f32 %v13123_v14, %v7796_v30 }
 0x4fc   : > { %v10713_v45 = vpop.f32.mrb[37].mxu1  ;;  %v13255_v8 = vpop.f32.mrb[98].mxu0 }
 0x4fd   : > { %v10714_v18 = vadd.f32 %v10713_v45, %v10712_v37  ;;  %v10715_v2 = vpop.f32.mrb[38].mxu1  ;;  %v13259_v57 = vpop.f32.mrb[99].mxu0 }
 0x4fe   : > { %v10716_v60 = vpop.f32.mrb[39].mxu1 }
 0x4ff   : > { %v7801_v12 = vadd.f32 %v10714_v18, %v7704_v15  ;;  %v10717_v33 = vadd.f32 %v10716_v60, %v10715_v2  ;;  %v7720_v15 = vadd.f32 %v13171_v25, %v13235_v46 }
 0x501   : > { %v7804_v62 = vadd.f32 %v10717_v33, %v7707_v4  ;;  %v13264_v14 = vadd.f32 %v13143_v61, %v7801_v12  ;;  %v7723_v12 = vadd.f32 %v13173_v31, %v13235_v46  ;;  %v7728_v31 = vadd.f32 %v13204_v50, %v13235_v46  ;;  %v11209_v50 = vld [vmem:[%s14088_s5 + $0x24] ss:$16 sps:$4 sm:$0xff]  }
 0x502   : > { %v13266_v36 = vpop.f32.mrb[100].mxu0  ;;  %9339 = vmatprep.subr.bf16.mxu1 %v11209_v50 }
 0x503   : > { %v10718_v56 = vpop.f32.mrb[40].mxu1  ;;  %v13268_v41 = vpop.f32.mrb[101].mxu0  ;;  %v13271_v39 = vadd.f32 %v13149_v51, %v7804_v62 }
 0x504   : > { %v10719_v52 = vpop.f32.mrb[41].mxu1  ;;  %v13273_v24 = vpop.f32.mrb[102].mxu0 }
 0x505   : > { %v10720_v32 = vadd.f32 %v10719_v52, %v10718_v56  ;;  %v10721_v63 = vpop.f32.mrb[42].mxu1  ;;  %v13277_v26 = vpop.f32.mrb[103].mxu0 }
 0x506   : > { %v10722_v61 = vpop.f32.mrb[43].mxu1 }
 0x507   : > { %v7809_v10 = vadd.f32 %v10720_v32, %v7712_v34  ;;  %v10723_v29 = vadd.f32 %v10722_v61, %v10721_v63 }
 0x509   : > { %v7812_v47 = vadd.f32 %v10723_v29, %v7715_v19  ;;  %v13282_v51 = vadd.f32 %v13163_v40, %v7809_v10 }
 0x50a   : > { %v13290_v23 = vpop.f32.mrb[104].mxu0 }
 0x50b   : > { %v10724_v30 = vpop.f32.mrb[44].mxu1  ;;  %v13292_v37 = vpop.f32.mrb[105].mxu0  ;;  %v13295_v11 = vadd.f32 %v13167_v13, %v7812_v47  ;;  %v7731_v47 = vadd.f32 %v13206_v9, %v13235_v46  ;;  %v11210_v9 = vld [vmem:[%s14088_s5 + $0x8] ss:$16 sps:$4 sm:$0xff]  }
 0x50c   : > { %v10725_v45 = vpop.f32.mrb[45].mxu1  ;;  %v13297_v40 = vpop.f32.mrb[106].mxu0 }
 0x50d   : > { %v10726_v18 = vadd.f32 %v10725_v45, %v10724_v30  ;;  %v10727_v2 = vpop.f32.mrb[46].mxu1  ;;  %v13301_v60 = vpop.f32.mrb[107].mxu0 }
 0x50e   : > { %v10728_v4 = vpop.f32.mrb[47].mxu1 }
 0x50f   : > { %v7817_v33 = vadd.f32 %v10726_v18, %v7720_v15  ;;  %v10729_v62 = vadd.f32 %v10728_v4, %v10727_v2  ;;  %v11212_v2 = vld [vmem:[%s14088_s5 + $0xc] ss:$16 sps:$4 sm:$0xff]   ;;  %v7736_v4 = vadd.f32 %v13212_v3, %v13235_v46  ;;  %v7744_v3 = vadd.f32 %v13220_v5, %v13235_v46 }
 0x510   : > { %9390 = vmatprep.subr.bf16.mxu0 %v11212_v2  ;;  %v7755_v5 = vadd.f32 %v13230_v7, %v13235_v46  ;;  %v11218_v7 = vld [vmem:[%s14088_s5 + $0x44] ss:$16 sps:$4 sm:$0xff]  }
 0x511   : > { %v7820_v13 = vadd.f32 %v10729_v62, %v7723_v12  ;;  %v13306_v56 = vadd.f32 %v13191_v16, %v7817_v33  ;;  %9391 = vmatpush1.bf16.msra.mxu0 %v11210_v9 }
 0x512   : > { %v13308_v52 = vpop.f32.mrb[108].mxu0 }
 0x513   : > { %14111 = vst [vmem:[#allocation9_spill] sm:$0xff] %v13308_v52  ;;  %v10730_v34 = vpop.f32.mrb[48].mxu1  ;;  %v13310_v32 = vpop.f32.mrb[109].mxu0  ;;  %v13313_v25 = vadd.f32 %v13193_v21, %v7820_v13  ;;  %v11207_v21 = vld [vmem:[%s14088_s5 + $0x20] ss:$16 sps:$4 sm:$0xff]  }
 0x514   : > { %14112 = vst [vmem:[#allocation10_spill] sm:$0xff] %v13310_v32  ;;  %v10731_v63 = vpop.f32.mrb[49].mxu1  ;;  %v13315_v61 = vpop.f32.mrb[110].mxu0  ;;  %9340 = vmatpush1.bf16.msra.mxu1 %v11207_v21 }
 0x515   : > { %14113 = vst [vmem:[#allocation11_spill] sm:$0xff] %v13315_v61  ;;  %v10732_v19 = vadd.f32 %v10731_v63, %v10730_v34  ;;  %v10733_v10 = vpop.f32.mrb[50].mxu1  ;;  %v13319_v29 = vpop.f32.mrb[111].mxu0  ;;  %9341 = vmatprep.subr.bf16.mxu1 %v11218_v7 }
 0x516   : > { %14114 = vst [vmem:[#allocation12_spill] sm:$0xff] %v13319_v29  ;;  %v10734_v16 = vpop.f32.mrb[51].mxu1 }
 0x517   : > { %v7825_v6 = vadd.f32 %v10732_v19, %v7728_v31  ;;  %v10735_v55 = vadd.f32 %v10734_v16, %v10733_v10 }
 0x519   : > { %v7828_v30 = vadd.f32 %v10735_v55, %v7731_v47  ;;  %v13330_v15 = vadd.f32 %v13208_v59, %v7825_v6  ;;  %v7739_v59 = vadd.f32 %v13214_v49, %v13235_v46  ;;  %v7747_v55 = vadd.f32 %v13222_v27, %v13235_v46  ;;  %v11213_v27 = vld [vmem:[%s14088_s5 + $0x28] ss:$16 sps:$4 sm:$0xff]  }
 0x51b   : > { %v10736_v45 = vpop.f32.mrb[52].mxu1  ;;  %v13343_v31 = vadd.f32 %v13210_v17, %v7828_v30  ;;  %v7752_v17 = vadd.f32 %v13228_v53, %v13235_v46  ;;  %v11216_v53 = vld [vmem:[%s14088_s5 + $0x40] ss:$16 sps:$4 sm:$0xff]   ;;  %v11221_v46 = vld [vmem:[%s14088_s5 + $0x4c] ss:$16 sps:$4 sm:$0xff]  }
 0x51c   : > { %v10737_v18 = vpop.f32.mrb[53].mxu1  ;;  %9342 = vmatpush1.bf16.msra.mxu1 %v11216_v53 }
 0x51d   : > { %v10738_v12 = vadd.f32 %v10737_v18, %v10736_v45  ;;  %v10739_v33 = vpop.f32.mrb[54].mxu1 }
 0x51e   : > { %v10740_v62 = vpop.f32.mrb[55].mxu1 }
 0x51f   : > { %v7833_v13 = vadd.f32 %v10738_v12, %v7736_v4  ;;  %v10741_v34 = vadd.f32 %v10740_v62, %v10739_v33  ;;  %v11215_v33 = vld [vmem:[%s14088_s5 + $0x2c] ss:$16 sps:$4 sm:$0xff]  }
 0x520   : > { %9392 = vmatprep.subr.bf16.mxu0 %v11215_v33 }
 0x521   : > { %v7836_v63 = vadd.f32 %v10741_v34, %v7739_v59  ;;  %v13369_v62 = vadd.f32 %v13216_v22, %v7833_v13  ;;  %9393 = vmatpush1.bf16.msra.mxu0 %v11213_v27  ;;  %v11219_v34 = vld [vmem:[%s14088_s5 + $0x48] ss:$16 sps:$4 sm:$0xff]  }
 0x522   : > { %9394 = vmatprep.subr.bf16.mxu0 %v11221_v46 }
 0x523   : > { %v10742_v19 = vpop.f32.mrb[56].mxu1  ;;  %v13383_v22 = vadd.f32 %v13218_v38, %v7836_v63 }
 0x524   : > { %v10743_v10 = vpop.f32.mrb[57].mxu1 }
 0x525   : > { %v10744_v16 = vadd.f32 %v10743_v10, %v10742_v19  ;;  %v10745_v47 = vpop.f32.mrb[58].mxu1  ;;  %9395 = vmatpush1.bf16.msra.mxu0 %v11219_v34 }
 0x526   : > { %v10746_v6 = vpop.f32.mrb[59].mxu1 }
 0x527   : > { %v13349_v45 = vadd.f32 %v10744_v16, %v7744_v3  ;;  %v10747_v49 = vadd.f32 %v10746_v6, %v10745_v47 }
 0x529   : > { %v13351_v21 = vadd.f32 %v10747_v49, %v7747_v55 }
 0x52b   : > { %v10748_v50 = vpop.f32.mrb[60].mxu1 }
 0x52c   : > { %v10749_v18 = vpop.f32.mrb[61].mxu1 }
 0x52d   : > { %v10750_v30 = vadd.f32 %v10749_v18, %v10748_v50  ;;  %v10751_v9 = vpop.f32.mrb[62].mxu1 }
 0x52e   : > { %v10752_v2 = vpop.f32.mrb[63].mxu1 }
 0x52f   : > { %v13357_v4 = vadd.f32 %v10750_v30, %v7752_v17  ;;  %v10753_v12 = vadd.f32 %v10752_v2, %v10751_v9 }
 0x531   : > { %14115 = vst [vmem:[#allocation13_spill] sm:$0xff] %v13357_v4  ;;  %v13377_v59 = vadd.f32 %v10753_v12, %v7755_v5 }
 0x533   : > { %14116 = vst [vmem:[#allocation14_spill] sm:$0xff] %v13377_v59  ;;  %v10834_v13 = vpop.f32.mrb[64].mxu1 }
 0x534   : > { %v10835_v19 = vpop.f32.mrb[65].mxu1 }
 0x535   : > { %v10836_v10 = vadd.f32 %v10835_v19, %v10834_v13  ;;  %v10837_v3 = vpop.f32.mrb[66].mxu1  ;;  %v11225_v13 = vld [vmem:[%s14088_s5 + $0x68] ss:$16 sps:$4 sm:$0xff]   ;;  %v11227_v19 = vld [vmem:[%s14088_s5 + $0x6c] ss:$16 sps:$4 sm:$0xff]  }
 0x536   : > { %v10838_v16 = vpop.f32.mrb[67].mxu1  ;;  %9396 = vmatprep.subr.bf16.mxu0 %v11227_v19 }
 0x537   : > { %v7987_v47 = vadd.f32 %v10836_v10, %v13246_v48  ;;  %v10839_v6 = vadd.f32 %v10838_v16, %v10837_v3  ;;  %9397 = vmatpush1.bf16.msra.mxu0 %v11225_v13 }
 0x539   : > { %v8084_v55 = vadd.f32 %v13250_v43, %v7987_v47  ;;  %v7990_v49 = vadd.f32 %v10839_v6, %v13253_v42  ;;  %v11222_v42 = vld [vmem:[%s14088_s5 + $0x60] ss:$16 sps:$4 sm:$0xff]  }
 0x53b   : > { %v8146_v50 = vmax.f32 %v8084_v55, 0.0  ;;  %v8087_v18 = vadd.f32 %v13259_v57, %v7990_v49  ;;  %v10840_v38 = vpop.f32.mrb[68].mxu1  ;;  %v11224_v57 = vld [vmem:[%s14088_s5 + $0x64] ss:$16 sps:$4 sm:$0xff]  }
 0x53c   : > { %v10841_v63 = vpop.f32.mrb[69].mxu1  ;;  %9343 = vmatprep.subr.bf16.mxu1 %v11224_v57 }
 0x53d   : > { %v8178_v17 = vcombine.high %v8146_v50, %v8146_v50  ;;  %v8185_v30 = vrot.slane %v8146_v50, %v11488_v58  ;;  %v8147_v9 = vmax.f32 %v8087_v18, 0.0  ;;  %v10842_v2 = vadd.f32 %v10841_v63, %v10840_v38  ;;  %v10843_v5 = vpop.f32.mrb[70].mxu1  ;;  %9344 = vmatpush1.bf16.msra.mxu1 %v11222_v42  ;;  %v11228_v18 = vld [vmem:[%s14088_s5 + $0x80] ss:$16 sps:$4 sm:$0xff]   ;;  %v11233_v38 = vld [vmem:[%s14088_s5 + $0x8c] ss:$16 sps:$4 sm:$0xff]  }
 0x53e   : > { %v10844_v12 = vpop.f32.mrb[71].mxu1  ;;  %9398 = vmatprep.subr.bf16.mxu0 %v11233_v38 }
 0x53f   : > { %v8192_v27 = vrot.slane %v8178_v17, %v11488_v58  ;;  %v8193_v48 = vcombine.high %v8185_v30, %v8185_v30  ;;  %v8514_v33 = vsel %vm2427_vm5, %v8185_v30, -inf  ;;  %v8195_v43 = vcombine.high %v8147_v9, %v8147_v9 }
 0x540   : > { %v8515_v53 = vrot.slane %v8514_v33, 4  ;;  %v8202_v7 = vrot.slane %v8147_v9, %v11488_v58  ;;  %v13400_v46 = vadd.f32 %v10842_v2, %v13264_v14  ;;  %v13402_v34 = vadd.f32 %v10844_v12, %v10843_v5  ;;  %v11230_v14 = vld [vmem:[%s14088_s5 + $0x84] ss:$16 sps:$4 sm:$0xff]   ;;  %v11231_v5 = vld [vmem:[%s14088_s5 + $0x88] ss:$16 sps:$4 sm:$0xff]  }
 0x541   : > { %v8194_v10 = vcombine.high %v8192_v27, %v8192_v27  ;;  %v8521_v3 = vsel %vm2427_vm5, %v8193_v48, -inf  ;;  %v8528_v16 = vsel %vm2427_vm5, %v8192_v27, -inf  ;;  %v8209_v47 = vrot.slane %v8195_v43, %v11488_v58  ;;  %9345 = vmatprep.subr.bf16.mxu1 %v11230_v14  ;;  %9399 = vmatpush1.bf16.msra.mxu0 %v11231_v5 }
 0x542   : > { %v8516_v6 = vmax.f32 %v8514_v33, %v8515_v53  ;;  %v8522_v55 = vrot.slane %v8521_v3, 4  ;;  %v8529_v49 = vrot.slane %v8528_v16, 4  ;;  %v8210_v50 = vcombine.high %v8202_v7, %v8202_v7  ;;  %9346 = vmatpush1.bf16.msra.mxu1 %v11228_v18 }
 0x543   : > { %v8535_v63 = vsel %vm2427_vm5, %v8194_v10, -inf  ;;  %v8211_v17 = vcombine.high %v8209_v47, %v8209_v47  ;;  %v8542_v30 = vsel %vm2427_vm5, %v8202_v7, -inf  ;;  %v8556_v9 = vsel %vm2427_vm5, %v8209_v47, -inf  ;;  %v10846_v2 = vpop.f32.mrb[72].mxu1 }
 0x544   : > { %v8517_v12 = vrot.slane %v8516_v6, 2  ;;  %v8523_v27 = vmax.f32 %v8521_v3, %v8522_v55  ;;  %v8530_v48 = vmax.f32 %v8528_v16, %v8529_v49  ;;  %v8536_v33 = vrot.slane %v8535_v63, 4  ;;  %v10847_v43 = vpop.f32.mrb[73].mxu1 }
 0x545   : > { %v8543_v42 = vrot.slane %v8542_v30, 4  ;;  %v8549_v57 = vsel %vm2427_vm5, %v8210_v50, -inf  ;;  %v8557_v53 = vrot.slane %v8556_v9, 4  ;;  %v8563_v7 = vsel %vm2427_vm5, %v8211_v17, -inf  ;;  %v13430_v19 = vpop.f32.mrb[74].mxu1 }
 0x546   : > { %v8518_v13 = vmax.f32 %v8516_v6, %v8517_v12  ;;  %v8524_v10 = vrot.slane %v8523_v27, 2  ;;  %v8531_v47 = vrot.slane %v8530_v48, 2  ;;  %v8537_v14 = vmax.f32 %v8535_v63, %v8536_v33  ;;  %v13432_v35 = vpop.f32.mrb[75].mxu1 }
 0x547   : > { %v8544_v3 = vmax.f32 %v8542_v30, %v8543_v42  ;;  %v8550_v16 = vrot.slane %v8549_v57, 4  ;;  %v8558_v55 = vmax.f32 %v8556_v9, %v8557_v53  ;;  %v8564_v49 = vrot.slane %v8563_v7, 4 }
 0x548   : > { %v8519_v38 = vrot.slane %v8518_v13, 1  ;;  %v8525_v54 = vmax.f32 %v8523_v27, %v8524_v10  ;;  %v8532_v50 = vmax.f32 %v8530_v48, %v8531_v47  ;;  %v8538_v61 = vrot.slane %v8537_v14, 2 }
 0x549   : > { %v8545_v52 = vrot.slane %v8544_v3, 2  ;;  %v8551_v17 = vmax.f32 %v8549_v57, %v8550_v16  ;;  %v8559_v29 = vrot.slane %v8558_v55, 2  ;;  %v8565_v1 = vmax.f32 %v8563_v7, %v8564_v49 }
 0x54a   : > { %v8520_v6 = vmax.f32 %v8518_v13, %v8519_v38  ;;  %v8526_v12 = vrot.slane %v8525_v54, 1  ;;  %v8533_v59 = vrot.slane %v8532_v50, 1  ;;  %v8539_v63 = vmax.f32 %v8537_v14, %v8538_v61 }
 0x54b   : > { %v8546_v33 = vmax.f32 %v8544_v3, %v8545_v52  ;;  %v8552_v44 = vrot.slane %v8551_v17, 2  ;;  %v8560_v18 = vmax.f32 %v8558_v55, %v8559_v29  ;;  %v8566_v30 = vrot.slane %v8565_v1, 2  ;;  %v13434_v42 = vpop.f32.mrb[76].mxu1 }
 0x54c   : > { %v8527_v9 = vmax.f32 %v8525_v54, %v8526_v12  ;;  %v8534_v5 = vmax.f32 %v8532_v50, %v8533_v59  ;;  %v8540_v53 = vrot.slane %v8539_v63, 1  ;;  %v8092_v27 = vadd.f32 %v13248_v28, %v13400_v46  ;;  %v13438_v48 = vpop.f32.mrb[77].mxu1 }
 0x54d   : > { %v8547_v57 = vrot.slane %v8546_v33, 1  ;;  %v8553_v7 = vmax.f32 %v8551_v17, %v8552_v44  ;;  %v8561_v13 = vrot.slane %v8560_v18, 1  ;;  %v8567_v10 = vmax.f32 %v8565_v1, %v8566_v30  ;;  %v13440_v47 = vpop.f32.mrb[78].mxu1 }
 0x54e   : > { %v8541_v52 = vmax.f32 %v8539_v63, %v8540_v53  ;;  %v8148_v61 = vmax.f32 %v8092_v27, 0.0  ;;  %v7998_v29 = vadd.f32 %v13402_v34, %v13271_v39  ;;  %v10848_v14 = vadd.f32 %v10847_v43, %v10846_v2  ;;  %v13444_v54 = vpop.f32.mrb[79].mxu1  ;;  %v11234_v27 = vld [vmem:[%s14088_s5 + $0xa0] ss:$16 sps:$4 sm:$0xff]  }
 0x54f   : > { %v8548_v59 = vmax.f32 %v8546_v33, %v8547_v57  ;;  %v8554_v3 = vrot.slane %v8553_v7, 1  ;;  %v8562_v16 = vmax.f32 %v8560_v18, %v8561_v13  ;;  %v8568_v28 = vrot.slane %v8567_v10, 1  ;;  %v11236_v13 = vld [vmem:[%s14088_s5 + $0xa4] ss:$16 sps:$4 sm:$0xff]  }
 0x550   : > { %v8212_v46 = vcombine.high %v8148_v61, %v8148_v61  ;;  %v8219_v55 = vrot.slane %v8148_v61, %v11488_v58  ;;  %v8095_v44 = vadd.f32 %v13255_v8, %v7998_v29  ;;  %v8003_v1 = vadd.f32 %v10848_v14, %v13282_v51  ;;  %9347 = vmatprep.subr.bf16.mxu1 %v11236_v13 }
 0x551   : > { %v8555_v49 = vmax.f32 %v8553_v7, %v8554_v3  ;;  %v8569_v38 = vmax.f32 %v8567_v10, %v8568_v28  ;;  %v8962_v50 = vmax.f32 %v8520_v6, %v8548_v59  ;;  %v8964_v17 = vmax.f32 %v8534_v5, %v8562_v16  ;;  %v11237_v10 = vld [vmem:[%s14088_s5 + $0xa8] ss:$16 sps:$4 sm:$0xff]   ;;  %v11239_v3 = vld [vmem:[%s14088_s5 + $0xac] ss:$16 sps:$4 sm:$0xff]   ;;  %9348 = vmatpush1.bf16.msra.mxu1 %v11234_v27 }
 0x552   : > { %v8226_v39 = vrot.slane %v8212_v46, %v11488_v58  ;;  %v8227_v34 = vcombine.high %v8219_v55, %v8219_v55  ;;  %v8570_v2 = vsel %vm2427_vm5, %v8219_v55, -inf  ;;  %v8149_v43 = vmax.f32 %v8095_v44, 0.0  ;;  %v11242_v44 = vld [vmem:[%s14088_s5 + $0xc4] ss:$16 sps:$4 sm:$0xff]   ;;  %9400 = vmatprep.subr.bf16.mxu0 %v11239_v3 }
 0x553   : > { %v8963_v12 = vmax.f32 %v8527_v9, %v8555_v49  ;;  %v13451_v63 = vmax.f32 %v8541_v52, %v8569_v38  ;;  %v8994_v33 = vpack.c.bf16 %v8962_v50, %v8962_v50  ;;  %v8996_v18 = vpack.c.bf16 %v8964_v17, %v8964_v17  ;;  %v13453_v30 = vpop.f32.mrb[80].mxu1  ;;  %9401 = vmatpush1.bf16.msra.mxu0 %v11237_v10 }
 0x554   : > { %v8228_v8 = vcombine.high %v8226_v39, %v8226_v39  ;;  %v8571_v53 = vrot.slane %v8570_v2, 4  ;;  %v8577_v51 = vsel %vm2427_vm5, %v8227_v34, -inf  ;;  %v8584_v6 = vsel %vm2427_vm5, %v8226_v39, -inf  ;;  %v13457_v5 = vpop.f32.mrb[81].mxu1  ;;  %v11240_v39 = vld [vmem:[%s14088_s5 + $0xc0] ss:$16 sps:$4 sm:$0xff]   ;;  %9349 = vmatprep.subr.bf16.mxu1 %v11242_v44 }
 0x555   : > { %v8995_v57 = vpack.c.bf16 %v8963_v12, %v8963_v12  ;;  %v9114_v9 = vunpack.c.l.b16 %v8996_v18  ;;  %v13462_v7 = vpop.f32.mrb[82].mxu1  ;;  %v8578_v61 = vrot.slane %v8577_v51, 4  ;;  %v8585_v29 = vrot.slane %v8584_v6, 4  ;;  %v11245_v34 = vld [vmem:[%s14088_s5 + $0xcc] ss:$16 sps:$4 sm:$0xff]   ;;  %9350 = vmatpush1.bf16.msra.mxu1 %v11240_v39 }
 0x556   : > { %v8572_v52 = vmax.f32 %v8570_v2, %v8571_v53  ;;  %v8591_v14 = vsel %vm2427_vm5, %v8228_v8, -inf  ;;  %v13471_v59 = vpop.f32.mrb[83].mxu1  ;;  %v9112_v16 = vunpack.c.l.b16 %v8994_v33  ;;  %v8229_v55 = vcombine.high %v8149_v43, %v8149_v43  ;;  %9402 = vmatprep.subr.bf16.mxu0 %v11245_v34 }
 0x557   : > { %v9113_v28 = vunpack.c.l.b16 %v8995_v57  ;;  %v8592_v46 = vrot.slane %v8591_v14, 4  ;;  %v8579_v38 = vmax.f32 %v8577_v51, %v8578_v61  ;;  %v8586_v50 = vmax.f32 %v8584_v6, %v8585_v29 }
 0x558   : > { %v8573_v49 = vrot.slane %v8572_v52, 2  ;;  %v8236_v17 = vrot.slane %v8149_v43, %v11488_v58  ;;  %v8243_v33 = vrot.slane %v8229_v55, %v11488_v58  ;;  %v8100_v18 = vadd.f32 %v13268_v41, %v8003_v1  ;;  %v11243_v43 = vld [vmem:[%s14088_s5 + $0xc8] ss:$16 sps:$4 sm:$0xff]  }
 0x559   : > { %v9145_v2 = vsel %vm9144_vm2, %v9113_v28, %v9112_v16  ;;  %v8593_v12 = vmax.f32 %v8591_v14, %v8592_v46  ;;  %v8580_v51 = vrot.slane %v8579_v38, 2  ;;  %v8587_v6 = vrot.slane %v8586_v50, 2  ;;  %9403 = vmatpush1.bf16.msra.mxu0 %v11243_v43 }
 0x55a   : > { %v13493_v8 = vsel %vm4798_vm6, %v9114_v9, %v9145_v2  ;;  %v8574_v53 = vmax.f32 %v8572_v52, %v8573_v49  ;;  %v8244_v57 = vcombine.high %v8236_v17, %v8236_v17  ;;  %v8245_v13 = vcombine.high %v8243_v33, %v8243_v33 }
 0x55b   : > { %14117 = vst [vmem:[#allocation15_spill] sm:$0xff] %v13493_v8  ;;  %v8594_v27 = vrot.slane %v8593_v12, 2  ;;  %v8598_v61 = vsel %vm2427_vm5, %v8236_v17, -inf  ;;  %v13496_v29 = vpop.f32.mrb[84].mxu1  ;;  %v8581_v1 = vmax.f32 %v8579_v38, %v8580_v51  ;;  %v8588_v10 = vmax.f32 %v8586_v50, %v8587_v6 }
 0x55c   : > { %v8575_v41 = vrot.slane %v8574_v53, 1  ;;  %v8599_v14 = vrot.slane %v8598_v61, 4  ;;  %v13498_v3 = vpop.f32.mrb[85].mxu1  ;;  %v8605_v52 = vsel %vm2427_vm5, %v8244_v57, -inf  ;;  %v8612_v16 = vsel %vm2427_vm5, %v8243_v33, -inf }
 0x55d   : > { %v13500_v9 = vmax.f32 %v8593_v12, %v8594_v27  ;;  %v8619_v28 = vsel %vm2427_vm5, %v8245_v13, -inf  ;;  %v13505_v46 = vpop.f32.mrb[86].mxu1  ;;  %v8582_v44 = vrot.slane %v8581_v1, 1  ;;  %v8606_v17 = vrot.slane %v8605_v52, 4 }
 0x55e   : > { %v8600_v49 = vmax.f32 %v8598_v61, %v8599_v14  ;;  %v13509_v38 = vpop.f32.mrb[87].mxu1  ;;  %v8576_v50 = vmax.f32 %v8574_v53, %v8575_v41  ;;  %v8613_v39 = vrot.slane %v8612_v16, 4  ;;  %v8620_v34 = vrot.slane %v8619_v28, 4 }
 0x55f   : > { %v8589_v2 = vrot.slane %v8588_v10, 1  ;;  %v8150_v51 = vmax.f32 %v8100_v18, 0.0  ;;  %v8583_v6 = vmax.f32 %v8581_v1, %v8582_v44  ;;  %v8607_v27 = vmax.f32 %v8605_v52, %v8606_v17 }
 0x560   : > { %v8601_v33 = vrot.slane %v8600_v49, 2  ;;  %v8614_v57 = vmax.f32 %v8612_v16, %v8613_v39  ;;  %v8621_v43 = vmax.f32 %v8619_v28, %v8620_v34  ;;  %v10851_v61 = vadd.f32 %v13432_v35, %v13430_v19 }
 0x561   : > { %v8246_v8 = vcombine.high %v8150_v51, %v8150_v51  ;;  %v8253_v55 = vrot.slane %v8150_v51, %v11488_v58  ;;  %v8608_v53 = vrot.slane %v8607_v27, 2  ;;  %v10854_v4 = vadd.f32 %v13438_v48, %v13434_v42 }
 0x562   : > { %v8602_v13 = vmax.f32 %v8600_v49, %v8601_v33  ;;  %v8615_v41 = vrot.slane %v8614_v57, 2  ;;  %v8622_v14 = vrot.slane %v8621_v43, 2 }
 0x563   : > { %v13517_v12 = vpop.f32.mrb[88].mxu1  ;;  %v8260_v1 = vrot.slane %v8246_v8, %v11488_v58  ;;  %v8261_v52 = vcombine.high %v8253_v55, %v8253_v55  ;;  %v8626_v16 = vsel %vm2427_vm5, %v8253_v55, -inf  ;;  %v8609_v44 = vmax.f32 %v8607_v27, %v8608_v53 }
 0x564   : > { %v8603_v18 = vrot.slane %v8602_v13, 1  ;;  %v13521_v28 = vpop.f32.mrb[89].mxu1  ;;  %v8616_v49 = vmax.f32 %v8614_v57, %v8615_v41  ;;  %v8623_v17 = vmax.f32 %v8621_v43, %v8622_v14  ;;  %v8627_v35 = vrot.slane %v8626_v16, 4 }
 0x565   : > { %v13523_v19 = vpop.f32.mrb[90].mxu1  ;;  %v8262_v34 = vcombine.high %v8260_v1, %v8260_v1  ;;  %v8633_v42 = vsel %vm2427_vm5, %v8261_v52, -inf  ;;  %v8640_v48 = vsel %vm2427_vm5, %v8260_v1, -inf  ;;  %v8590_v8 = vmax.f32 %v8588_v10, %v8589_v2  ;;  %v11248_v10 = vld [vmem:[%s14088_s5 + $0xe4] ss:$16 sps:$4 sm:$0xff]  }
 0x566   : > { %v8604_v39 = vmax.f32 %v8602_v13, %v8603_v18  ;;  %v13527_v33 = vpop.f32.mrb[91].mxu1  ;;  %v8610_v51 = vrot.slane %v8609_v44, 1  ;;  %v8617_v32 = vrot.slane %v8616_v49, 1  ;;  %v8628_v55 = vmax.f32 %v8626_v16, %v8627_v35  ;;  %v11246_v18 = vld [vmem:[%s14088_s5 + $0xe0] ss:$16 sps:$4 sm:$0xff]   ;;  %9351 = vmatprep.subr.bf16.mxu1 %v11248_v10 }
 0x567   : > { %v8634_v27 = vrot.slane %v8633_v42, 4  ;;  %v8641_v57 = vrot.slane %v8640_v48, 4  ;;  %v8647_v43 = vsel %vm2427_vm5, %v8262_v34, -inf  ;;  %v8624_v13 = vrot.slane %v8623_v17, 1  ;;  %v11249_v52 = vld [vmem:[%s14088_s5 + $0xe8] ss:$16 sps:$4 sm:$0xff]   ;;  %9352 = vmatpush1.bf16.msra.mxu1 %v11246_v18 }
 0x568   : > { %v13529_v0 = vmax.f32 %v8576_v50, %v8604_v39  ;;  %v8611_v53 = vmax.f32 %v8609_v44, %v8610_v51  ;;  %v8618_v41 = vmax.f32 %v8616_v49, %v8617_v32  ;;  %v8629_v14 = vrot.slane %v8628_v55, 2  ;;  %v11251_v32 = vld [vmem:[%s14088_s5 + $0xec] ss:$16 sps:$4 sm:$0xff]  }
 0x569   : > { %v8635_v2 = vmax.f32 %v8633_v42, %v8634_v27  ;;  %v8642_v1 = vmax.f32 %v8640_v48, %v8641_v57  ;;  %v8648_v50 = vrot.slane %v8647_v43, 4  ;;  %v8006_v35 = vadd.f32 %v10851_v61, %v13295_v11  ;;  %9404 = vmatprep.subr.bf16.mxu0 %v11251_v32 }
 0x56a   : > { %v13544_v16 = vmax.f32 %v8583_v6, %v8611_v53  ;;  %v13546_v44 = vmax.f32 %v8590_v8, %v8618_v41  ;;  %v8630_v49 = vmax.f32 %v8628_v55, %v8629_v14  ;;  %v14118_v34 = vpack.c.bf16 %v13451_v63, %v13451_v63  ;;  %9405 = vmatpush1.bf16.msra.mxu0 %v11249_v52 }
 0x56b   : > { %v13549_v39 = vpop.f32.mrb[92].mxu1  ;;  %v8636_v48 = vrot.slane %v8635_v2, 2  ;;  %v8643_v51 = vrot.slane %v8642_v1, 2  ;;  %v8649_v27 = vmax.f32 %v8647_v43, %v8648_v50  ;;  %v14121_v6 = vrot.slane %v13500_v9, 1 }
 0x56c   : > { %v13554_v42 = vunpack.c.l.b16 %v14118_v34  ;;  %v13556_v57 = vpop.f32.mrb[93].mxu1  ;;  %v13563_v11 = vmax.f32 %v8623_v17, %v8624_v13  ;;  %v8631_v61 = vrot.slane %v8630_v49, 1  ;;  %v8103_v55 = vadd.f32 %v13277_v26, %v8006_v35 }
 0x56d   : > { %14120 = vst [vmem:[#allocation17_spill] sm:$0xff] %v13556_v57  ;;  %v13561_v8 = vmax.f32 %v13500_v9, %v14121_v6  ;;  %v13566_v63 = vpop.f32.mrb[94].mxu1  ;;  %v8637_v53 = vmax.f32 %v8635_v2, %v8636_v48  ;;  %v8644_v41 = vmax.f32 %v8642_v1, %v8643_v51  ;;  %v8650_v43 = vrot.slane %v8649_v27, 2 }
 0x56e   : > { %14119 = vst [vmem:[#allocation16_spill] sm:$0xff] %v13554_v42  ;;  %14123 = vst [vmem:[#allocation19_spill] sm:$0xff] %v13563_v11  ;;  %v8011_v14 = vadd.f32 %v10854_v4, %v13306_v56  ;;  %v13569_v10 = vpop.f32.mrb[95].mxu1  ;;  %v13575_v17 = vmax.f32 %v8630_v49, %v8631_v61  ;;  %v8151_v13 = vmax.f32 %v8103_v55, 0.0  ;;  %v10857_v56 = vadd.f32 %v13444_v54, %v13440_v47 }
 0x56f   : > { %14122 = vst [vmem:[#allocation18_spill] sm:$0xff] %v13561_v8  ;;  %14124 = vst [vmem:[#allocation20_spill] sm:$0xff] %v13566_v63  ;;  %v8638_v26 = vrot.slane %v8637_v53, 1  ;;  %v8645_v50 = vrot.slane %v8644_v41, 1  ;;  %v8651_v32 = vmax.f32 %v8649_v27, %v8650_v43  ;;  %v13583_v4 = vadd.f32 %v13457_v5, %v13453_v30 }
 0x570   : > { %14125 = vst [vmem:[#allocation21_spill] sm:$0xff] %v13569_v10  ;;  %v8108_v2 = vadd.f32 %v13266_v36, %v8011_v14  ;;  %v8263_v1 = vcombine.high %v8151_v13, %v8151_v13  ;;  %v8270_v52 = vrot.slane %v8151_v13, %v11488_v58  ;;  %v8014_v6 = vadd.f32 %v10857_v56, %v13313_v25 }
 0x571   : > { %v13585_v35 = vmax.f32 %v8637_v53, %v8638_v26  ;;  %v13587_v49 = vmax.f32 %v8644_v41, %v8645_v50  ;;  %v8652_v34 = vrot.slane %v8651_v32, 1 }
 0x572   : > { %v8152_v48 = vmax.f32 %v8108_v2, 0.0  ;;  %v8277_v51 = vrot.slane %v8263_v1, %v11488_v58  ;;  %v8278_v27 = vcombine.high %v8270_v52, %v8270_v52  ;;  %v8654_v36 = vsel %vm2427_vm5, %v8270_v52, -inf }
 0x573   : > { %v13592_v61 = vmax.f32 %v8651_v32, %v8652_v34  ;;  %v8655_v47 = vrot.slane %v8654_v36, 4  ;;  %v8111_v41 = vadd.f32 %v13273_v24, %v8014_v6 }
 0x574   : > { %v8280_v54 = vcombine.high %v8152_v48, %v8152_v48  ;;  %v8287_v30 = vrot.slane %v8152_v48, %v11488_v58  ;;  %v8279_v5 = vcombine.high %v8277_v51, %v8277_v51  ;;  %v8661_v55 = vsel %vm2427_vm5, %v8278_v27, -inf }
 0x575   : > { %v8668_v53 = vsel %vm2427_vm5, %v8277_v51, -inf  ;;  %v8656_v43 = vmax.f32 %v8654_v36, %v8655_v47  ;;  %v8662_v14 = vrot.slane %v8661_v55, 4  ;;  %v13601_v2 = vmax.f32 %v8111_v41, 0.0 }
 0x576   : > { %v8669_v13 = vrot.slane %v8668_v53, 4  ;;  %v8294_v26 = vrot.slane %v8280_v54, %v11488_v58  ;;  %v8675_v25 = vsel %vm2427_vm5, %v8279_v5, -inf  ;;  %v8295_v50 = vcombine.high %v8287_v30, %v8287_v30 }
 0x577   : > { %v8682_v32 = vsel %vm2427_vm5, %v8287_v30, -inf  ;;  %v8657_v1 = vrot.slane %v8656_v43, 2  ;;  %v8663_v52 = vmax.f32 %v8661_v55, %v8662_v14  ;;  %v8676_v34 = vrot.slane %v8675_v25, 4 }
 0x578   : > { %v8670_v56 = vmax.f32 %v8668_v53, %v8669_v13  ;;  %v8296_v48 = vcombine.high %v8294_v26, %v8294_v26  ;;  %v8683_v51 = vrot.slane %v8682_v32, 4  ;;  %v8689_v24 = vsel %vm2427_vm5, %v8295_v50, -inf }
 0x579   : > { %v8696_v27 = vsel %vm2427_vm5, %v8294_v26, -inf  ;;  %v8658_v36 = vmax.f32 %v8656_v43, %v8657_v1  ;;  %v8664_v6 = vrot.slane %v8663_v52, 2  ;;  %v8677_v54 = vmax.f32 %v8675_v25, %v8676_v34 }
 0x57a   : > { %v8671_v47 = vrot.slane %v8670_v56, 2  ;;  %v8684_v5 = vmax.f32 %v8682_v32, %v8683_v51  ;;  %v8690_v9 = vrot.slane %v8689_v24, 4  ;;  %v8697_v18 = vrot.slane %v8696_v27, 4 }
 0x57b   : > { %v8703_v30 = vsel %vm2427_vm5, %v8296_v48, -inf  ;;  %v8659_v41 = vrot.slane %v8658_v36, 1  ;;  %v8665_v42 = vmax.f32 %v8663_v52, %v8664_v6  ;;  %v8678_v53 = vrot.slane %v8677_v54, 2 }
 0x57c   : > { %v8672_v55 = vmax.f32 %v8670_v56, %v8671_v47  ;;  %v8685_v14 = vrot.slane %v8684_v5, 2  ;;  %v8691_v13 = vmax.f32 %v8689_v24, %v8690_v9  ;;  %v8698_v8 = vmax.f32 %v8696_v27, %v8697_v18 }
 0x57d   : > { %v8704_v11 = vrot.slane %v8703_v30, 4  ;;  %v8660_v50 = vmax.f32 %v8658_v36, %v8659_v41  ;;  %v8666_v10 = vrot.slane %v8665_v42, 1  ;;  %v8679_v43 = vmax.f32 %v8677_v54, %v8678_v53 }
 0x57e   : > { %v8673_v26 = vrot.slane %v8672_v55, 1  ;;  %v8686_v1 = vmax.f32 %v8684_v5, %v8685_v14  ;;  %v8692_v63 = vrot.slane %v8691_v13, 2  ;;  %v8699_v25 = vrot.slane %v8698_v8, 2 }
 0x57f   : > { %v8705_v32 = vmax.f32 %v8703_v30, %v8704_v11  ;;  %v8667_v34 = vmax.f32 %v8665_v42, %v8666_v10  ;;  %v8680_v57 = vrot.slane %v8679_v43, 1  ;;  %v8970_v48 = vmax.f32 %v13575_v17, %v8660_v50 }
 0x580   : > { %v8674_v51 = vmax.f32 %v8672_v55, %v8673_v26  ;;  %v8687_v52 = vrot.slane %v8686_v1, 1  ;;  %v8693_v56 = vmax.f32 %v8691_v13, %v8692_v63  ;;  %v8700_v6 = vmax.f32 %v8698_v8, %v8699_v25 }
 0x581   : > { %v8706_v47 = vrot.slane %v8705_v32, 2  ;;  %v8681_v9 = vmax.f32 %v8679_v43, %v8680_v57  ;;  %v8971_v18 = vmax.f32 %v13585_v35, %v8667_v34  ;;  %v9002_v27 = vpack.c.bf16 %v8970_v48, %v8970_v48 }
 0x582   : > { %v8972_v24 = vmax.f32 %v13587_v49, %v8674_v51  ;;  %v9000_v36 = vpack.c.bf16 %v13546_v44, %v13546_v44  ;;  %v14126_v42 = vpack.c.bf16 %v13529_v0, %v13529_v0  ;;  %v8694_v10 = vrot.slane %v8693_v56, 1 }
 0x583   : > { %v8701_v17 = vrot.slane %v8700_v6, 1  ;;  %v13617_v63 = vmax.f32 %v13592_v61, %v8681_v9  ;;  %v9003_v8 = vpack.c.bf16 %v8971_v18, %v8971_v18  ;;  %v13619_v54 = vmax.f32 %v8705_v32, %v8706_v47 }
 0x584   : > { %v13614_v11 = vunpack.c.l.b16 %v14126_v42  ;;  %v9004_v57 = vpack.c.bf16 %v8972_v24, %v8972_v24  ;;  %v14127_v35 = vpack.c.bf16 %v13544_v16, %v13544_v16  ;;  %v9120_v5 = vunpack.c.l.b16 %v9002_v27 }
 0x585   : > { %v13626_v30 = vmax.f32 %v8686_v1, %v8687_v52  ;;  %v8297_v0 = vcombine.high %v13601_v2, %v13601_v2  ;;  %v9121_v41 = vunpack.c.l.b16 %v9003_v8  ;;  %v13630_v53 = vmax.f32 %v8693_v56, %v8694_v10 }
 0x586   : > { %v13624_v49 = vunpack.c.l.b16 %v14127_v35  ;;  %v9122_v55 = vunpack.c.l.b16 %v9004_v57  ;;  %v8304_v61 = vrot.slane %v13601_v2, %v11488_v58  ;;  %v8702_v14 = vmax.f32 %v8700_v6, %v8701_v17 }
 0x587   : > { %v8311_v13 = vrot.slane %v8297_v0, %v11488_v58  ;;  %v8019_v16 = vadd.f32 %v13583_v4, %v13330_v15  ;;  %v10863_v50 = vadd.f32 %v13471_v59, %v13462_v7  ;;  %v9152_v26 = vsel %vm9144_vm2, %v9121_v41, %v9120_v5 }
 0x588   : > { %v8708_v43 = vrot.slane %v13619_v54, 1  ;;  %v8312_v1 = vcombine.high %v8304_v61, %v8304_v61  ;;  %v8710_v25 = vsel %vm2427_vm5, %v8304_v61, -inf  ;;  %v13643_v32 = vsel %vm4798_vm6, %v9122_v55, %v9152_v26 }
 0x589   : > { %v8313_v2 = vcombine.high %v8311_v13, %v8311_v13  ;;  %v8711_v34 = vrot.slane %v8710_v25, 4  ;;  %v8724_v51 = vsel %vm2427_vm5, %v8311_v13, -inf  ;;  %v8116_v4 = vadd.f32 %v13292_v37, %v8019_v16 }
 0x58a   : > { %v8717_v48 = vsel %vm2427_vm5, %v8312_v1, -inf  ;;  %v8725_v15 = vrot.slane %v8724_v51, 4  ;;  %v8022_v7 = vadd.f32 %v10863_v50, %v13343_v31  ;;  %v10866_v6 = vadd.f32 %v13498_v3, %v13496_v29 }
 0x58b   : > { %v8712_v59 = vmax.f32 %v8710_v25, %v8711_v34  ;;  %v8718_v52 = vrot.slane %v8717_v48, 4  ;;  %v8731_v56 = vsel %vm2427_vm5, %v8313_v2, -inf  ;;  %v8154_v18 = vmax.f32 %v8116_v4, 0.0 }
 0x58c   : > { %v8726_v47 = vmax.f32 %v8724_v51, %v8725_v15  ;;  %v8732_v9 = vrot.slane %v8731_v56, 4  ;;  %v8119_v24 = vadd.f32 %v13301_v60, %v8022_v7  ;;  %v8027_v10 = vadd.f32 %v10866_v6, %v13369_v62 }
 0x58d   : > { %v8713_v27 = vrot.slane %v8712_v59, 2  ;;  %v8719_v42 = vmax.f32 %v8717_v48, %v8718_v52  ;;  %v13656_v37 = vadd.f32 %v13509_v38, %v13505_v46  ;;  %v8314_v8 = vcombine.high %v8154_v18, %v8154_v18 }
 0x58e   : > { %v8727_v31 = vrot.slane %v8726_v47, 2  ;;  %v8733_v17 = vmax.f32 %v8731_v56, %v8732_v9  ;;  %v8321_v57 = vrot.slane %v8154_v18, %v11488_v58  ;;  %v8155_v3 = vmax.f32 %v8119_v24, 0.0 }
 0x58f   : > { %v8714_v35 = vmax.f32 %v8712_v59, %v8713_v27  ;;  %v8720_v29 = vrot.slane %v8719_v42, 2  ;;  %v13660_v5 = vadd.f32 %v13290_v23, %v8027_v10  ;;  %v8328_v41 = vrot.slane %v8314_v8, %v11488_v58 }
 0x590   : > { %v8728_v60 = vmax.f32 %v8726_v47, %v8727_v31  ;;  %v8734_v0 = vrot.slane %v8733_v17, 2  ;;  %v8329_v62 = vcombine.high %v8321_v57, %v8321_v57  ;;  %v9005_v46 = vpack.c.bf16 %v13617_v63, %v13617_v63 }
 0x591   : > { %v8715_v38 = vrot.slane %v8714_v35, 1  ;;  %v8721_v55 = vmax.f32 %v8719_v42, %v8720_v29  ;;  %v8738_v61 = vsel %vm2427_vm5, %v8321_v57, -inf  ;;  %v8330_v50 = vcombine.high %v8328_v41, %v8328_v41 }
 0x592   : > { %v8729_v13 = vrot.slane %v8728_v60, 1  ;;  %v8735_v16 = vmax.f32 %v8733_v17, %v8734_v0  ;;  %v8739_v26 = vrot.slane %v8738_v61, 4  ;;  %v8745_v23 = vsel %vm2427_vm5, %v8329_v62, -inf }
 0x593   : > { %v8716_v1 = vmax.f32 %v8714_v35, %v8715_v38  ;;  %v8722_v25 = vrot.slane %v8721_v55, 1  ;;  %v8752_v2 = vsel %vm2427_vm5, %v8328_v41, -inf  ;;  %v8746_v48 = vrot.slane %v8745_v23, 4 }
 0x594   : > { %v8730_v34 = vmax.f32 %v8728_v60, %v8729_v13  ;;  %v8740_v51 = vmax.f32 %v8738_v61, %v8739_v26  ;;  %v8331_v15 = vcombine.high %v8155_v3, %v8155_v3  ;;  %v8753_v7 = vrot.slane %v8752_v2, 4 }
 0x595   : > { %v8723_v4 = vmax.f32 %v8721_v55, %v8722_v25  ;;  %v8974_v63 = vmax.f32 %v13626_v30, %v8716_v1  ;;  %v8759_v59 = vsel %vm2427_vm5, %v8330_v50, -inf  ;;  %v8736_v52 = vrot.slane %v8735_v16, 1 }
 0x596   : > { %v13670_v56 = vmax.f32 %v8702_v14, %v8730_v34  ;;  %v8741_v6 = vrot.slane %v8740_v51, 2  ;;  %v8747_v47 = vmax.f32 %v8745_v23, %v8746_v48  ;;  %v13675_v9 = vunpack.c.l.b16 %v9000_v36 }
 0x597   : > { %v13678_v18 = vmax.f32 %v13630_v53, %v8723_v4  ;;  %v8754_v24 = vmax.f32 %v8752_v2, %v8753_v7  ;;  %v8760_v27 = vrot.slane %v8759_v59, 4  ;;  %v13683_v30 = vmax.f32 %v13619_v54, %v8708_v43 }
 0x598   : > { %v8742_v42 = vmax.f32 %v8740_v51, %v8741_v6  ;;  %v8748_v14 = vrot.slane %v8747_v47, 2  ;;  %v8338_v10 = vrot.slane %v8155_v3, %v11488_v58  ;;  %v13686_v31 = vunpack.c.l.b16 %v9005_v46 }
 0x599   : > { %v9006_v17 = vpack.c.bf16 %v8974_v63, %v8974_v63  ;;  %v8755_v44 = vrot.slane %v8754_v24, 2  ;;  %v8761_v36 = vmax.f32 %v8759_v59, %v8760_v27  ;;  %v13688_v8 = vmax.f32 %v8735_v16, %v8736_v52 }
 0x59a   : > { %v8743_v53 = vrot.slane %v8742_v42, 1  ;;  %v8749_v57 = vmax.f32 %v8747_v47, %v8748_v14  ;;  %v8345_v35 = vrot.slane %v8331_v15, %v11488_v58  ;;  %v9008_v29 = vpack.c.bf16 %v13670_v56, %v13670_v56 }
 0x59b   : > { %v8756_v54 = vmax.f32 %v8754_v24, %v8755_v44  ;;  %v8762_v43 = vrot.slane %v8761_v36, 2  ;;  %v8346_v60 = vcombine.high %v8338_v10, %v8338_v10  ;;  %v9007_v3 = vpack.c.bf16 %v13678_v18, %v13678_v18 }
 0x59c   : > { %v8750_v0 = vrot.slane %v8749_v57, 1  ;;  %v8347_v41 = vcombine.high %v8345_v35, %v8345_v35  ;;  %v8766_v62 = vsel %vm2427_vm5, %v8338_v10, -inf  ;;  %v13696_v46 = vunpack.c.l.b16 %v9006_v17 }
 0x59d   : > { %v8757_v38 = vrot.slane %v8756_v54, 1  ;;  %v8767_v55 = vrot.slane %v8766_v62, 4  ;;  %v8773_v61 = vsel %vm2427_vm5, %v8346_v60, -inf  ;;  %v8744_v13 = vmax.f32 %v8742_v42, %v8743_v53 }
 0x59e   : > { %v8774_v16 = vrot.slane %v8773_v61, 4  ;;  %v8780_v50 = vsel %vm2427_vm5, %v8345_v35, -inf  ;;  %v8787_v26 = vsel %vm2427_vm5, %v8347_v41, -inf  ;;  %v8751_v1 = vmax.f32 %v8749_v57, %v8750_v0 }
 0x59f   : > { %v8763_v25 = vmax.f32 %v8761_v36, %v8762_v43  ;;  %v8768_v23 = vmax.f32 %v8766_v62, %v8767_v55  ;;  %v8781_v2 = vrot.slane %v8780_v50, 4  ;;  %v8788_v51 = vrot.slane %v8787_v26, 4 }
 0x5a0   : > { %v8775_v34 = vmax.f32 %v8773_v61, %v8774_v16  ;;  %v8156_v48 = vmax.f32 %v13660_v5, 0.0  ;;  %v8030_v15 = vadd.f32 %v13656_v37, %v13383_v22  ;;  %v8758_v4 = vmax.f32 %v8756_v54, %v8757_v38 }
 0x5a1   : > { %v8769_v63 = vrot.slane %v8768_v23, 2  ;;  %v8782_v7 = vmax.f32 %v8780_v50, %v8781_v2  ;;  %v13706_v59 = vadd.f32 %v13224_v20, %v13349_v45  ;;  %v8789_v6 = vmax.f32 %v8787_v26, %v8788_v51 }
 0x5a2   : > { %v8776_v52 = vrot.slane %v8775_v34, 2  ;;  %v8348_v47 = vcombine.high %v8156_v48, %v8156_v48  ;;  %v8355_v24 = vrot.slane %v8156_v48, %v11488_v58  ;;  %v8127_v14 = vadd.f32 %v13297_v40, %v8030_v15 }
 0x5a3   : > { %v8770_v27 = vmax.f32 %v8768_v23, %v8769_v63  ;;  %v8783_v42 = vrot.slane %v8782_v7, 2  ;;  %v10872_v5 = vadd.f32 %v13521_v28, %v13517_v12  ;;  %v8790_v37 = vrot.slane %v8789_v6, 2 }
 0x5a4   : > { %v8777_v22 = vmax.f32 %v8775_v34, %v8776_v52  ;;  %v8362_v10 = vrot.slane %v8348_v47, %v11488_v58  ;;  %v8363_v17 = vcombine.high %v8355_v24, %v8355_v24  ;;  %v8764_v44 = vrot.slane %v8763_v25, 1 }
 0x5a5   : > { %v8771_v20 = vrot.slane %v8770_v27, 1  ;;  %v8784_v45 = vmax.f32 %v8782_v7, %v8783_v42  ;;  %v8794_v36 = vsel %vm2427_vm5, %v8355_v24, -inf  ;;  %v8791_v57 = vmax.f32 %v8789_v6, %v8790_v37 }
 0x5a6   : > { %v8778_v53 = vrot.slane %v8777_v22, 1  ;;  %v8364_v35 = vcombine.high %v8362_v10, %v8362_v10  ;;  %v8795_v54 = vrot.slane %v8794_v36, 4  ;;  %v8801_v40 = vsel %vm2427_vm5, %v8363_v17, -inf }
 0x5a7   : > { %v8772_v43 = vmax.f32 %v8770_v27, %v8771_v20  ;;  %v8785_v60 = vrot.slane %v8784_v45, 1  ;;  %v8808_v12 = vsel %vm2427_vm5, %v8362_v10, -inf  ;;  %v8802_v41 = vrot.slane %v8801_v40, 4 }
 0x5a8   : > { %v8779_v28 = vmax.f32 %v8777_v22, %v8778_v53  ;;  %v8796_v0 = vmax.f32 %v8794_v36, %v8795_v54  ;;  %v8157_v62 = vmax.f32 %v8127_v14, 0.0  ;;  %v8809_v61 = vrot.slane %v8808_v12, 4 }
 0x5a9   : > { %v8786_v38 = vmax.f32 %v8784_v45, %v8785_v60  ;;  %v8978_v55 = vmax.f32 %v8744_v13, %v8772_v43  ;;  %v8815_v16 = vsel %vm2427_vm5, %v8364_v35, -inf  ;;  %v8792_v50 = vrot.slane %v8791_v57, 1 }
 0x5aa   : > { %v8979_v26 = vmax.f32 %v8751_v1, %v8779_v28  ;;  %v8797_v23 = vrot.slane %v8796_v0, 2  ;;  %v8803_v2 = vmax.f32 %v8801_v40, %v8802_v41  ;;  %v8810_v48 = vmax.f32 %v8808_v12, %v8809_v61  ;;  %v14128_v40 = vld [vmem:[#allocation6_spill] sm:$0xff] }
 0x5ab   : > { %v8980_v34 = vmax.f32 %v8758_v4, %v8786_v38  ;;  %v9010_v51 = vpack.c.bf16 %v8978_v55, %v8978_v55  ;;  %v8816_v15 = vrot.slane %v8815_v16, 4  ;;  %v8365_v6 = vcombine.high %v8157_v62, %v8157_v62  ;;  %v14129_v41 = vld [vmem:[#allocation10_spill] sm:$0xff] }
 0x5ac   : > { %v9011_v63 = vpack.c.bf16 %v8979_v26, %v8979_v26  ;;  %v8798_v7 = vmax.f32 %v8796_v0, %v8797_v23  ;;  %v8804_v52 = vrot.slane %v8803_v2, 2  ;;  %v13720_v47 = vunpack.c.l.b16 %v9007_v3 }
 0x5ad   : > { %v13725_v13 = vunpack.c.l.b16 %v9008_v29  ;;  %v9012_v1 = vpack.c.bf16 %v8980_v34, %v8980_v34  ;;  %v8811_v24 = vrot.slane %v8810_v48, 2  ;;  %v13727_v4 = vmax.f32 %v8763_v25, %v8764_v44 }
 0x5ae   : > { %v13729_v27 = vmax.f32 %v8791_v57, %v8792_v50  ;;  %v13731_v42 = vmax.f32 %v8815_v16, %v8816_v15  ;;  %v8372_v14 = vrot.slane %v8157_v62, %v11488_v58  ;;  %v13734_v22 = vunpack.c.l.b16 %v9010_v51  ;;  %v14130_v16 = vld [vmem:[#allocation13_spill] sm:$0xff]  ;;  %v14131_v50 = vld [vmem:[#allocation7_spill] sm:$0xff] }
 0x5af   : > { %v13736_v18 = vunpack.c.l.b16 %v9011_v63  ;;  %v8799_v3 = vrot.slane %v8798_v7, 1  ;;  %v8379_v37 = vrot.slane %v8365_v6, %v11488_v58  ;;  %v13739_v56 = vunpack.c.l.b16 %v9012_v1  ;;  %v14133_v63 = vld [vmem:[#allocation14_spill] sm:$0xff] }
 0x5b0   : > { %v8805_v29 = vmax.f32 %v8803_v2, %v8804_v52  ;;  %v8380_v10 = vcombine.high %v8372_v14, %v8372_v14  ;;  %v8822_v25 = vsel %vm2427_vm5, %v8372_v14, -inf  ;;  %v13742_v17 = vmax.f32 %v8810_v48, %v8811_v24  ;;  %v14134_v52 = vld [vmem:[#allocation8_spill] sm:$0xff] }
 0x5b1   : > { %v8381_v44 = vcombine.high %v8379_v37, %v8379_v37  ;;  %v8823_v20 = vrot.slane %v8822_v25, 4  ;;  %v8836_v45 = vsel %vm2427_vm5, %v8379_v37, -inf  ;;  %v8818_v36 = vrot.slane %v13731_v42, 2  ;;  %v14136_v37 = vld [vmem:[#allocation9_spill] sm:$0xff] }
 0x5b2   : > { %v8829_v53 = vsel %vm2427_vm5, %v8380_v10, -inf  ;;  %v8837_v57 = vrot.slane %v8836_v45, 4  ;;  %v8035_v35 = vadd.f32 %v10872_v5, %v13706_v59  ;;  %v7941_v12 = vadd.f32 %v14128_v40, %v13351_v21  ;;  %v14132_v59 = vld [vmem:[#allocation17_spill] sm:$0xff] }
 0x5b3   : > { %v8824_v54 = vmax.f32 %v8822_v25, %v8823_v20  ;;  %v8830_v43 = vrot.slane %v8829_v53, 4  ;;  %v8843_v60 = vsel %vm2427_vm5, %v8381_v44, -inf  ;;  %v10875_v38 = vadd.f32 %v13527_v33, %v13523_v19 }
 0x5b4   : > { %v8838_v28 = vmax.f32 %v8836_v45, %v8837_v57  ;;  %v8844_v0 = vrot.slane %v8843_v60, 4  ;;  %v8132_v62 = vadd.f32 %v14129_v41, %v8035_v35  ;;  %v7946_v26 = vadd.f32 %v14131_v50, %v14130_v16 }
 0x5b5   : > { %v8825_v55 = vrot.slane %v8824_v54, 2  ;;  %v8831_v61 = vmax.f32 %v8829_v53, %v8830_v43  ;;  %v10878_v5 = vadd.f32 %v14132_v59, %v13549_v39  ;;  %v8800_v23 = vmax.f32 %v8798_v7, %v8799_v3  ;;  %v14135_v7 = vld [vmem:[#allocation12_spill] sm:$0xff] }
 0x5b6   : > { %v8806_v2 = vrot.slane %v8805_v29, 1  ;;  %v8158_v34 = vmax.f32 %v8132_v62, 0.0  ;;  %v8038_v51 = vadd.f32 %v10875_v38, %v7941_v12  ;;  %v8839_v48 = vrot.slane %v8838_v28, 2 }
 0x5b7   : > { %v8826_v21 = vmax.f32 %v8824_v54, %v8825_v55  ;;  %v8043_v15 = vadd.f32 %v10878_v5, %v7946_v26  ;;  %v13760_v6 = vadd.f32 %v14134_v52, %v14133_v63  ;;  %v8813_v19 = vrot.slane %v13742_v17, 1 }
 0x5b8   : > { %v13763_v33 = vmax.f32 %v8843_v60, %v8844_v0  ;;  %v8382_v1 = vcombine.high %v8158_v34, %v8158_v34  ;;  %v8389_v24 = vrot.slane %v8158_v34, %v11488_v58  ;;  %v8832_v39 = vrot.slane %v8831_v61, 2 }
 0x5b9   : > { %v8827_v14 = vrot.slane %v8826_v21, 1  ;;  %v8135_v3 = vadd.f32 %v14135_v7, %v8038_v51  ;;  %v8140_v10 = vadd.f32 %v14136_v37, %v8043_v15  ;;  %v13768_v25 = vmax.f32 %v8805_v29, %v8806_v2 }
 0x5ba   : > { %v8396_v44 = vrot.slane %v8382_v1, %v11488_v58  ;;  %v8397_v20 = vcombine.high %v8389_v24, %v8389_v24  ;;  %v8850_v45 = vsel %vm2427_vm5, %v8389_v24, -inf  ;;  %v13772_v57 = vmax.f32 %v8838_v28, %v8839_v48 }
 0x5bb   : > { %v8828_v53 = vmax.f32 %v8826_v21, %v8827_v14  ;;  %v8851_v35 = vrot.slane %v8850_v45, 4  ;;  %v8159_v54 = vmax.f32 %v8135_v3, 0.0  ;;  %v8846_v43 = vrot.slane %v13763_v33, 2 }
 0x5bc   : > { %v8398_v60 = vcombine.high %v8396_v44, %v8396_v44  ;;  %v8857_v40 = vsel %vm2427_vm5, %v8397_v20, -inf  ;;  %v8864_v12 = vsel %vm2427_vm5, %v8396_v44, -inf  ;;  %v13777_v0 = vmax.f32 %v8831_v61, %v8832_v39 }
 0x5bd   : > { %v13779_v29 = vmax.f32 %v8800_v23, %v8828_v53  ;;  %v8852_v41 = vmax.f32 %v8850_v45, %v8851_v35  ;;  %v8858_v62 = vrot.slane %v8857_v40, 4  ;;  %v8865_v38 = vrot.slane %v8864_v12, 4 }
 0x5be   : > { %v8871_v55 = vsel %vm2427_vm5, %v8398_v60, -inf  ;;  %v8399_v28 = vcombine.high %v8159_v54, %v8159_v54  ;;  %v8406_v16 = vrot.slane %v8159_v54, %v11488_v58  ;;  %v8160_v5 = vmax.f32 %v8140_v10, 0.0 }
 0x5bf   : > { %v8853_v50 = vrot.slane %v8852_v41, 2  ;;  %v8859_v26 = vmax.f32 %v8857_v40, %v8858_v62  ;;  %v8872_v59 = vrot.slane %v8871_v55, 4  ;;  %v8866_v2 = vmax.f32 %v8864_v12, %v8865_v38 }
 0x5c0   : > { %v8413_v34 = vrot.slane %v8399_v28, %v11488_v58  ;;  %v8414_v51 = vcombine.high %v8406_v16, %v8406_v16  ;;  %v8878_v61 = vsel %vm2427_vm5, %v8406_v16, -inf  ;;  %v8841_v45 = vrot.slane %v13772_v57, 1 }
 0x5c1   : > { %v8854_v23 = vmax.f32 %v8852_v41, %v8853_v50  ;;  %v8860_v21 = vrot.slane %v8859_v26, 2  ;;  %v8873_v48 = vmax.f32 %v8871_v55, %v8872_v59  ;;  %v8879_v15 = vrot.slane %v8878_v61, 4 }
 0x5c2   : > { %v8867_v63 = vrot.slane %v8866_v2, 2  ;;  %v8415_v52 = vcombine.high %v8413_v34, %v8413_v34  ;;  %v8885_v1 = vsel %vm2427_vm5, %v8414_v51, -inf  ;;  %v8892_v24 = vsel %vm2427_vm5, %v8413_v34, -inf }
 0x5c3   : > { %v8855_v14 = vrot.slane %v8854_v23, 1  ;;  %v8861_v39 = vmax.f32 %v8859_v26, %v8860_v21  ;;  %v8874_v7 = vrot.slane %v8873_v48, 2  ;;  %v8880_v3 = vmax.f32 %v8878_v61, %v8879_v15 }
 0x5c4   : > { %v8868_v37 = vmax.f32 %v8866_v2, %v8867_v63  ;;  %v8886_v10 = vrot.slane %v8885_v1, 4  ;;  %v8893_v44 = vrot.slane %v8892_v24, 4  ;;  %v8899_v20 = vsel %vm2427_vm5, %v8415_v52, -inf  ;;  %v14137_v63 = vld [vmem:[#allocation20_spill] sm:$0xff]  ;;  %v14138_v52 = vld [vmem:[#allocation21_spill] sm:$0xff] }
 0x5c5   : > { %v8862_v53 = vrot.slane %v8861_v39, 1  ;;  %v8875_v35 = vmax.f32 %v8873_v48, %v8874_v7  ;;  %v8881_v54 = vrot.slane %v8880_v3, 2  ;;  %v8834_v60 = vrot.slane %v13777_v0, 1 }
 0x5c6   : > { %v8887_v40 = vmax.f32 %v8885_v1, %v8886_v10  ;;  %v8894_v12 = vmax.f32 %v8892_v24, %v8893_v44  ;;  %v8900_v41 = vrot.slane %v8899_v20, 4  ;;  %v8856_v62 = vmax.f32 %v8854_v23, %v8855_v14 }
 0x5c7   : > { %v8869_v38 = vrot.slane %v8868_v37, 1  ;;  %v8882_v55 = vmax.f32 %v8880_v3, %v8881_v54  ;;  %v8416_v28 = vcombine.high %v8160_v5, %v8160_v5  ;;  %v8863_v16 = vmax.f32 %v8861_v39, %v8862_v53 }
 0x5c8   : > { %v8888_v50 = vrot.slane %v8887_v40, 2  ;;  %v8895_v26 = vrot.slane %v8894_v12, 2  ;;  %v8901_v59 = vmax.f32 %v8899_v20, %v8900_v41  ;;  %v8876_v2 = vrot.slane %v8875_v35, 1 }
 0x5c9   : > { %v8883_v34 = vrot.slane %v8882_v55, 1  ;;  %v8423_v51 = vrot.slane %v8160_v5, %v11488_v58  ;;  %v8430_v61 = vrot.slane %v8416_v28, %v11488_v58  ;;  %v10881_v1 = vadd.f32 %v14138_v52, %v14137_v63 }
 0x5ca   : > { %v8889_v21 = vmax.f32 %v8887_v40, %v8888_v50  ;;  %v8896_v48 = vmax.f32 %v8894_v12, %v8895_v26  ;;  %v8902_v15 = vrot.slane %v8901_v59, 2  ;;  %v8870_v40 = vmax.f32 %v8868_v37, %v8869_v38 }
 0x5cb   : > { %v8884_v23 = vmax.f32 %v8882_v55, %v8883_v34  ;;  %v8431_v24 = vcombine.high %v8423_v51, %v8423_v51  ;;  %v8432_v14 = vcombine.high %v8430_v61, %v8430_v61  ;;  %v8906_v39 = vsel %vm2427_vm5, %v8423_v51, -inf }
 0x5cc   : > { %v8890_v7 = vrot.slane %v8889_v21, 1  ;;  %v8897_v3 = vrot.slane %v8896_v48, 1  ;;  %v8903_v10 = vmax.f32 %v8901_v59, %v8902_v15  ;;  %v8907_v44 = vrot.slane %v8906_v39, 4 }
 0x5cd   : > { %v8986_v20 = vmax.f32 %v8856_v62, %v8884_v23  ;;  %v8913_v5 = vsel %vm2427_vm5, %v8431_v24, -inf  ;;  %v8920_v53 = vsel %vm2427_vm5, %v8430_v61, -inf  ;;  %v8927_v54 = vsel %vm2427_vm5, %v8432_v14, -inf }
 0x5ce   : > { %v8891_v12 = vmax.f32 %v8889_v21, %v8890_v7  ;;  %v8898_v41 = vmax.f32 %v8896_v48, %v8897_v3  ;;  %v8908_v28 = vmax.f32 %v8906_v39, %v8907_v44  ;;  %v8904_v55 = vrot.slane %v8903_v10, 1  ;;  %v14139_v39 = vld [vmem:[#allocation19_spill] sm:$0xff]  ;;  %v14140_v7 = vld [vmem:[#allocation18_spill] sm:$0xff] }
 0x5cf   : > { %v8914_v50 = vrot.slane %v8913_v5, 4  ;;  %v8921_v26 = vrot.slane %v8920_v53, 4  ;;  %v8928_v34 = vrot.slane %v8927_v54, 4  ;;  %v9018_v59 = vpack.c.bf16 %v8986_v20, %v8986_v20  ;;  %v14141_v20 = vld [vmem:[#allocation11_spill] sm:$0xff] }
 0x5d0   : > { %v8987_v51 = vmax.f32 %v8863_v16, %v8891_v12  ;;  %v13798_v63 = vmax.f32 %v8870_v40, %v8898_v41  ;;  %v8909_v15 = vrot.slane %v8908_v28, 2  ;;  %v13801_v62 = vmax.f32 %v13777_v0, %v8834_v60  ;;  %v14142_v40 = vld [vmem:[#allocation15_spill] sm:$0xff] }
 0x5d1   : > { %v8915_v52 = vmax.f32 %v8913_v5, %v8914_v50  ;;  %v8922_v61 = vmax.f32 %v8920_v53, %v8921_v26  ;;  %v13803_v23 = vmax.f32 %v8927_v54, %v8928_v34  ;;  %v9014_v37 = vpack.c.bf16 %v13779_v29, %v13779_v29 }
 0x5d2   : > { %v9019_v38 = vpack.c.bf16 %v8987_v51, %v8987_v51  ;;  %v8910_v21 = vmax.f32 %v8908_v28, %v8909_v15  ;;  %v8046_v48 = vadd.f32 %v10881_v1, %v13760_v6  ;;  %v13808_v24 = vmax.f32 %v8875_v35, %v8876_v2 }
 0x5d3   : > { %v8916_v16 = vrot.slane %v8915_v52, 2  ;;  %v8923_v14 = vrot.slane %v8922_v61, 2  ;;  %v8969_v3 = vmax.f32 %v14140_v7, %v14139_v39  ;;  %v13812_v0 = vmax.f32 %v8903_v10, %v8904_v55  ;;  %v14143_v10 = vld [vmem:[#allocation16_spill] sm:$0xff] }
 0x5d4   : > { %v9020_v60 = vpack.c.bf16 %v13798_v63, %v13798_v63  ;;  %v13816_v44 = vunpack.c.l.b16 %v9018_v59  ;;  %v8143_v5 = vadd.f32 %v14141_v20, %v8046_v48  ;;  %v8911_v53 = vrot.slane %v8910_v21, 1 }
 0x5d5   : > { %v8930_v54 = vrot.slane %v13803_v23, 2  ;;  %v8977_v6 = vmax.f32 %v13683_v30, %v13688_v8  ;;  %v9001_v35 = vpack.c.bf16 %v8969_v3, %v8969_v3  ;;  %v13822_v2 = vunpack.c.l.b16 %v9019_v38 }
 0x5d6   : > { %v8161_v1 = vmax.f32 %v8143_v5, 0.0  ;;  %v9147_v12 = vsel %vm4800_vm7, %v14143_v10, %v14142_v40  ;;  %v9154_v41 = vsel %vm4800_vm7, %v13686_v31, %v13643_v32  ;;  %v13830_v28 = vmax.f32 %v8915_v52, %v8916_v16 }
 0x5d7   : > { %v13832_v55 = vmax.f32 %v8922_v61, %v8923_v14  ;;  %v9009_v50 = vpack.c.bf16 %v8977_v6, %v8977_v6  ;;  %v9119_v26 = vunpack.c.l.b16 %v9001_v35  ;;  %v9148_v8 = vsel %vm4802_vm8, %v13614_v11, %v9147_v12 }
 0x5d8   : > { %v8433_v34 = vcombine.high %v8161_v1, %v8161_v1  ;;  %v8440_v30 = vrot.slane %v8161_v1, %v11488_v58  ;;  %v9155_v51 = vsel %vm4802_vm8, %v13696_v46, %v9154_v41  ;;  %v8912_v59 = vmax.f32 %v8910_v21, %v8911_v53 }
 0x5d9   : > { %v9127_v15 = vunpack.c.l.b16 %v9009_v50  ;;  %v9149_v32 = vsel %vm4804_vm9, %v13624_v49, %v9148_v8  ;;  %v9156_v31 = vsel %vm4804_vm9, %v13720_v47, %v9155_v51  ;;  %v8918_v11 = vrot.slane %v13830_v28, 1 }
 0x5da   : > { %v8447_v52 = vrot.slane %v8433_v34, %v11488_v58  ;;  %v8448_v61 = vcombine.high %v8440_v30, %v8440_v30  ;;  %v8934_v38 = vsel %vm2427_vm5, %v8440_v30, -inf  ;;  %v9150_v48 = vsel %vm4806_vm10, %v13675_v9, %v9149_v32 }
 0x5db   : > { %v8935_v16 = vrot.slane %v8934_v38, 4  ;;  %v9151_v46 = vsel %vm4808_vm11, %v9119_v26, %v9150_v48  ;;  %v9157_v21 = vsel %vm4806_vm10, %v13725_v13, %v9156_v31  ;;  %v8925_v9 = vrot.slane %v13832_v55, 1 }
 0x5dc   : > { %v8449_v49 = vcombine.high %v8447_v52, %v8447_v52  ;;  %v8941_v14 = vsel %vm2427_vm5, %v8448_v61, -inf  ;;  %v8948_v47 = vsel %vm2427_vm5, %v8447_v52, -inf  ;;  %v9158_v58 = vsel %vm4808_vm11, %v9127_v15, %v9157_v21 }
 0x5dd   : > { %v8936_v39 = vmax.f32 %v8934_v38, %v8935_v16  ;;  %v8942_v7 = vrot.slane %v8941_v14, 4  ;;  %v8949_v3 = vrot.slane %v8948_v47, 4  ;;  %v9173_v20 = vpack.c.b16 %v9158_v58, %v9151_v46 }
 0x5de   : > { %v8955_v5 = vsel %vm2427_vm5, %v8449_v49, -inf  ;;  %v8819_v53 = vmax.f32 %v13731_v42, %v8818_v36  ;;  %v8847_v13 = vmax.f32 %v13763_v33, %v8846_v43  ;;  %v14144_v10 = vmov 0  }
 0x5df   : > { %v8937_v6 = vrot.slane %v8936_v39, 2  ;;  %v8943_v35 = vmax.f32 %v8941_v14, %v8942_v7  ;;  %v8950_v1 = vmax.f32 %v8948_v47, %v8949_v3  ;;  %v8956_v40 = vrot.slane %v8955_v5, 4  ;;  %9370 = vmatmul.mubr.bf16.vlgmr.msra.gmra.mrb[96].mxu1 %v9173_v20  ;;  %9423 = vmatmul.mubr.bf16.vlgmr.msra.gmra.mrb[112].mxu0 %v9173_v20 }
 0x5e0   : > { %9379 = vmatprep.mubr.bf16.mxu1 %v14144_v10  ;;  %9432 = vmatprep.mubr.bf16.mxu0 %v14144_v10  ;;  %v8820_v12 = vrot.slane %v8819_v53, 1  ;;  %v8842_v41 = vmax.f32 %v13772_v57, %v8841_v45  ;;  %v8848_v42 = vrot.slane %v8847_v13, 1  ;;  %v8931_v36 = vmax.f32 %v13803_v23, %v8930_v54 }
 0x5e1   : > { %v8938_v50 = vmax.f32 %v8936_v39, %v8937_v6  ;;  %v8944_v33 = vrot.slane %v8943_v35, 2  ;;  %v8951_v43 = vrot.slane %v8950_v1, 2  ;;  %v8957_v26 = vmax.f32 %v8955_v5, %v8956_v40 }
 0x5e2   : > { %v8814_v34 = vmax.f32 %v13742_v17, %v8813_v19  ;;  %v8821_v30 = vmax.f32 %v8819_v53, %v8820_v12  ;;  %v8849_v8 = vmax.f32 %v8847_v13, %v8848_v42  ;;  %v8981_v51 = vmax.f32 %v13727_v4, %v13729_v27 }
 0x5e3   : > { %v8939_v15 = vrot.slane %v8938_v50, 1  ;;  %v8945_v32 = vmax.f32 %v8943_v35, %v8944_v33  ;;  %v8952_v31 = vmax.f32 %v8950_v1, %v8951_v43  ;;  %v8958_v57 = vrot.slane %v8957_v26, 2 }
 0x5e4   : > { %v8932_v45 = vrot.slane %v8931_v36, 1  ;;  %v8983_v23 = vmax.f32 %v13768_v25, %v13801_v62  ;;  %v8984_v54 = vmax.f32 %v8814_v34, %v8842_v41  ;;  %v8985_v52 = vmax.f32 %v8821_v30, %v8849_v8  ;;  %v11253_v34 = vld [vmem:[%s14090_s7 + $0x8] sm:$0xff]   ;;  %v11254_v30 = vld [vmem:[%s14090_s7 + $0x10] sm:$0xff]   ;;  %v11255_v8 = vld [vmem:[%s14090_s7 + $0x18] sm:$0xff]  }
 0x5e5   : > { %v8940_v61 = vmax.f32 %v8938_v50, %v8939_v15  ;;  %v8946_v38 = vrot.slane %v8945_v32, 1  ;;  %v8953_v48 = vrot.slane %v8952_v31, 1  ;;  %v8959_v16 = vmax.f32 %v8957_v26, %v8958_v57  ;;  %v11252_v26 = vld [vmem:[%s14090_s7] sm:$0xff]   ;;  %v11257_v15 = vld [vmem:[%s14090_s7 + $0x28] sm:$0xff]  }
 0x5e6   : > { %v8919_v17 = vmax.f32 %v13830_v28, %v8918_v11  ;;  %v8926_v19 = vmax.f32 %v13832_v55, %v8925_v9  ;;  %v8989_v4 = vmax.f32 %v13808_v24, %v13812_v0  ;;  %v9013_v27 = vpack.c.bf16 %v8981_v51, %v8981_v51  ;;  %11026 = vmatprep.subr.bf16.mxu1 %v11252_v26  ;;  %v11256_v51 = vld [vmem:[%s14090_s7 + $0x20] sm:$0xff]  }
 0x5e7   : > { %v8947_v46 = vmax.f32 %v8945_v32, %v8946_v38  ;;  %v8990_v21 = vmax.f32 %v8912_v59, %v8940_v61  ;;  %v8954_v49 = vmax.f32 %v8952_v31, %v8953_v48  ;;  %v8960_v14 = vrot.slane %v8959_v16, 1  ;;  %11027 = vmatpush3.bf16.msra.mxu1 %v11252_v26  ;;  %v11258_v32 = vld [vmem:[%s14090_s7 + $0x30] sm:$0xff]   ;;  %v11259_v31 = vld [vmem:[%s14090_s7 + $0x38] sm:$0xff]   ;;  %v14145_v57 = vld [vmem:[#allocation5_spill] sm:$0xff] }
 0x5e8   : > { %v8933_v47 = vmax.f32 %v8931_v36, %v8932_v45  ;;  %v9015_v25 = vpack.c.bf16 %v8983_v23, %v8983_v23  ;;  %v9016_v62 = vpack.c.bf16 %v8984_v54, %v8984_v54  ;;  %v9021_v58 = vpack.c.bf16 %v8989_v4, %v8989_v4  ;;  %11028 = vmatprep.subr.bf16.mxu1 %v11253_v34  ;;  %v9058_v54 = vld [vmem:[%s14089_s6] sm:$0xf] }
 0x5e9   : > { %v9022_v39 = vpack.c.bf16 %v8990_v21, %v8990_v21  ;;  %v8961_v7 = vmax.f32 %v8959_v16, %v8960_v14  ;;  %v8991_v3 = vmax.f32 %v8919_v17, %v8947_v46  ;;  %v8992_v20 = vmax.f32 %v8926_v19, %v8954_v49 }
 0x5ea   : > { %v9138_v28 = vunpack.c.l.b16 %v9020_v60  ;;  %v9017_v55 = vpack.c.bf16 %v8985_v52, %v8985_v52  ;;  %v9131_v11 = vunpack.c.l.b16 %v9013_v27  ;;  %v9132_v24 = vunpack.c.l.b16 %v9014_v37 }
 0x5eb   : > { %v8993_v0 = vmax.f32 %v8933_v47, %v8961_v7  ;;  %v9023_v59 = vpack.c.bf16 %v8991_v3, %v8991_v3  ;;  %v9024_v9 = vpack.c.bf16 %v8992_v20, %v8992_v20  ;;  %v9139_v5 = vunpack.c.l.b16 %v9021_v58  ;;  %11029 = vmatpush3.bf16.msra.mxu1 %v11253_v34 }
 0x5ec   : > { %v9133_v53 = vunpack.c.l.b16 %v9015_v25  ;;  %v9140_v13 = vunpack.c.l.b16 %v9022_v39  ;;  %v9159_v6 = vsel %vm9144_vm2, %v13736_v18, %v13734_v22  ;;  %v9166_v63 = vsel %vm9144_vm2, %v13822_v2, %v13816_v44  ;;  %11030 = vmatprep.subr.bf16.mxu1 %v11254_v30 }
 0x5ed   : > { %v9025_v60 = vpack.c.bf16 %v8993_v0, %v8993_v0  ;;  %v9134_v35 = vunpack.c.l.b16 %v9016_v62  ;;  %v9141_v1 = vunpack.c.l.b16 %v9023_v59  ;;  %v9160_v29 = vsel %vm4798_vm6, %v13739_v56, %v9159_v6 }
 0x5ee   : > { %v9135_v37 = vunpack.c.l.b16 %v9017_v55  ;;  %v9142_v40 = vunpack.c.l.b16 %v9024_v9  ;;  %v9161_v10 = vsel %vm4800_vm7, %v9131_v11, %v9160_v29  ;;  %v9167_v12 = vsel %vm4798_vm6, %v9138_v28, %v9166_v63 }
 0x5ef   : > { %v9143_v41 = vunpack.c.l.b16 %v9025_v60  ;;  %v9162_v42 = vsel %vm4802_vm8, %v9132_v24, %v9161_v10  ;;  %v9168_v22 = vsel %vm4800_vm7, %v9139_v5, %v9167_v12  ;;  %11031 = vmatpush3.bf16.msra.mxu1 %v11254_v30  ;;  %v9062_v45 = vsub.s32 0, %v14145_v57 }
 0x5f0   : > { %v9163_v18 = vsel %vm4804_vm9, %v9133_v53, %v9162_v42  ;;  %v9169_v44 = vsel %vm4802_vm8, %v9140_v13, %v9168_v22  ;;  %11032 = vmatprep.subr.bf16.mxu1 %v11255_v8  ;;  %v9070_v23 = vsub.s32 2, %v14145_v57  ;;  %v9066_v52 = vsub.s32 1, %v14145_v57 }
 0x5f1   : > { %v9164_v2 = vsel %vm4806_vm10, %v9134_v35, %v9163_v18  ;;  %v9170_v36 = vsel %vm4804_vm9, %v9141_v1, %v9169_v44  ;;  %v9074_v61 = vsub.s32 3, %v14145_v57  ;;  %v9063_v38 = vrot.slane %v9058_v54, %v9062_v45 }
 0x5f2   : > { %v9165_v56 = vsel %vm4808_vm11, %v9135_v37, %v9164_v2  ;;  %v9171_v50 = vsel %vm4806_vm10, %v9142_v40, %v9170_v36  ;;  %v9071_v48 = vrot.slane %v9058_v54, %v9070_v23  ;;  %v9067_v16 = vrot.slane %v9058_v54, %v9066_v52  ;;  %v13938_v23 = vld [vmem:[%s14091_s8] ss:$0 sm:$0xff] }
 0x5f3   : > { %v9172_v33 = vsel %vm4808_vm11, %v9143_v41, %v9171_v50  ;;  %11033 = vmatpush3.bf16.msra.mxu1 %v11255_v8  ;;  %v9075_v17 = vrot.slane %v9058_v54, %v9074_v61 }
 0x5f4   : > { %v9174_v43 = vpack.c.b16 %v9172_v33, %v9165_v56  ;;  %11034 = vmatprep.subr.bf16.mxu1 %v11256_v51 }
 0x5f6   : > { %9380 = vmatmul.mubr.bf16.gmra.mrb[100].mxu1 %v9174_v43  ;;  %9433 = vmatmul.mubr.bf16.gmra.mrb[116].mxu0 %v9174_v43 }
 0x5f7   : > { %11035 = vmatpush3.bf16.msra.mxu1 %v11256_v51 }
 0x5f8   : > { %11036 = vmatprep.subr.bf16.mxu1 %v11257_v15 }
 0x5fb   : > { %11037 = vmatpush3.bf16.msra.mxu1 %v11257_v15 }
 0x5fc   : > { %11038 = vmatprep.subr.bf16.mxu1 %v11258_v32 }
 0x5ff   : > { %11039 = vmatpush3.bf16.msra.mxu1 %v11258_v32 }
 0x600   : > { %11040 = vmatprep.subr.bf16.mxu1 %v11259_v31 }
 0x603   : > { %11041 = vmatpush3.bf16.msra.mxu1 %v11259_v31 }
 0x6b2   : > { %v9371_v19 = vpop.f32.mrb[96].mxu1  ;;  %v9424_v4 = vpop.f32.mrb[112].mxu0 }
 0x6b3   : > { %v9372_v27 = vadd.f32 %v9371_v19, %v9063_v38  ;;  %v9425_v46 = vadd.f32 %v9424_v4, %v9071_v48  ;;  %v9373_v21 = vpop.f32.mrb[97].mxu1  ;;  %v9426_v49 = vpop.f32.mrb[113].mxu0 }
 0x6b4   : > { %v9374_v14 = vadd.f32 %v9373_v21, %v9067_v16  ;;  %v9427_v47 = vadd.f32 %v9426_v49, %v9075_v17  ;;  %v9375_v25 = vpop.f32.mrb[98].mxu1  ;;  %v9428_v62 = vpop.f32.mrb[114].mxu0 }
 0x6b5   : > { %v9376_v58 = vadd.f32 %v9375_v25, %v9063_v38  ;;  %v9429_v39 = vadd.f32 %v9428_v62, %v9071_v48  ;;  %v9377_v7 = vpop.f32.mrb[99].mxu1  ;;  %v9430_v3 = vpop.f32.mrb[115].mxu0  ;;  %v9443_v55 = vmax.f32 %v9372_v27, 0.0  ;;  %v9445_v11 = vmax.f32 %v9425_v46, 0.0 }
 0x6b6   : > { %v9378_v20 = vadd.f32 %v9377_v7, %v9067_v16  ;;  %v9431_v28 = vadd.f32 %v9430_v3, %v9075_v17  ;;  %v9444_v59 = vmax.f32 %v9374_v14, 0.0  ;;  %v9446_v9 = vmax.f32 %v9427_v47, 0.0 }
 0x6b7   : > { %v9447_v24 = vmax.f32 %v9376_v58, 0.0  ;;  %v9449_v0 = vmax.f32 %v9429_v39, 0.0 }
 0x6b8   : > { %v9448_v5 = vmax.f32 %v9378_v20, 0.0  ;;  %v9450_v53 = vmax.f32 %v9431_v28, 0.0 }
 0x6b9   : > { %v9459_v13 = vpack.c.bf16 %v9447_v24, %v9443_v55  ;;  %v9467_v6 = vpack.c.bf16 %v9449_v0, %v9445_v11 }
 0x6ba   : > { %v9463_v63 = vpack.c.bf16 %v9448_v5, %v9444_v59  ;;  %v9471_v60 = vpack.c.bf16 %v9450_v53, %v9446_v9 }
 0x6bb   : > { %11042 = vmatprep.mubr.bf16.mxu1 %v9459_v13 }
 0x6c9   : > { %v9381_v35 = vpop.f32.mrb[100].mxu1  ;;  %v9434_v1 = vpop.f32.mrb[116].mxu0 }
 0x6ca   : > { %v9382_v29 = vadd.f32 %v9381_v35, %v9063_v38  ;;  %v9435_v37 = vadd.f32 %v9434_v1, %v9071_v48  ;;  %v9383_v40 = vpop.f32.mrb[101].mxu1  ;;  %v9436_v10 = vpop.f32.mrb[117].mxu0 }
 0x6cb   : > { %v9384_v12 = vadd.f32 %v9383_v40, %v9067_v16  ;;  %v9437_v41 = vadd.f32 %v9436_v10, %v9075_v17  ;;  %v9385_v42 = vpop.f32.mrb[102].mxu1  ;;  %v9438_v22 = vpop.f32.mrb[118].mxu0 }
 0x6cc   : > { %v9386_v18 = vadd.f32 %v9385_v42, %v9063_v38  ;;  %v9439_v44 = vadd.f32 %v9438_v22, %v9071_v48  ;;  %v9387_v2 = vpop.f32.mrb[103].mxu1  ;;  %v9440_v36 = vpop.f32.mrb[119].mxu0  ;;  %v9451_v33 = vmax.f32 %v9382_v29, 0.0  ;;  %v9453_v43 = vmax.f32 %v9435_v37, 0.0 }
 0x6cd   : > { %v9388_v56 = vadd.f32 %v9387_v2, %v9067_v16  ;;  %v9441_v50 = vadd.f32 %v9440_v36, %v9075_v17  ;;  %v9452_v30 = vmax.f32 %v9384_v12, 0.0  ;;  %v9454_v8 = vmax.f32 %v9437_v41, 0.0 }
 0x6ce   : > { %v9455_v26 = vmax.f32 %v9386_v18, 0.0  ;;  %v9457_v34 = vmax.f32 %v9439_v44, 0.0 }
 0x6cf   : > { %v9456_v51 = vmax.f32 %v9388_v56, 0.0  ;;  %v9458_v15 = vmax.f32 %v9441_v50, 0.0 }
 0x6d0   : > { %v9460_v32 = vpack.c.bf16 %v9455_v26, %v9451_v33  ;;  %v9468_v31 = vpack.c.bf16 %v9457_v34, %v9453_v43 }
 0x6d1   : > { %v9464_v57 = vpack.c.bf16 %v9456_v51, %v9452_v30  ;;  %v9472_v45 = vpack.c.bf16 %v9458_v15, %v9454_v8 }
 0x6d2   : > { %11043 = vmatmul.mubr.bf16.vlgmr.msra.gmra.mrb[104].mxu1 %v9460_v32 }
 0x6d3   : > { %11046 = vmatprep.mubr.bf16.mxu1 %v9463_v63 }
 0x6da   : > { %11047 = vmatmul.mubr.bf16.gmra.mrb[108].mxu1 %v9464_v57 }
 0x6db   : > { %11050 = vmatprep.mubr.bf16.mxu1 %v9467_v6 }
 0x6e2   : > { %11051 = vmatmul.mubr.bf16.gmra.mrb[112].mxu1 %v9468_v31 }
 0x6e3   : > { %11054 = vmatprep.mubr.bf16.mxu1 %v9471_v60 }
 0x6ea   : > { %11055 = vmatmul.mubr.bf16.gmra.mrb[116].mxu1 %v9472_v45 }
 0x7a5   : > { %v11044_v54 = vpop.f32.mrb[104].mxu1 }
 0x7a6   : > { %v13941_v52 = vadd.f32 %v11044_v54, %v13938_v23  ;;  %v9588_v61 = vpop.f32.mrb[105].mxu1 }
 0x7a7   : > { %v13944_v38 = vadd.f32 %v13938_v23, %v9588_v61  ;;  %v11045_v48 = vpop.f32.mrb[106].mxu1 }
 0x7a8   : > { %v9653_v16 = vand.u32 2147483647, %v13941_v52  ;;  %v13948_v17 = vadd.f32 %v11045_v48, %v13938_v23  ;;  %v9591_v19 = vpop.f32.mrb[107].mxu1  ;;  %vm9749_vm4 = vcmp.ge.f32.partialorder %v13941_v52, 0.0 }
 0x7a9   : > { %v9651_v4 = vand.u32 2147483647, %v13944_v38  ;;  %v13952_v27 = vadd.f32 %v13938_v23, %v9591_v19  ;;  %vm9747_vm5 = vcmp.ge.f32.partialorder %v13944_v38, 0.0 }
 0x7aa   : > { %v9669_v46 = vsub.f32 0.0, %v9653_v16  ;;  %v9654_v21 = vand.u32 2147483647, %v13948_v17  ;;  %vm9750_vm6 = vcmp.ge.f32.partialorder %v13948_v17, 0.0 }
 0x7ab   : > { %v9667_v49 = vsub.f32 0.0, %v9651_v4  ;;  %v9652_v14 = vand.u32 2147483647, %v13952_v27  ;;  %vm9748_vm7 = vcmp.ge.f32.partialorder %v13952_v27, 0.0 }
 0x7ac   : > { %v9687_v47 = vmul.f32 1.442695, %v9669_v46  ;;  %v9670_v25 = vsub.f32 0.0, %v9654_v21 }
 0x7ad   : > { %v9683_v62 = vmul.f32 1.442695, %v9667_v49  ;;  %v9668_v58 = vsub.f32 0.0, %v9652_v14  ;;  %v11048_v39 = vpop.f32.mrb[108].mxu1 }
 0x7ae   : > { %11260 = vpow2.f32 %v9687_v47  ;;  %v9689_v7 = vmul.f32 1.442695, %v9670_v25  ;;  %v13957_v3 = vadd.f32 %v11048_v39, %v13938_v23  ;;  %v9604_v20 = vpop.f32.mrb[109].mxu1 }
 0x7af   : > { %11262 = vpow2.f32 %v9683_v62  ;;  %v9685_v28 = vmul.f32 1.442695, %v9668_v58  ;;  %v13960_v55 = vadd.f32 %v13938_v23, %v9604_v20  ;;  %v11049_v11 = vpop.f32.mrb[110].mxu1 }
 0x7b0   : > { %11264 = vpow2.f32 %v9689_v7  ;;  %v9657_v24 = vand.u32 2147483647, %v13957_v3  ;;  %v13964_v0 = vadd.f32 %v11049_v11, %v13938_v23  ;;  %v9607_v59 = vpop.f32.mrb[111].mxu1  ;;  %vm9753_vm8 = vcmp.ge.f32.partialorder %v13957_v3, 0.0 }
 0x7b1   : > { %11266 = vpow2.f32 %v9685_v28  ;;  %v9655_v9 = vand.u32 2147483647, %v13960_v55  ;;  %v13968_v5 = vadd.f32 %v13938_v23, %v9607_v59  ;;  %vm9751_vm9 = vcmp.ge.f32.partialorder %v13960_v55, 0.0 }
 0x7b2   : > { %v9673_v53 = vsub.f32 0.0, %v9657_v24  ;;  %v9658_v13 = vand.u32 2147483647, %v13964_v0  ;;  %vm9754_vm10 = vcmp.ge.f32.partialorder %v13964_v0, 0.0 }
 0x7b3   : > { %v9671_v6 = vsub.f32 0.0, %v9655_v9  ;;  %v9656_v63 = vand.u32 2147483647, %v13968_v5  ;;  %vm9752_vm11 = vcmp.ge.f32.partialorder %v13968_v5, 0.0 }
 0x7b4   : > { %v9695_v60 = vmul.f32 1.442695, %v9673_v53  ;;  %v9674_v35 = vsub.f32 0.0, %v9658_v13 }
 0x7b5   : > { %v9691_v1 = vmul.f32 1.442695, %v9671_v6  ;;  %v9672_v29 = vsub.f32 0.0, %v9656_v63  ;;  %v11052_v37 = vpop.f32.mrb[112].mxu1 }
 0x7b6   : > { %11268 = vpow2.f32 %v9695_v60  ;;  %v9697_v40 = vmul.f32 1.442695, %v9674_v35  ;;  %v13973_v10 = vadd.f32 %v11052_v37, %v13938_v23  ;;  %v9620_v12 = vpop.f32.mrb[113].mxu1 }
 0x7b7   : > { %11270 = vpow2.f32 %v9691_v1  ;;  %v9693_v41 = vmul.f32 1.442695, %v9672_v29  ;;  %v13976_v42 = vadd.f32 %v13938_v23, %v9620_v12  ;;  %v11053_v22 = vpop.f32.mrb[114].mxu1 }
 0x7b8   : > { %v13978_v18 = vpop.eup %11260  ;;  %11272 = vpow2.f32 %v9697_v40  ;;  %v9661_v44 = vand.u32 2147483647, %v13973_v10  ;;  %v13982_v2 = vadd.f32 %v11053_v22, %v13938_v23  ;;  %v9623_v36 = vpop.f32.mrb[115].mxu1  ;;  %vm9757_vm13 = vcmp.ge.f32.partialorder %v13973_v10, 0.0 }
 0x7b9   : > { %v13984_v56 = vpop.eup %11262  ;;  %v9717_v50 = vadd.f32 1.0, %v13978_v18  ;;  %11274 = vpow2.f32 %v9693_v41  ;;  %v9659_v33 = vand.u32 2147483647, %v13976_v42  ;;  %v13996_v32 = vadd.f32 %v13938_v23, %v9623_v36 }
 0x7ba   : > { %v13988_v43 = vpop.eup %11264  ;;  %v9715_v26 = vadd.f32 1.0, %v13984_v56  ;;  %v9677_v34 = vsub.f32 0.0, %v9661_v44  ;;  %v9662_v30 = vand.u32 2147483647, %v13982_v2  ;;  %vm9758_vm14 = vcmp.ge.f32.partialorder %v13982_v2, 0.0 }
 0x7bb   : > { %v13992_v8 = vpop.eup %11266  ;;  %11276 = vrcp.f32 %v9717_v50  ;;  %v9718_v51 = vadd.f32 1.0, %v13988_v43  ;;  %v9675_v15 = vsub.f32 0.0, %v9659_v33  ;;  %v9660_v61 = vand.u32 2147483647, %v13996_v32 }
 0x7bc   : > { %11278 = vrcp.f32 %v9715_v26  ;;  %v9716_v31 = vadd.f32 1.0, %v13992_v8  ;;  %v9703_v57 = vmul.f32 1.442695, %v9677_v34  ;;  %v9678_v45 = vsub.f32 0.0, %v9662_v30 }
 0x7bd   : > { %11280 = vrcp.f32 %v9718_v51  ;;  %v9699_v54 = vmul.f32 1.442695, %v9675_v15  ;;  %v11056_v48 = vpop.f32.mrb[116].mxu1  ;;  %v9676_v46 = vsub.f32 0.0, %v9660_v61  ;;  %vm9755_vm15 = vcmp.ge.f32.partialorder %v13976_v42, 0.0 }
 0x7be   : > { %11282 = vrcp.f32 %v9716_v31  ;;  %v9705_v16 = vmul.f32 1.442695, %v9678_v45  ;;  %v14001_v19 = vadd.f32 %v11056_v48, %v13938_v23  ;;  %v9636_v4 = vpop.f32.mrb[117].mxu1  ;;  %vm9756_vm0 = vcmp.ge.f32.partialorder %v13996_v32, 0.0 }
 0x7bf   : > { %11284 = vpow2.f32 %v9703_v57  ;;  %v14005_v21 = vadd.f32 %v13938_v23, %v9636_v4  ;;  %v11057_v49 = vpop.f32.mrb[118].mxu1  ;;  %v9701_v53 = vmul.f32 1.442695, %v9676_v46 }
 0x7c0   : > { %v14007_v14 = vpop.eup %11268  ;;  %11286 = vpow2.f32 %v9699_v54  ;;  %v9665_v47 = vand.u32 2147483647, %v14001_v19  ;;  %v14011_v25 = vadd.f32 %v11057_v49, %v13938_v23  ;;  %v9639_v62 = vpop.f32.mrb[119].mxu1  ;;  %vm9761_vm1 = vcmp.ge.f32.partialorder %v14001_v19, 0.0 }
 0x7c1   : > { %v14013_v58 = vpop.eup %11270  ;;  %v9721_v39 = vadd.f32 1.0, %v14007_v14  ;;  %11288 = vpow2.f32 %v9705_v16  ;;  %v9663_v7 = vand.u32 2147483647, %v14005_v21  ;;  %v14031_v29 = vadd.f32 %v13938_v23, %v9639_v62 }
 0x7c2   : > { %v14017_v20 = vpop.eup %11272  ;;  %v9719_v28 = vadd.f32 1.0, %v14013_v58  ;;  %v9681_v11 = vsub.f32 0.0, %v9665_v47  ;;  %v9666_v24 = vand.u32 2147483647, %v14011_v25  ;;  %vm9762_vm3 = vcmp.ge.f32.partialorder %v14011_v25, 0.0 }
 0x7c3   : > { %v14021_v59 = vpop.eup %11274  ;;  %11290 = vrcp.f32 %v9721_v39  ;;  %v9722_v9 = vadd.f32 1.0, %v14017_v20  ;;  %v9679_v13 = vsub.f32 0.0, %v9663_v7  ;;  %v9664_v44 = vand.u32 2147483647, %v14031_v29 }
 0x7c4   : > { %11292 = vrcp.f32 %v9719_v28  ;;  %v9720_v6 = vadd.f32 1.0, %v14021_v59  ;;  %v9711_v63 = vmul.f32 1.442695, %v9681_v11  ;;  %v9682_v60 = vsub.f32 0.0, %v9666_v24 }
 0x7c5   : > { %v11277_v35 = vpop.eup %11276  ;;  %11294 = vrcp.f32 %v9722_v9  ;;  %v9707_v1 = vmul.f32 1.442695, %v9679_v13  ;;  %v9680_v33 = vsub.f32 0.0, %v9664_v44  ;;  %vm9759_vm12 = vcmp.ge.f32.partialorder %v14005_v21, 0.0 }
 0x7c6   : > { %v11279_v37 = vpop.eup %11278  ;;  %v9765_v40 = vmul.f32 %v11277_v35, %v13978_v18  ;;  %11296 = vrcp.f32 %v9720_v6  ;;  %v9713_v12 = vmul.f32 1.442695, %v9682_v60  ;;  %vm9760_vm2 = vcmp.ge.f32.partialorder %v14031_v29, 0.0 }
 0x7c7   : > { %v11281_v41 = vpop.eup %11280  ;;  %v9763_v22 = vmul.f32 %v11279_v37, %v13984_v56  ;;  %11298 = vpow2.f32 %v9701_v53  ;;  %v9709_v51 = vmul.f32 1.442695, %v9680_v33 }
 0x7c8   : > { %v11283_v36 = vpop.eup %11282  ;;  %v9766_v23 = vmul.f32 %v11281_v41, %v13988_v43  ;;  %11300 = vpow2.f32 %v9711_v63  ;;  %v9781_v26 = vsel %vm9749_vm4, %v11277_v35, %v9765_v40 }
 0x7c9   : > { %v11285_v18 = vpop.eup %11284  ;;  %v9764_v50 = vmul.f32 %v11283_v36, %v13992_v8  ;;  %11302 = vpow2.f32 %v9707_v1  ;;  %v9779_v34 = vsel %vm9747_vm5, %v11279_v37, %v9763_v22 }
 0x7ca   : > { %v14043_v56 = vpop.eup %11286  ;;  %v9782_v17 = vsel %vm9750_vm6, %v11281_v41, %v9766_v23  ;;  %v9725_v43 = vadd.f32 1.0, %v11285_v18  ;;  %11304 = vpow2.f32 %v9713_v12 }
 0x7cb   : > { %v11289_v27 = vpop.eup %11288  ;;  %v10547_v30 = vpack.c.bf16 %v9782_v17, %v9781_v26  ;;  %v9780_v8 = vsel %vm9748_vm7, %v11283_v36, %v9764_v50  ;;  %v9723_v52 = vadd.f32 1.0, %v14043_v56 }
 0x7cc   : > { %v10542_v15 = vpack.c.bf16 %v9780_v8, %v9779_v34  ;;  %11306 = vrcp.f32 %v9725_v43  ;;  %v9726_v31 = vadd.f32 1.0, %v11289_v27 }
 0x7cd   : > { %v11291_v57 = vpop.eup %11290  ;;  %10579 = vst [vmem:[%s14050_s12 + $0x8] sm:$0xff] %v10547_v30  }
 0x7ce   : > { %v11293_v45 = vpop.eup %11292  ;;  %10543 = vst [vmem:[%s14050_s12] sm:$0xff] %v10542_v15   ;;  %v9769_v54 = vmul.f32 %v11291_v57, %v14007_v14  ;;  %11308 = vrcp.f32 %v9726_v31 }
 0x7cf   : > { %v11295_v61 = vpop.eup %11294  ;;  %v9767_v48 = vmul.f32 %v11293_v45, %v14013_v58  ;;  %11310 = vpow2.f32 %v9709_v51 }
 0x7d0   : > { %v11297_v38 = vpop.eup %11296  ;;  %v9770_v16 = vmul.f32 %v11295_v61, %v14017_v20  ;;  %11312 = vrcp.f32 %v9723_v52  ;;  %v9785_v14 = vsel %vm9753_vm8, %v11291_v57, %v9769_v54 }
 0x7d1   : > { %v11299_v4 = vpop.eup %11298  ;;  %v9768_v46 = vmul.f32 %v11297_v38, %v14021_v59  ;;  %v9783_v39 = vsel %vm9751_vm9, %v11293_v45, %v9767_v48 }
 0x7d2   : > { %v11301_v49 = vpop.eup %11300  ;;  %v9786_v47 = vsel %vm9754_vm10, %v11295_v61, %v9770_v16  ;;  %v9724_v62 = vadd.f32 1.0, %v11299_v4 }
 0x7d3   : > { %v11303_v58 = vpop.eup %11302  ;;  %v10557_v7 = vpack.c.bf16 %v9786_v47, %v9785_v14  ;;  %v9784_v20 = vsel %vm9752_vm11, %v11297_v38, %v9768_v46  ;;  %v9729_v28 = vadd.f32 1.0, %v11301_v49 }
 0x7d4   : > { %v11305_v3 = vpop.eup %11304  ;;  %v10552_v11 = vpack.c.bf16 %v9784_v20, %v9783_v39  ;;  %11314 = vrcp.f32 %v9724_v62  ;;  %v9727_v55 = vadd.f32 1.0, %v11303_v58 }
 0x7d5   : > { %10581 = vst [vmem:[%s14050_s12 + $0x18] sm:$0xff] %v10557_v7   ;;  %11316 = vrcp.f32 %v9729_v28  ;;  %v9730_v0 = vadd.f32 1.0, %v11305_v3 }
 0x7d6   : > { %v11307_v24 = vpop.eup %11306  ;;  %10580 = vst [vmem:[%s14050_s12 + $0x10] sm:$0xff] %v10552_v11  }
 0x7d7   : > { %v9773_v59 = vmul.f32 %v11307_v24, %v11285_v18  ;;  %11318 = vrcp.f32 %v9730_v0 }
 0x7d8   : > { %v11309_v9 = vpop.eup %11308  ;;  %11320 = vrcp.f32 %v9727_v55 }
 0x7d9   : > { %v11311_v5 = vpop.eup %11310  ;;  %v9774_v53 = vmul.f32 %v11309_v9, %v11289_v27  ;;  %v9789_v63 = vsel %vm9757_vm13, %v11307_v24, %v9773_v59 }
 0x7da   : > { %v11313_v13 = vpop.eup %11312  ;;  %v9728_v6 = vadd.f32 1.0, %v11311_v5 }
 0x7db   : > { %v9790_v60 = vsel %vm9758_vm14, %v11309_v9, %v9774_v53  ;;  %v9771_v1 = vmul.f32 %v11313_v13, %v14043_v56 }
 0x7dc   : > { %v10567_v35 = vpack.c.bf16 %v9790_v60, %v9789_v63  ;;  %11322 = vrcp.f32 %v9728_v6 }
 0x7dd   : > { %v9787_v2 = vsel %vm9755_vm15, %v11313_v13, %v9771_v1 }
 0x7de   : > { %v11315_v37 = vpop.eup %11314  ;;  %10583 = vst [vmem:[%s14050_s12 + $0x28] sm:$0xff] %v10567_v35  }
 0x7df   : > { %v11317_v40 = vpop.eup %11316  ;;  %v9772_v12 = vmul.f32 %v11315_v37, %v11299_v4 }
 0x7e0   : > { %v9777_v10 = vmul.f32 %v11317_v40, %v11301_v49 }
 0x7e1   : > { %v11319_v41 = vpop.eup %11318  ;;  %v9788_v22 = vsel %vm9756_vm0, %v11315_v37, %v9772_v12 }
 0x7e2   : > { %v11321_v44 = vpop.eup %11320  ;;  %v10562_v36 = vpack.c.bf16 %v9788_v22, %v9787_v2  ;;  %v9778_v23 = vmul.f32 %v11319_v41, %v11305_v3  ;;  %v9793_v18 = vsel %vm9761_vm1, %v11317_v40, %v9777_v10 }
 0x7e3   : > { %v9775_v33 = vmul.f32 %v11321_v44, %v11303_v58 }
 0x7e4   : > { %10582 = vst [vmem:[%s14050_s12 + $0x20] sm:$0xff] %v10562_v36   ;;  %v9794_v50 = vsel %vm9762_vm3, %v11319_v41, %v9778_v23 }
 0x7e5   : > { %v10577_v42 = vpack.c.bf16 %v9794_v50, %v9793_v18  ;;  %v9791_v26 = vsel %vm9759_vm12, %v11321_v44, %v9775_v33 }
 0x7e6   : > { %v11323_v56 = vpop.eup %11322 }
 0x7e7   : > { %10585 = vst [vmem:[%s14050_s12 + $0x38] sm:$0xff] %v10577_v42   ;;  %v9776_v32 = vmul.f32 %v11323_v56, %v11311_v5 }
 0x7e9   : > { %v9792_v17 = vsel %vm9760_vm2, %v11323_v56, %v9776_v32 }
 0x7ea   : > { %v10572_v43 = vpack.c.bf16 %v9792_v17, %v9791_v26 }
 0x7ec   : > { %10584 = vst [vmem:[%s14050_s12 + $0x30] sm:$0xff] %v10572_v43  }
 0x7ed PF: > { %s19_s30 = sadd.s32 1, %s11336_s30  }
 0x7ee   : > { %p16_p5 = scmp.ge.s32.totalorder %s19_s30, 4  }
 0x7f0   :  { %18 = sbr.rel (!%p16_p5) target bundleno = 1 (0x1), region = 93 }

</bundles_post_ra>
